<compile_context>
chip_gen: v7x
topology: tpu7x:2x2x1
jax: 0.10.0
libtpu: 0.0.40
codegen_flags: <defaults>
</compile_context>

<pallas_src>
import functools
import math

import jax
import jax.numpy as jnp
from jax import lax
from jax.experimental import pallas as pl
from jax.experimental.pallas import tpu as pltpu


# ----------------------------- Pallas kernel ------------------------------- #

def nerf_kernel(xin_ref, w_xyz1_ref, w_sq_ref, w_skip_ref, w_dir1_ref,
                b128_ref, w_head_ref, b_head_ref, w_dir2_ref, w_rgb1_ref,
                w_rgb2_ref, b_tail_ref, out_ref, skip_ref, dir_ref):
    bf16 = jnp.bfloat16
    xyz_pad, width = w_xyz1_ref.shape

    def mm(a, w):  # bf16 x bf16 matmul, f32 accumulation on the MXU
        return jnp.dot(a, w, preferred_element_type=jnp.float32)

    def layer(a, w, b):
        # Linear + ReLU, result immediately narrowed to bf16 (next op is a matmul)
        return jnp.maximum(mm(a, w) + b, 0.0).astype(bf16)

    pos = xin_ref[:, :xyz_pad]        # (tm, 128) bf16, lanes [in_xyz:128] are zero
    dirs = xin_ref[:, xyz_pad:]       # (tm, 128) bf16, lanes [in_dir:128] are zero

    # xyz_encoding_1..4
    x = layer(pos, w_xyz1_ref[...], b128_ref[0])
    x = layer(x, w_sq_ref[0], b128_ref[1])
    x = layer(x, w_sq_ref[1], b128_ref[2])
    x = layer(x, w_sq_ref[2], b128_ref[3])

    # xyz_encoding_5: torch.cat([input_xyz, x], -1) -> K-fused single matmul
    # (lane-packed LHS scratch, zero-row-padded weight; accumulation stays in MXU)
    skip_ref[:, :width] = x
    skip_ref[:, width:] = pos
    x = layer(skip_ref[...], w_skip_ref[...], b128_ref[4])

    # xyz_encoding_6..8
    x = layer(x, w_sq_ref[3], b128_ref[5])
    x = layer(x, w_sq_ref[4], b128_ref[6])
    x = layer(x, w_sq_ref[5], b128_ref[7])

    # xyz_encoding_final (W lanes) fused with static_sigma pre-activation (1 lane)
    head = mm(x, w_head_ref[...]) + b_head_ref[...]          # (tm, W+1) f32
    s_lin = head[:, width:width + 1]
    # numerically stable softplus
    sigma = jnp.maximum(s_lin, 0.0) + jnp.log1p(jnp.exp(-jnp.abs(s_lin)))

    # dir_encoding layer 1: torch.cat([feat, dir], -1) -> K-fused single matmul
    dir_ref[:, :width] = head[:, :width].astype(bf16)        # xyz_encoding_final
    dir_ref[:, width:] = dirs
    h = layer(dir_ref[...], w_dir1_ref[...], b128_ref[8])
    # dir_encoding layer 2, static_rgb layer 1
    h = layer(h, w_dir2_ref[...], b_tail_ref[0])
    h = layer(h, w_rgb1_ref[...], b_tail_ref[1])
    # static_rgb layer 2: (W//2 -> 3), padded to 4 output lanes (lane 3 = 0)
    rgb4 = mm(h, w_rgb2_ref[...]) + b_tail_ref[2][:, :4]     # (tm, 4) f32

    # place sigma into lane 3 (replaces torch.cat([rgb, sigma], -1))
    lane = lax.broadcasted_iota(jnp.int32, rgb4.shape, 1)
    out_ref[...] = jnp.where(lane == 3, sigma, rgb4).astype(out_ref.dtype)


# ------------------------- Parameter init / packing ------------------------- #

def init_params(key, in_xyz, in_dir, width):
    """PyTorch-style uniform(-1/sqrt(fan_in)) init.  Weights stored as (in, out)
    so y = x @ W + b.  Weights are snapped to bf16-representable values so the
    bf16 kernel and the f32 reference share exactly the same parameters."""
    def lin(k, fan_in, fan_out):
        kw, kb = jax.random.split(k)
        bound = 1.0 / math.sqrt(fan_in)
        w = jax.random.uniform(kw, (fan_in, fan_out), jnp.float32, -bound, bound)
        b = jax.random.uniform(kb, (1, fan_out), jnp.float32, -bound, bound)
        return w.astype(jnp.bfloat16).astype(jnp.float32), b

    keys = jax.random.split(key, 16)
    p = {}
    p["xyz_w1"], p["xyz_b1"] = lin(keys[0], in_xyz, width)
    for i in range(2, 9):
        fan_in = width + in_xyz if i == 5 else width     # skips=[4] -> layer 5
        p[f"xyz_w{i}"], p[f"xyz_b{i}"] = lin(keys[i - 1], fan_in, width)
    p["final_w"], p["final_b"] = lin(keys[8], width, width)
    p["sigma_w"], p["sigma_b"] = lin(keys[9], width, 1)
    p["dir_w1"], p["dir_b1"] = lin(keys[10], width + in_dir, width)
    p["dir_w2"], p["dir_b2"] = lin(keys[11], width, width // 2)
    p["rgb_w1"], p["rgb_b1"] = lin(keys[12], width // 2, width // 2)
    p["rgb_w2"], p["rgb_b2"] = lin(keys[13], width // 2, 3)
    return p


def _round_up(n, m):
    return ((n + m - 1) // m) * m


def pack_params(params, in_xyz, in_dir, width):
    """Pack the 26 logical tensors into ~11 kernel operands.  Called ONCE
    (hoisted out of the forward path).  Matmul weights bf16, biases f32.
    The skip / dir concat weights are kept unsplit and zero-row-padded so the
    kernel can do a single K-fused matmul against a lane-packed LHS."""
    bf = lambda a: a.astype(jnp.bfloat16)
    half = width // 2
    xyz_pad = _round_up(in_xyz, 128)
    dir_pad = _round_up(in_dir, 128)

    # layer 1: pos is lane-padded to xyz_pad -> pad weight rows with zeros
    w_xyz1 = jnp.zeros((xyz_pad, width), jnp.float32).at[:in_xyz].set(params["xyz_w1"])

    # layer 5 (skip): LHS is [x (W lanes) | pos (xyz_pad lanes)]
    w5 = params["xyz_w5"]                                  # (in_xyz + W, W)
    w_skip = (jnp.zeros((width + xyz_pad, width), jnp.float32)
              .at[:width].set(w5[in_xyz:])                 # x part
              .at[width:width + in_xyz].set(w5[:in_xyz]))  # xyz part

    # dir layer 1: LHS is [feat (W lanes) | dirs (dir_pad lanes)]
    wd1 = params["dir_w1"]                                 # (W + in_dir, W)
    w_dir1 = (jnp.zeros((width + dir_pad, width), jnp.float32)
              .at[:width].set(wd1[:width])                 # feat part
              .at[width:width + in_dir].set(wd1[width:]))  # dir part

    w_sq = jnp.stack([params[f"xyz_w{i}"] for i in (2, 3, 4, 6, 7, 8)], axis=0)
    b128 = jnp.stack([params[f"xyz_b{i}"] for i in range(1, 9)]
                     + [params["dir_b1"]], axis=0)                            # (9, 1, W)
    w_head = jnp.concatenate([params["final_w"], params["sigma_w"]], axis=1)  # (W, W+1)
    b_head = jnp.concatenate([params["final_b"], params["sigma_b"]], axis=1)  # (1, W+1)
    w_rgb2 = jnp.pad(params["rgb_w2"], ((0, 0), (0, 1)))                      # (W//2, 4)
    b_tail = jnp.stack([params["dir_b2"], params["rgb_b1"],
                        jnp.pad(params["rgb_b2"], ((0, 0), (0, half - 3)))],
                       axis=0)                                                # (3, 1, W//2)

    return dict(w_xyz1=bf(w_xyz1), w_sq=bf(w_sq), w_skip=bf(w_skip),
                w_dir1=bf(w_dir1), b128=b128, w_head=bf(w_head), b_head=b_head,
                w_dir2=bf(params["dir_w2"]), w_rgb1=bf(params["rgb_w1"]),
                w_rgb2=bf(w_rgb2), b_tail=b_tail)


# ------------------------------ Host wrapper -------------------------------- #

def _vmem_limit_bytes(tm, width, lanes_in):
    """Real footprint (x2 safety), clamped to [16 MiB, 60 MiB] — fits v7x's 64 MiB."""
    inputs = 2 * tm * lanes_in * 2          # bf16 xin, double-buffered
    output = 2 * tm * 128 * 4               # f32 out tile (lane-padded), double-buffered
    weights = 2 * (1 << 20)                 # packed weights (<0.5 MiB) x 2 buffers + slack
    scratch = 2 * tm * 2 * width * 2        # lane-packed bf16 LHS scratch buffers
    temps = 12 * tm * width * 4             # activation temporaries (compiler-managed)
    est = inputs + output + weights + scratch + temps
    return int(max(16 << 20, min(60 << 20, 2 * est)))


@functools.partial(jax.jit, static_argnames=("tm",))
def full_nerf_forward(input_xyz, input_dir, packed, tm=1024):
    assert tm % 128 == 0, "row tile must be a multiple of 128"
    lead = input_xyz.shape[:-1]
    in_xyz = input_xyz.shape[-1]
    in_dir = input_dir.shape[-1]
    width = packed["w_head"].shape[0]
    xyz_pad = packed["w_xyz1"].shape[0]
    dir_pad = packed["w_dir1"].shape[0] - width
    lanes_in = xyz_pad + dir_pad

    M = math.prod(lead)
    n_blocks = pl.cdiv(M, tm)
    M_pad = n_blocks * tm

    # lane-aligned bf16 input packing: pos in lanes [0:xyz_pad), dirs at [xyz_pad:)
    pos = jnp.pad(input_xyz.reshape(M, in_xyz),
                  ((0, M_pad - M), (0, xyz_pad - in_xyz)))
    dirs = jnp.pad(input_dir.reshape(M, in_dir),
                   ((0, M_pad - M), (0, dir_pad - in_dir)))
    xin = jnp.concatenate([pos, dirs], axis=-1).astype(jnp.bfloat16)

    names = ("w_xyz1", "w_sq", "w_skip", "w_dir1", "b128", "w_head",
             "b_head", "w_dir2", "w_rgb1", "w_rgb2", "b_tail")
    ops = [packed[k] for k in names]

    def full_spec(a):
        # whole (small) weight tensor resident in VMEM; constant index map ->
        # no re-DMA across grid steps
        nd = a.ndim
        return pl.BlockSpec(a.shape, lambda i, _nd=nd: (0,) * _nd)

    in_specs = ([pl.BlockSpec((tm, lanes_in), lambda i: (i, 0))]
                + [full_spec(a) for a in ops])
    out_spec = pl.BlockSpec((tm, 4), lambda i: (i, 0))

    out = pl.pallas_call(
        nerf_kernel,
        out_shape=jax.ShapeDtypeStruct((M_pad, 4), jnp.float32),
        grid_spec=pltpu.PrefetchScalarGridSpec(
            num_scalar_prefetch=0,
            grid=(n_blocks,),
            in_specs=in_specs,
            out_specs=out_spec,
            scratch_shapes=[
                pltpu.VMEM((tm, width + xyz_pad), jnp.bfloat16),  # [x | pos]
                pltpu.VMEM((tm, width + dir_pad), jnp.bfloat16),  # [feat | dirs]
            ],
        ),
        compiler_params=pltpu.CompilerParams(
            dimension_semantics=("parallel",),
            vmem_limit_bytes=_vmem_limit_bytes(tm, width, lanes_in),
        ),
    )(xin, *ops)

    return out[:M].reshape(lead + (4,))


# ------------------------------ JAX reference ------------------------------- #

def reference_forward(input_xyz, input_dir, params):
    relu = lambda v: jnp.maximum(v, 0.0)
    x = input_xyz
    for i in range(1, 9):
        if i == 5:  # skips=[4]: torch.cat([input_xyz, xyz_], -1) before layer 5
            x = jnp.concatenate([input_xyz, x], axis=-1)
        x = relu(x @ params[f"xyz_w{i}"] + params[f"xyz_b{i}"])
    sigma = jax.nn.softplus(x @ params["sigma_w"] + params["sigma_b"])
    feat = x @ params["final_w"] + params["final_b"]
    h = jnp.concatenate([feat, input_dir], axis=-1)
    h = relu(h @ params["dir_w1"] + params["dir_b1"])
    h = relu(h @ params["dir_w2"] + params["dir_b2"])
    h = relu(h @ params["rgb_w1"] + params["rgb_b1"])
    rgb = h @ params["rgb_w2"] + params["rgb_b2"]
    return jnp.concatenate([rgb, sigma], axis=-1)


# --------------------------------- main ------------------------------------- #

if __name__ == "__main__":
    # Small NeRF-like shapes: (H, W, N_sample, C); M = 5120 rows.
    # tm=640 -> 8 even grid steps (balanced on v7x's 2 cores, zero pad rows).
    H_IMG, W_IMG, N_SAMPLE = 16, 16, 20
    IN_XYZ, IN_DIR, WIDTH = 63, 27, 128

    key = jax.random.PRNGKey(0)
    k_xyz, k_dir, k_par = jax.random.split(key, 3)
    input_xyz = jax.random.normal(k_xyz, (H_IMG, W_IMG, N_SAMPLE, IN_XYZ), jnp.float32)
    input_dir = jax.random.normal(k_dir, (H_IMG, W_IMG, N_SAMPLE, IN_DIR), jnp.float32)
    # the kernel feeds the MXU bf16 operands; snap the encodings so the f32
    # reference sees exactly the same inputs
    input_xyz = input_xyz.astype(jnp.bfloat16).astype(jnp.float32)
    input_dir = input_dir.astype(jnp.bfloat16).astype(jnp.float32)

    params = init_params(k_par, IN_XYZ, IN_DIR, WIDTH)
    packed = pack_params(params, IN_XYZ, IN_DIR, WIDTH)   # hoisted: packed once

    out = full_nerf_forward(input_xyz, input_dir, packed, tm=640)
    out = jax.block_until_ready(out)
    assert out.shape == (H_IMG, W_IMG, N_SAMPLE, 4)

    ref = reference_forward(input_xyz, input_dir, params)
    max_err = float(jnp.max(jnp.abs(out - ref)))
    # bf16 matmul operands with f32 accumulation -> loosened tolerance vs f32 ref
    assert jnp.allclose(out, ref, rtol=2e-2, atol=2e-2), \
        f"mismatch vs JAX reference (max |err| = {max_err})"
    print("KERNEL_OK")
</pallas_src>

<mosaic_0001>
module attributes {stable_mosaic.version = 11 : i64} {
  func.func @nerf_kernel(%arg0: i32, %arg1: memref<640x256xbf16, #tpu.memory_space<vmem>>, %arg2: memref<128x128xbf16, #tpu.memory_space<vmem>>, %arg3: memref<6x128x128xbf16, #tpu.memory_space<vmem>>, %arg4: memref<256x128xbf16, #tpu.memory_space<vmem>>, %arg5: memref<256x128xbf16, #tpu.memory_space<vmem>>, %arg6: memref<9x1x128xf32, #tpu.memory_space<vmem>>, %arg7: memref<128x129xbf16, #tpu.memory_space<vmem>>, %arg8: memref<1x129xf32, #tpu.memory_space<vmem>>, %arg9: memref<128x64xbf16, #tpu.memory_space<vmem>>, %arg10: memref<64x64xbf16, #tpu.memory_space<vmem>>, %arg11: memref<64x4xbf16, #tpu.memory_space<vmem>>, %arg12: memref<3x1x64xf32, #tpu.memory_space<vmem>>, %arg13: memref<640x4xf32, #tpu.memory_space<vmem>>, %arg14: memref<640x256xbf16, #tpu.memory_space<vmem>>, %arg15: memref<640x256xbf16, #tpu.memory_space<vmem>>) attributes {dimension_semantics = [#tpu.dimension_semantics<parallel>], iteration_bounds = array<i64: 8>, scalar_prefetch = 0 : i64, scratch_operands = 2 : i64, tpu.core_type = #tpu.core_type<tc>, window_params = [{transform_indices = @transform_0, window_bounds = array<i64: 640, 256>}, {pipeline_mode = #tpu.pipeline_mode<synchronous>, transform_indices = @transform_1, window_bounds = array<i64: 128, 128>}, {pipeline_mode = #tpu.pipeline_mode<synchronous>, transform_indices = @transform_2, window_bounds = array<i64: 6, 128, 128>}, {pipeline_mode = #tpu.pipeline_mode<synchronous>, transform_indices = @transform_3, window_bounds = array<i64: 256, 128>}, {pipeline_mode = #tpu.pipeline_mode<synchronous>, transform_indices = @transform_4, window_bounds = array<i64: 256, 128>}, {pipeline_mode = #tpu.pipeline_mode<synchronous>, transform_indices = @transform_5, window_bounds = array<i64: 9, 1, 128>}, {pipeline_mode = #tpu.pipeline_mode<synchronous>, transform_indices = @transform_6, window_bounds = array<i64: 128, 129>}, {pipeline_mode = #tpu.pipeline_mode<synchronous>, transform_indices = @transform_7, window_bounds = array<i64: 1, 129>}, {pipeline_mode = #tpu.pipeline_mode<synchronous>, transform_indices = @transform_8, window_bounds = array<i64: 128, 64>}, {pipeline_mode = #tpu.pipeline_mode<synchronous>, transform_indices = @transform_9, window_bounds = array<i64: 64, 64>}, {pipeline_mode = #tpu.pipeline_mode<synchronous>, transform_indices = @transform_10, window_bounds = array<i64: 64, 4>}, {pipeline_mode = #tpu.pipeline_mode<synchronous>, transform_indices = @transform_11, window_bounds = array<i64: 3, 1, 64>}, {transform_indices = @transform_12, window_bounds = array<i64: 640, 4>}]} {
    %c0 = arith.constant 0 : index
    %c0_0 = arith.constant 0 : index
    %0 = vector.load %arg1[%c0, %c0_0] : memref<640x256xbf16, #tpu.memory_space<vmem>>, vector<640x128xbf16>
    %c0_1 = arith.constant 0 : index
    %c128 = arith.constant 128 : index
    %1 = vector.load %arg1[%c0_1, %c128] : memref<640x256xbf16, #tpu.memory_space<vmem>>, vector<640x128xbf16>
    %c0_2 = arith.constant 0 : index
    %c0_3 = arith.constant 0 : index
    %2 = vector.load %arg2[%c0_2, %c0_3] : memref<128x128xbf16, #tpu.memory_space<vmem>>, vector<128x128xbf16>
    %c0_4 = arith.constant 0 : index
    %c0_5 = arith.constant 0 : index
    %c0_6 = arith.constant 0 : index
    %3 = vector.load %arg6[%c0_4, %c0_5, %c0_6] : memref<9x1x128xf32, #tpu.memory_space<vmem>>, vector<1x1x128xf32>
    %4 = vector.shape_cast %3 : vector<1x1x128xf32> to vector<1x128xf32>
    %cst = arith.constant dense<0.000000e+00> : vector<640x128xf32>
    %5 = tpu.matmul %0, %2, %cst {dimension_numbers = #tpu.dot_dimension_numbers<[1], [0], [0], [1], [0, 0, 1, 1], [], []>} : vector<640x128xbf16>, vector<128x128xbf16>, vector<640x128xf32> -> vector<640x128xf32>
    %6 = vector.broadcast %4 : vector<1x128xf32> to vector<640x128xf32>
    %7 = arith.addf %5, %6 : vector<640x128xf32>
    %cst_7 = arith.constant 0.000000e+00 : f32
    %8 = vector.broadcast %cst_7 : f32 to vector<640x128xf32>
    %9 = arith.maximumf %7, %8 : vector<640x128xf32>
    %10 = arith.truncf %9 : vector<640x128xf32> to vector<640x128xbf16>
    %c0_8 = arith.constant 0 : index
    %c0_9 = arith.constant 0 : index
    %c0_10 = arith.constant 0 : index
    %11 = vector.load %arg3[%c0_8, %c0_9, %c0_10] : memref<6x128x128xbf16, #tpu.memory_space<vmem>>, vector<1x128x128xbf16>
    %12 = vector.shape_cast %11 : vector<1x128x128xbf16> to vector<128x128xbf16>
    %c1 = arith.constant 1 : index
    %c0_11 = arith.constant 0 : index
    %c0_12 = arith.constant 0 : index
    %13 = vector.load %arg6[%c1, %c0_11, %c0_12] : memref<9x1x128xf32, #tpu.memory_space<vmem>>, vector<1x1x128xf32>
    %14 = vector.shape_cast %13 : vector<1x1x128xf32> to vector<1x128xf32>
    %cst_13 = arith.constant dense<0.000000e+00> : vector<640x128xf32>
    %15 = tpu.matmul %10, %12, %cst_13 {dimension_numbers = #tpu.dot_dimension_numbers<[1], [0], [0], [1], [0, 0, 1, 1], [], []>} : vector<640x128xbf16>, vector<128x128xbf16>, vector<640x128xf32> -> vector<640x128xf32>
    %16 = vector.broadcast %14 : vector<1x128xf32> to vector<640x128xf32>
    %17 = arith.addf %15, %16 : vector<640x128xf32>
    %cst_14 = arith.constant 0.000000e+00 : f32
    %18 = vector.broadcast %cst_14 : f32 to vector<640x128xf32>
    %19 = arith.maximumf %17, %18 : vector<640x128xf32>
    %20 = arith.truncf %19 : vector<640x128xf32> to vector<640x128xbf16>
    %c1_15 = arith.constant 1 : index
    %c0_16 = arith.constant 0 : index
    %c0_17 = arith.constant 0 : index
    %21 = vector.load %arg3[%c1_15, %c0_16, %c0_17] : memref<6x128x128xbf16, #tpu.memory_space<vmem>>, vector<1x128x128xbf16>
    %22 = vector.shape_cast %21 : vector<1x128x128xbf16> to vector<128x128xbf16>
    %c2 = arith.constant 2 : index
    %c0_18 = arith.constant 0 : index
    %c0_19 = arith.constant 0 : index
    %23 = vector.load %arg6[%c2, %c0_18, %c0_19] : memref<9x1x128xf32, #tpu.memory_space<vmem>>, vector<1x1x128xf32>
    %24 = vector.shape_cast %23 : vector<1x1x128xf32> to vector<1x128xf32>
    %cst_20 = arith.constant dense<0.000000e+00> : vector<640x128xf32>
    %25 = tpu.matmul %20, %22, %cst_20 {dimension_numbers = #tpu.dot_dimension_numbers<[1], [0], [0], [1], [0, 0, 1, 1], [], []>} : vector<640x128xbf16>, vector<128x128xbf16>, vector<640x128xf32> -> vector<640x128xf32>
    %26 = vector.broadcast %24 : vector<1x128xf32> to vector<640x128xf32>
    %27 = arith.addf %25, %26 : vector<640x128xf32>
    %cst_21 = arith.constant 0.000000e+00 : f32
    %28 = vector.broadcast %cst_21 : f32 to vector<640x128xf32>
    %29 = arith.maximumf %27, %28 : vector<640x128xf32>
    %30 = arith.truncf %29 : vector<640x128xf32> to vector<640x128xbf16>
    %c2_22 = arith.constant 2 : index
    %c0_23 = arith.constant 0 : index
    %c0_24 = arith.constant 0 : index
    %31 = vector.load %arg3[%c2_22, %c0_23, %c0_24] : memref<6x128x128xbf16, #tpu.memory_space<vmem>>, vector<1x128x128xbf16>
    %32 = vector.shape_cast %31 : vector<1x128x128xbf16> to vector<128x128xbf16>
    %c3 = arith.constant 3 : index
    %c0_25 = arith.constant 0 : index
    %c0_26 = arith.constant 0 : index
    %33 = vector.load %arg6[%c3, %c0_25, %c0_26] : memref<9x1x128xf32, #tpu.memory_space<vmem>>, vector<1x1x128xf32>
    %34 = vector.shape_cast %33 : vector<1x1x128xf32> to vector<1x128xf32>
    %cst_27 = arith.constant dense<0.000000e+00> : vector<640x128xf32>
    %35 = tpu.matmul %30, %32, %cst_27 {dimension_numbers = #tpu.dot_dimension_numbers<[1], [0], [0], [1], [0, 0, 1, 1], [], []>} : vector<640x128xbf16>, vector<128x128xbf16>, vector<640x128xf32> -> vector<640x128xf32>
    %36 = vector.broadcast %34 : vector<1x128xf32> to vector<640x128xf32>
    %37 = arith.addf %35, %36 : vector<640x128xf32>
    %cst_28 = arith.constant 0.000000e+00 : f32
    %38 = vector.broadcast %cst_28 : f32 to vector<640x128xf32>
    %39 = arith.maximumf %37, %38 : vector<640x128xf32>
    %40 = arith.truncf %39 : vector<640x128xf32> to vector<640x128xbf16>
    %c0_29 = arith.constant 0 : index
    %c0_30 = arith.constant 0 : index
    %41 = vector.load %arg14[%c0_29, %c0_30] : memref<640x256xbf16, #tpu.memory_space<vmem>>, vector<640x128xbf16>
    tpu.vector_store %arg14[%c0_29, %c0_30], %40 {strides = array<i32>} : memref<640x256xbf16, #tpu.memory_space<vmem>>, vector<640x128xbf16>,
    %c0_31 = arith.constant 0 : index
    %c128_32 = arith.constant 128 : index
    %42 = vector.load %arg14[%c0_31, %c128_32] : memref<640x256xbf16, #tpu.memory_space<vmem>>, vector<640x128xbf16>
    tpu.vector_store %arg14[%c0_31, %c128_32], %0 {strides = array<i32>} : memref<640x256xbf16, #tpu.memory_space<vmem>>, vector<640x128xbf16>,
    %c0_33 = arith.constant 0 : index
    %c0_34 = arith.constant 0 : index
    %43 = vector.load %arg14[%c0_33, %c0_34] : memref<640x256xbf16, #tpu.memory_space<vmem>>, vector<640x256xbf16>
    %c0_35 = arith.constant 0 : index
    %c0_36 = arith.constant 0 : index
    %44 = vector.load %arg4[%c0_35, %c0_36] : memref<256x128xbf16, #tpu.memory_space<vmem>>, vector<256x128xbf16>
    %c4 = arith.constant 4 : index
    %c0_37 = arith.constant 0 : index
    %c0_38 = arith.constant 0 : index
    %45 = vector.load %arg6[%c4, %c0_37, %c0_38] : memref<9x1x128xf32, #tpu.memory_space<vmem>>, vector<1x1x128xf32>
    %46 = vector.shape_cast %45 : vector<1x1x128xf32> to vector<1x128xf32>
    %cst_39 = arith.constant dense<0.000000e+00> : vector<640x128xf32>
    %47 = tpu.matmul %43, %44, %cst_39 {dimension_numbers = #tpu.dot_dimension_numbers<[1], [0], [0], [1], [0, 0, 1, 1], [], []>} : vector<640x256xbf16>, vector<256x128xbf16>, vector<640x128xf32> -> vector<640x128xf32>
    %48 = vector.broadcast %46 : vector<1x128xf32> to vector<640x128xf32>
    %49 = arith.addf %47, %48 : vector<640x128xf32>
    %cst_40 = arith.constant 0.000000e+00 : f32
    %50 = vector.broadcast %cst_40 : f32 to vector<640x128xf32>
    %51 = arith.maximumf %49, %50 : vector<640x128xf32>
    %52 = arith.truncf %51 : vector<640x128xf32> to vector<640x128xbf16>
    %c3_41 = arith.constant 3 : index
    %c0_42 = arith.constant 0 : index
    %c0_43 = arith.constant 0 : index
    %53 = vector.load %arg3[%c3_41, %c0_42, %c0_43] : memref<6x128x128xbf16, #tpu.memory_space<vmem>>, vector<1x128x128xbf16>
    %54 = vector.shape_cast %53 : vector<1x128x128xbf16> to vector<128x128xbf16>
    %c5 = arith.constant 5 : index
    %c0_44 = arith.constant 0 : index
    %c0_45 = arith.constant 0 : index
    %55 = vector.load %arg6[%c5, %c0_44, %c0_45] : memref<9x1x128xf32, #tpu.memory_space<vmem>>, vector<1x1x128xf32>
    %56 = vector.shape_cast %55 : vector<1x1x128xf32> to vector<1x128xf32>
    %cst_46 = arith.constant dense<0.000000e+00> : vector<640x128xf32>
    %57 = tpu.matmul %52, %54, %cst_46 {dimension_numbers = #tpu.dot_dimension_numbers<[1], [0], [0], [1], [0, 0, 1, 1], [], []>} : vector<640x128xbf16>, vector<128x128xbf16>, vector<640x128xf32> -> vector<640x128xf32>
    %58 = vector.broadcast %56 : vector<1x128xf32> to vector<640x128xf32>
    %59 = arith.addf %57, %58 : vector<640x128xf32>
    %cst_47 = arith.constant 0.000000e+00 : f32
    %60 = vector.broadcast %cst_47 : f32 to vector<640x128xf32>
    %61 = arith.maximumf %59, %60 : vector<640x128xf32>
    %62 = arith.truncf %61 : vector<640x128xf32> to vector<640x128xbf16>
    %c4_48 = arith.constant 4 : index
    %c0_49 = arith.constant 0 : index
    %c0_50 = arith.constant 0 : index
    %63 = vector.load %arg3[%c4_48, %c0_49, %c0_50] : memref<6x128x128xbf16, #tpu.memory_space<vmem>>, vector<1x128x128xbf16>
    %64 = vector.shape_cast %63 : vector<1x128x128xbf16> to vector<128x128xbf16>
    %c6 = arith.constant 6 : index
    %c0_51 = arith.constant 0 : index
    %c0_52 = arith.constant 0 : index
    %65 = vector.load %arg6[%c6, %c0_51, %c0_52] : memref<9x1x128xf32, #tpu.memory_space<vmem>>, vector<1x1x128xf32>
    %66 = vector.shape_cast %65 : vector<1x1x128xf32> to vector<1x128xf32>
    %cst_53 = arith.constant dense<0.000000e+00> : vector<640x128xf32>
    %67 = tpu.matmul %62, %64, %cst_53 {dimension_numbers = #tpu.dot_dimension_numbers<[1], [0], [0], [1], [0, 0, 1, 1], [], []>} : vector<640x128xbf16>, vector<128x128xbf16>, vector<640x128xf32> -> vector<640x128xf32>
    %68 = vector.broadcast %66 : vector<1x128xf32> to vector<640x128xf32>
    %69 = arith.addf %67, %68 : vector<640x128xf32>
    %cst_54 = arith.constant 0.000000e+00 : f32
    %70 = vector.broadcast %cst_54 : f32 to vector<640x128xf32>
    %71 = arith.maximumf %69, %70 : vector<640x128xf32>
    %72 = arith.truncf %71 : vector<640x128xf32> to vector<640x128xbf16>
    %c5_55 = arith.constant 5 : index
    %c0_56 = arith.constant 0 : index
    %c0_57 = arith.constant 0 : index
    %73 = vector.load %arg3[%c5_55, %c0_56, %c0_57] : memref<6x128x128xbf16, #tpu.memory_space<vmem>>, vector<1x128x128xbf16>
    %74 = vector.shape_cast %73 : vector<1x128x128xbf16> to vector<128x128xbf16>
    %c7 = arith.constant 7 : index
    %c0_58 = arith.constant 0 : index
    %c0_59 = arith.constant 0 : index
    %75 = vector.load %arg6[%c7, %c0_58, %c0_59] : memref<9x1x128xf32, #tpu.memory_space<vmem>>, vector<1x1x128xf32>
    %76 = vector.shape_cast %75 : vector<1x1x128xf32> to vector<1x128xf32>
    %cst_60 = arith.constant dense<0.000000e+00> : vector<640x128xf32>
    %77 = tpu.matmul %72, %74, %cst_60 {dimension_numbers = #tpu.dot_dimension_numbers<[1], [0], [0], [1], [0, 0, 1, 1], [], []>} : vector<640x128xbf16>, vector<128x128xbf16>, vector<640x128xf32> -> vector<640x128xf32>
    %78 = vector.broadcast %76 : vector<1x128xf32> to vector<640x128xf32>
    %79 = arith.addf %77, %78 : vector<640x128xf32>
    %cst_61 = arith.constant 0.000000e+00 : f32
    %80 = vector.broadcast %cst_61 : f32 to vector<640x128xf32>
    %81 = arith.maximumf %79, %80 : vector<640x128xf32>
    %82 = arith.truncf %81 : vector<640x128xf32> to vector<640x128xbf16>
    %c0_62 = arith.constant 0 : index
    %c0_63 = arith.constant 0 : index
    %83 = vector.load %arg7[%c0_62, %c0_63] : memref<128x129xbf16, #tpu.memory_space<vmem>>, vector<128x129xbf16>
    %cst_64 = arith.constant dense<0.000000e+00> : vector<640x129xf32>
    %84 = tpu.matmul %82, %83, %cst_64 {dimension_numbers = #tpu.dot_dimension_numbers<[1], [0], [0], [1], [0, 0, 1, 1], [], []>} : vector<640x128xbf16>, vector<128x129xbf16>, vector<640x129xf32> -> vector<640x129xf32>
    %c0_65 = arith.constant 0 : index
    %c0_66 = arith.constant 0 : index
    %85 = vector.load %arg8[%c0_65, %c0_66] : memref<1x129xf32, #tpu.memory_space<vmem>>, vector<1x129xf32>
    %86 = vector.broadcast %85 : vector<1x129xf32> to vector<640x129xf32>
    %87 = arith.addf %84, %86 : vector<640x129xf32>
    %88 = vector.extract_strided_slice %87 {offsets = [0, 128], sizes = [640, 1], strides = [1, 1]} : vector<640x129xf32> to vector<640x1xf32>
    %cst_67 = arith.constant 0.000000e+00 : f32
    %89 = vector.broadcast %cst_67 : f32 to vector<640x1xf32>
    %90 = arith.maximumf %88, %89 : vector<640x1xf32>
    %91 = math.absf %88 : vector<640x1xf32>
    %cst_68 = arith.constant 0.000000e+00 : f32
    %92 = vector.broadcast %cst_68 : f32 to vector<640x1xf32>
    %93 = arith.subf %92, %91 : vector<640x1xf32>
    %94 = math.exp %93 : vector<640x1xf32>
    %95 = math.log1p %94 : vector<640x1xf32>
    %96 = arith.addf %90, %95 : vector<640x1xf32>
    %97 = vector.extract_strided_slice %87 {offsets = [0, 0], sizes = [640, 128], strides = [1, 1]} : vector<640x129xf32> to vector<640x128xf32>
    %98 = arith.truncf %97 : vector<640x128xf32> to vector<640x128xbf16>
    %c0_69 = arith.constant 0 : index
    %c0_70 = arith.constant 0 : index
    %99 = vector.load %arg15[%c0_69, %c0_70] : memref<640x256xbf16, #tpu.memory_space<vmem>>, vector<640x128xbf16>
    tpu.vector_store %arg15[%c0_69, %c0_70], %98 {strides = array<i32>} : memref<640x256xbf16, #tpu.memory_space<vmem>>, vector<640x128xbf16>,
    %c0_71 = arith.constant 0 : index
    %c128_72 = arith.constant 128 : index
    %100 = vector.load %arg15[%c0_71, %c128_72] : memref<640x256xbf16, #tpu.memory_space<vmem>>, vector<640x128xbf16>
    tpu.vector_store %arg15[%c0_71, %c128_72], %1 {strides = array<i32>} : memref<640x256xbf16, #tpu.memory_space<vmem>>, vector<640x128xbf16>,
    %c0_73 = arith.constant 0 : index
    %c0_74 = arith.constant 0 : index
    %101 = vector.load %arg15[%c0_73, %c0_74] : memref<640x256xbf16, #tpu.memory_space<vmem>>, vector<640x256xbf16>
    %c0_75 = arith.constant 0 : index
    %c0_76 = arith.constant 0 : index
    %102 = vector.load %arg5[%c0_75, %c0_76] : memref<256x128xbf16, #tpu.memory_space<vmem>>, vector<256x128xbf16>
    %c8 = arith.constant 8 : index
    %c0_77 = arith.constant 0 : index
    %c0_78 = arith.constant 0 : index
    %103 = vector.load %arg6[%c8, %c0_77, %c0_78] : memref<9x1x128xf32, #tpu.memory_space<vmem>>, vector<1x1x128xf32>
    %104 = vector.shape_cast %103 : vector<1x1x128xf32> to vector<1x128xf32>
    %cst_79 = arith.constant dense<0.000000e+00> : vector<640x128xf32>
    %105 = tpu.matmul %101, %102, %cst_79 {dimension_numbers = #tpu.dot_dimension_numbers<[1], [0], [0], [1], [0, 0, 1, 1], [], []>} : vector<640x256xbf16>, vector<256x128xbf16>, vector<640x128xf32> -> vector<640x128xf32>
    %106 = vector.broadcast %104 : vector<1x128xf32> to vector<640x128xf32>
    %107 = arith.addf %105, %106 : vector<640x128xf32>
    %cst_80 = arith.constant 0.000000e+00 : f32
    %108 = vector.broadcast %cst_80 : f32 to vector<640x128xf32>
    %109 = arith.maximumf %107, %108 : vector<640x128xf32>
    %110 = arith.truncf %109 : vector<640x128xf32> to vector<640x128xbf16>
    %c0_81 = arith.constant 0 : index
    %c0_82 = arith.constant 0 : index
    %111 = vector.load %arg9[%c0_81, %c0_82] : memref<128x64xbf16, #tpu.memory_space<vmem>>, vector<128x64xbf16>
    %c0_83 = arith.constant 0 : index
    %c0_84 = arith.constant 0 : index
    %c0_85 = arith.constant 0 : index
    %112 = vector.load %arg12[%c0_83, %c0_84, %c0_85] : memref<3x1x64xf32, #tpu.memory_space<vmem>>, vector<1x1x64xf32>
    %113 = vector.shape_cast %112 : vector<1x1x64xf32> to vector<1x64xf32>
    %cst_86 = arith.constant dense<0.000000e+00> : vector<640x64xf32>
    %114 = tpu.matmul %110, %111, %cst_86 {dimension_numbers = #tpu.dot_dimension_numbers<[1], [0], [0], [1], [0, 0, 1, 1], [], []>} : vector<640x128xbf16>, vector<128x64xbf16>, vector<640x64xf32> -> vector<640x64xf32>
    %115 = vector.broadcast %113 : vector<1x64xf32> to vector<640x64xf32>
    %116 = arith.addf %114, %115 : vector<640x64xf32>
    %cst_87 = arith.constant 0.000000e+00 : f32
    %117 = vector.broadcast %cst_87 : f32 to vector<640x64xf32>
    %118 = arith.maximumf %116, %117 : vector<640x64xf32>
    %119 = arith.truncf %118 : vector<640x64xf32> to vector<640x64xbf16>
    %c0_88 = arith.constant 0 : index
    %c0_89 = arith.constant 0 : index
    %120 = vector.load %arg10[%c0_88, %c0_89] : memref<64x64xbf16, #tpu.memory_space<vmem>>, vector<64x64xbf16>
    %c1_90 = arith.constant 1 : index
    %c0_91 = arith.constant 0 : index
    %c0_92 = arith.constant 0 : index
    %121 = vector.load %arg12[%c1_90, %c0_91, %c0_92] : memref<3x1x64xf32, #tpu.memory_space<vmem>>, vector<1x1x64xf32>
    %122 = vector.shape_cast %121 : vector<1x1x64xf32> to vector<1x64xf32>
    %cst_93 = arith.constant dense<0.000000e+00> : vector<640x64xf32>
    %123 = tpu.matmul %119, %120, %cst_93 {dimension_numbers = #tpu.dot_dimension_numbers<[1], [0], [0], [1], [0, 0, 1, 1], [], []>} : vector<640x64xbf16>, vector<64x64xbf16>, vector<640x64xf32> -> vector<640x64xf32>
    %124 = vector.broadcast %122 : vector<1x64xf32> to vector<640x64xf32>
    %125 = arith.addf %123, %124 : vector<640x64xf32>
    %cst_94 = arith.constant 0.000000e+00 : f32
    %126 = vector.broadcast %cst_94 : f32 to vector<640x64xf32>
    %127 = arith.maximumf %125, %126 : vector<640x64xf32>
    %128 = arith.truncf %127 : vector<640x64xf32> to vector<640x64xbf16>
    %c0_95 = arith.constant 0 : index
    %c0_96 = arith.constant 0 : index
    %129 = vector.load %arg11[%c0_95, %c0_96] : memref<64x4xbf16, #tpu.memory_space<vmem>>, vector<64x4xbf16>
    %cst_97 = arith.constant dense<0.000000e+00> : vector<640x4xf32>
    %130 = tpu.matmul %128, %129, %cst_97 {dimension_numbers = #tpu.dot_dimension_numbers<[1], [0], [0], [1], [0, 0, 1, 1], [], []>} : vector<640x64xbf16>, vector<64x4xbf16>, vector<640x4xf32> -> vector<640x4xf32>
    %c2_98 = arith.constant 2 : index
    %c0_99 = arith.constant 0 : index
    %c0_100 = arith.constant 0 : index
    %131 = vector.load %arg12[%c2_98, %c0_99, %c0_100] : memref<3x1x64xf32, #tpu.memory_space<vmem>>, vector<1x1x64xf32>
    %132 = vector.shape_cast %131 : vector<1x1x64xf32> to vector<1x64xf32>
    %133 = vector.extract_strided_slice %132 {offsets = [0, 0], sizes = [1, 4], strides = [1, 1]} : vector<1x64xf32> to vector<1x4xf32>
    %134 = vector.broadcast %133 : vector<1x4xf32> to vector<640x4xf32>
    %135 = arith.addf %130, %134 : vector<640x4xf32>
    %136 = tpu.iota {dimensions = array<i32: 1>} : vector<640x4xi32>
    %c3_i32 = arith.constant 3 : i32
    %137 = vector.broadcast %c3_i32 : i32 to vector<640x4xi32>
    %138 = arith.cmpi eq, %136, %137 : vector<640x4xi32>
    %139 = vector.shape_cast %96 : vector<640x1xf32> to vector<640x1xf32>
    %140 = vector.broadcast %139 : vector<640x1xf32> to vector<640x4xf32>
    %141 = arith.select %138, %140, %135 : vector<640x4xi1>, vector<640x4xf32>
    %c0_101 = arith.constant 0 : index
    %c0_102 = arith.constant 0 : index
    %142 = vector.load %arg13[%c0_101, %c0_102] : memref<640x4xf32, #tpu.memory_space<vmem>>, vector<640x4xf32>
    tpu.vector_store %arg13[%c0_101, %c0_102], %141 {strides = array<i32>} : memref<640x4xf32, #tpu.memory_space<vmem>>, vector<640x4xf32>,
    return
  }
  func.func @transform_0(%arg0: i32) -> (i32, i32) {
    %c0_i32 = arith.constant 0 : i32
    %c0_i32_0 = arith.constant 0 : i32
    return %arg0, %c0_i32 : i32, i32
  }
  func.func @transform_1(%arg0: i32) -> (i32, i32) {
    %c0_i32 = arith.constant 0 : i32
    %c0_i32_0 = arith.constant 0 : i32
    %c0_i32_1 = arith.constant 0 : i32
    return %c0_i32, %c0_i32_0 : i32, i32
  }
  func.func @transform_2(%arg0: i32) -> (i32, i32, i32) {
    %c0_i32 = arith.constant 0 : i32
    %c0_i32_0 = arith.constant 0 : i32
    %c0_i32_1 = arith.constant 0 : i32
    %c0_i32_2 = arith.constant 0 : i32
    return %c0_i32, %c0_i32_0, %c0_i32_1 : i32, i32, i32
  }
  func.func @transform_3(%arg0: i32) -> (i32, i32) {
    %c0_i32 = arith.constant 0 : i32
    %c0_i32_0 = arith.constant 0 : i32
    %c0_i32_1 = arith.constant 0 : i32
    return %c0_i32, %c0_i32_0 : i32, i32
  }
  func.func @transform_4(%arg0: i32) -> (i32, i32) {
    %c0_i32 = arith.constant 0 : i32
    %c0_i32_0 = arith.constant 0 : i32
    %c0_i32_1 = arith.constant 0 : i32
    return %c0_i32, %c0_i32_0 : i32, i32
  }
  func.func @transform_5(%arg0: i32) -> (i32, i32, i32) {
    %c0_i32 = arith.constant 0 : i32
    %c0_i32_0 = arith.constant 0 : i32
    %c0_i32_1 = arith.constant 0 : i32
    %c0_i32_2 = arith.constant 0 : i32
    return %c0_i32, %c0_i32_0, %c0_i32_1 : i32, i32, i32
  }
  func.func @transform_6(%arg0: i32) -> (i32, i32) {
    %c0_i32 = arith.constant 0 : i32
    %c0_i32_0 = arith.constant 0 : i32
    %c0_i32_1 = arith.constant 0 : i32
    return %c0_i32, %c0_i32_0 : i32, i32
  }
  func.func @transform_7(%arg0: i32) -> (i32, i32) {
    %c0_i32 = arith.constant 0 : i32
    %c0_i32_0 = arith.constant 0 : i32
    %c0_i32_1 = arith.constant 0 : i32
    return %c0_i32, %c0_i32_0 : i32, i32
  }
  func.func @transform_8(%arg0: i32) -> (i32, i32) {
    %c0_i32 = arith.constant 0 : i32
    %c0_i32_0 = arith.constant 0 : i32
    %c0_i32_1 = arith.constant 0 : i32
    return %c0_i32, %c0_i32_0 : i32, i32
  }
  func.func @transform_9(%arg0: i32) -> (i32, i32) {
    %c0_i32 = arith.constant 0 : i32
    %c0_i32_0 = arith.constant 0 : i32
    %c0_i32_1 = arith.constant 0 : i32
    return %c0_i32, %c0_i32_0 : i32, i32
  }
  func.func @transform_10(%arg0: i32) -> (i32, i32) {
    %c0_i32 = arith.constant 0 : i32
    %c0_i32_0 = arith.constant 0 : i32
    %c0_i32_1 = arith.constant 0 : i32
    return %c0_i32, %c0_i32_0 : i32, i32
  }
  func.func @transform_11(%arg0: i32) -> (i32, i32, i32) {
    %c0_i32 = arith.constant 0 : i32
    %c0_i32_0 = arith.constant 0 : i32
    %c0_i32_1 = arith.constant 0 : i32
    %c0_i32_2 = arith.constant 0 : i32
    return %c0_i32, %c0_i32_0, %c0_i32_1 : i32, i32, i32
  }
  func.func @transform_12(%arg0: i32) -> (i32, i32) {
    %c0_i32 = arith.constant 0 : i32
    %c0_i32_0 = arith.constant 0 : i32
    return %arg0, %c0_i32 : i32, i32
  }
}

</mosaic_0001>

<bundles_post_ra>
// kernel: full_nerf_forward.1
= control target key start
LH: loop header
LB: loop body
LE: loop exit
PB: predicated region body
PF: predicated region fallthrough
CT: control target
= control target key end

     0   :  { %s12977_s21 = smov 0   ;;  %s17032_s0 = inlined_call_operand.vmem [shape: bf16[5120,256], index: 0, kind: input, shape index: {}]   ;;  %s17033_s1 = inlined_call_operand.vmem [shape: bf16[128,128], index: 1, kind: input, shape index: {}]   ;;  %s17034_s2 = inlined_call_operand.vmem [shape: bf16[6,128,128], index: 2, kind: input, shape index: {}]   ;;  %s17035_s3 = inlined_call_operand.vmem [shape: bf16[256,128], index: 3, kind: input, shape index: {}]   ;;  %s17036_s4 = inlined_call_operand.vmem [shape: bf16[256,128], index: 4, kind: input, shape index: {}]   ;;  %s17037_s5 = inlined_call_operand.vmem [shape: f32[9,1,128], index: 5, kind: input, shape index: {}]   ;;  %s17038_s6 = inlined_call_operand.vmem [shape: bf16[128,129], index: 6, kind: input, shape index: {}]   ;;  %s17039_s7 = inlined_call_operand.vmem [shape: f32[1,129], index: 7, kind: input, shape index: {}]   ;;  %s17040_s8 = inlined_call_operand.vmem [shape: bf16[128,64], index: 8, kind: input, shape index: {}]   ;;  %s17041_s9 = inlined_call_operand.vmem [shape: bf16[64,64], index: 9, kind: input, shape index: {}]   ;;  %s17042_s10 = inlined_call_operand.vmem [shape: bf16[64,4], index: 10, kind: input, shape index: {}]   ;;  %s17043_s11 = inlined_call_operand.vmem [shape: f32[3,1,64], index: 11, kind: input, shape index: {}]   ;;  %s17044_s12 = inlined_call_operand.vmem [shape: f32[5120,4], index: 12, kind: output, shape index: {}]  }
   0x1 LB: > { %s10510_s22 = sadd.s32 4294967295, %s12909_s21   ;;  %p10514_p0 = scmp.ge.s32.totalorder %s12909_s21, 1  ;;  %s12909_s21 = sphi %s12977_s21, %s22_s21  }
   0x2   : > { %p364_p1 = scmp.lt.s32.totalorder %s12909_s21, 9 }
   0x4   : > { %p365_p2 = pnand %p10514_p0, %p364_p1 }
   0x6   : > { %368 = sbr.rel (%p365_p2) target bundleno = 3359 (0xd1f), region = 68 }
   0xd   : > { %v12330_v0 = vld [vmem:[%s17033_s1] sm:$0xff]   ;;  %s407_s25 = smul.u32 80, %s10510_s22  ;;  %v12331_v1 = vld [vmem:[%s17033_s1 + $0x8] sm:$0xff]   ;;  %v12332_v2 = vld [vmem:[%s17033_s1 + $0x10] sm:$0xff]  }
   0xe   : > { %11375 = vmatprep.subr.bf16.mxu0 %v12330_v0  ;;  %v12333_v3 = vld [vmem:[%s17033_s1 + $0x18] sm:$0xff]   ;;  %v12334_v5 = vld [vmem:[%s17033_s1 + $0x20] sm:$0xff]   ;;  %v12335_v6 = vld [vmem:[%s17033_s1 + $0x28] sm:$0xff]  }
   0xf   : > { %p408_p3 = scmp.lt.s32.totalorder %s407_s25, 639  ;;  %11376 = vmatpush3.bf16.msra.mxu0 %v12330_v0  ;;  %v12336_v7 = vld [vmem:[%s17033_s1 + $0x30] sm:$0xff]   ;;  %v12337_v8 = vld [vmem:[%s17033_s1 + $0x38] sm:$0xff]   ;;  %v12364_v11 = vld [vmem:[%s17034_s2] sm:$0xff]  }
  0x10   : > { %11377 = vmatprep.subr.bf16.mxu0 %v12331_v1  ;;  %11471 = vmatprep.subr.bf16.mxu1 %v12364_v11  ;;  %v12367_v13 = vld [vmem:[%s17034_s2 + $0x8] sm:$0xff]   ;;  %v12368_v14 = vld [vmem:[%s17034_s2 + $0x10] sm:$0xff]   ;;  %v12369_v16 = vld [vmem:[%s17034_s2 + $0x18] sm:$0xff]  }
  0x11   : > { %s17229_s25 = smov (!%p408_p3, %s407_s25), 639  ;;  %11472 = vmatpush3.bf16.msra.mxu1 %v12364_v11  ;;  %v12370_v18 = vld [vmem:[%s17034_s2 + $0x20] sm:$0xff]   ;;  %v12373_v20 = vld [vmem:[%s17034_s2 + $0x28] sm:$0xff]   ;;  %v12374_v39 = vld [vmem:[%s17034_s2 + $0x30] sm:$0xff]  }
  0x12   : > { %s10902_s30 = sshll.u32 %s17229_s25, 3  ;;  %11473 = vmatprep.subr.bf16.mxu1 %v12367_v13  ;;  %v12375_v40 = vld [vmem:[%s17034_s2 + $0x38] sm:$0xff]   ;;  %v12384_v51 = vld [vmem:[%s17034_s2 + $0x40] sm:$0xff]   ;;  %v12387_v56 = vld [vmem:[%s17034_s2 + $0x48] sm:$0xff]  }
  0x13   : > { %11378 = vmatpush3.bf16.msra.mxu0 %v12331_v1  ;;  %s13005_s17 = scalar_lea.vmem %s17032_s0, %s10902_s30  ;;  %v12388_v58 = vld [vmem:[%s17034_s2 + $0x50] sm:$0xff]   ;;  %v12389_v59 = vld [vmem:[%s17034_s2 + $0x58] sm:$0xff]   ;;  %v12390_v60 = vld [vmem:[%s17034_s2 + $0x60] sm:$0xff]   ;;  %s16592_s18 = scalar_lea.vmem %s17044_s12, %s10902_s30 }
  0x14   : > { %11379 = vmatprep.subr.bf16.mxu0 %v12332_v2  ;;  %v12338_v4 = vld [vmem:[%s13005_s17] ss:$8 sps:$4 sm:$0xff]   ;;  %v12339_v9 = vld [vmem:[%s13005_s17 + $0x10] ss:$8 sps:$4 sm:$0xff]  }
  0x15   : > { %11391 = vmatprep.mubr.bf16.mxu0 %v12338_v4  ;;  %v12340_v10 = vld [vmem:[%s13005_s17 + $0x20] ss:$8 sps:$4 sm:$0xff]   ;;  %v12341_v12 = vld [vmem:[%s13005_s17 + $0x30] ss:$8 sps:$4 sm:$0xff]   ;;  %11474 = vmatpush3.bf16.msra.mxu1 %v12367_v13 }
  0x16   : > { %v12342_v15 = vld [vmem:[%s13005_s17 + $0x40] ss:$8 sps:$4 sm:$0xff]   ;;  %11475 = vmatprep.subr.bf16.mxu1 %v12368_v14  ;;  %v12343_v17 = vld [vmem:[%s13005_s17 + $0x50] ss:$8 sps:$4 sm:$0xff]  }
  0x17   : > { %11380 = vmatpush3.bf16.msra.mxu0 %v12332_v2  ;;  %v12344_v19 = vld [vmem:[%s13005_s17 + $0x60] ss:$8 sps:$4 sm:$0xff]   ;;  %v12345_v21 = vld [vmem:[%s13005_s17 + $0x70] ss:$8 sps:$4 sm:$0xff]  }
  0x18   : > { %11381 = vmatprep.subr.bf16.mxu0 %v12333_v3  ;;  %v12346_v22 = vld [vmem:[%s13005_s17 + $0x80] ss:$8 sps:$4 sm:$0xff]   ;;  %v12347_v23 = vld [vmem:[%s13005_s17 + $0x90] ss:$8 sps:$4 sm:$0xff]  }
  0x19   : > { %11476 = vmatpush3.bf16.msra.mxu1 %v12368_v14  ;;  %v12348_v24 = vld [vmem:[%s13005_s17 + $0xa0] ss:$8 sps:$4 sm:$0xff]   ;;  %v12349_v25 = vld [vmem:[%s13005_s17 + $0xb0] ss:$8 sps:$4 sm:$0xff]  }
  0x1a   : > { %11477 = vmatprep.subr.bf16.mxu1 %v12369_v16  ;;  %v12350_v26 = vld [vmem:[%s13005_s17 + $0xc0] ss:$8 sps:$4 sm:$0xff]   ;;  %v12351_v27 = vld [vmem:[%s13005_s17 + $0xd0] ss:$8 sps:$4 sm:$0xff]  }
  0x1b   : > { %11382 = vmatpush3.bf16.msra.mxu0 %v12333_v3  ;;  %v12352_v28 = vld [vmem:[%s13005_s17 + $0xe0] ss:$8 sps:$4 sm:$0xff]   ;;  %v12353_v29 = vld [vmem:[%s13005_s17 + $0xf0] ss:$8 sps:$4 sm:$0xff]  }
  0x1c   : > { %11383 = vmatprep.subr.bf16.mxu0 %v12334_v5  ;;  %v12354_v30 = vld [vmem:[%s13005_s17 + $0x100] ss:$8 sps:$4 sm:$0xff]   ;;  %v12355_v31 = vld [vmem:[%s13005_s17 + $0x110] ss:$8 sps:$4 sm:$0xff]  }
  0x1d   : > { %11478 = vmatpush3.bf16.msra.mxu1 %v12369_v16  ;;  %v12356_v32 = vld [vmem:[%s13005_s17 + $0x120] ss:$8 sps:$4 sm:$0xff]   ;;  %v12357_v33 = vld [vmem:[%s13005_s17 + $0x130] ss:$8 sps:$4 sm:$0xff]  }
  0x1e   : > { %11479 = vmatprep.subr.bf16.mxu1 %v12370_v18  ;;  %v12358_v34 = vld [vmem:[%s13005_s17 + $0x140] ss:$8 sps:$4 sm:$0xff]   ;;  %v12359_v35 = vld [vmem:[%s13005_s17 + $0x150] ss:$8 sps:$4 sm:$0xff]  }
  0x1f   : > { %11384 = vmatpush3.bf16.msra.mxu0 %v12334_v5  ;;  %v12360_v36 = vld [vmem:[%s13005_s17 + $0x160] ss:$8 sps:$4 sm:$0xff]   ;;  %v12361_v37 = vld [vmem:[%s13005_s17 + $0x170] ss:$8 sps:$4 sm:$0xff]  }
  0x20   : > { %11385 = vmatprep.subr.bf16.mxu0 %v12335_v6  ;;  %v12362_v38 = vld [vmem:[%s13005_s17 + $0x180] ss:$8 sps:$4 sm:$0xff]   ;;  %v12363_v41 = vld [vmem:[%s13005_s17 + $0x190] ss:$8 sps:$4 sm:$0xff]  }
  0x21   : > { %11480 = vmatpush3.bf16.msra.mxu1 %v12370_v18  ;;  %v12365_v42 = vld [vmem:[%s13005_s17 + $0x1a0] ss:$8 sps:$4 sm:$0xff]   ;;  %v12366_v43 = vld [vmem:[%s13005_s17 + $0x1b0] ss:$8 sps:$4 sm:$0xff]  }
  0x22   : > { %11481 = vmatprep.subr.bf16.mxu1 %v12373_v20  ;;  %v12371_v44 = vld [vmem:[%s13005_s17 + $0x1c0] ss:$8 sps:$4 sm:$0xff]   ;;  %v12372_v45 = vld [vmem:[%s13005_s17 + $0x1d0] ss:$8 sps:$4 sm:$0xff]  }
  0x23   : > { %11386 = vmatpush3.bf16.msra.mxu0 %v12335_v6  ;;  %v12376_v46 = vld [vmem:[%s13005_s17 + $0x1e0] ss:$8 sps:$4 sm:$0xff]   ;;  %v12377_v47 = vld [vmem:[%s13005_s17 + $0x1f0] ss:$8 sps:$4 sm:$0xff]  }
  0x24   : > { %11387 = vmatprep.subr.bf16.mxu0 %v12336_v7  ;;  %v12378_v48 = vld [vmem:[%s13005_s17 + $0x200] ss:$8 sps:$4 sm:$0xff]   ;;  %v12379_v49 = vld [vmem:[%s13005_s17 + $0x210] ss:$8 sps:$4 sm:$0xff]  }
  0x25   : > { %11482 = vmatpush3.bf16.msra.mxu1 %v12373_v20  ;;  %v12380_v50 = vld [vmem:[%s13005_s17 + $0x220] ss:$8 sps:$4 sm:$0xff]   ;;  %v12381_v52 = vld [vmem:[%s13005_s17 + $0x230] ss:$8 sps:$4 sm:$0xff]  }
  0x26   : > { %11483 = vmatprep.subr.bf16.mxu1 %v12374_v39  ;;  %v12382_v53 = vld [vmem:[%s13005_s17 + $0x240] ss:$8 sps:$4 sm:$0xff]   ;;  %v12383_v54 = vld [vmem:[%s13005_s17 + $0x250] ss:$8 sps:$4 sm:$0xff]  }
  0x27   : > { %11388 = vmatpush3.bf16.msra.mxu0 %v12336_v7  ;;  %v12385_v55 = vld [vmem:[%s13005_s17 + $0x260] ss:$8 sps:$4 sm:$0xff]   ;;  %v12386_v57 = vld [vmem:[%s13005_s17 + $0x270] ss:$8 sps:$4 sm:$0xff]  }
  0x28   : > { %11389 = vmatprep.subr.bf16.mxu0 %v12337_v8  ;;  %v12391_v61 = vld [vmem:[%s17034_s2 + $0x68] sm:$0xff]   ;;  %v12392_v62 = vld [vmem:[%s17034_s2 + $0x70] sm:$0xff]   ;;  %v12393_v63 = vld [vmem:[%s17034_s2 + $0x78] sm:$0xff]  }
  0x29   : > { %11484 = vmatpush3.bf16.msra.mxu1 %v12374_v39  ;;  %v13110_v0 = vld [vmem:[%s17037_s5] ss:$0 sm:$0xff] }
  0x2a   : > { %11485 = vmatprep.subr.bf16.mxu1 %v12375_v40 }
  0x2b   : > { %11390 = vmatpush3.bf16.msra.mxu0 %v12337_v8 }
  0x2c   : > { %11567 = vmatprep.subr.bf16.mxu0 %v12384_v51 }
  0x2d   : > { %11486 = vmatpush3.bf16.msra.mxu1 %v12375_v40 }
  0x2e   : > { %11392 = vmatmul.mubr.bf16.vlgmr.msra.gmra.mrb[0].mxu0 %v12339_v9 }
  0x2f   : > { %11395 = vmatprep.mubr.bf16.mxu0 %v12340_v10  ;;  %11568 = vmatpush3.bf16.msra.mxu0 %v12384_v51 }
  0x30   : > { %11569 = vmatprep.subr.bf16.mxu0 %v12387_v56 }
  0x33   : > { %11570 = vmatpush3.bf16.msra.mxu0 %v12387_v56 }
  0x34   : > { %11571 = vmatprep.subr.bf16.mxu0 %v12388_v58 }
  0x36   : > { %11396 = vmatmul.mubr.bf16.gmra.mrb[4].mxu0 %v12341_v12 }
  0x37   : > { %11399 = vmatprep.mubr.bf16.mxu0 %v12342_v15  ;;  %11572 = vmatpush3.bf16.msra.mxu0 %v12388_v58 }
  0x38   : > { %11573 = vmatprep.subr.bf16.mxu0 %v12389_v59 }
  0x3b   : > { %11574 = vmatpush3.bf16.msra.mxu0 %v12389_v59 }
  0x3c   : > { %11575 = vmatprep.subr.bf16.mxu0 %v12390_v60 }
  0x3e   : > { %11400 = vmatmul.mubr.bf16.gmra.mrb[8].mxu0 %v12343_v17 }
  0x3f   : > { %11403 = vmatprep.mubr.bf16.mxu0 %v12344_v19  ;;  %11576 = vmatpush3.bf16.msra.mxu0 %v12390_v60 }
  0x40   : > { %11577 = vmatprep.subr.bf16.mxu0 %v12391_v61 }
  0x43   : > { %11578 = vmatpush3.bf16.msra.mxu0 %v12391_v61 }
  0x44   : > { %11579 = vmatprep.subr.bf16.mxu0 %v12392_v62 }
  0x46   : > { %11404 = vmatmul.mubr.bf16.gmra.mrb[12].mxu0 %v12345_v21 }
  0x47   : > { %11407 = vmatprep.mubr.bf16.mxu0 %v12346_v22  ;;  %11580 = vmatpush3.bf16.msra.mxu0 %v12392_v62 }
  0x48   : > { %11581 = vmatprep.subr.bf16.mxu0 %v12393_v63 }
  0x4b   : > { %11582 = vmatpush3.bf16.msra.mxu0 %v12393_v63 }
  0x4e   : > { %11408 = vmatmul.mubr.bf16.gmra.mrb[16].mxu0 %v12347_v23 }
  0x4f   : > { %11411 = vmatprep.mubr.bf16.mxu0 %v12348_v24 }
  0x56   : > { %11412 = vmatmul.mubr.bf16.gmra.mrb[20].mxu0 %v12349_v25 }
  0x57   : > { %11415 = vmatprep.mubr.bf16.mxu0 %v12350_v26 }
  0x5e   : > { %11416 = vmatmul.mubr.bf16.gmra.mrb[24].mxu0 %v12351_v27 }
  0x5f   : > { %11419 = vmatprep.mubr.bf16.mxu0 %v12352_v28 }
  0x66   : > { %11420 = vmatmul.mubr.bf16.gmra.mrb[28].mxu0 %v12353_v29 }
  0x67   : > { %11423 = vmatprep.mubr.bf16.mxu0 %v12354_v30 }
  0x6e   : > { %11424 = vmatmul.mubr.bf16.gmra.mrb[32].mxu0 %v12355_v31 }
  0x6f   : > { %11427 = vmatprep.mubr.bf16.mxu0 %v12356_v32 }
  0x76   : > { %11428 = vmatmul.mubr.bf16.gmra.mrb[36].mxu0 %v12357_v33 }
  0x77   : > { %11431 = vmatprep.mubr.bf16.mxu0 %v12358_v34 }
  0x7e   : > { %11432 = vmatmul.mubr.bf16.gmra.mrb[40].mxu0 %v12359_v35 }
  0x7f   : > { %11435 = vmatprep.mubr.bf16.mxu0 %v12360_v36 }
  0x86   : > { %11436 = vmatmul.mubr.bf16.gmra.mrb[44].mxu0 %v12361_v37 }
  0x87   : > { %11439 = vmatprep.mubr.bf16.mxu0 %v12362_v38 }
  0x8e   : > { %11440 = vmatmul.mubr.bf16.gmra.mrb[48].mxu0 %v12363_v41 }
  0x8f   : > { %11443 = vmatprep.mubr.bf16.mxu0 %v12365_v42 }
  0x96   : > { %11444 = vmatmul.mubr.bf16.gmra.mrb[52].mxu0 %v12366_v43 }
  0x97   : > { %11447 = vmatprep.mubr.bf16.mxu0 %v12371_v44 }
  0x9e   : > { %11448 = vmatmul.mubr.bf16.gmra.mrb[56].mxu0 %v12372_v45 }
  0x9f   : > { %11451 = vmatprep.mubr.bf16.mxu0 %v12376_v46 }
  0xa6   : > { %11452 = vmatmul.mubr.bf16.gmra.mrb[60].mxu0 %v12377_v47 }
  0xa7   : > { %11455 = vmatprep.mubr.bf16.mxu0 %v12378_v48 }
  0xae   : > { %11456 = vmatmul.mubr.bf16.gmra.mrb[64].mxu0 %v12379_v49 }
  0xaf   : > { %11459 = vmatprep.mubr.bf16.mxu0 %v12380_v50 }
  0xb6   : > { %11460 = vmatmul.mubr.bf16.gmra.mrb[68].mxu0 %v12381_v52 }
  0xb7   : > { %11463 = vmatprep.mubr.bf16.mxu0 %v12382_v53 }
  0xbe   : > { %11464 = vmatmul.mubr.bf16.gmra.mrb[72].mxu0 %v12383_v54 }
  0xbf   : > { %11467 = vmatprep.mubr.bf16.mxu0 %v12385_v55 }
  0xc6   : > { %11468 = vmatmul.mubr.bf16.gmra.mrb[76].mxu0 %v12386_v57 }
 0x101   : > { %v11393_v1 = vpop.f32.mrb[0].mxu0 }
 0x102   : > { %v935_v2 = vadd.f32 %v11393_v1, %v13110_v0  ;;  %v926_v3 = vpop.f32.mrb[1].mxu0 }
 0x103   : > { %v11394_v4 = vpop.f32.mrb[2].mxu0  ;;  %v927_v5 = vadd.f32 %v13110_v0, %v926_v3 }
 0x104   : > { %v938_v6 = vadd.f32 %v11394_v4, %v13110_v0  ;;  %v929_v7 = vpop.f32.mrb[3].mxu0  ;;  %v1247_v9 = vmax.f32 %v935_v2, 0.0 }
 0x105   : > { %v930_v8 = vadd.f32 %v13110_v0, %v929_v7  ;;  %v1245_v11 = vmax.f32 %v927_v5, 0.0 }
 0x106   : > { %v1248_v10 = vmax.f32 %v938_v6, 0.0 }
 0x107   : > { %v1246_v12 = vmax.f32 %v930_v8, 0.0 }
 0x108   : > { %v1326_v13 = vpack.c.bf16 %v1248_v10, %v1247_v9 }
 0x109   : > { %v11397_v14 = vpop.f32.mrb[4].mxu0  ;;  %v1325_v15 = vpack.c.bf16 %v1246_v12, %v1245_v11 }
 0x10a   : > { %v951_v16 = vadd.f32 %v11397_v14, %v13110_v0  ;;  %v942_v17 = vpop.f32.mrb[5].mxu0 }
 0x10b   : > { %v943_v18 = vadd.f32 %v13110_v0, %v942_v17  ;;  %v11398_v19 = vpop.f32.mrb[6].mxu0  ;;  %11487 = vmatprep.mubr.bf16.mxu1 %v1325_v15 }
 0x10c   : > { %v1251_v20 = vmax.f32 %v951_v16, 0.0  ;;  %v954_v21 = vadd.f32 %v11398_v19, %v13110_v0  ;;  %v945_v22 = vpop.f32.mrb[7].mxu0  ;;  %11488 = vmatmul.mubr.bf16.vlgmr.msra.gmra.mrb[0].mxu1 %v1326_v13 }
 0x10d   : > { %v1249_v23 = vmax.f32 %v943_v18, 0.0  ;;  %v946_v24 = vadd.f32 %v13110_v0, %v945_v22 }
 0x10e   : > { %v1252_v25 = vmax.f32 %v954_v21, 0.0 }
 0x10f   : > { %v1250_v26 = vmax.f32 %v946_v24, 0.0 }
 0x110   : > { %v1328_v27 = vpack.c.bf16 %v1252_v25, %v1251_v20 }
 0x111   : > { %v11401_v28 = vpop.f32.mrb[8].mxu0  ;;  %v1327_v29 = vpack.c.bf16 %v1250_v26, %v1249_v23 }
 0x112   : > { %v967_v30 = vadd.f32 %v11401_v28, %v13110_v0  ;;  %v958_v31 = vpop.f32.mrb[9].mxu0 }
 0x113   : > { %v959_v32 = vadd.f32 %v13110_v0, %v958_v31  ;;  %11491 = vmatprep.mubr.bf16.mxu1 %v1327_v29  ;;  %v11402_v33 = vpop.f32.mrb[10].mxu0 }
 0x114   : > { %v1255_v34 = vmax.f32 %v967_v30, 0.0  ;;  %v970_v35 = vadd.f32 %v11402_v33, %v13110_v0  ;;  %11492 = vmatmul.mubr.bf16.gmra.mrb[4].mxu1 %v1328_v27  ;;  %v961_v36 = vpop.f32.mrb[11].mxu0 }
 0x115   : > { %v1253_v37 = vmax.f32 %v959_v32, 0.0  ;;  %v962_v38 = vadd.f32 %v13110_v0, %v961_v36 }
 0x116   : > { %v1256_v39 = vmax.f32 %v970_v35, 0.0 }
 0x117   : > { %v1254_v40 = vmax.f32 %v962_v38, 0.0 }
 0x118   : > { %v1330_v41 = vpack.c.bf16 %v1256_v39, %v1255_v34 }
 0x119   : > { %v1329_v42 = vpack.c.bf16 %v1254_v40, %v1253_v37  ;;  %v11405_v43 = vpop.f32.mrb[12].mxu0 }
 0x11a   : > { %v983_v44 = vadd.f32 %v11405_v43, %v13110_v0  ;;  %v974_v45 = vpop.f32.mrb[13].mxu0 }
 0x11b   : > { %11495 = vmatprep.mubr.bf16.mxu1 %v1329_v42  ;;  %v975_v46 = vadd.f32 %v13110_v0, %v974_v45  ;;  %v11406_v47 = vpop.f32.mrb[14].mxu0 }
 0x11c   : > { %11496 = vmatmul.mubr.bf16.gmra.mrb[8].mxu1 %v1330_v41  ;;  %v1259_v48 = vmax.f32 %v983_v44, 0.0  ;;  %v986_v49 = vadd.f32 %v11406_v47, %v13110_v0  ;;  %v977_v50 = vpop.f32.mrb[15].mxu0 }
 0x11d   : > { %v1257_v51 = vmax.f32 %v975_v46, 0.0  ;;  %v978_v52 = vadd.f32 %v13110_v0, %v977_v50 }
 0x11e   : > { %v1260_v53 = vmax.f32 %v986_v49, 0.0 }
 0x11f   : > { %v1258_v54 = vmax.f32 %v978_v52, 0.0 }
 0x120   : > { %v1332_v55 = vpack.c.bf16 %v1260_v53, %v1259_v48 }
 0x121   : > { %v1331_v56 = vpack.c.bf16 %v1258_v54, %v1257_v51  ;;  %v11409_v57 = vpop.f32.mrb[16].mxu0 }
 0x122   : > { %v999_v58 = vadd.f32 %v11409_v57, %v13110_v0  ;;  %v990_v59 = vpop.f32.mrb[17].mxu0 }
 0x123   : > { %11499 = vmatprep.mubr.bf16.mxu1 %v1331_v56  ;;  %v991_v60 = vadd.f32 %v13110_v0, %v990_v59  ;;  %v11410_v61 = vpop.f32.mrb[18].mxu0 }
 0x124   : > { %11500 = vmatmul.mubr.bf16.gmra.mrb[12].mxu1 %v1332_v55  ;;  %v1263_v62 = vmax.f32 %v999_v58, 0.0  ;;  %v1002_v63 = vadd.f32 %v11410_v61, %v13110_v0  ;;  %v993_v1 = vpop.f32.mrb[19].mxu0 }
 0x125   : > { %v1261_v2 = vmax.f32 %v991_v60, 0.0  ;;  %v994_v3 = vadd.f32 %v13110_v0, %v993_v1 }
 0x126   : > { %v1264_v4 = vmax.f32 %v1002_v63, 0.0 }
 0x127   : > { %v1262_v5 = vmax.f32 %v994_v3, 0.0 }
 0x128   : > { %v1334_v6 = vpack.c.bf16 %v1264_v4, %v1263_v62 }
 0x129   : > { %v1333_v7 = vpack.c.bf16 %v1262_v5, %v1261_v2  ;;  %v11413_v8 = vpop.f32.mrb[20].mxu0 }
 0x12a   : > { %v1015_v9 = vadd.f32 %v11413_v8, %v13110_v0  ;;  %v1006_v10 = vpop.f32.mrb[21].mxu0 }
 0x12b   : > { %11503 = vmatprep.mubr.bf16.mxu1 %v1333_v7  ;;  %v1007_v11 = vadd.f32 %v13110_v0, %v1006_v10  ;;  %v11414_v12 = vpop.f32.mrb[22].mxu0 }
 0x12c   : > { %11504 = vmatmul.mubr.bf16.gmra.mrb[16].mxu1 %v1334_v6  ;;  %v1267_v13 = vmax.f32 %v1015_v9, 0.0  ;;  %v1018_v14 = vadd.f32 %v11414_v12, %v13110_v0  ;;  %v1009_v15 = vpop.f32.mrb[23].mxu0 }
 0x12d   : > { %v1265_v16 = vmax.f32 %v1007_v11, 0.0  ;;  %v1010_v17 = vadd.f32 %v13110_v0, %v1009_v15 }
 0x12e   : > { %v1268_v18 = vmax.f32 %v1018_v14, 0.0 }
 0x12f   : > { %v1266_v19 = vmax.f32 %v1010_v17, 0.0 }
 0x130   : > { %v1336_v20 = vpack.c.bf16 %v1268_v18, %v1267_v13 }
 0x131   : > { %v1335_v21 = vpack.c.bf16 %v1266_v19, %v1265_v16  ;;  %v11417_v22 = vpop.f32.mrb[24].mxu0 }
 0x132   : > { %v1031_v23 = vadd.f32 %v11417_v22, %v13110_v0  ;;  %v1022_v24 = vpop.f32.mrb[25].mxu0 }
 0x133   : > { %11507 = vmatprep.mubr.bf16.mxu1 %v1335_v21  ;;  %v1023_v25 = vadd.f32 %v13110_v0, %v1022_v24  ;;  %v11418_v26 = vpop.f32.mrb[26].mxu0 }
 0x134   : > { %11508 = vmatmul.mubr.bf16.gmra.mrb[20].mxu1 %v1336_v20  ;;  %v1271_v27 = vmax.f32 %v1031_v23, 0.0  ;;  %v1034_v28 = vadd.f32 %v11418_v26, %v13110_v0  ;;  %v1025_v29 = vpop.f32.mrb[27].mxu0 }
 0x135   : > { %v1269_v30 = vmax.f32 %v1023_v25, 0.0  ;;  %v1026_v31 = vadd.f32 %v13110_v0, %v1025_v29 }
 0x136   : > { %v1272_v32 = vmax.f32 %v1034_v28, 0.0 }
 0x137   : > { %v1270_v33 = vmax.f32 %v1026_v31, 0.0 }
 0x138   : > { %v1338_v34 = vpack.c.bf16 %v1272_v32, %v1271_v27 }
 0x139   : > { %v1337_v35 = vpack.c.bf16 %v1270_v33, %v1269_v30  ;;  %v11421_v36 = vpop.f32.mrb[28].mxu0 }
 0x13a   : > { %v1047_v37 = vadd.f32 %v11421_v36, %v13110_v0  ;;  %v1038_v38 = vpop.f32.mrb[29].mxu0 }
 0x13b   : > { %11511 = vmatprep.mubr.bf16.mxu1 %v1337_v35  ;;  %v1039_v39 = vadd.f32 %v13110_v0, %v1038_v38  ;;  %v11422_v40 = vpop.f32.mrb[30].mxu0 }
 0x13c   : > { %11512 = vmatmul.mubr.bf16.gmra.mrb[24].mxu1 %v1338_v34  ;;  %v1275_v41 = vmax.f32 %v1047_v37, 0.0  ;;  %v1050_v42 = vadd.f32 %v11422_v40, %v13110_v0  ;;  %v1041_v43 = vpop.f32.mrb[31].mxu0 }
 0x13d   : > { %v1273_v44 = vmax.f32 %v1039_v39, 0.0  ;;  %v1042_v45 = vadd.f32 %v13110_v0, %v1041_v43 }
 0x13e   : > { %v1276_v46 = vmax.f32 %v1050_v42, 0.0 }
 0x13f   : > { %v1274_v47 = vmax.f32 %v1042_v45, 0.0 }
 0x140   : > { %v1340_v48 = vpack.c.bf16 %v1276_v46, %v1275_v41 }
 0x141   : > { %v1339_v49 = vpack.c.bf16 %v1274_v47, %v1273_v44  ;;  %v11425_v50 = vpop.f32.mrb[32].mxu0 }
 0x142   : > { %v1063_v51 = vadd.f32 %v11425_v50, %v13110_v0  ;;  %v1054_v52 = vpop.f32.mrb[33].mxu0 }
 0x143   : > { %11515 = vmatprep.mubr.bf16.mxu1 %v1339_v49  ;;  %v1055_v53 = vadd.f32 %v13110_v0, %v1054_v52  ;;  %v11426_v54 = vpop.f32.mrb[34].mxu0 }
 0x144   : > { %11516 = vmatmul.mubr.bf16.gmra.mrb[28].mxu1 %v1340_v48  ;;  %v1279_v55 = vmax.f32 %v1063_v51, 0.0  ;;  %v1066_v56 = vadd.f32 %v11426_v54, %v13110_v0  ;;  %v1057_v57 = vpop.f32.mrb[35].mxu0 }
 0x145   : > { %v1277_v58 = vmax.f32 %v1055_v53, 0.0  ;;  %v1058_v59 = vadd.f32 %v13110_v0, %v1057_v57 }
 0x146   : > { %v1280_v60 = vmax.f32 %v1066_v56, 0.0 }
 0x147   : > { %v1278_v61 = vmax.f32 %v1058_v59, 0.0 }
 0x148   : > { %v1342_v62 = vpack.c.bf16 %v1280_v60, %v1279_v55 }
 0x149   : > { %v1341_v63 = vpack.c.bf16 %v1278_v61, %v1277_v58  ;;  %v11429_v1 = vpop.f32.mrb[36].mxu0 }
 0x14a   : > { %v1079_v2 = vadd.f32 %v11429_v1, %v13110_v0  ;;  %v1070_v3 = vpop.f32.mrb[37].mxu0 }
 0x14b   : > { %11519 = vmatprep.mubr.bf16.mxu1 %v1341_v63  ;;  %v1071_v4 = vadd.f32 %v13110_v0, %v1070_v3  ;;  %v11430_v5 = vpop.f32.mrb[38].mxu0 }
 0x14c   : > { %11520 = vmatmul.mubr.bf16.gmra.mrb[32].mxu1 %v1342_v62  ;;  %v1283_v6 = vmax.f32 %v1079_v2, 0.0  ;;  %v1082_v7 = vadd.f32 %v11430_v5, %v13110_v0  ;;  %v1073_v8 = vpop.f32.mrb[39].mxu0 }
 0x14d   : > { %v1281_v9 = vmax.f32 %v1071_v4, 0.0  ;;  %v1074_v10 = vadd.f32 %v13110_v0, %v1073_v8 }
 0x14e   : > { %v1284_v11 = vmax.f32 %v1082_v7, 0.0 }
 0x14f   : > { %v1282_v12 = vmax.f32 %v1074_v10, 0.0 }
 0x150   : > { %v1344_v13 = vpack.c.bf16 %v1284_v11, %v1283_v6 }
 0x151   : > { %v1343_v14 = vpack.c.bf16 %v1282_v12, %v1281_v9  ;;  %v11433_v15 = vpop.f32.mrb[40].mxu0 }
 0x152   : > { %v1095_v16 = vadd.f32 %v11433_v15, %v13110_v0  ;;  %v1086_v17 = vpop.f32.mrb[41].mxu0 }
 0x153   : > { %11523 = vmatprep.mubr.bf16.mxu1 %v1343_v14  ;;  %v1087_v18 = vadd.f32 %v13110_v0, %v1086_v17  ;;  %v11434_v19 = vpop.f32.mrb[42].mxu0 }
 0x154   : > { %11524 = vmatmul.mubr.bf16.gmra.mrb[36].mxu1 %v1344_v13  ;;  %v1287_v20 = vmax.f32 %v1095_v16, 0.0  ;;  %v1098_v21 = vadd.f32 %v11434_v19, %v13110_v0  ;;  %v1089_v22 = vpop.f32.mrb[43].mxu0 }
 0x155   : > { %v1285_v23 = vmax.f32 %v1087_v18, 0.0  ;;  %v1090_v24 = vadd.f32 %v13110_v0, %v1089_v22 }
 0x156   : > { %v1288_v25 = vmax.f32 %v1098_v21, 0.0 }
 0x157   : > { %v1286_v26 = vmax.f32 %v1090_v24, 0.0 }
 0x158   : > { %v1346_v27 = vpack.c.bf16 %v1288_v25, %v1287_v20 }
 0x159   : > { %v1345_v28 = vpack.c.bf16 %v1286_v26, %v1285_v23  ;;  %v11437_v29 = vpop.f32.mrb[44].mxu0 }
 0x15a   : > { %v1111_v30 = vadd.f32 %v11437_v29, %v13110_v0  ;;  %v1102_v31 = vpop.f32.mrb[45].mxu0 }
 0x15b   : > { %11527 = vmatprep.mubr.bf16.mxu1 %v1345_v28  ;;  %v1103_v32 = vadd.f32 %v13110_v0, %v1102_v31  ;;  %v11438_v33 = vpop.f32.mrb[46].mxu0 }
 0x15c   : > { %11528 = vmatmul.mubr.bf16.gmra.mrb[40].mxu1 %v1346_v27  ;;  %v1291_v34 = vmax.f32 %v1111_v30, 0.0  ;;  %v1114_v35 = vadd.f32 %v11438_v33, %v13110_v0  ;;  %v1105_v36 = vpop.f32.mrb[47].mxu0 }
 0x15d   : > { %v1289_v37 = vmax.f32 %v1103_v32, 0.0  ;;  %v1106_v38 = vadd.f32 %v13110_v0, %v1105_v36 }
 0x15e   : > { %v1292_v39 = vmax.f32 %v1114_v35, 0.0 }
 0x15f   : > { %v1290_v40 = vmax.f32 %v1106_v38, 0.0 }
 0x160   : > { %v1348_v41 = vpack.c.bf16 %v1292_v39, %v1291_v34 }
 0x161   : > { %v1347_v42 = vpack.c.bf16 %v1290_v40, %v1289_v37  ;;  %v11441_v43 = vpop.f32.mrb[48].mxu0 }
 0x162   : > { %v1127_v44 = vadd.f32 %v11441_v43, %v13110_v0  ;;  %v1118_v45 = vpop.f32.mrb[49].mxu0 }
 0x163   : > { %11531 = vmatprep.mubr.bf16.mxu1 %v1347_v42  ;;  %v1119_v46 = vadd.f32 %v13110_v0, %v1118_v45  ;;  %v11442_v47 = vpop.f32.mrb[50].mxu0 }
 0x164   : > { %11532 = vmatmul.mubr.bf16.gmra.mrb[44].mxu1 %v1348_v41  ;;  %v1295_v48 = vmax.f32 %v1127_v44, 0.0  ;;  %v1130_v49 = vadd.f32 %v11442_v47, %v13110_v0  ;;  %v1121_v50 = vpop.f32.mrb[51].mxu0 }
 0x165   : > { %v1293_v51 = vmax.f32 %v1119_v46, 0.0  ;;  %v1122_v52 = vadd.f32 %v13110_v0, %v1121_v50 }
 0x166   : > { %v1296_v53 = vmax.f32 %v1130_v49, 0.0 }
 0x167   : > { %v1294_v54 = vmax.f32 %v1122_v52, 0.0 }
 0x168   : > { %v1350_v55 = vpack.c.bf16 %v1296_v53, %v1295_v48 }
 0x169   : > { %v1349_v56 = vpack.c.bf16 %v1294_v54, %v1293_v51  ;;  %v11445_v57 = vpop.f32.mrb[52].mxu0 }
 0x16a   : > { %v1143_v58 = vadd.f32 %v11445_v57, %v13110_v0  ;;  %v1134_v59 = vpop.f32.mrb[53].mxu0 }
 0x16b   : > { %11535 = vmatprep.mubr.bf16.mxu1 %v1349_v56  ;;  %v1135_v60 = vadd.f32 %v13110_v0, %v1134_v59  ;;  %v11446_v61 = vpop.f32.mrb[54].mxu0 }
 0x16c   : > { %11536 = vmatmul.mubr.bf16.gmra.mrb[48].mxu1 %v1350_v55  ;;  %v1299_v62 = vmax.f32 %v1143_v58, 0.0  ;;  %v1146_v63 = vadd.f32 %v11446_v61, %v13110_v0  ;;  %v1137_v1 = vpop.f32.mrb[55].mxu0 }
 0x16d   : > { %v1297_v2 = vmax.f32 %v1135_v60, 0.0  ;;  %v1138_v3 = vadd.f32 %v13110_v0, %v1137_v1  ;;  %v12394_v60 = vld [vmem:[%s17034_s2 + $0x80] sm:$0xff]  }
 0x16e   : > { %v1300_v4 = vmax.f32 %v1146_v63, 0.0  ;;  %11663 = vmatprep.subr.bf16.mxu1 %v12394_v60 }
 0x16f   : > { %v1298_v5 = vmax.f32 %v1138_v3, 0.0  ;;  %11664 = vmatpush3.bf16.msra.mxu1 %v12394_v60 }
 0x170   : > { %v1352_v6 = vpack.c.bf16 %v1300_v4, %v1299_v62 }
 0x171   : > { %v1351_v7 = vpack.c.bf16 %v1298_v5, %v1297_v2  ;;  %v11449_v8 = vpop.f32.mrb[56].mxu0 }
 0x172   : > { %v1159_v9 = vadd.f32 %v11449_v8, %v13110_v0  ;;  %v1150_v10 = vpop.f32.mrb[57].mxu0 }
 0x173   : > { %11539 = vmatprep.mubr.bf16.mxu1 %v1351_v7  ;;  %v1151_v11 = vadd.f32 %v13110_v0, %v1150_v10  ;;  %v11450_v12 = vpop.f32.mrb[58].mxu0 }
 0x174   : > { %11540 = vmatmul.mubr.bf16.gmra.mrb[52].mxu1 %v1352_v6  ;;  %v1303_v13 = vmax.f32 %v1159_v9, 0.0  ;;  %v1162_v14 = vadd.f32 %v11450_v12, %v13110_v0  ;;  %v1153_v15 = vpop.f32.mrb[59].mxu0 }
 0x175   : > { %v1301_v16 = vmax.f32 %v1151_v11, 0.0  ;;  %v1154_v17 = vadd.f32 %v13110_v0, %v1153_v15 }
 0x176   : > { %v1304_v18 = vmax.f32 %v1162_v14, 0.0 }
 0x177   : > { %v1302_v19 = vmax.f32 %v1154_v17, 0.0 }
 0x178   : > { %v1354_v20 = vpack.c.bf16 %v1304_v18, %v1303_v13 }
 0x179   : > { %v1353_v21 = vpack.c.bf16 %v1302_v19, %v1301_v16  ;;  %v11453_v22 = vpop.f32.mrb[60].mxu0  ;;  %v12395_v19 = vld [vmem:[%s17034_s2 + $0x88] sm:$0xff]  }
 0x17a   : > { %v1175_v23 = vadd.f32 %v11453_v22, %v13110_v0  ;;  %v1166_v24 = vpop.f32.mrb[61].mxu0  ;;  %11665 = vmatprep.subr.bf16.mxu1 %v12395_v19 }
 0x17b   : > { %11543 = vmatprep.mubr.bf16.mxu1 %v1353_v21  ;;  %v1167_v25 = vadd.f32 %v13110_v0, %v1166_v24  ;;  %v11454_v26 = vpop.f32.mrb[62].mxu0  ;;  %11666 = vmatpush3.bf16.msra.mxu1 %v12395_v19 }
 0x17c   : > { %11544 = vmatmul.mubr.bf16.gmra.mrb[56].mxu1 %v1354_v20  ;;  %v1307_v27 = vmax.f32 %v1175_v23, 0.0  ;;  %v1178_v28 = vadd.f32 %v11454_v26, %v13110_v0  ;;  %v1169_v29 = vpop.f32.mrb[63].mxu0 }
 0x17d   : > { %v1305_v30 = vmax.f32 %v1167_v25, 0.0  ;;  %v1170_v31 = vadd.f32 %v13110_v0, %v1169_v29 }
 0x17e   : > { %v1308_v32 = vmax.f32 %v1178_v28, 0.0 }
 0x17f   : > { %v1306_v33 = vmax.f32 %v1170_v31, 0.0  ;;  %v12396_v31 = vld [vmem:[%s17034_s2 + $0x90] sm:$0xff]  }
 0x180   : > { %v1356_v34 = vpack.c.bf16 %v1308_v32, %v1307_v27  ;;  %11667 = vmatprep.subr.bf16.mxu1 %v12396_v31  ;;  %v12397_v32 = vld [vmem:[%s17034_s2 + $0x98] sm:$0xff]  }
 0x181   : > { %v1355_v35 = vpack.c.bf16 %v1306_v33, %v1305_v30  ;;  %v11457_v36 = vpop.f32.mrb[64].mxu0  ;;  %11668 = vmatpush3.bf16.msra.mxu1 %v12396_v31  ;;  %v12399_v33 = vld [vmem:[%s17034_s2 + $0xa8] sm:$0xff]  }
 0x182   : > { %v1191_v37 = vadd.f32 %v11457_v36, %v13110_v0  ;;  %v1182_v38 = vpop.f32.mrb[65].mxu0  ;;  %11669 = vmatprep.subr.bf16.mxu1 %v12397_v32  ;;  %v13219_v36 = vld [vmem:[%s17037_s5 + $0x1] ss:$0 sm:$0xff] }
 0x183   : > { %11547 = vmatprep.mubr.bf16.mxu1 %v1355_v35  ;;  %v1183_v39 = vadd.f32 %v13110_v0, %v1182_v38  ;;  %v11458_v40 = vpop.f32.mrb[66].mxu0  ;;  %v12401_v35 = vld [vmem:[%s17034_s2 + $0xb8] sm:$0xff]  }
 0x184   : > { %11548 = vmatmul.mubr.bf16.gmra.mrb[60].mxu1 %v1356_v34  ;;  %v1311_v41 = vmax.f32 %v1191_v37, 0.0  ;;  %v1194_v42 = vadd.f32 %v11458_v40, %v13110_v0  ;;  %v1185_v43 = vpop.f32.mrb[67].mxu0  ;;  %v12400_v34 = vld [vmem:[%s17034_s2 + $0xb0] sm:$0xff]  }
 0x185   : > { %v1309_v44 = vmax.f32 %v1183_v39, 0.0  ;;  %v1186_v45 = vadd.f32 %v13110_v0, %v1185_v43  ;;  %11670 = vmatpush3.bf16.msra.mxu1 %v12397_v32 }
 0x186   : > { %v1312_v46 = vmax.f32 %v1194_v42, 0.0 }
 0x187   : > { %v1310_v47 = vmax.f32 %v1186_v45, 0.0 }
 0x188   : > { %v1358_v48 = vpack.c.bf16 %v1312_v46, %v1311_v41 }
 0x189   : > { %v1357_v49 = vpack.c.bf16 %v1310_v47, %v1309_v44  ;;  %v11461_v50 = vpop.f32.mrb[68].mxu0 }
 0x18a   : > { %v1207_v51 = vadd.f32 %v11461_v50, %v13110_v0  ;;  %v1198_v52 = vpop.f32.mrb[69].mxu0 }
 0x18b   : > { %11551 = vmatprep.mubr.bf16.mxu1 %v1357_v49  ;;  %v1199_v53 = vadd.f32 %v13110_v0, %v1198_v52  ;;  %v11462_v54 = vpop.f32.mrb[70].mxu0 }
 0x18c   : > { %11552 = vmatmul.mubr.bf16.gmra.mrb[64].mxu1 %v1358_v48  ;;  %v1315_v55 = vmax.f32 %v1207_v51, 0.0  ;;  %v1210_v56 = vadd.f32 %v11462_v54, %v13110_v0  ;;  %v1201_v57 = vpop.f32.mrb[71].mxu0 }
 0x18d   : > { %v1313_v58 = vmax.f32 %v1199_v53, 0.0  ;;  %v1202_v59 = vadd.f32 %v13110_v0, %v1201_v57 }
 0x18e   : > { %v1316_v61 = vmax.f32 %v1210_v56, 0.0 }
 0x18f   : > { %v1314_v62 = vmax.f32 %v1202_v59, 0.0 }
 0x190   : > { %v1360_v63 = vpack.c.bf16 %v1316_v61, %v1315_v55 }
 0x191   : > { %v1359_v1 = vpack.c.bf16 %v1314_v62, %v1313_v58  ;;  %v11465_v2 = vpop.f32.mrb[72].mxu0 }
 0x192   : > { %v1223_v3 = vadd.f32 %v11465_v2, %v13110_v0  ;;  %v1214_v4 = vpop.f32.mrb[73].mxu0 }
 0x193   : > { %11555 = vmatprep.mubr.bf16.mxu1 %v1359_v1  ;;  %v1215_v5 = vadd.f32 %v13110_v0, %v1214_v4  ;;  %v11466_v6 = vpop.f32.mrb[74].mxu0 }
 0x194   : > { %11556 = vmatmul.mubr.bf16.gmra.mrb[68].mxu1 %v1360_v63  ;;  %v1319_v7 = vmax.f32 %v1223_v3, 0.0  ;;  %v1226_v8 = vadd.f32 %v11466_v6, %v13110_v0  ;;  %v1217_v9 = vpop.f32.mrb[75].mxu0 }
 0x195   : > { %v1317_v10 = vmax.f32 %v1215_v5, 0.0  ;;  %v1218_v11 = vadd.f32 %v13110_v0, %v1217_v9 }
 0x196   : > { %v1320_v12 = vmax.f32 %v1226_v8, 0.0 }
 0x197   : > { %v1318_v13 = vmax.f32 %v1218_v11, 0.0 }
 0x198   : > { %v1362_v14 = vpack.c.bf16 %v1320_v12, %v1319_v7 }
 0x199   : > { %v1361_v15 = vpack.c.bf16 %v1318_v13, %v1317_v10  ;;  %v11469_v16 = vpop.f32.mrb[76].mxu0 }
 0x19a   : > { %v1239_v17 = vadd.f32 %v11469_v16, %v13110_v0  ;;  %v1230_v18 = vpop.f32.mrb[77].mxu0 }
 0x19b   : > { %11559 = vmatprep.mubr.bf16.mxu1 %v1361_v15  ;;  %v1231_v20 = vadd.f32 %v13110_v0, %v1230_v18  ;;  %v11470_v21 = vpop.f32.mrb[78].mxu0 }
 0x19c   : > { %11560 = vmatmul.mubr.bf16.gmra.mrb[72].mxu1 %v1362_v14  ;;  %v1323_v22 = vmax.f32 %v1239_v17, 0.0  ;;  %v1242_v23 = vadd.f32 %v11470_v21, %v13110_v0  ;;  %v1233_v24 = vpop.f32.mrb[79].mxu0 }
 0x19d   : > { %v1321_v25 = vmax.f32 %v1231_v20, 0.0  ;;  %v1234_v26 = vadd.f32 %v13110_v0, %v1233_v24  ;;  %v12398_v0 = vld [vmem:[%s17034_s2 + $0xa0] sm:$0xff]  }
 0x19e   : > { %v1324_v27 = vmax.f32 %v1242_v23, 0.0  ;;  %11671 = vmatprep.subr.bf16.mxu1 %v12398_v0 }
 0x19f   : > { %v1322_v28 = vmax.f32 %v1234_v26, 0.0  ;;  %11672 = vmatpush3.bf16.msra.mxu1 %v12398_v0 }
 0x1a0   : > { %v1364_v29 = vpack.c.bf16 %v1324_v27, %v1323_v22  ;;  %11673 = vmatprep.subr.bf16.mxu1 %v12399_v33 }
 0x1a1   : > { %v1363_v30 = vpack.c.bf16 %v1322_v28, %v1321_v25 }
 0x1a3   : > { %11563 = vmatprep.mubr.bf16.mxu1 %v1363_v30  ;;  %11674 = vmatpush3.bf16.msra.mxu1 %v12399_v33 }
 0x1a4   : > { %11564 = vmatmul.mubr.bf16.gmra.mrb[76].mxu1 %v1364_v29  ;;  %11675 = vmatprep.subr.bf16.mxu1 %v12400_v34 }
 0x1a7   : > { %11676 = vmatpush3.bf16.msra.mxu1 %v12400_v34 }
 0x1a8   : > { %11677 = vmatprep.subr.bf16.mxu1 %v12401_v35 }
 0x1ab   : > { %11678 = vmatpush3.bf16.msra.mxu1 %v12401_v35 }
 0x1df   : > { %v11489_v37 = vpop.f32.mrb[0].mxu1 }
 0x1e0   : > { %v1480_v38 = vadd.f32 %v11489_v37, %v13219_v36  ;;  %v1471_v39 = vpop.f32.mrb[1].mxu1 }
 0x1e1   : > { %v1472_v40 = vadd.f32 %v13219_v36, %v1471_v39  ;;  %v11490_v41 = vpop.f32.mrb[2].mxu1 }
 0x1e2   : > { %v1483_v42 = vadd.f32 %v11490_v41, %v13219_v36  ;;  %v1474_v43 = vpop.f32.mrb[3].mxu1  ;;  %v1792_v45 = vmax.f32 %v1480_v38, 0.0 }
 0x1e3   : > { %v1475_v44 = vadd.f32 %v13219_v36, %v1474_v43  ;;  %v1790_v47 = vmax.f32 %v1472_v40, 0.0 }
 0x1e4   : > { %v1793_v46 = vmax.f32 %v1483_v42, 0.0 }
 0x1e5   : > { %v1791_v48 = vmax.f32 %v1475_v44, 0.0 }
 0x1e6   : > { %v1871_v49 = vpack.c.bf16 %v1793_v46, %v1792_v45 }
 0x1e7   : > { %v11493_v50 = vpop.f32.mrb[4].mxu1  ;;  %v1870_v51 = vpack.c.bf16 %v1791_v48, %v1790_v47 }
 0x1e8   : > { %v1496_v52 = vadd.f32 %v11493_v50, %v13219_v36  ;;  %v1487_v53 = vpop.f32.mrb[5].mxu1 }
 0x1e9   : > { %v1488_v54 = vadd.f32 %v13219_v36, %v1487_v53  ;;  %v11494_v55 = vpop.f32.mrb[6].mxu1  ;;  %11583 = vmatprep.mubr.bf16.mxu0 %v1870_v51 }
 0x1ea   : > { %v1796_v56 = vmax.f32 %v1496_v52, 0.0  ;;  %v1499_v57 = vadd.f32 %v11494_v55, %v13219_v36  ;;  %v1490_v58 = vpop.f32.mrb[7].mxu1  ;;  %11584 = vmatmul.mubr.bf16.vlgmr.msra.gmra.mrb[80].mxu0 %v1871_v49 }
 0x1eb   : > { %v1794_v59 = vmax.f32 %v1488_v54, 0.0  ;;  %v1491_v60 = vadd.f32 %v13219_v36, %v1490_v58 }
 0x1ec   : > { %v1797_v61 = vmax.f32 %v1499_v57, 0.0 }
 0x1ed   : > { %v1795_v62 = vmax.f32 %v1491_v60, 0.0 }
 0x1ee   : > { %v1873_v63 = vpack.c.bf16 %v1797_v61, %v1796_v56 }
 0x1ef   : > { %v11497_v1 = vpop.f32.mrb[8].mxu1  ;;  %v1872_v2 = vpack.c.bf16 %v1795_v62, %v1794_v59 }
 0x1f0   : > { %v1512_v3 = vadd.f32 %v11497_v1, %v13219_v36  ;;  %v1503_v4 = vpop.f32.mrb[9].mxu1 }
 0x1f1   : > { %v1504_v5 = vadd.f32 %v13219_v36, %v1503_v4  ;;  %11587 = vmatprep.mubr.bf16.mxu0 %v1872_v2  ;;  %v11498_v6 = vpop.f32.mrb[10].mxu1 }
 0x1f2   : > { %v1800_v7 = vmax.f32 %v1512_v3, 0.0  ;;  %v1515_v8 = vadd.f32 %v11498_v6, %v13219_v36  ;;  %11588 = vmatmul.mubr.bf16.gmra.mrb[84].mxu0 %v1873_v63  ;;  %v1506_v9 = vpop.f32.mrb[11].mxu1 }
 0x1f3   : > { %v1798_v10 = vmax.f32 %v1504_v5, 0.0  ;;  %v1507_v11 = vadd.f32 %v13219_v36, %v1506_v9 }
 0x1f4   : > { %v1801_v12 = vmax.f32 %v1515_v8, 0.0 }
 0x1f5   : > { %v1799_v13 = vmax.f32 %v1507_v11, 0.0 }
 0x1f6   : > { %v1875_v14 = vpack.c.bf16 %v1801_v12, %v1800_v7 }
 0x1f7   : > { %v1874_v15 = vpack.c.bf16 %v1799_v13, %v1798_v10  ;;  %v11501_v16 = vpop.f32.mrb[12].mxu1 }
 0x1f8   : > { %v1528_v17 = vadd.f32 %v11501_v16, %v13219_v36  ;;  %v1519_v18 = vpop.f32.mrb[13].mxu1 }
 0x1f9   : > { %11591 = vmatprep.mubr.bf16.mxu0 %v1874_v15  ;;  %v1520_v19 = vadd.f32 %v13219_v36, %v1519_v18  ;;  %v11502_v20 = vpop.f32.mrb[14].mxu1 }
 0x1fa   : > { %11592 = vmatmul.mubr.bf16.gmra.mrb[88].mxu0 %v1875_v14  ;;  %v1804_v21 = vmax.f32 %v1528_v17, 0.0  ;;  %v1531_v22 = vadd.f32 %v11502_v20, %v13219_v36  ;;  %v1522_v23 = vpop.f32.mrb[15].mxu1 }
 0x1fb   : > { %v1802_v24 = vmax.f32 %v1520_v19, 0.0  ;;  %v1523_v25 = vadd.f32 %v13219_v36, %v1522_v23 }
 0x1fc   : > { %v1805_v26 = vmax.f32 %v1531_v22, 0.0 }
 0x1fd   : > { %v1803_v27 = vmax.f32 %v1523_v25, 0.0 }
 0x1fe   : > { %v1877_v28 = vpack.c.bf16 %v1805_v26, %v1804_v21 }
 0x1ff   : > { %v1876_v29 = vpack.c.bf16 %v1803_v27, %v1802_v24  ;;  %v11505_v30 = vpop.f32.mrb[16].mxu1 }
 0x200   : > { %v1544_v31 = vadd.f32 %v11505_v30, %v13219_v36  ;;  %v1535_v32 = vpop.f32.mrb[17].mxu1 }
 0x201   : > { %11595 = vmatprep.mubr.bf16.mxu0 %v1876_v29  ;;  %v1536_v0 = vadd.f32 %v13219_v36, %v1535_v32  ;;  %v11506_v33 = vpop.f32.mrb[18].mxu1 }
 0x202   : > { %11596 = vmatmul.mubr.bf16.gmra.mrb[92].mxu0 %v1877_v28  ;;  %v1808_v34 = vmax.f32 %v1544_v31, 0.0  ;;  %v1547_v35 = vadd.f32 %v11506_v33, %v13219_v36  ;;  %v1538_v37 = vpop.f32.mrb[19].mxu1 }
 0x203   : > { %v1806_v38 = vmax.f32 %v1536_v0, 0.0  ;;  %v1539_v39 = vadd.f32 %v13219_v36, %v1538_v37 }
 0x204   : > { %v1809_v40 = vmax.f32 %v1547_v35, 0.0 }
 0x205   : > { %v1807_v41 = vmax.f32 %v1539_v39, 0.0 }
 0x206   : > { %v1879_v42 = vpack.c.bf16 %v1809_v40, %v1808_v34 }
 0x207   : > { %v1878_v43 = vpack.c.bf16 %v1807_v41, %v1806_v38  ;;  %v11509_v44 = vpop.f32.mrb[20].mxu1 }
 0x208   : > { %v1560_v45 = vadd.f32 %v11509_v44, %v13219_v36  ;;  %v1551_v46 = vpop.f32.mrb[21].mxu1 }
 0x209   : > { %11599 = vmatprep.mubr.bf16.mxu0 %v1878_v43  ;;  %v1552_v47 = vadd.f32 %v13219_v36, %v1551_v46  ;;  %v11510_v48 = vpop.f32.mrb[22].mxu1 }
 0x20a   : > { %11600 = vmatmul.mubr.bf16.gmra.mrb[96].mxu0 %v1879_v42  ;;  %v1812_v49 = vmax.f32 %v1560_v45, 0.0  ;;  %v1563_v50 = vadd.f32 %v11510_v48, %v13219_v36  ;;  %v1554_v51 = vpop.f32.mrb[23].mxu1 }
 0x20b   : > { %v1810_v52 = vmax.f32 %v1552_v47, 0.0  ;;  %v1555_v53 = vadd.f32 %v13219_v36, %v1554_v51 }
 0x20c   : > { %v1813_v54 = vmax.f32 %v1563_v50, 0.0 }
 0x20d   : > { %v1811_v55 = vmax.f32 %v1555_v53, 0.0 }
 0x20e   : > { %v1881_v56 = vpack.c.bf16 %v1813_v54, %v1812_v49 }
 0x20f   : > { %v1880_v57 = vpack.c.bf16 %v1811_v55, %v1810_v52  ;;  %v11513_v58 = vpop.f32.mrb[24].mxu1 }
 0x210   : > { %v1576_v59 = vadd.f32 %v11513_v58, %v13219_v36  ;;  %v1567_v60 = vpop.f32.mrb[25].mxu1 }
 0x211   : > { %11603 = vmatprep.mubr.bf16.mxu0 %v1880_v57  ;;  %v1568_v61 = vadd.f32 %v13219_v36, %v1567_v60  ;;  %v11514_v62 = vpop.f32.mrb[26].mxu1 }
 0x212   : > { %11604 = vmatmul.mubr.bf16.gmra.mrb[100].mxu0 %v1881_v56  ;;  %v1816_v63 = vmax.f32 %v1576_v59, 0.0  ;;  %v1579_v1 = vadd.f32 %v11514_v62, %v13219_v36  ;;  %v1570_v2 = vpop.f32.mrb[27].mxu1 }
 0x213   : > { %v1814_v3 = vmax.f32 %v1568_v61, 0.0  ;;  %v1571_v4 = vadd.f32 %v13219_v36, %v1570_v2 }
 0x214   : > { %v1817_v5 = vmax.f32 %v1579_v1, 0.0 }
 0x215   : > { %v1815_v6 = vmax.f32 %v1571_v4, 0.0 }
 0x216   : > { %v1883_v7 = vpack.c.bf16 %v1817_v5, %v1816_v63 }
 0x217   : > { %v1882_v8 = vpack.c.bf16 %v1815_v6, %v1814_v3  ;;  %v11517_v9 = vpop.f32.mrb[28].mxu1 }
 0x218   : > { %v1592_v10 = vadd.f32 %v11517_v9, %v13219_v36  ;;  %v1583_v11 = vpop.f32.mrb[29].mxu1 }
 0x219   : > { %11607 = vmatprep.mubr.bf16.mxu0 %v1882_v8  ;;  %v1584_v12 = vadd.f32 %v13219_v36, %v1583_v11  ;;  %v11518_v13 = vpop.f32.mrb[30].mxu1 }
 0x21a   : > { %11608 = vmatmul.mubr.bf16.gmra.mrb[104].mxu0 %v1883_v7  ;;  %v1820_v14 = vmax.f32 %v1592_v10, 0.0  ;;  %v1595_v15 = vadd.f32 %v11518_v13, %v13219_v36  ;;  %v1586_v16 = vpop.f32.mrb[31].mxu1 }
 0x21b   : > { %v1818_v17 = vmax.f32 %v1584_v12, 0.0  ;;  %v1587_v18 = vadd.f32 %v13219_v36, %v1586_v16 }
 0x21c   : > { %v1821_v19 = vmax.f32 %v1595_v15, 0.0 }
 0x21d   : > { %v1819_v20 = vmax.f32 %v1587_v18, 0.0 }
 0x21e   : > { %v1885_v21 = vpack.c.bf16 %v1821_v19, %v1820_v14 }
 0x21f   : > { %v1884_v22 = vpack.c.bf16 %v1819_v20, %v1818_v17  ;;  %v11521_v23 = vpop.f32.mrb[32].mxu1 }
 0x220   : > { %v1608_v24 = vadd.f32 %v11521_v23, %v13219_v36  ;;  %v1599_v25 = vpop.f32.mrb[33].mxu1 }
 0x221   : > { %11611 = vmatprep.mubr.bf16.mxu0 %v1884_v22  ;;  %v1600_v26 = vadd.f32 %v13219_v36, %v1599_v25  ;;  %v11522_v27 = vpop.f32.mrb[34].mxu1 }
 0x222   : > { %11612 = vmatmul.mubr.bf16.gmra.mrb[108].mxu0 %v1885_v21  ;;  %v1824_v28 = vmax.f32 %v1608_v24, 0.0  ;;  %v1611_v29 = vadd.f32 %v11522_v27, %v13219_v36  ;;  %v1602_v30 = vpop.f32.mrb[35].mxu1 }
 0x223   : > { %v1822_v31 = vmax.f32 %v1600_v26, 0.0  ;;  %v1603_v32 = vadd.f32 %v13219_v36, %v1602_v30 }
 0x224   : > { %v1825_v0 = vmax.f32 %v1611_v29, 0.0 }
 0x225   : > { %v1823_v33 = vmax.f32 %v1603_v32, 0.0 }
 0x226   : > { %v1887_v34 = vpack.c.bf16 %v1825_v0, %v1824_v28 }
 0x227   : > { %v1886_v35 = vpack.c.bf16 %v1823_v33, %v1822_v31  ;;  %v11525_v37 = vpop.f32.mrb[36].mxu1 }
 0x228   : > { %v1624_v38 = vadd.f32 %v11525_v37, %v13219_v36  ;;  %v1615_v39 = vpop.f32.mrb[37].mxu1 }
 0x229   : > { %11615 = vmatprep.mubr.bf16.mxu0 %v1886_v35  ;;  %v1616_v40 = vadd.f32 %v13219_v36, %v1615_v39  ;;  %v11526_v41 = vpop.f32.mrb[38].mxu1 }
 0x22a   : > { %11616 = vmatmul.mubr.bf16.gmra.mrb[112].mxu0 %v1887_v34  ;;  %v1828_v42 = vmax.f32 %v1624_v38, 0.0  ;;  %v1627_v43 = vadd.f32 %v11526_v41, %v13219_v36  ;;  %v1618_v44 = vpop.f32.mrb[39].mxu1 }
 0x22b   : > { %v1826_v45 = vmax.f32 %v1616_v40, 0.0  ;;  %v1619_v46 = vadd.f32 %v13219_v36, %v1618_v44 }
 0x22c   : > { %v1829_v47 = vmax.f32 %v1627_v43, 0.0 }
 0x22d   : > { %v1827_v48 = vmax.f32 %v1619_v46, 0.0 }
 0x22e   : > { %v1889_v49 = vpack.c.bf16 %v1829_v47, %v1828_v42 }
 0x22f   : > { %v1888_v50 = vpack.c.bf16 %v1827_v48, %v1826_v45  ;;  %v11529_v51 = vpop.f32.mrb[40].mxu1 }
 0x230   : > { %v1640_v52 = vadd.f32 %v11529_v51, %v13219_v36  ;;  %v1631_v53 = vpop.f32.mrb[41].mxu1 }
 0x231   : > { %11619 = vmatprep.mubr.bf16.mxu0 %v1888_v50  ;;  %v1632_v54 = vadd.f32 %v13219_v36, %v1631_v53  ;;  %v11530_v55 = vpop.f32.mrb[42].mxu1 }
 0x232   : > { %11620 = vmatmul.mubr.bf16.gmra.mrb[116].mxu0 %v1889_v49  ;;  %v1832_v56 = vmax.f32 %v1640_v52, 0.0  ;;  %v1643_v57 = vadd.f32 %v11530_v55, %v13219_v36  ;;  %v1634_v58 = vpop.f32.mrb[43].mxu1 }
 0x233   : > { %v1830_v59 = vmax.f32 %v1632_v54, 0.0  ;;  %v1635_v60 = vadd.f32 %v13219_v36, %v1634_v58 }
 0x234   : > { %v1833_v61 = vmax.f32 %v1643_v57, 0.0 }
 0x235   : > { %v1831_v62 = vmax.f32 %v1635_v60, 0.0 }
 0x236   : > { %v1891_v63 = vpack.c.bf16 %v1833_v61, %v1832_v56 }
 0x237   : > { %v1890_v1 = vpack.c.bf16 %v1831_v62, %v1830_v59  ;;  %v11533_v2 = vpop.f32.mrb[44].mxu1 }
 0x238   : > { %v1656_v3 = vadd.f32 %v11533_v2, %v13219_v36  ;;  %v1647_v4 = vpop.f32.mrb[45].mxu1 }
 0x239   : > { %11623 = vmatprep.mubr.bf16.mxu0 %v1890_v1  ;;  %v1648_v5 = vadd.f32 %v13219_v36, %v1647_v4  ;;  %v11534_v6 = vpop.f32.mrb[46].mxu1 }
 0x23a   : > { %11624 = vmatmul.mubr.bf16.gmra.mrb[120].mxu0 %v1891_v63  ;;  %v1836_v7 = vmax.f32 %v1656_v3, 0.0  ;;  %v1659_v8 = vadd.f32 %v11534_v6, %v13219_v36  ;;  %v1650_v9 = vpop.f32.mrb[47].mxu1 }
 0x23b   : > { %v1834_v10 = vmax.f32 %v1648_v5, 0.0  ;;  %v1651_v11 = vadd.f32 %v13219_v36, %v1650_v9 }
 0x23c   : > { %v1837_v12 = vmax.f32 %v1659_v8, 0.0 }
 0x23d   : > { %v1835_v13 = vmax.f32 %v1651_v11, 0.0 }
 0x23e   : > { %v1893_v14 = vpack.c.bf16 %v1837_v12, %v1836_v7 }
 0x23f   : > { %v1892_v15 = vpack.c.bf16 %v1835_v13, %v1834_v10  ;;  %v11537_v16 = vpop.f32.mrb[48].mxu1 }
 0x240   : > { %v1672_v17 = vadd.f32 %v11537_v16, %v13219_v36  ;;  %v1663_v18 = vpop.f32.mrb[49].mxu1 }
 0x241   : > { %11627 = vmatprep.mubr.bf16.mxu0 %v1892_v15  ;;  %v1664_v19 = vadd.f32 %v13219_v36, %v1663_v18  ;;  %v11538_v20 = vpop.f32.mrb[50].mxu1 }
 0x242   : > { %11628 = vmatmul.mubr.bf16.gmra.mrb[124].mxu0 %v1893_v14  ;;  %v1840_v21 = vmax.f32 %v1672_v17, 0.0  ;;  %v1675_v22 = vadd.f32 %v11538_v20, %v13219_v36  ;;  %v1666_v23 = vpop.f32.mrb[51].mxu1 }
 0x243   : > { %v1838_v24 = vmax.f32 %v1664_v19, 0.0  ;;  %v1667_v25 = vadd.f32 %v13219_v36, %v1666_v23 }
 0x244   : > { %v1841_v26 = vmax.f32 %v1675_v22, 0.0 }
 0x245   : > { %v1839_v27 = vmax.f32 %v1667_v25, 0.0 }
 0x246   : > { %v1895_v28 = vpack.c.bf16 %v1841_v26, %v1840_v21 }
 0x247   : > { %v1894_v29 = vpack.c.bf16 %v1839_v27, %v1838_v24  ;;  %v11541_v30 = vpop.f32.mrb[52].mxu1 }
 0x248   : > { %v1688_v31 = vadd.f32 %v11541_v30, %v13219_v36  ;;  %v1679_v32 = vpop.f32.mrb[53].mxu1 }
 0x249   : > { %11631 = vmatprep.mubr.bf16.mxu0 %v1894_v29  ;;  %v1680_v0 = vadd.f32 %v13219_v36, %v1679_v32  ;;  %v11542_v33 = vpop.f32.mrb[54].mxu1 }
 0x24a   : > { %11632 = vmatmul.mubr.bf16.gmra.mrb[128].mxu0 %v1895_v28  ;;  %v1844_v34 = vmax.f32 %v1688_v31, 0.0  ;;  %v1691_v35 = vadd.f32 %v11542_v33, %v13219_v36  ;;  %v1682_v37 = vpop.f32.mrb[55].mxu1 }
 0x24b   : > { %v1842_v38 = vmax.f32 %v1680_v0, 0.0  ;;  %v1683_v39 = vadd.f32 %v13219_v36, %v1682_v37  ;;  %v12402_v0 = vld [vmem:[%s17035_s3] sm:$0xff]  }
 0x24c   : > { %v1845_v40 = vmax.f32 %v1691_v35, 0.0 }
 0x24d   : > { %v1843_v41 = vmax.f32 %v1683_v39, 0.0 }
 0x24e   : > { %v1897_v42 = vpack.c.bf16 %v1845_v40, %v1844_v34  ;;  %v12911_v34 = vmov 0  }
 0x24f   : > { %v1896_v43 = vpack.c.bf16 %v1843_v41, %v1842_v38  ;;  %v11545_v44 = vpop.f32.mrb[56].mxu1  ;;  %3298 = vmatprep.subr.bf16.mxu0 %v12911_v34  ;;  %12328 = vset.pattern.permute.xlu0 %v12911_v34 }
 0x250   : > { %v1704_v45 = vadd.f32 %v11545_v44, %v13219_v36  ;;  %v1695_v46 = vpop.f32.mrb[57].mxu1  ;;  %3299 = vmatpush1.bf16.msra.mxu0 %v12402_v0  ;;  %12329 = vset.pattern.permute.xlu1 %v12911_v34  ;;  %v12403_v44 = vld [vmem:[%s17035_s3 + $0x8] sm:$0xff]  }
 0x251   : > { %11635 = vmatprep.mubr.bf16.mxu0 %v1896_v43  ;;  %v1696_v47 = vadd.f32 %v13219_v36, %v1695_v46  ;;  %v11546_v48 = vpop.f32.mrb[58].mxu1  ;;  %3300 = vmatprep.subr.bf16.mxu0 %v12911_v34 }
 0x252   : > { %11636 = vmatmul.mubr.bf16.gmra.mrb[132].mxu0 %v1897_v42  ;;  %v1848_v49 = vmax.f32 %v1704_v45, 0.0  ;;  %v1707_v50 = vadd.f32 %v11546_v48, %v13219_v36  ;;  %v1698_v51 = vpop.f32.mrb[59].mxu1 }
 0x253   : > { %v1846_v52 = vmax.f32 %v1696_v47, 0.0  ;;  %v1699_v53 = vadd.f32 %v13219_v36, %v1698_v51 }
 0x254   : > { %v1849_v54 = vmax.f32 %v1707_v50, 0.0  ;;  %3301 = vmatpush1.bf16.msra.mxu0 %v12403_v44 }
 0x255   : > { %v1847_v55 = vmax.f32 %v1699_v53, 0.0  ;;  %3302 = vmatprep.subr.bf16.mxu0 %v12911_v34 }
 0x256   : > { %v1899_v56 = vpack.c.bf16 %v1849_v54, %v1848_v49 }
 0x257   : > { %v1898_v57 = vpack.c.bf16 %v1847_v55, %v1846_v52  ;;  %v11549_v58 = vpop.f32.mrb[60].mxu1 }
 0x258   : > { %v1720_v59 = vadd.f32 %v11549_v58, %v13219_v36  ;;  %v1711_v60 = vpop.f32.mrb[61].mxu1 }
 0x259   : > { %11639 = vmatprep.mubr.bf16.mxu0 %v1898_v57  ;;  %v1712_v61 = vadd.f32 %v13219_v36, %v1711_v60  ;;  %v11550_v62 = vpop.f32.mrb[62].mxu1  ;;  %v12404_v57 = vld [vmem:[%s17035_s3 + $0x10] sm:$0xff]  }
 0x25a   : > { %11640 = vmatmul.mubr.bf16.gmra.mrb[136].mxu0 %v1899_v56  ;;  %v1852_v63 = vmax.f32 %v1720_v59, 0.0  ;;  %v1723_v1 = vadd.f32 %v11550_v62, %v13219_v36  ;;  %v1714_v2 = vpop.f32.mrb[63].mxu1 }
 0x25b   : > { %v1850_v3 = vmax.f32 %v1712_v61, 0.0  ;;  %v1715_v4 = vadd.f32 %v13219_v36, %v1714_v2  ;;  %3303 = vmatpush1.bf16.msra.mxu0 %v12404_v57  ;;  %v12405_v2 = vld [vmem:[%s17035_s3 + $0x18] sm:$0xff]  }
 0x25c   : > { %v1853_v5 = vmax.f32 %v1723_v1, 0.0  ;;  %3304 = vmatprep.subr.bf16.mxu0 %v12911_v34 }
 0x25d   : > { %v1851_v6 = vmax.f32 %v1715_v4, 0.0 }
 0x25e   : > { %v1901_v7 = vpack.c.bf16 %v1853_v5, %v1852_v63 }
 0x25f   : > { %v1900_v8 = vpack.c.bf16 %v1851_v6, %v1850_v3  ;;  %v11553_v9 = vpop.f32.mrb[64].mxu1  ;;  %3305 = vmatpush1.bf16.msra.mxu0 %v12405_v2 }
 0x260   : > { %v1736_v10 = vadd.f32 %v11553_v9, %v13219_v36  ;;  %v1727_v11 = vpop.f32.mrb[65].mxu1  ;;  %3306 = vmatprep.subr.bf16.mxu0 %v12911_v34  ;;  %v12408_v9 = vld [vmem:[%s17035_s3 + $0x30] sm:$0xff]  }
 0x261   : > { %11643 = vmatprep.mubr.bf16.mxu0 %v1900_v8  ;;  %v1728_v12 = vadd.f32 %v13219_v36, %v1727_v11  ;;  %v11554_v13 = vpop.f32.mrb[66].mxu1  ;;  %v12858_v8 = vld [vmem:[%s13005_s17] ss:$8 sps:$4 sm:$0xff]  }
 0x262   : > { %11644 = vmatmul.mubr.bf16.gmra.mrb[140].mxu0 %v1901_v7  ;;  %v1856_v14 = vmax.f32 %v1736_v10, 0.0  ;;  %v1739_v15 = vadd.f32 %v11554_v13, %v13219_v36  ;;  %v1730_v16 = vpop.f32.mrb[67].mxu1  ;;  %v12406_v7 = vld [vmem:[%s17035_s3 + $0x20] sm:$0xff]   ;;  %v12409_v10 = vld [vmem:[%s17035_s3 + $0x38] sm:$0xff]   ;;  %v12412_v13 = vld [vmem:[%s17035_s3 + $0x50] sm:$0xff]  }
 0x263   : > { %v1854_v17 = vmax.f32 %v1728_v12, 0.0  ;;  %v1731_v18 = vadd.f32 %v13219_v36, %v1730_v16  ;;  %3307 = vmatpush1.bf16.msra.mxu0 %v12406_v7  ;;  %v12410_v11 = vld [vmem:[%s17035_s3 + $0x40] sm:$0xff]   ;;  %v12411_v12 = vld [vmem:[%s17035_s3 + $0x48] sm:$0xff]  }
 0x264   : > { %v1857_v19 = vmax.f32 %v1739_v15, 0.0  ;;  %3308 = vmatprep.subr.bf16.mxu0 %v12911_v34  ;;  %v12414_v15 = vld [vmem:[%s17035_s3 + $0x60] sm:$0xff]   ;;  %v12415_v16 = vld [vmem:[%s17035_s3 + $0x68] sm:$0xff]  }
 0x265   : > { %v1855_v20 = vmax.f32 %v1731_v18, 0.0  ;;  %v13368_v18 = vld [vmem:[%s17037_s5 + $0x2] ss:$0 sm:$0xff] }
 0x266   : > { %v1903_v21 = vpack.c.bf16 %v1857_v19, %v1856_v14  ;;  %v12413_v14 = vld [vmem:[%s17035_s3 + $0x58] sm:$0xff]  }
 0x267   : > { %v1902_v22 = vpack.c.bf16 %v1855_v20, %v1854_v17  ;;  %v11557_v23 = vpop.f32.mrb[68].mxu1  ;;  %v12416_v17 = vld [vmem:[%s17035_s3 + $0x70] sm:$0xff]  }
 0x268   : > { %v1752_v24 = vadd.f32 %v11557_v23, %v13219_v36  ;;  %v1743_v25 = vpop.f32.mrb[69].mxu1 }
 0x269   : > { %11647 = vmatprep.mubr.bf16.mxu0 %v1902_v22  ;;  %v1744_v26 = vadd.f32 %v13219_v36, %v1743_v25  ;;  %v11558_v27 = vpop.f32.mrb[70].mxu1 }
 0x26a   : > { %11648 = vmatmul.mubr.bf16.gmra.mrb[144].mxu0 %v1903_v21  ;;  %v1860_v28 = vmax.f32 %v1752_v24, 0.0  ;;  %v1755_v29 = vadd.f32 %v11558_v27, %v13219_v36  ;;  %v1746_v30 = vpop.f32.mrb[71].mxu1 }
 0x26b   : > { %v1858_v31 = vmax.f32 %v1744_v26, 0.0  ;;  %v1747_v32 = vadd.f32 %v13219_v36, %v1746_v30 }
 0x26c   : > { %v1861_v33 = vmax.f32 %v1755_v29, 0.0 }
 0x26d   : > { %v1859_v35 = vmax.f32 %v1747_v32, 0.0 }
 0x26e   : > { %v1905_v37 = vpack.c.bf16 %v1861_v33, %v1860_v28 }
 0x26f   : > { %v1904_v38 = vpack.c.bf16 %v1859_v35, %v1858_v31  ;;  %v11561_v39 = vpop.f32.mrb[72].mxu1 }
 0x270   : > { %v1768_v40 = vadd.f32 %v11561_v39, %v13219_v36  ;;  %v1759_v41 = vpop.f32.mrb[73].mxu1 }
 0x271   : > { %11651 = vmatprep.mubr.bf16.mxu0 %v1904_v38  ;;  %v1760_v42 = vadd.f32 %v13219_v36, %v1759_v41  ;;  %v11562_v43 = vpop.f32.mrb[74].mxu1 }
 0x272   : > { %11652 = vmatmul.mubr.bf16.gmra.mrb[148].mxu0 %v1905_v37  ;;  %v1864_v45 = vmax.f32 %v1768_v40, 0.0  ;;  %v1771_v46 = vadd.f32 %v11562_v43, %v13219_v36  ;;  %v1762_v47 = vpop.f32.mrb[75].mxu1 }
 0x273   : > { %v1862_v48 = vmax.f32 %v1760_v42, 0.0  ;;  %v1763_v49 = vadd.f32 %v13219_v36, %v1762_v47 }
 0x274   : > { %v1865_v50 = vmax.f32 %v1771_v46, 0.0 }
 0x275   : > { %v1863_v51 = vmax.f32 %v1763_v49, 0.0 }
 0x276   : > { %v1907_v52 = vpack.c.bf16 %v1865_v50, %v1864_v45 }
 0x277   : > { %v1906_v53 = vpack.c.bf16 %v1863_v51, %v1862_v48  ;;  %v11565_v54 = vpop.f32.mrb[76].mxu1 }
 0x278   : > { %v1784_v55 = vadd.f32 %v11565_v54, %v13219_v36  ;;  %v1775_v56 = vpop.f32.mrb[77].mxu1 }
 0x279   : > { %11655 = vmatprep.mubr.bf16.mxu0 %v1906_v53  ;;  %v1776_v58 = vadd.f32 %v13219_v36, %v1775_v56  ;;  %v11566_v59 = vpop.f32.mrb[78].mxu1 }
 0x27a   : > { %11656 = vmatmul.mubr.bf16.gmra.mrb[152].mxu0 %v1907_v52  ;;  %v1868_v60 = vmax.f32 %v1784_v55, 0.0  ;;  %v1787_v61 = vadd.f32 %v11566_v59, %v13219_v36  ;;  %v1778_v62 = vpop.f32.mrb[79].mxu1 }
 0x27b   : > { %v1866_v63 = vmax.f32 %v1776_v58, 0.0  ;;  %v1779_v1 = vadd.f32 %v13219_v36, %v1778_v62  ;;  %v12407_v36 = vld [vmem:[%s17035_s3 + $0x28] sm:$0xff]  }
 0x27c   : > { %v1869_v3 = vmax.f32 %v1787_v61, 0.0  ;;  %3309 = vmatpush1.bf16.msra.mxu0 %v12407_v36 }
 0x27d   : > { %v1867_v4 = vmax.f32 %v1779_v1, 0.0  ;;  %3310 = vmatprep.subr.bf16.mxu0 %v12911_v34 }
 0x27e   : > { %v1909_v5 = vpack.c.bf16 %v1869_v3, %v1868_v60 }
 0x27f   : > { %v1908_v6 = vpack.c.bf16 %v1867_v4, %v1866_v63 }
 0x280   : > { %3311 = vmatpush1.bf16.msra.mxu0 %v12408_v9 }
 0x281   : > { %11659 = vmatprep.mubr.bf16.mxu0 %v1908_v6  ;;  %3312 = vmatprep.subr.bf16.mxu0 %v12911_v34 }
 0x282   : > { %11660 = vmatmul.mubr.bf16.gmra.mrb[156].mxu0 %v1909_v5 }
 0x283   : > { %3330 = vmatprep.mubr.bf16.mxu0 %v12858_v8 }
 0x284   : > { %3313 = vmatpush1.bf16.msra.mxu0 %v12409_v10 }
 0x285   : > { %3314 = vmatprep.subr.bf16.mxu0 %v12911_v34 }
 0x288   : > { %3315 = vmatpush1.bf16.msra.mxu0 %v12410_v11 }
 0x289   : > { %3316 = vmatprep.subr.bf16.mxu0 %v12911_v34 }
 0x28c   : > { %3317 = vmatpush1.bf16.msra.mxu0 %v12411_v12 }
 0x28d   : > { %3318 = vmatprep.subr.bf16.mxu0 %v12911_v34 }
 0x290   : > { %3319 = vmatpush1.bf16.msra.mxu0 %v12412_v13 }
 0x291   : > { %3320 = vmatprep.subr.bf16.mxu0 %v12911_v34 }
 0x294   : > { %3321 = vmatpush1.bf16.msra.mxu0 %v12413_v14 }
 0x295   : > { %3322 = vmatprep.subr.bf16.mxu0 %v12911_v34 }
 0x298   : > { %3323 = vmatpush1.bf16.msra.mxu0 %v12414_v15 }
 0x299   : > { %3324 = vmatprep.subr.bf16.mxu0 %v12911_v34 }
 0x29c   : > { %3325 = vmatpush1.bf16.msra.mxu0 %v12415_v16 }
 0x29d   : > { %3326 = vmatprep.subr.bf16.mxu0 %v12911_v34 }
 0x2a0   : > { %3327 = vmatpush1.bf16.msra.mxu0 %v12416_v17 }
 0x2a1   : > { %3328 = vmatprep.subr.bf16.mxu0 %v12911_v34 }
 0x2bd   : > { %v11585_v19 = vpop.f32.mrb[80].mxu0 }
 0x2be   : > { %v2026_v20 = vadd.f32 %v11585_v19, %v13368_v18  ;;  %v2017_v21 = vpop.f32.mrb[81].mxu0 }
 0x2bf   : > { %v2018_v22 = vadd.f32 %v13368_v18, %v2017_v21  ;;  %v11586_v23 = vpop.f32.mrb[82].mxu0 }
 0x2c0   : > { %v2029_v24 = vadd.f32 %v11586_v23, %v13368_v18  ;;  %v2020_v25 = vpop.f32.mrb[83].mxu0  ;;  %v2338_v27 = vmax.f32 %v2026_v20, 0.0 }
 0x2c1   : > { %v2021_v26 = vadd.f32 %v13368_v18, %v2020_v25  ;;  %v2336_v29 = vmax.f32 %v2018_v22, 0.0 }
 0x2c2   : > { %v2339_v28 = vmax.f32 %v2029_v24, 0.0 }
 0x2c3   : > { %v2337_v30 = vmax.f32 %v2021_v26, 0.0 }
 0x2c4   : > { %v2417_v31 = vpack.c.bf16 %v2339_v28, %v2338_v27 }
 0x2c5   : > { %v11589_v32 = vpop.f32.mrb[84].mxu0  ;;  %v2416_v0 = vpack.c.bf16 %v2337_v30, %v2336_v29 }
 0x2c6   : > { %v2042_v33 = vadd.f32 %v11589_v32, %v13368_v18  ;;  %v2033_v35 = vpop.f32.mrb[85].mxu0 }
 0x2c7   : > { %v2034_v37 = vadd.f32 %v13368_v18, %v2033_v35  ;;  %v11590_v38 = vpop.f32.mrb[86].mxu0  ;;  %11679 = vmatprep.mubr.bf16.mxu1 %v2416_v0 }
 0x2c8   : > { %v2045_v39 = vadd.f32 %v11590_v38, %v13368_v18  ;;  %v2036_v40 = vpop.f32.mrb[87].mxu0  ;;  %11680 = vmatmul.mubr.bf16.vlgmr.msra.gmra.mrb[80].mxu1 %v2417_v31  ;;  %v2342_v42 = vmax.f32 %v2042_v33, 0.0 }
 0x2c9   : > { %v2037_v41 = vadd.f32 %v13368_v18, %v2036_v40  ;;  %v2340_v44 = vmax.f32 %v2034_v37, 0.0 }
 0x2ca   : > { %v2343_v43 = vmax.f32 %v2045_v39, 0.0 }
 0x2cb   : > { %v2341_v45 = vmax.f32 %v2037_v41, 0.0 }
 0x2cc   : > { %v2419_v46 = vpack.c.bf16 %v2343_v43, %v2342_v42 }
 0x2cd   : > { %v11593_v47 = vpop.f32.mrb[88].mxu0  ;;  %v2418_v48 = vpack.c.bf16 %v2341_v45, %v2340_v44 }
 0x2ce   : > { %v2058_v49 = vadd.f32 %v11593_v47, %v13368_v18  ;;  %v2049_v50 = vpop.f32.mrb[89].mxu0 }
 0x2cf   : > { %v2050_v51 = vadd.f32 %v13368_v18, %v2049_v50  ;;  %11683 = vmatprep.mubr.bf16.mxu1 %v2418_v48  ;;  %v11594_v52 = vpop.f32.mrb[90].mxu0 }
 0x2d0   : > { %v2346_v53 = vmax.f32 %v2058_v49, 0.0  ;;  %v2061_v54 = vadd.f32 %v11594_v52, %v13368_v18  ;;  %11684 = vmatmul.mubr.bf16.gmra.mrb[84].mxu1 %v2419_v46  ;;  %v2052_v55 = vpop.f32.mrb[91].mxu0 }
 0x2d1   : > { %v2344_v56 = vmax.f32 %v2050_v51, 0.0  ;;  %v2053_v57 = vadd.f32 %v13368_v18, %v2052_v55 }
 0x2d2   : > { %v2347_v58 = vmax.f32 %v2061_v54, 0.0 }
 0x2d3   : > { %v2345_v59 = vmax.f32 %v2053_v57, 0.0 }
 0x2d4   : > { %v2421_v60 = vpack.c.bf16 %v2347_v58, %v2346_v53 }
 0x2d5   : > { %v2420_v61 = vpack.c.bf16 %v2345_v59, %v2344_v56  ;;  %v11597_v62 = vpop.f32.mrb[92].mxu0 }
 0x2d6   : > { %v2074_v63 = vadd.f32 %v11597_v62, %v13368_v18  ;;  %v2065_v1 = vpop.f32.mrb[93].mxu0 }
 0x2d7   : > { %11687 = vmatprep.mubr.bf16.mxu1 %v2420_v61  ;;  %v2066_v2 = vadd.f32 %v13368_v18, %v2065_v1  ;;  %v11598_v3 = vpop.f32.mrb[94].mxu0 }
 0x2d8   : > { %11688 = vmatmul.mubr.bf16.gmra.mrb[88].mxu1 %v2421_v60  ;;  %v2350_v4 = vmax.f32 %v2074_v63, 0.0  ;;  %v2077_v5 = vadd.f32 %v11598_v3, %v13368_v18  ;;  %v2068_v6 = vpop.f32.mrb[95].mxu0 }
 0x2d9   : > { %v2348_v7 = vmax.f32 %v2066_v2, 0.0  ;;  %v2069_v36 = vadd.f32 %v13368_v18, %v2068_v6 }
 0x2da   : > { %v2351_v8 = vmax.f32 %v2077_v5, 0.0 }
 0x2db   : > { %v2349_v9 = vmax.f32 %v2069_v36, 0.0 }
 0x2dc   : > { %v2423_v10 = vpack.c.bf16 %v2351_v8, %v2350_v4 }
 0x2dd   : > { %v2422_v11 = vpack.c.bf16 %v2349_v9, %v2348_v7  ;;  %v11601_v12 = vpop.f32.mrb[96].mxu0 }
 0x2de   : > { %v2090_v13 = vadd.f32 %v11601_v12, %v13368_v18  ;;  %v2081_v14 = vpop.f32.mrb[97].mxu0 }
 0x2df   : > { %11691 = vmatprep.mubr.bf16.mxu1 %v2422_v11  ;;  %v2082_v15 = vadd.f32 %v13368_v18, %v2081_v14  ;;  %v11602_v16 = vpop.f32.mrb[98].mxu0 }
 0x2e0   : > { %11692 = vmatmul.mubr.bf16.gmra.mrb[92].mxu1 %v2423_v10  ;;  %v2354_v17 = vmax.f32 %v2090_v13, 0.0  ;;  %v2093_v19 = vadd.f32 %v11602_v16, %v13368_v18  ;;  %v2084_v20 = vpop.f32.mrb[99].mxu0 }
 0x2e1   : > { %v2352_v21 = vmax.f32 %v2082_v15, 0.0  ;;  %v2085_v22 = vadd.f32 %v13368_v18, %v2084_v20 }
 0x2e2   : > { %v2355_v23 = vmax.f32 %v2093_v19, 0.0 }
 0x2e3   : > { %v2353_v24 = vmax.f32 %v2085_v22, 0.0 }
 0x2e4   : > { %v2425_v25 = vpack.c.bf16 %v2355_v23, %v2354_v17 }
 0x2e5   : > { %v2424_v26 = vpack.c.bf16 %v2353_v24, %v2352_v21  ;;  %v11605_v27 = vpop.f32.mrb[100].mxu0 }
 0x2e6   : > { %v2106_v28 = vadd.f32 %v11605_v27, %v13368_v18  ;;  %v2097_v29 = vpop.f32.mrb[101].mxu0 }
 0x2e7   : > { %11695 = vmatprep.mubr.bf16.mxu1 %v2424_v26  ;;  %v2098_v30 = vadd.f32 %v13368_v18, %v2097_v29  ;;  %v11606_v31 = vpop.f32.mrb[102].mxu0 }
 0x2e8   : > { %11696 = vmatmul.mubr.bf16.gmra.mrb[96].mxu1 %v2425_v25  ;;  %v2358_v32 = vmax.f32 %v2106_v28, 0.0  ;;  %v2109_v0 = vadd.f32 %v11606_v31, %v13368_v18  ;;  %v2100_v33 = vpop.f32.mrb[103].mxu0 }
 0x2e9   : > { %v2356_v35 = vmax.f32 %v2098_v30, 0.0  ;;  %v2101_v37 = vadd.f32 %v13368_v18, %v2100_v33 }
 0x2ea   : > { %v2359_v38 = vmax.f32 %v2109_v0, 0.0 }
 0x2eb   : > { %v2357_v39 = vmax.f32 %v2101_v37, 0.0 }
 0x2ec   : > { %v2427_v40 = vpack.c.bf16 %v2359_v38, %v2358_v32 }
 0x2ed   : > { %v2426_v41 = vpack.c.bf16 %v2357_v39, %v2356_v35  ;;  %v11609_v42 = vpop.f32.mrb[104].mxu0 }
 0x2ee   : > { %v2122_v43 = vadd.f32 %v11609_v42, %v13368_v18  ;;  %v2113_v44 = vpop.f32.mrb[105].mxu0 }
 0x2ef   : > { %11699 = vmatprep.mubr.bf16.mxu1 %v2426_v41  ;;  %v2114_v45 = vadd.f32 %v13368_v18, %v2113_v44  ;;  %v11610_v46 = vpop.f32.mrb[106].mxu0 }
 0x2f0   : > { %11700 = vmatmul.mubr.bf16.gmra.mrb[100].mxu1 %v2427_v40  ;;  %v2362_v47 = vmax.f32 %v2122_v43, 0.0  ;;  %v2125_v48 = vadd.f32 %v11610_v46, %v13368_v18  ;;  %v2116_v49 = vpop.f32.mrb[107].mxu0 }
 0x2f1   : > { %v2360_v50 = vmax.f32 %v2114_v45, 0.0  ;;  %v2117_v51 = vadd.f32 %v13368_v18, %v2116_v49 }
 0x2f2   : > { %v2363_v52 = vmax.f32 %v2125_v48, 0.0 }
 0x2f3   : > { %v2361_v53 = vmax.f32 %v2117_v51, 0.0 }
 0x2f4   : > { %v2429_v54 = vpack.c.bf16 %v2363_v52, %v2362_v47 }
 0x2f5   : > { %v2428_v55 = vpack.c.bf16 %v2361_v53, %v2360_v50  ;;  %v11613_v56 = vpop.f32.mrb[108].mxu0 }
 0x2f6   : > { %v2138_v57 = vadd.f32 %v11613_v56, %v13368_v18  ;;  %v2129_v58 = vpop.f32.mrb[109].mxu0 }
 0x2f7   : > { %11703 = vmatprep.mubr.bf16.mxu1 %v2428_v55  ;;  %v2130_v59 = vadd.f32 %v13368_v18, %v2129_v58  ;;  %v11614_v60 = vpop.f32.mrb[110].mxu0 }
 0x2f8   : > { %11704 = vmatmul.mubr.bf16.gmra.mrb[104].mxu1 %v2429_v54  ;;  %v2366_v61 = vmax.f32 %v2138_v57, 0.0  ;;  %v2141_v62 = vadd.f32 %v11614_v60, %v13368_v18  ;;  %v2132_v63 = vpop.f32.mrb[111].mxu0 }
 0x2f9   : > { %v2364_v1 = vmax.f32 %v2130_v59, 0.0  ;;  %v2133_v2 = vadd.f32 %v13368_v18, %v2132_v63 }
 0x2fa   : > { %v2367_v3 = vmax.f32 %v2141_v62, 0.0 }
 0x2fb   : > { %v2365_v4 = vmax.f32 %v2133_v2, 0.0 }
 0x2fc   : > { %v2431_v5 = vpack.c.bf16 %v2367_v3, %v2366_v61 }
 0x2fd   : > { %v2430_v6 = vpack.c.bf16 %v2365_v4, %v2364_v1  ;;  %v11617_v7 = vpop.f32.mrb[112].mxu0  ;;  %v12417_v4 = vld [vmem:[%s17035_s3 + $0x78] sm:$0xff]  }
 0x2fe   : > { %v2154_v36 = vadd.f32 %v11617_v7, %v13368_v18  ;;  %v2145_v8 = vpop.f32.mrb[113].mxu0  ;;  %3329 = vmatpush1.bf16.msra.mxu0 %v12417_v4 }
 0x2ff   : > { %11707 = vmatprep.mubr.bf16.mxu1 %v2430_v6  ;;  %v2146_v9 = vadd.f32 %v13368_v18, %v2145_v8  ;;  %v11618_v10 = vpop.f32.mrb[114].mxu0 }
 0x300   : > { %11708 = vmatmul.mubr.bf16.gmra.mrb[108].mxu1 %v2431_v5  ;;  %v2370_v11 = vmax.f32 %v2154_v36, 0.0  ;;  %v2157_v12 = vadd.f32 %v11618_v10, %v13368_v18  ;;  %v2148_v13 = vpop.f32.mrb[115].mxu0 }
 0x301   : > { %v2368_v14 = vmax.f32 %v2146_v9, 0.0  ;;  %v2149_v15 = vadd.f32 %v13368_v18, %v2148_v13 }
 0x302   : > { %v2371_v16 = vmax.f32 %v2157_v12, 0.0 }
 0x303   : > { %v2369_v17 = vmax.f32 %v2149_v15, 0.0 }
 0x304   : > { %v2433_v19 = vpack.c.bf16 %v2371_v16, %v2370_v11 }
 0x305   : > { %v2432_v20 = vpack.c.bf16 %v2369_v17, %v2368_v14  ;;  %v11621_v21 = vpop.f32.mrb[116].mxu0 }
 0x306   : > { %v2170_v22 = vadd.f32 %v11621_v21, %v13368_v18  ;;  %v2161_v23 = vpop.f32.mrb[117].mxu0 }
 0x307   : > { %11711 = vmatprep.mubr.bf16.mxu1 %v2432_v20  ;;  %v2162_v24 = vadd.f32 %v13368_v18, %v2161_v23  ;;  %v11622_v25 = vpop.f32.mrb[118].mxu0 }
 0x308   : > { %11712 = vmatmul.mubr.bf16.gmra.mrb[112].mxu1 %v2433_v19  ;;  %v2374_v26 = vmax.f32 %v2170_v22, 0.0  ;;  %v2173_v27 = vadd.f32 %v11622_v25, %v13368_v18  ;;  %v2164_v28 = vpop.f32.mrb[119].mxu0 }
 0x309   : > { %v2372_v29 = vmax.f32 %v2162_v24, 0.0  ;;  %v2165_v30 = vadd.f32 %v13368_v18, %v2164_v28 }
 0x30a   : > { %v2375_v31 = vmax.f32 %v2173_v27, 0.0 }
 0x30b   : > { %v2373_v32 = vmax.f32 %v2165_v30, 0.0 }
 0x30c   : > { %v2435_v0 = vpack.c.bf16 %v2375_v31, %v2374_v26 }
 0x30d   : > { %v2434_v33 = vpack.c.bf16 %v2373_v32, %v2372_v29  ;;  %v11625_v35 = vpop.f32.mrb[120].mxu0 }
 0x30e   : > { %v2186_v37 = vadd.f32 %v11625_v35, %v13368_v18  ;;  %v2177_v38 = vpop.f32.mrb[121].mxu0 }
 0x30f   : > { %11715 = vmatprep.mubr.bf16.mxu1 %v2434_v33  ;;  %v2178_v39 = vadd.f32 %v13368_v18, %v2177_v38  ;;  %v11626_v40 = vpop.f32.mrb[122].mxu0 }
 0x310   : > { %11716 = vmatmul.mubr.bf16.gmra.mrb[116].mxu1 %v2435_v0  ;;  %v2378_v41 = vmax.f32 %v2186_v37, 0.0  ;;  %v2189_v42 = vadd.f32 %v11626_v40, %v13368_v18  ;;  %v2180_v43 = vpop.f32.mrb[123].mxu0 }
 0x311   : > { %v2376_v44 = vmax.f32 %v2178_v39, 0.0  ;;  %v2181_v45 = vadd.f32 %v13368_v18, %v2180_v43 }
 0x312   : > { %v2379_v46 = vmax.f32 %v2189_v42, 0.0 }
 0x313   : > { %v2377_v47 = vmax.f32 %v2181_v45, 0.0 }
 0x314   : > { %v2437_v48 = vpack.c.bf16 %v2379_v46, %v2378_v41 }
 0x315   : > { %v2436_v49 = vpack.c.bf16 %v2377_v47, %v2376_v44  ;;  %v11629_v50 = vpop.f32.mrb[124].mxu0 }
 0x316   : > { %v2202_v51 = vadd.f32 %v11629_v50, %v13368_v18  ;;  %v2193_v52 = vpop.f32.mrb[125].mxu0 }
 0x317   : > { %11719 = vmatprep.mubr.bf16.mxu1 %v2436_v49  ;;  %v2194_v53 = vadd.f32 %v13368_v18, %v2193_v52  ;;  %v11630_v54 = vpop.f32.mrb[126].mxu0 }
 0x318   : > { %11720 = vmatmul.mubr.bf16.gmra.mrb[120].mxu1 %v2437_v48  ;;  %v2382_v55 = vmax.f32 %v2202_v51, 0.0  ;;  %v2205_v56 = vadd.f32 %v11630_v54, %v13368_v18  ;;  %v2196_v57 = vpop.f32.mrb[127].mxu0 }
 0x319   : > { %v2380_v58 = vmax.f32 %v2194_v53, 0.0  ;;  %v2197_v59 = vadd.f32 %v13368_v18, %v2196_v57 }
 0x31a   : > { %v2383_v60 = vmax.f32 %v2205_v56, 0.0 }
 0x31b   : > { %v2381_v61 = vmax.f32 %v2197_v59, 0.0 }
 0x31c   : > { %v2439_v62 = vpack.c.bf16 %v2383_v60, %v2382_v55 }
 0x31d   : > { %v2438_v63 = vpack.c.bf16 %v2381_v61, %v2380_v58  ;;  %v11633_v1 = vpop.f32.mrb[128].mxu0 }
 0x31e   : > { %v2218_v2 = vadd.f32 %v11633_v1, %v13368_v18  ;;  %v2209_v3 = vpop.f32.mrb[129].mxu0 }
 0x31f   : > { %11723 = vmatprep.mubr.bf16.mxu1 %v2438_v63  ;;  %v2210_v5 = vadd.f32 %v13368_v18, %v2209_v3  ;;  %v11634_v6 = vpop.f32.mrb[130].mxu0 }
 0x320   : > { %11724 = vmatmul.mubr.bf16.gmra.mrb[124].mxu1 %v2439_v62  ;;  %v2386_v7 = vmax.f32 %v2218_v2, 0.0  ;;  %v2221_v36 = vadd.f32 %v11634_v6, %v13368_v18  ;;  %v2212_v8 = vpop.f32.mrb[131].mxu0 }
 0x321   : > { %v2384_v9 = vmax.f32 %v2210_v5, 0.0  ;;  %v2213_v10 = vadd.f32 %v13368_v18, %v2212_v8 }
 0x322   : > { %v2387_v11 = vmax.f32 %v2221_v36, 0.0 }
 0x323   : > { %v2385_v12 = vmax.f32 %v2213_v10, 0.0 }
 0x324   : > { %v2441_v13 = vpack.c.bf16 %v2387_v11, %v2386_v7 }
 0x325   : > { %v2440_v14 = vpack.c.bf16 %v2385_v12, %v2384_v9  ;;  %v11637_v15 = vpop.f32.mrb[132].mxu0 }
 0x326   : > { %v2234_v16 = vadd.f32 %v11637_v15, %v13368_v18  ;;  %v2225_v17 = vpop.f32.mrb[133].mxu0 }
 0x327   : > { %11727 = vmatprep.mubr.bf16.mxu1 %v2440_v14  ;;  %v2226_v19 = vadd.f32 %v13368_v18, %v2225_v17  ;;  %v11638_v20 = vpop.f32.mrb[134].mxu0 }
 0x328   : > { %11728 = vmatmul.mubr.bf16.gmra.mrb[128].mxu1 %v2441_v13  ;;  %v2390_v21 = vmax.f32 %v2234_v16, 0.0  ;;  %v2237_v22 = vadd.f32 %v11638_v20, %v13368_v18  ;;  %v2228_v23 = vpop.f32.mrb[135].mxu0 }
 0x329   : > { %v2388_v24 = vmax.f32 %v2226_v19, 0.0  ;;  %v2229_v25 = vadd.f32 %v13368_v18, %v2228_v23 }
 0x32a   : > { %v2391_v26 = vmax.f32 %v2237_v22, 0.0 }
 0x32b   : > { %v2389_v27 = vmax.f32 %v2229_v25, 0.0 }
 0x32c   : > { %v2443_v28 = vpack.c.bf16 %v2391_v26, %v2390_v21 }
 0x32d   : > { %v2442_v29 = vpack.c.bf16 %v2389_v27, %v2388_v24  ;;  %v11641_v30 = vpop.f32.mrb[136].mxu0 }
 0x32e   : > { %v2250_v31 = vadd.f32 %v11641_v30, %v13368_v18  ;;  %v2241_v32 = vpop.f32.mrb[137].mxu0 }
 0x32f   : > { %11731 = vmatprep.mubr.bf16.mxu1 %v2442_v29  ;;  %v2242_v0 = vadd.f32 %v13368_v18, %v2241_v32  ;;  %v11642_v33 = vpop.f32.mrb[138].mxu0 }
 0x330   : > { %11732 = vmatmul.mubr.bf16.gmra.mrb[132].mxu1 %v2443_v28  ;;  %v2394_v35 = vmax.f32 %v2250_v31, 0.0  ;;  %v2253_v37 = vadd.f32 %v11642_v33, %v13368_v18  ;;  %v2244_v38 = vpop.f32.mrb[139].mxu0 }
 0x331   : > { %v2392_v39 = vmax.f32 %v2242_v0, 0.0  ;;  %v2245_v40 = vadd.f32 %v13368_v18, %v2244_v38 }
 0x332   : > { %v2395_v41 = vmax.f32 %v2253_v37, 0.0 }
 0x333   : > { %v2393_v42 = vmax.f32 %v2245_v40, 0.0 }
 0x334   : > { %v2445_v43 = vpack.c.bf16 %v2395_v41, %v2394_v35 }
 0x335   : > { %v2444_v44 = vpack.c.bf16 %v2393_v42, %v2392_v39  ;;  %v11645_v45 = vpop.f32.mrb[140].mxu0 }
 0x336   : > { %v2266_v46 = vadd.f32 %v11645_v45, %v13368_v18  ;;  %v2257_v47 = vpop.f32.mrb[141].mxu0 }
 0x337   : > { %11735 = vmatprep.mubr.bf16.mxu1 %v2444_v44  ;;  %v2258_v48 = vadd.f32 %v13368_v18, %v2257_v47  ;;  %v11646_v49 = vpop.f32.mrb[142].mxu0 }
 0x338   : > { %11736 = vmatmul.mubr.bf16.gmra.mrb[136].mxu1 %v2445_v43  ;;  %v2398_v50 = vmax.f32 %v2266_v46, 0.0  ;;  %v2269_v51 = vadd.f32 %v11646_v49, %v13368_v18  ;;  %v2260_v52 = vpop.f32.mrb[143].mxu0 }
 0x339   : > { %v2396_v53 = vmax.f32 %v2258_v48, 0.0  ;;  %v2261_v54 = vadd.f32 %v13368_v18, %v2260_v52 }
 0x33a   : > { %v2399_v55 = vmax.f32 %v2269_v51, 0.0 }
 0x33b   : > { %v2397_v56 = vmax.f32 %v2261_v54, 0.0 }
 0x33c   : > { %v2447_v57 = vpack.c.bf16 %v2399_v55, %v2398_v50 }
 0x33d   : > { %v2446_v58 = vpack.c.bf16 %v2397_v56, %v2396_v53  ;;  %v11649_v59 = vpop.f32.mrb[144].mxu0  ;;  %v13456_v53 = vld [vmem:[%s17037_s5 + $0x3] ss:$0 sm:$0xff] }
 0x33e   : > { %v2282_v60 = vadd.f32 %v11649_v59, %v13368_v18  ;;  %v2273_v61 = vpop.f32.mrb[145].mxu0 }
 0x33f   : > { %11739 = vmatprep.mubr.bf16.mxu1 %v2446_v58  ;;  %v2274_v62 = vadd.f32 %v13368_v18, %v2273_v61  ;;  %v11650_v63 = vpop.f32.mrb[146].mxu0 }
 0x340   : > { %11740 = vmatmul.mubr.bf16.gmra.mrb[140].mxu1 %v2447_v57  ;;  %v2402_v1 = vmax.f32 %v2282_v60, 0.0  ;;  %v2285_v2 = vadd.f32 %v11650_v63, %v13368_v18  ;;  %v2276_v3 = vpop.f32.mrb[147].mxu0 }
 0x341   : > { %v2400_v4 = vmax.f32 %v2274_v62, 0.0  ;;  %v2277_v5 = vadd.f32 %v13368_v18, %v2276_v3 }
 0x342   : > { %v2403_v6 = vmax.f32 %v2285_v2, 0.0 }
 0x343   : > { %v2401_v7 = vmax.f32 %v2277_v5, 0.0 }
 0x344   : > { %v2449_v36 = vpack.c.bf16 %v2403_v6, %v2402_v1 }
 0x345   : > { %v2448_v8 = vpack.c.bf16 %v2401_v7, %v2400_v4  ;;  %v11653_v9 = vpop.f32.mrb[148].mxu0 }
 0x346   : > { %v2298_v10 = vadd.f32 %v11653_v9, %v13368_v18  ;;  %v2289_v11 = vpop.f32.mrb[149].mxu0 }
 0x347   : > { %11743 = vmatprep.mubr.bf16.mxu1 %v2448_v8  ;;  %v2290_v12 = vadd.f32 %v13368_v18, %v2289_v11  ;;  %v11654_v13 = vpop.f32.mrb[150].mxu0 }
 0x348   : > { %11744 = vmatmul.mubr.bf16.gmra.mrb[144].mxu1 %v2449_v36  ;;  %v2406_v14 = vmax.f32 %v2298_v10, 0.0  ;;  %v2301_v15 = vadd.f32 %v11654_v13, %v13368_v18  ;;  %v2292_v16 = vpop.f32.mrb[151].mxu0  ;;  %v12859_v10 = vld [vmem:[%s13005_s17 + $0x10] ss:$8 sps:$4 sm:$0xff]  }
 0x349   : > { %v2404_v17 = vmax.f32 %v2290_v12, 0.0  ;;  %v2293_v19 = vadd.f32 %v13368_v18, %v2292_v16 }
 0x34a   : > { %v2407_v20 = vmax.f32 %v2301_v15, 0.0 }
 0x34b   : > { %v2405_v21 = vmax.f32 %v2293_v19, 0.0 }
 0x34c   : > { %v2451_v22 = vpack.c.bf16 %v2407_v20, %v2406_v14 }
 0x34d   : > { %v2450_v23 = vpack.c.bf16 %v2405_v21, %v2404_v17  ;;  %v11657_v24 = vpop.f32.mrb[152].mxu0 }
 0x34e   : > { %v2314_v25 = vadd.f32 %v11657_v24, %v13368_v18  ;;  %v2305_v26 = vpop.f32.mrb[153].mxu0 }
 0x34f   : > { %11747 = vmatprep.mubr.bf16.mxu1 %v2450_v23  ;;  %v2306_v27 = vadd.f32 %v13368_v18, %v2305_v26  ;;  %v11658_v28 = vpop.f32.mrb[154].mxu0 }
 0x350   : > { %11748 = vmatmul.mubr.bf16.gmra.mrb[148].mxu1 %v2451_v22  ;;  %v2317_v29 = vadd.f32 %v11658_v28, %v13368_v18  ;;  %v2308_v30 = vpop.f32.mrb[155].mxu0  ;;  %v2410_v31 = vmax.f32 %v2314_v25, 0.0 }
 0x351   : > { %v2408_v32 = vmax.f32 %v2306_v27, 0.0  ;;  %v2309_v0 = vadd.f32 %v13368_v18, %v2308_v30  ;;  %v12860_v27 = vld [vmem:[%s13005_s17 + $0x20] ss:$8 sps:$4 sm:$0xff]  }
 0x352   : > { %v2411_v33 = vmax.f32 %v2317_v29, 0.0 }
 0x353   : > { %v2409_v35 = vmax.f32 %v2309_v0, 0.0 }
 0x354   : > { %v2453_v38 = vpack.c.bf16 %v2411_v33, %v2410_v31 }
 0x355   : > { %v2452_v37 = vpack.c.bf16 %v2409_v35, %v2408_v32  ;;  %v11661_v39 = vpop.f32.mrb[156].mxu0 }
 0x356   : > { %v2330_v40 = vadd.f32 %v11661_v39, %v13368_v18  ;;  %v2321_v41 = vpop.f32.mrb[157].mxu0 }
 0x357   : > { %11751 = vmatprep.mubr.bf16.mxu1 %v2452_v37  ;;  %v2322_v42 = vadd.f32 %v13368_v18, %v2321_v41  ;;  %v11662_v43 = vpop.f32.mrb[158].mxu0  ;;  %v12861_v41 = vld [vmem:[%s13005_s17 + $0x30] ss:$8 sps:$4 sm:$0xff]  }
 0x358   : > { %11752 = vmatmul.mubr.bf16.gmra.mrb[152].mxu1 %v2453_v38  ;;  %v2333_v44 = vadd.f32 %v11662_v43, %v13368_v18  ;;  %v2324_v45 = vpop.f32.mrb[159].mxu0  ;;  %v2414_v46 = vmax.f32 %v2330_v40, 0.0 }
 0x359   : > { %v2412_v47 = vmax.f32 %v2322_v42, 0.0  ;;  %v2325_v48 = vadd.f32 %v13368_v18, %v2324_v45 }
 0x35a   : > { %v2415_v49 = vmax.f32 %v2333_v44, 0.0 }
 0x35b   : > { %v2413_v50 = vmax.f32 %v2325_v48, 0.0 }
 0x35c   : > { %v2455_v52 = vpack.c.bf16 %v2415_v49, %v2414_v46 }
 0x35d   : > { %v2454_v51 = vpack.c.bf16 %v2413_v50, %v2412_v47 }
 0x35f   : > { %11755 = vmatprep.mubr.bf16.mxu1 %v2454_v51 }
 0x360   : > { %11756 = vmatmul.mubr.bf16.gmra.mrb[156].mxu1 %v2455_v52 }
 0x39b   : > { %v11681_v54 = vpop.f32.mrb[80].mxu1 }
 0x39c   : > { %v2572_v55 = vadd.f32 %v11681_v54, %v13456_v53  ;;  %v2563_v56 = vpop.f32.mrb[81].mxu1 }
 0x39d   : > { %v2564_v57 = vadd.f32 %v13456_v53, %v2563_v56  ;;  %v11682_v58 = vpop.f32.mrb[82].mxu1  ;;  %v12418_v56 = vld [vmem:[%s17034_s2 + $0xc0] sm:$0xff]  }
 0x39e   : > { %v2575_v18 = vadd.f32 %v11682_v58, %v13456_v53  ;;  %v2566_v59 = vpop.f32.mrb[83].mxu1  ;;  %v2884_v61 = vmax.f32 %v2572_v55, 0.0  ;;  %11759 = vmatprep.subr.bf16.mxu1 %v12418_v56 }
 0x39f   : > { %v2567_v60 = vadd.f32 %v13456_v53, %v2566_v59  ;;  %v2882_v63 = vmax.f32 %v2564_v57, 0.0  ;;  %v12862_v57 = vld [vmem:[%s13005_s17 + $0x40] ss:$8 sps:$4 sm:$0xff]   ;;  %11760 = vmatpush3.bf16.msra.mxu1 %v12418_v56 }
 0x3a0   : > { %v2885_v62 = vmax.f32 %v2575_v18, 0.0 }
 0x3a1   : > { %v2883_v1 = vmax.f32 %v2567_v60, 0.0 }
 0x3a2   : > { %v2963_v2 = vpack.c.bf16 %v2885_v62, %v2884_v61 }
 0x3a3   : > { %v2962_v3 = vpack.c.bf16 %v2883_v1, %v2882_v63  ;;  %v11685_v4 = vpop.f32.mrb[84].mxu1 }
 0x3a4   : > { %v2588_v5 = vadd.f32 %v11685_v4, %v13456_v53  ;;  %v2579_v6 = vpop.f32.mrb[85].mxu1 }
 0x3a5   : > { %v2580_v7 = vadd.f32 %v13456_v53, %v2579_v6  ;;  %v11686_v36 = vpop.f32.mrb[86].mxu1  ;;  %3331 = vmatmul.mubr.bf16.vlgmr.msra.gmra.mrb[160].mxu0 %v2962_v3 }
 0x3a6   : > { %v2591_v8 = vadd.f32 %v11686_v36, %v13456_v53  ;;  %v2582_v9 = vpop.f32.mrb[87].mxu1  ;;  %3338 = vmatprep.mubr.bf16.mxu0 %v12859_v10  ;;  %v2888_v12 = vmax.f32 %v2588_v5, 0.0  ;;  %v12863_v36 = vld [vmem:[%s13005_s17 + $0x50] ss:$8 sps:$4 sm:$0xff]  }
 0x3a7   : > { %v2583_v11 = vadd.f32 %v13456_v53, %v2582_v9  ;;  %v2886_v14 = vmax.f32 %v2580_v7, 0.0 }
 0x3a8   : > { %v2889_v13 = vmax.f32 %v2591_v8, 0.0 }
 0x3a9   : > { %v2887_v15 = vmax.f32 %v2583_v11, 0.0 }
 0x3aa   : > { %v2965_v16 = vpack.c.bf16 %v2889_v13, %v2888_v12 }
 0x3ab   : > { %v11689_v17 = vpop.f32.mrb[88].mxu1  ;;  %v2964_v19 = vpack.c.bf16 %v2887_v15, %v2886_v14 }
 0x3ac   : > { %v2604_v20 = vadd.f32 %v11689_v17, %v13456_v53  ;;  %v2595_v21 = vpop.f32.mrb[89].mxu1 }
 0x3ad   : > { %v2596_v22 = vadd.f32 %v13456_v53, %v2595_v21  ;;  %3339 = vmatmul.mubr.bf16.gmra.mrb[164].mxu0 %v2963_v2  ;;  %v11690_v23 = vpop.f32.mrb[90].mxu1 }
 0x3ae   : > { %v2892_v24 = vmax.f32 %v2604_v20, 0.0  ;;  %v2607_v25 = vadd.f32 %v11690_v23, %v13456_v53  ;;  %v2598_v26 = vpop.f32.mrb[91].mxu1  ;;  %3346 = vmatprep.mubr.bf16.mxu0 %v12860_v27  ;;  %v12864_v23 = vld [vmem:[%s13005_s17 + $0x60] ss:$8 sps:$4 sm:$0xff]  }
 0x3af   : > { %v2890_v28 = vmax.f32 %v2596_v22, 0.0  ;;  %v2599_v29 = vadd.f32 %v13456_v53, %v2598_v26 }
 0x3b0   : > { %v2893_v30 = vmax.f32 %v2607_v25, 0.0 }
 0x3b1   : > { %v2891_v31 = vmax.f32 %v2599_v29, 0.0 }
 0x3b2   : > { %v2967_v32 = vpack.c.bf16 %v2893_v30, %v2892_v24 }
 0x3b3   : > { %v11693_v0 = vpop.f32.mrb[92].mxu1  ;;  %v2966_v33 = vpack.c.bf16 %v2891_v31, %v2890_v28 }
 0x3b4   : > { %v2620_v35 = vadd.f32 %v11693_v0, %v13456_v53  ;;  %v2611_v37 = vpop.f32.mrb[93].mxu1 }
 0x3b5   : > { %3347 = vmatmul.mubr.bf16.gmra.mrb[168].mxu0 %v2964_v19  ;;  %v2612_v38 = vadd.f32 %v13456_v53, %v2611_v37  ;;  %v11694_v39 = vpop.f32.mrb[94].mxu1 }
 0x3b6   : > { %v2896_v40 = vmax.f32 %v2620_v35, 0.0  ;;  %3354 = vmatprep.mubr.bf16.mxu0 %v12861_v41  ;;  %v2623_v42 = vadd.f32 %v11694_v39, %v13456_v53  ;;  %v2614_v43 = vpop.f32.mrb[95].mxu1  ;;  %v12419_v39 = vld [vmem:[%s17034_s2 + $0xc8] sm:$0xff]  }
 0x3b7   : > { %v2894_v44 = vmax.f32 %v2612_v38, 0.0  ;;  %v2615_v45 = vadd.f32 %v13456_v53, %v2614_v43  ;;  %11761 = vmatprep.subr.bf16.mxu1 %v12419_v39 }
 0x3b8   : > { %v2897_v46 = vmax.f32 %v2623_v42, 0.0  ;;  %11762 = vmatpush3.bf16.msra.mxu1 %v12419_v39 }
 0x3b9   : > { %v2895_v47 = vmax.f32 %v2615_v45, 0.0 }
 0x3ba   : > { %v13477_v48 = vpack.c.bf16 %v2897_v46, %v2896_v40  ;;  %v12865_v40 = vld [vmem:[%s13005_s17 + $0x70] ss:$8 sps:$4 sm:$0xff]  }
 0x3bb   : > { %v11697_v49 = vpop.f32.mrb[96].mxu1  ;;  %v2968_v50 = vpack.c.bf16 %v2895_v47, %v2894_v44 }
 0x3bc   : > { %v2636_v51 = vadd.f32 %v11697_v49, %v13456_v53  ;;  %v2627_v52 = vpop.f32.mrb[97].mxu1 }
 0x3bd   : > { %3355 = vmatmul.mubr.bf16.gmra.mrb[172].mxu0 %v2965_v16  ;;  %v2628_v54 = vadd.f32 %v13456_v53, %v2627_v52  ;;  %v11698_v55 = vpop.f32.mrb[98].mxu1 }
 0x3be   : > { %3362 = vmatprep.mubr.bf16.mxu0 %v12862_v57  ;;  %v2900_v58 = vmax.f32 %v2636_v51, 0.0  ;;  %v2639_v18 = vadd.f32 %v11698_v55, %v13456_v53  ;;  %v2630_v59 = vpop.f32.mrb[99].mxu1  ;;  %v12866_v57 = vld [vmem:[%s13005_s17 + $0x80] ss:$8 sps:$4 sm:$0xff]  }
 0x3bf   : > { %v2898_v60 = vmax.f32 %v2628_v54, 0.0  ;;  %v2631_v61 = vadd.f32 %v13456_v53, %v2630_v59 }
 0x3c0   : > { %v2901_v62 = vmax.f32 %v2639_v18, 0.0 }
 0x3c1   : > { %v2899_v63 = vmax.f32 %v2631_v61, 0.0 }
 0x3c2   : > { %v13487_v1 = vpack.c.bf16 %v2901_v62, %v2900_v58 }
 0x3c3   : > { %v11701_v2 = vpop.f32.mrb[100].mxu1  ;;  %v13489_v3 = vpack.c.bf16 %v2899_v63, %v2898_v60 }
 0x3c4   : > { %v2652_v4 = vadd.f32 %v11701_v2, %v13456_v53  ;;  %v2643_v5 = vpop.f32.mrb[101].mxu1 }
 0x3c5   : > { %3363 = vmatmul.mubr.bf16.gmra.mrb[176].mxu0 %v2966_v33  ;;  %v2644_v6 = vadd.f32 %v13456_v53, %v2643_v5  ;;  %v11702_v7 = vpop.f32.mrb[102].mxu1 }
 0x3c6   : > { %3370 = vmatprep.mubr.bf16.mxu0 %v12863_v36  ;;  %v2904_v8 = vmax.f32 %v2652_v4, 0.0  ;;  %v2655_v9 = vadd.f32 %v11702_v7, %v13456_v53  ;;  %v2646_v10 = vpop.f32.mrb[103].mxu1 }
 0x3c7   : > { %v2902_v11 = vmax.f32 %v2644_v6, 0.0  ;;  %v2647_v12 = vadd.f32 %v13456_v53, %v2646_v10 }
 0x3c8   : > { %v2905_v13 = vmax.f32 %v2655_v9, 0.0  ;;  %v12867_v9 = vld [vmem:[%s13005_s17 + $0x90] ss:$8 sps:$4 sm:$0xff]  }
 0x3c9   : > { %v2903_v14 = vmax.f32 %v2647_v12, 0.0 }
 0x3ca   : > { %v13496_v15 = vpack.c.bf16 %v2905_v13, %v2904_v8  ;;  %v12420_v8 = vld [vmem:[%s17034_s2 + $0xd0] sm:$0xff]  }
 0x3cb   : > { %v11705_v16 = vpop.f32.mrb[104].mxu1  ;;  %v13498_v17 = vpack.c.bf16 %v2903_v14, %v2902_v11  ;;  %11763 = vmatprep.subr.bf16.mxu1 %v12420_v8 }
 0x3cc   : > { %v2668_v19 = vadd.f32 %v11705_v16, %v13456_v53  ;;  %v2659_v20 = vpop.f32.mrb[105].mxu1  ;;  %11764 = vmatpush3.bf16.msra.mxu1 %v12420_v8  ;;  %v12424_v8 = vld [vmem:[%s17034_s2 + $0xf0] sm:$0xff]  }
 0x3cd   : > { %3371 = vmatmul.mubr.bf16.gmra.mrb[180].mxu0 %v2967_v32  ;;  %v2660_v21 = vadd.f32 %v13456_v53, %v2659_v20  ;;  %v11706_v22 = vpop.f32.mrb[106].mxu1 }
 0x3ce   : > { %3378 = vmatprep.mubr.bf16.mxu0 %v12864_v23  ;;  %v2908_v24 = vmax.f32 %v2668_v19, 0.0  ;;  %v2671_v25 = vadd.f32 %v11706_v22, %v13456_v53  ;;  %v2662_v26 = vpop.f32.mrb[107].mxu1 }
 0x3cf   : > { %v2906_v27 = vmax.f32 %v2660_v21, 0.0  ;;  %v2663_v28 = vadd.f32 %v13456_v53, %v2662_v26  ;;  %v12868_v26 = vld [vmem:[%s13005_s17 + $0xa0] ss:$8 sps:$4 sm:$0xff]  }
 0x3d0   : > { %v2909_v29 = vmax.f32 %v2671_v25, 0.0 }
 0x3d1   : > { %v2907_v30 = vmax.f32 %v2663_v28, 0.0 }
 0x3d2   : > { %v13505_v31 = vpack.c.bf16 %v2909_v29, %v2908_v24 }
 0x3d3   : > { %v11709_v0 = vpop.f32.mrb[108].mxu1  ;;  %v13507_v33 = vpack.c.bf16 %v2907_v30, %v2906_v27 }
 0x3d4   : > { %v2684_v32 = vadd.f32 %v11709_v0, %v13456_v53  ;;  %v2675_v35 = vpop.f32.mrb[109].mxu1 }
 0x3d5   : > { %3379 = vmatmul.mubr.bf16.gmra.mrb[184].mxu0 %v2968_v50  ;;  %v2676_v37 = vadd.f32 %v13456_v53, %v2675_v35  ;;  %v11710_v38 = vpop.f32.mrb[110].mxu1 }
 0x3d6   : > { %3386 = vmatprep.mubr.bf16.mxu0 %v12865_v40  ;;  %v2912_v41 = vmax.f32 %v2684_v32, 0.0  ;;  %v2687_v42 = vadd.f32 %v11710_v38, %v13456_v53  ;;  %v2678_v43 = vpop.f32.mrb[111].mxu1 }
 0x3d7   : > { %v2910_v44 = vmax.f32 %v2676_v37, 0.0  ;;  %v2679_v45 = vadd.f32 %v13456_v53, %v2678_v43 }
 0x3d8   : > { %v2913_v46 = vmax.f32 %v2687_v42, 0.0 }
 0x3d9   : > { %v2911_v47 = vmax.f32 %v2679_v45, 0.0 }
 0x3da   : > { %v13517_v49 = vpack.c.bf16 %v2913_v46, %v2912_v41 }
 0x3db   : > { %v11713_v50 = vpop.f32.mrb[112].mxu1  ;;  %v13519_v51 = vpack.c.bf16 %v2911_v47, %v2910_v44  ;;  %v12869_v44 = vld [vmem:[%s13005_s17 + $0xb0] ss:$8 sps:$4 sm:$0xff]  }
 0x3dc   : > { %v2700_v52 = vadd.f32 %v11713_v50, %v13456_v53  ;;  %v2691_v54 = vpop.f32.mrb[113].mxu1 }
 0x3dd   : > { %3387 = vmatmul.mubr.bf16.gmra.mrb[188].mxu0 %v13477_v48  ;;  %v2692_v55 = vadd.f32 %v13456_v53, %v2691_v54  ;;  %v11714_v56 = vpop.f32.mrb[114].mxu1  ;;  %v12422_v54 = vld [vmem:[%s17034_s2 + $0xe0] sm:$0xff]  }
 0x3de   : > { %3394 = vmatprep.mubr.bf16.mxu0 %v12866_v57  ;;  %v2916_v58 = vmax.f32 %v2700_v52, 0.0  ;;  %v2703_v18 = vadd.f32 %v11714_v56, %v13456_v53  ;;  %v2694_v59 = vpop.f32.mrb[115].mxu1 }
 0x3df   : > { %v2914_v60 = vmax.f32 %v2692_v55, 0.0  ;;  %v2695_v61 = vadd.f32 %v13456_v53, %v2694_v59 }
 0x3e0   : > { %v2917_v62 = vmax.f32 %v2703_v18, 0.0  ;;  %v12423_v18 = vld [vmem:[%s17034_s2 + $0xe8] sm:$0xff]  }
 0x3e1   : > { %v2915_v63 = vmax.f32 %v2695_v61, 0.0 }
 0x3e2   : > { %v13527_v2 = vpack.c.bf16 %v2917_v62, %v2916_v58 }
 0x3e3   : > { %v11717_v4 = vpop.f32.mrb[116].mxu1  ;;  %v13529_v5 = vpack.c.bf16 %v2915_v63, %v2914_v60  ;;  %v12870_v63 = vld [vmem:[%s13005_s17 + $0xc0] ss:$8 sps:$4 sm:$0xff]  }
 0x3e4   : > { %v2716_v48 = vadd.f32 %v11717_v4, %v13456_v53  ;;  %v2707_v6 = vpop.f32.mrb[117].mxu1 }
 0x3e5   : > { %3395 = vmatmul.mubr.bf16.gmra.mrb[192].mxu0 %v13489_v3  ;;  %v2708_v7 = vadd.f32 %v13456_v53, %v2707_v6  ;;  %v11718_v36 = vpop.f32.mrb[118].mxu1 }
 0x3e6   : > { %3402 = vmatprep.mubr.bf16.mxu0 %v12867_v9  ;;  %v2920_v10 = vmax.f32 %v2716_v48, 0.0  ;;  %v2719_v11 = vadd.f32 %v11718_v36, %v13456_v53  ;;  %v2710_v12 = vpop.f32.mrb[119].mxu1 }
 0x3e7   : > { %v2918_v13 = vmax.f32 %v2708_v7, 0.0  ;;  %v2711_v14 = vadd.f32 %v13456_v53, %v2710_v12 }
 0x3e8   : > { %v2921_v16 = vmax.f32 %v2719_v11, 0.0 }
 0x3e9   : > { %v2919_v3 = vmax.f32 %v2711_v14, 0.0 }
 0x3ea   : > { %v13540_v19 = vpack.c.bf16 %v2921_v16, %v2920_v10 }
 0x3eb   : > { %v11721_v20 = vpop.f32.mrb[120].mxu1  ;;  %v13542_v21 = vpack.c.bf16 %v2919_v3, %v2918_v13  ;;  %v12425_v13 = vld [vmem:[%s17034_s2 + $0xf8] sm:$0xff]  }
 0x3ec   : > { %v2732_v22 = vadd.f32 %v11721_v20, %v13456_v53  ;;  %v2723_v23 = vpop.f32.mrb[121].mxu1 }
 0x3ed   : > { %3403 = vmatmul.mubr.bf16.gmra.mrb[196].mxu0 %v13487_v1  ;;  %v2724_v24 = vadd.f32 %v13456_v53, %v2723_v23  ;;  %v11722_v25 = vpop.f32.mrb[122].mxu1  ;;  %v12421_v1 = vld [vmem:[%s17034_s2 + $0xd8] sm:$0xff]  }
 0x3ee   : > { %3410 = vmatprep.mubr.bf16.mxu0 %v12868_v26  ;;  %v2924_v27 = vmax.f32 %v2732_v22, 0.0  ;;  %v2735_v28 = vadd.f32 %v11722_v25, %v13456_v53  ;;  %v2726_v29 = vpop.f32.mrb[123].mxu1  ;;  %11765 = vmatprep.subr.bf16.mxu1 %v12421_v1  ;;  %v12871_v22 = vld [vmem:[%s13005_s17 + $0xd0] ss:$8 sps:$4 sm:$0xff]  }
 0x3ef   : > { %v2922_v30 = vmax.f32 %v2724_v24, 0.0  ;;  %v2727_v0 = vadd.f32 %v13456_v53, %v2726_v29  ;;  %11766 = vmatpush3.bf16.msra.mxu1 %v12421_v1 }
 0x3f0   : > { %v2925_v32 = vmax.f32 %v2735_v28, 0.0  ;;  %11767 = vmatprep.subr.bf16.mxu1 %v12422_v54 }
 0x3f1   : > { %v2923_v35 = vmax.f32 %v2727_v0, 0.0 }
 0x3f2   : > { %v13550_v37 = vpack.c.bf16 %v2925_v32, %v2924_v27 }
 0x3f3   : > { %v11725_v38 = vpop.f32.mrb[124].mxu1  ;;  %v13552_v39 = vpack.c.bf16 %v2923_v35, %v2922_v30  ;;  %11768 = vmatpush3.bf16.msra.mxu1 %v12422_v54 }
 0x3f4   : > { %v2748_v40 = vadd.f32 %v11725_v38, %v13456_v53  ;;  %v2739_v41 = vpop.f32.mrb[125].mxu1  ;;  %11769 = vmatprep.subr.bf16.mxu1 %v12423_v18 }
 0x3f5   : > { %3411 = vmatmul.mubr.bf16.gmra.mrb[200].mxu0 %v13498_v17  ;;  %v2740_v42 = vadd.f32 %v13456_v53, %v2739_v41  ;;  %v11726_v43 = vpop.f32.mrb[126].mxu1 }
 0x3f6   : > { %3418 = vmatprep.mubr.bf16.mxu0 %v12869_v44  ;;  %v2928_v45 = vmax.f32 %v2748_v40, 0.0  ;;  %v2751_v46 = vadd.f32 %v11726_v43, %v13456_v53  ;;  %v2742_v47 = vpop.f32.mrb[127].mxu1  ;;  %v12872_v40 = vld [vmem:[%s13005_s17 + $0xe0] ss:$8 sps:$4 sm:$0xff]  }
 0x3f7   : > { %v2926_v50 = vmax.f32 %v2740_v42, 0.0  ;;  %v2743_v52 = vadd.f32 %v13456_v53, %v2742_v47  ;;  %11770 = vmatpush3.bf16.msra.mxu1 %v12423_v18  ;;  %v12873_v18 = vld [vmem:[%s13005_s17 + $0xf0] ss:$8 sps:$4 sm:$0xff]  }
 0x3f8   : > { %v2929_v17 = vmax.f32 %v2751_v46, 0.0  ;;  %11771 = vmatprep.subr.bf16.mxu1 %v12424_v8 }
 0x3f9   : > { %v2927_v55 = vmax.f32 %v2743_v52, 0.0 }
 0x3fa   : > { %v13566_v56 = vpack.c.bf16 %v2929_v17, %v2928_v45 }
 0x3fb   : > { %v11729_v57 = vpop.f32.mrb[128].mxu1  ;;  %v13568_v58 = vpack.c.bf16 %v2927_v55, %v2926_v50  ;;  %11772 = vmatpush3.bf16.msra.mxu1 %v12424_v8 }
 0x3fc   : > { %v2764_v59 = vadd.f32 %v11729_v57, %v13456_v53  ;;  %v2755_v60 = vpop.f32.mrb[129].mxu1  ;;  %11773 = vmatprep.subr.bf16.mxu1 %v12425_v13 }
 0x3fd   : > { %3419 = vmatmul.mubr.bf16.gmra.mrb[204].mxu0 %v13496_v15  ;;  %v2756_v61 = vadd.f32 %v13456_v53, %v2755_v60  ;;  %v11730_v62 = vpop.f32.mrb[130].mxu1 }
 0x3fe   : > { %3426 = vmatprep.mubr.bf16.mxu0 %v12870_v63  ;;  %v2932_v4 = vmax.f32 %v2764_v59, 0.0  ;;  %v2767_v48 = vadd.f32 %v11730_v62, %v13456_v53  ;;  %v2758_v6 = vpop.f32.mrb[131].mxu1 }
 0x3ff   : > { %v2930_v7 = vmax.f32 %v2756_v61, 0.0  ;;  %v2759_v36 = vadd.f32 %v13456_v53, %v2758_v6  ;;  %11774 = vmatpush3.bf16.msra.mxu1 %v12425_v13 }
 0x400   : > { %v2933_v15 = vmax.f32 %v2767_v48, 0.0 }
 0x401   : > { %v2931_v9 = vmax.f32 %v2759_v36, 0.0 }
 0x402   : > { %v13582_v10 = vpack.c.bf16 %v2933_v15, %v2932_v4 }
 0x403   : > { %v13584_v11 = vpack.c.bf16 %v2931_v9, %v2930_v7  ;;  %v11733_v12 = vpop.f32.mrb[132].mxu1 }
 0x404   : > { %v2780_v14 = vadd.f32 %v11733_v12, %v13456_v53  ;;  %v2771_v16 = vpop.f32.mrb[133].mxu1  ;;  %v12874_v12 = vld [vmem:[%s13005_s17 + $0x100] ss:$8 sps:$4 sm:$0xff]  }
 0x405   : > { %3427 = vmatmul.mubr.bf16.gmra.mrb[208].mxu0 %v13507_v33  ;;  %v2772_v3 = vadd.f32 %v13456_v53, %v2771_v16  ;;  %v11734_v20 = vpop.f32.mrb[134].mxu1 }
 0x406   : > { %3434 = vmatprep.mubr.bf16.mxu0 %v12871_v22  ;;  %v2936_v23 = vmax.f32 %v2780_v14, 0.0  ;;  %v2783_v24 = vadd.f32 %v11734_v20, %v13456_v53  ;;  %v2774_v25 = vpop.f32.mrb[135].mxu1 }
 0x407   : > { %v2934_v26 = vmax.f32 %v2772_v3, 0.0  ;;  %v2775_v27 = vadd.f32 %v13456_v53, %v2774_v25 }
 0x408   : > { %v2937_v28 = vmax.f32 %v2783_v24, 0.0 }
 0x409   : > { %v2935_v29 = vmax.f32 %v2775_v27, 0.0 }
 0x40a   : > { %v13595_v30 = vpack.c.bf16 %v2937_v28, %v2936_v23 }
 0x40b   : > { %v13597_v33 = vpack.c.bf16 %v2935_v29, %v2934_v26  ;;  %v11737_v0 = vpop.f32.mrb[136].mxu1 }
 0x40c   : > { %v2796_v32 = vadd.f32 %v11737_v0, %v13456_v53  ;;  %v2787_v35 = vpop.f32.mrb[137].mxu1  ;;  %v12875_v0 = vld [vmem:[%s13005_s17 + $0x110] ss:$8 sps:$4 sm:$0xff]  }
 0x40d   : > { %3435 = vmatmul.mubr.bf16.gmra.mrb[212].mxu0 %v13505_v31  ;;  %v2788_v38 = vadd.f32 %v13456_v53, %v2787_v35  ;;  %v11738_v1 = vpop.f32.mrb[138].mxu1 }
 0x40e   : > { %3442 = vmatprep.mubr.bf16.mxu0 %v12872_v40  ;;  %v2940_v41 = vmax.f32 %v2796_v32, 0.0  ;;  %v2799_v42 = vadd.f32 %v11738_v1, %v13456_v53  ;;  %v2790_v43 = vpop.f32.mrb[139].mxu1 }
 0x40f   : > { %v2938_v44 = vmax.f32 %v2788_v38, 0.0  ;;  %v2791_v45 = vadd.f32 %v13456_v53, %v2790_v43 }
 0x410   : > { %v2941_v46 = vmax.f32 %v2799_v42, 0.0 }
 0x411   : > { %v2939_v47 = vmax.f32 %v2791_v45, 0.0 }
 0x412   : > { %v13605_v50 = vpack.c.bf16 %v2941_v46, %v2940_v41 }
 0x413   : > { %v13607_v52 = vpack.c.bf16 %v2939_v47, %v2938_v44  ;;  %v11741_v31 = vpop.f32.mrb[140].mxu1  ;;  %v12876_v47 = vld [vmem:[%s13005_s17 + $0x120] ss:$8 sps:$4 sm:$0xff]  }
 0x414   : > { %v2812_v54 = vadd.f32 %v11741_v31, %v13456_v53  ;;  %v2803_v17 = vpop.f32.mrb[141].mxu1 }
 0x415   : > { %3443 = vmatmul.mubr.bf16.gmra.mrb[216].mxu0 %v13519_v51  ;;  %v2804_v55 = vadd.f32 %v13456_v53, %v2803_v17  ;;  %v11742_v57 = vpop.f32.mrb[142].mxu1 }
 0x416   : > { %3450 = vmatprep.mubr.bf16.mxu0 %v12873_v18  ;;  %v2944_v59 = vmax.f32 %v2812_v54, 0.0  ;;  %v2815_v60 = vadd.f32 %v11742_v57, %v13456_v53  ;;  %v2806_v61 = vpop.f32.mrb[143].mxu1 }
 0x417   : > { %v2942_v62 = vmax.f32 %v2804_v55, 0.0  ;;  %v2807_v63 = vadd.f32 %v13456_v53, %v2806_v61 }
 0x418   : > { %v2945_v4 = vmax.f32 %v2815_v60, 0.0 }
 0x419   : > { %v2943_v48 = vmax.f32 %v2807_v63, 0.0  ;;  %v12877_v63 = vld [vmem:[%s13005_s17 + $0x130] ss:$8 sps:$4 sm:$0xff]  }
 0x41a   : > { %v13615_v6 = vpack.c.bf16 %v2945_v4, %v2944_v59 }
 0x41b   : > { %v13617_v7 = vpack.c.bf16 %v2943_v48, %v2942_v62  ;;  %v11745_v51 = vpop.f32.mrb[144].mxu1 }
 0x41c   : > { %v2828_v36 = vadd.f32 %v11745_v51, %v13456_v53  ;;  %v2819_v8 = vpop.f32.mrb[145].mxu1 }
 0x41d   : > { %3451 = vmatmul.mubr.bf16.gmra.mrb[220].mxu0 %v13517_v49  ;;  %v2820_v15 = vadd.f32 %v13456_v53, %v2819_v8  ;;  %v11746_v9 = vpop.f32.mrb[146].mxu1 }
 0x41e   : > { %3458 = vmatprep.mubr.bf16.mxu0 %v12874_v12  ;;  %v2948_v13 = vmax.f32 %v2828_v36, 0.0  ;;  %v2831_v14 = vadd.f32 %v11746_v9, %v13456_v53  ;;  %v2822_v16 = vpop.f32.mrb[147].mxu1  ;;  %v12878_v36 = vld [vmem:[%s13005_s17 + $0x140] ss:$8 sps:$4 sm:$0xff]  }
 0x41f   : > { %v2946_v3 = vmax.f32 %v2820_v15, 0.0  ;;  %v2823_v20 = vadd.f32 %v13456_v53, %v2822_v16 }
 0x420   : > { %v2949_v22 = vmax.f32 %v2831_v14, 0.0 }
 0x421   : > { %v2947_v23 = vmax.f32 %v2823_v20, 0.0 }
 0x422   : > { %v13625_v24 = vpack.c.bf16 %v2949_v22, %v2948_v13  ;;  %v12879_v22 = vld [vmem:[%s13005_s17 + $0x150] ss:$8 sps:$4 sm:$0xff]  }
 0x423   : > { %v13627_v25 = vpack.c.bf16 %v2947_v23, %v2946_v3  ;;  %v11749_v49 = vpop.f32.mrb[148].mxu1  ;;  %v12880_v23 = vld [vmem:[%s13005_s17 + $0x160] ss:$8 sps:$4 sm:$0xff]  }
 0x424   : > { %v2844_v26 = vadd.f32 %v11749_v49, %v13456_v53  ;;  %v2835_v27 = vpop.f32.mrb[149].mxu1  ;;  %v12882_v49 = vld [vmem:[%s13005_s17 + $0x180] ss:$8 sps:$4 sm:$0xff]  }
 0x425   : > { %3459 = vmatmul.mubr.bf16.gmra.mrb[224].mxu0 %v13529_v5  ;;  %v2836_v28 = vadd.f32 %v13456_v53, %v2835_v27  ;;  %v11750_v29 = vpop.f32.mrb[150].mxu1 }
 0x426   : > { %3466 = vmatprep.mubr.bf16.mxu0 %v12875_v0  ;;  %v2952_v32 = vmax.f32 %v2844_v26, 0.0  ;;  %v2847_v35 = vadd.f32 %v11750_v29, %v13456_v53  ;;  %v2838_v38 = vpop.f32.mrb[151].mxu1  ;;  %v12883_v26 = vld [vmem:[%s13005_s17 + $0x190] ss:$8 sps:$4 sm:$0xff]  }
 0x427   : > { %v2950_v1 = vmax.f32 %v2836_v28, 0.0  ;;  %v2839_v40 = vadd.f32 %v13456_v53, %v2838_v38 }
 0x428   : > { %v2953_v41 = vmax.f32 %v2847_v35, 0.0 }
 0x429   : > { %v2951_v42 = vmax.f32 %v2839_v40, 0.0 }
 0x42a   : > { %v13635_v43 = vpack.c.bf16 %v2953_v41, %v2952_v32 }
 0x42b   : > { %v13637_v44 = vpack.c.bf16 %v2951_v42, %v2950_v1  ;;  %v11753_v5 = vpop.f32.mrb[152].mxu1 }
 0x42c   : > { %v2860_v45 = vadd.f32 %v11753_v5, %v13456_v53  ;;  %v2851_v46 = vpop.f32.mrb[153].mxu1 }
 0x42d   : > { %3467 = vmatmul.mubr.bf16.gmra.mrb[228].mxu0 %v13527_v2  ;;  %v2852_v31 = vadd.f32 %v13456_v53, %v2851_v46  ;;  %v11754_v54 = vpop.f32.mrb[154].mxu1 }
 0x42e   : > { %3474 = vmatprep.mubr.bf16.mxu0 %v12876_v47  ;;  %v2956_v17 = vmax.f32 %v2860_v45, 0.0  ;;  %v2863_v55 = vadd.f32 %v11754_v54, %v13456_v53  ;;  %v2854_v57 = vpop.f32.mrb[155].mxu1  ;;  %v12887_v47 = vld [vmem:[%s13005_s17 + $0x1d0] ss:$8 sps:$4 sm:$0xff]  }
 0x42f   : > { %v2954_v18 = vmax.f32 %v2852_v31, 0.0  ;;  %v2855_v59 = vadd.f32 %v13456_v53, %v2854_v57 }
 0x430   : > { %v2957_v60 = vmax.f32 %v2863_v55, 0.0 }
 0x431   : > { %v2955_v61 = vmax.f32 %v2855_v59, 0.0 }
 0x432   : > { %v13645_v2 = vpack.c.bf16 %v2957_v60, %v2956_v17 }
 0x433   : > { %v13647_v62 = vpack.c.bf16 %v2955_v61, %v2954_v18  ;;  %v11757_v4 = vpop.f32.mrb[156].mxu1  ;;  %v12888_v61 = vld [vmem:[%s13005_s17 + $0x1e0] ss:$8 sps:$4 sm:$0xff]  }
 0x434   : > { %v2876_v48 = vadd.f32 %v11757_v4, %v13456_v53  ;;  %v2867_v51 = vpop.f32.mrb[157].mxu1 }
 0x435   : > { %3475 = vmatmul.mubr.bf16.gmra.mrb[232].mxu0 %v13542_v21  ;;  %v2868_v8 = vadd.f32 %v13456_v53, %v2867_v51  ;;  %v11758_v15 = vpop.f32.mrb[158].mxu1 }
 0x436   : > { %3482 = vmatprep.mubr.bf16.mxu0 %v12877_v63  ;;  %v2960_v9 = vmax.f32 %v2876_v48, 0.0  ;;  %v2879_v12 = vadd.f32 %v11758_v15, %v13456_v53  ;;  %v2870_v21 = vpop.f32.mrb[159].mxu1 }
 0x437   : > { %v2958_v13 = vmax.f32 %v2868_v8, 0.0  ;;  %v2871_v14 = vadd.f32 %v13456_v53, %v2870_v21  ;;  %v12881_v53 = vld [vmem:[%s13005_s17 + $0x170] ss:$8 sps:$4 sm:$0xff]  }
 0x439   : > { %v2959_v16 = vmax.f32 %v2871_v14, 0.0 }
 0x43b   : > { %v13659_v20 = vpack.c.bf16 %v2959_v16, %v2958_v13 }
 0x43d   : > { %3483 = vmatmul.mubr.bf16.gmra.mrb[236].mxu0 %v13540_v19  ;;  %v2961_v19 = vmax.f32 %v2879_v12, 0.0  ;;  %v12889_v12 = vld [vmem:[%s13005_s17 + $0x1f0] ss:$8 sps:$4 sm:$0xff]  }
 0x43e   : > { %3490 = vmatprep.mubr.bf16.mxu0 %v12878_v36 }
 0x43f   : > { %v13657_v3 = vpack.c.bf16 %v2961_v19, %v2960_v9 }
 0x445   : > { %3491 = vmatmul.mubr.bf16.gmra.mrb[240].mxu0 %v13552_v39  ;;  %v12884_v39 = vld [vmem:[%s13005_s17 + $0x1a0] ss:$8 sps:$4 sm:$0xff]  }
 0x446   : > { %3498 = vmatprep.mubr.bf16.mxu0 %v12879_v22 }
 0x44d   : > { %3499 = vmatmul.mubr.bf16.gmra.mrb[244].mxu0 %v13550_v37  ;;  %v13677_v37 = vld [vmem:[%s17037_s5 + $0x4] ss:$0 sm:$0xff] }
 0x44e   : > { %3506 = vmatprep.mubr.bf16.mxu0 %v12880_v23 }
 0x455   : > { %3507 = vmatmul.mubr.bf16.gmra.mrb[248].mxu0 %v13568_v58  ;;  %v12885_v58 = vld [vmem:[%s13005_s17 + $0x1b0] ss:$8 sps:$4 sm:$0xff]  }
 0x456   : > { %3514 = vmatprep.mubr.bf16.mxu0 %v12881_v53 }
 0x45d   : > { %3515 = vmatmul.mubr.bf16.gmra.mrb[252].mxu0 %v13566_v56 }
 0x45e   : > { %3522 = vmatprep.mubr.bf16.mxu0 %v12882_v49  ;;  %v12890_v49 = vld [vmem:[%s13005_s17 + $0x200] ss:$8 sps:$4 sm:$0xff]  }
 0x465   : > { %3523 = vmatmul.mubr.bf16.gmra.mrb[0].mxu0 %v13584_v11 }
 0x466   : > { %3530 = vmatprep.mubr.bf16.mxu0 %v12883_v26 }
 0x46d   : > { %3531 = vmatmul.mubr.bf16.gmra.mrb[4].mxu0 %v13582_v10 }
 0x46e   : > { %3538 = vmatprep.mubr.bf16.mxu0 %v12884_v39 }
 0x475   : > { %3539 = vmatmul.mubr.bf16.gmra.mrb[8].mxu0 %v13597_v33  ;;  %v12886_v33 = vld [vmem:[%s13005_s17 + $0x1c0] ss:$8 sps:$4 sm:$0xff]  }
 0x476   : > { %3546 = vmatprep.mubr.bf16.mxu0 %v12885_v58 }
 0x478   : > { %v3332_v56 = vpop.f32.mrb[160].mxu0 }
 0x479   : > { %v3333_v27 = vadd.f32 %v13677_v37, %v3332_v56  ;;  %v3334_v11 = vpop.f32.mrb[161].mxu0 }
 0x47a   : > { %v3335_v28 = vpop.f32.mrb[162].mxu0 }
 0x47b   : > { %v3336_v29 = vadd.f32 %v13677_v37, %v3335_v28  ;;  %v3337_v10 = vpop.f32.mrb[163].mxu0  ;;  %v3651_v0 = vmax.f32 %v3333_v27, 0.0  ;;  %v12426_v28 = vld [vmem:[%s17034_s2 + $0x100] sm:$0xff]  }
 0x47c   : > { %11855 = vmatprep.subr.bf16.mxu1 %v12426_v28 }
 0x47d   : > { %v3652_v32 = vmax.f32 %v3336_v29, 0.0  ;;  %3547 = vmatmul.mubr.bf16.gmra.mrb[12].mxu0 %v13595_v30 }
 0x47e   : > { %3554 = vmatprep.mubr.bf16.mxu0 %v12886_v33 }
 0x47f   : > { %v3731_v35 = vpack.c.bf16 %v3652_v32, %v3651_v0 }
 0x480   : > { %v3340_v38 = vpop.f32.mrb[164].mxu0 }
 0x481   : > { %v3341_v1 = vadd.f32 %v13677_v37, %v3340_v38  ;;  %v3342_v40 = vpop.f32.mrb[165].mxu0  ;;  %11775 = vmatprep.mubr.bf16.mxu1 %v3731_v35 }
 0x482   : > { %v3343_v41 = vpop.f32.mrb[166].mxu0 }
 0x483   : > { %v3344_v42 = vadd.f32 %v13677_v37, %v3343_v41  ;;  %v3345_v5 = vpop.f32.mrb[167].mxu0  ;;  %v3653_v45 = vmax.f32 %v3341_v1, 0.0 }
 0x485   : > { %v3654_v46 = vmax.f32 %v3344_v42, 0.0  ;;  %3555 = vmatmul.mubr.bf16.gmra.mrb[16].mxu0 %v13607_v52 }
 0x486   : > { %3562 = vmatprep.mubr.bf16.mxu0 %v12887_v47 }
 0x487   : > { %v3732_v30 = vpack.c.bf16 %v3654_v46, %v3653_v45 }
 0x488   : > { %v3348_v31 = vpop.f32.mrb[168].mxu0 }
 0x489   : > { %v3349_v54 = vadd.f32 %v13677_v37, %v3348_v31  ;;  %v3350_v17 = vpop.f32.mrb[169].mxu0  ;;  %11776 = vmatmul.mubr.bf16.vlgmr.msra.gmra.mrb[160].mxu1 %v3732_v30 }
 0x48a   : > { %v3351_v55 = vpop.f32.mrb[170].mxu0  ;;  %11856 = vmatpush3.bf16.msra.mxu1 %v12426_v28 }
 0x48b   : > { %v3352_v57 = vadd.f32 %v13677_v37, %v3351_v55  ;;  %v3353_v18 = vpop.f32.mrb[171].mxu0  ;;  %v3655_v59 = vmax.f32 %v3349_v54, 0.0 }
 0x48d   : > { %v3656_v60 = vmax.f32 %v3352_v57, 0.0  ;;  %3563 = vmatmul.mubr.bf16.gmra.mrb[20].mxu0 %v13605_v50  ;;  %v12893_v57 = vld [vmem:[%s13005_s17 + $0x230] ss:$8 sps:$4 sm:$0xff]  }
 0x48e   : > { %3570 = vmatprep.mubr.bf16.mxu0 %v12888_v61 }
 0x48f   : > { %v3733_v52 = vpack.c.bf16 %v3656_v60, %v3655_v59 }
 0x490   : > { %v3356_v63 = vpop.f32.mrb[172].mxu0 }
 0x491   : > { %v3357_v4 = vadd.f32 %v13677_v37, %v3356_v63  ;;  %v3358_v48 = vpop.f32.mrb[173].mxu0  ;;  %11779 = vmatprep.mubr.bf16.mxu1 %v3733_v52 }
 0x492   : > { %v3359_v51 = vpop.f32.mrb[174].mxu0 }
 0x493   : > { %v3360_v36 = vadd.f32 %v13677_v37, %v3359_v51  ;;  %v3361_v8 = vpop.f32.mrb[175].mxu0  ;;  %v3657_v15 = vmax.f32 %v3357_v4, 0.0  ;;  %v12894_v51 = vld [vmem:[%s13005_s17 + $0x240] ss:$8 sps:$4 sm:$0xff]  }
 0x495   : > { %v3658_v9 = vmax.f32 %v3360_v36, 0.0  ;;  %3571 = vmatmul.mubr.bf16.gmra.mrb[24].mxu0 %v13617_v7 }
 0x496   : > { %3578 = vmatprep.mubr.bf16.mxu0 %v12889_v12 }
 0x497   : > { %v3734_v50 = vpack.c.bf16 %v3658_v9, %v3657_v15 }
 0x498   : > { %v3364_v21 = vpop.f32.mrb[176].mxu0 }
 0x499   : > { %v3365_v13 = vadd.f32 %v13677_v37, %v3364_v21  ;;  %v3366_v14 = vpop.f32.mrb[177].mxu0  ;;  %11780 = vmatmul.mubr.bf16.gmra.mrb[164].mxu1 %v3734_v50 }
 0x49a   : > { %v3367_v19 = vpop.f32.mrb[178].mxu0 }
 0x49b   : > { %v3368_v16 = vadd.f32 %v13677_v37, %v3367_v19  ;;  %v3369_v22 = vpop.f32.mrb[179].mxu0  ;;  %v3659_v23 = vmax.f32 %v3365_v13, 0.0  ;;  %v12895_v19 = vld [vmem:[%s13005_s17 + $0x250] ss:$8 sps:$4 sm:$0xff]  }
 0x49d   : > { %v3660_v53 = vmax.f32 %v3368_v16, 0.0  ;;  %3579 = vmatmul.mubr.bf16.gmra.mrb[28].mxu0 %v13615_v6  ;;  %v12891_v6 = vld [vmem:[%s13005_s17 + $0x210] ss:$8 sps:$4 sm:$0xff]  }
 0x49e   : > { %3586 = vmatprep.mubr.bf16.mxu0 %v12890_v49 }
 0x49f   : > { %v3735_v7 = vpack.c.bf16 %v3660_v53, %v3659_v23 }
 0x4a0   : > { %v3372_v26 = vpop.f32.mrb[180].mxu0 }
 0x4a1   : > { %v3373_v39 = vadd.f32 %v13677_v37, %v3372_v26  ;;  %v3374_v58 = vpop.f32.mrb[181].mxu0  ;;  %11783 = vmatprep.mubr.bf16.mxu1 %v3735_v7  ;;  %v12428_v26 = vld [vmem:[%s17034_s2 + $0x110] sm:$0xff]  }
 0x4a2   : > { %v3375_v56 = vpop.f32.mrb[182].mxu0 }
 0x4a3   : > { %v3376_v27 = vadd.f32 %v13677_v37, %v3375_v56  ;;  %v3377_v11 = vpop.f32.mrb[183].mxu0  ;;  %v3661_v29 = vmax.f32 %v3373_v39, 0.0 }
 0x4a5   : > { %v3662_v10 = vmax.f32 %v3376_v27, 0.0  ;;  %3587 = vmatmul.mubr.bf16.gmra.mrb[32].mxu0 %v13627_v25  ;;  %v12892_v25 = vld [vmem:[%s13005_s17 + $0x220] ss:$8 sps:$4 sm:$0xff]  }
 0x4a6   : > { %3594 = vmatprep.mubr.bf16.mxu0 %v12891_v6 }
 0x4a7   : > { %v3736_v0 = vpack.c.bf16 %v3662_v10, %v3661_v29 }
 0x4a8   : > { %v3380_v32 = vpop.f32.mrb[184].mxu0 }
 0x4a9   : > { %v3381_v33 = vadd.f32 %v13677_v37, %v3380_v32  ;;  %v3382_v35 = vpop.f32.mrb[185].mxu0  ;;  %11784 = vmatmul.mubr.bf16.gmra.mrb[168].mxu1 %v3736_v0 }
 0x4aa   : > { %v3383_v38 = vpop.f32.mrb[186].mxu0 }
 0x4ab   : > { %v3384_v1 = vadd.f32 %v13677_v37, %v3383_v38  ;;  %v3385_v40 = vpop.f32.mrb[187].mxu0  ;;  %v3663_v41 = vmax.f32 %v3381_v33, 0.0 }
 0x4ad   : > { %v3664_v42 = vmax.f32 %v3384_v1, 0.0  ;;  %3595 = vmatmul.mubr.bf16.gmra.mrb[36].mxu0 %v13625_v24  ;;  %v12427_v24 = vld [vmem:[%s17034_s2 + $0x108] sm:$0xff]  }
 0x4ae   : > { %3602 = vmatprep.mubr.bf16.mxu0 %v12892_v25  ;;  %11857 = vmatprep.subr.bf16.mxu1 %v12427_v24 }
 0x4af   : > { %v3737_v5 = vpack.c.bf16 %v3664_v42, %v3663_v41  ;;  %11858 = vmatpush3.bf16.msra.mxu1 %v12427_v24 }
 0x4b0   : > { %v3388_v45 = vpop.f32.mrb[188].mxu0  ;;  %11859 = vmatprep.subr.bf16.mxu1 %v12428_v26 }
 0x4b1   : > { %v3389_v46 = vadd.f32 %v13677_v37, %v3388_v45  ;;  %v3390_v47 = vpop.f32.mrb[189].mxu0  ;;  %11787 = vmatprep.mubr.bf16.mxu1 %v3737_v5 }
 0x4b2   : > { %v3391_v30 = vpop.f32.mrb[190].mxu0 }
 0x4b3   : > { %v3392_v31 = vadd.f32 %v13677_v37, %v3391_v30  ;;  %v3393_v54 = vpop.f32.mrb[191].mxu0  ;;  %v3665_v17 = vmax.f32 %v3389_v46, 0.0  ;;  %11860 = vmatpush3.bf16.msra.mxu1 %v12428_v26 }
 0x4b5   : > { %v3666_v55 = vmax.f32 %v3392_v31, 0.0  ;;  %3603 = vmatmul.mubr.bf16.gmra.mrb[40].mxu0 %v13637_v44 }
 0x4b6   : > { %3610 = vmatprep.mubr.bf16.mxu0 %v12893_v57 }
 0x4b7   : > { %v3738_v18 = vpack.c.bf16 %v3666_v55, %v3665_v17 }
 0x4b8   : > { %v3396_v59 = vpop.f32.mrb[192].mxu0 }
 0x4b9   : > { %v3397_v60 = vadd.f32 %v13677_v37, %v3396_v59  ;;  %v3398_v61 = vpop.f32.mrb[193].mxu0  ;;  %11788 = vmatmul.mubr.bf16.gmra.mrb[172].mxu1 %v3738_v18 }
 0x4ba   : > { %v3399_v52 = vpop.f32.mrb[194].mxu0 }
 0x4bb   : > { %v3400_v63 = vadd.f32 %v13677_v37, %v3399_v52  ;;  %v3401_v4 = vpop.f32.mrb[195].mxu0  ;;  %v3667_v44 = vmax.f32 %v3397_v60, 0.0 }
 0x4bd   : > { %v3668_v48 = vmax.f32 %v3400_v63, 0.0  ;;  %3611 = vmatmul.mubr.bf16.gmra.mrb[44].mxu0 %v13635_v43 }
 0x4be   : > { %3618 = vmatprep.mubr.bf16.mxu0 %v12894_v51 }
 0x4bf   : > { %v3739_v36 = vpack.c.bf16 %v3668_v48, %v3667_v44 }
 0x4c0   : > { %v3404_v8 = vpop.f32.mrb[196].mxu0 }
 0x4c1   : > { %v3405_v15 = vadd.f32 %v13677_v37, %v3404_v8  ;;  %v3406_v9 = vpop.f32.mrb[197].mxu0  ;;  %11791 = vmatprep.mubr.bf16.mxu1 %v3739_v36 }
 0x4c2   : > { %v3407_v12 = vpop.f32.mrb[198].mxu0 }
 0x4c3   : > { %v3408_v50 = vadd.f32 %v13677_v37, %v3407_v12  ;;  %v3409_v21 = vpop.f32.mrb[199].mxu0  ;;  %v3669_v13 = vmax.f32 %v3405_v15, 0.0 }
 0x4c5   : > { %v3670_v14 = vmax.f32 %v3408_v50, 0.0  ;;  %3619 = vmatmul.mubr.bf16.gmra.mrb[48].mxu0 %v13647_v62  ;;  %v12896_v62 = vld [vmem:[%s13005_s17 + $0x260] ss:$8 sps:$4 sm:$0xff]  }
 0x4c6   : > { %3626 = vmatprep.mubr.bf16.mxu0 %v12895_v19  ;;  %v12431_v50 = vld [vmem:[%s17034_s2 + $0x120] sm:$0xff]  }
 0x4c7   : > { %v3740_v43 = vpack.c.bf16 %v3670_v14, %v3669_v13 }
 0x4c8   : > { %v3412_v16 = vpop.f32.mrb[200].mxu0 }
 0x4c9   : > { %v3413_v22 = vadd.f32 %v13677_v37, %v3412_v16  ;;  %v3414_v23 = vpop.f32.mrb[201].mxu0  ;;  %11792 = vmatmul.mubr.bf16.gmra.mrb[176].mxu1 %v3740_v43 }
 0x4ca   : > { %v3415_v53 = vpop.f32.mrb[202].mxu0 }
 0x4cb   : > { %v3416_v49 = vadd.f32 %v13677_v37, %v3415_v53  ;;  %v3417_v7 = vpop.f32.mrb[203].mxu0  ;;  %v3671_v39 = vmax.f32 %v3413_v22, 0.0 }
 0x4cd   : > { %v3672_v58 = vmax.f32 %v3416_v49, 0.0  ;;  %3627 = vmatmul.mubr.bf16.gmra.mrb[52].mxu0 %v13645_v2  ;;  %v12897_v2 = vld [vmem:[%s13005_s17 + $0x270] ss:$8 sps:$4 sm:$0xff]  }
 0x4ce   : > { %3634 = vmatprep.mubr.bf16.mxu0 %v12896_v62 }
 0x4cf   : > { %v3741_v56 = vpack.c.bf16 %v3672_v58, %v3671_v39 }
 0x4d0   : > { %v3420_v27 = vpop.f32.mrb[204].mxu0 }
 0x4d1   : > { %v3421_v11 = vadd.f32 %v13677_v37, %v3420_v27  ;;  %v3422_v28 = vpop.f32.mrb[205].mxu0  ;;  %11795 = vmatprep.mubr.bf16.mxu1 %v3741_v56 }
 0x4d2   : > { %v3423_v29 = vpop.f32.mrb[206].mxu0 }
 0x4d3   : > { %v3424_v10 = vadd.f32 %v13677_v37, %v3423_v29  ;;  %v3425_v6 = vpop.f32.mrb[207].mxu0  ;;  %v3673_v0 = vmax.f32 %v3421_v11, 0.0 }
 0x4d4   : > { %v12433_v6 = vld [vmem:[%s17034_s2 + $0x148] sm:$0xff]  }
 0x4d5   : > { %v3674_v32 = vmax.f32 %v3424_v10, 0.0  ;;  %3635 = vmatmul.mubr.bf16.gmra.mrb[56].mxu0 %v13659_v20  ;;  %v12429_v20 = vld [vmem:[%s17034_s2 + $0x118] sm:$0xff]   ;;  %v12432_v10 = vld [vmem:[%s17034_s2 + $0x128] sm:$0xff]  }
 0x4d6   : > { %3642 = vmatprep.mubr.bf16.mxu0 %v12897_v2  ;;  %11861 = vmatprep.subr.bf16.mxu1 %v12429_v20 }
 0x4d7   : > { %v3742_v33 = vpack.c.bf16 %v3674_v32, %v3673_v0  ;;  %11862 = vmatpush3.bf16.msra.mxu1 %v12429_v20 }
 0x4d8   : > { %v3428_v35 = vpop.f32.mrb[208].mxu0  ;;  %11863 = vmatprep.subr.bf16.mxu1 %v12431_v50 }
 0x4d9   : > { %v3429_v38 = vadd.f32 %v13677_v37, %v3428_v35  ;;  %v3430_v1 = vpop.f32.mrb[209].mxu0  ;;  %11796 = vmatmul.mubr.bf16.gmra.mrb[180].mxu1 %v3742_v33 }
 0x4da   : > { %v3431_v40 = vpop.f32.mrb[210].mxu0 }
 0x4db   : > { %v3432_v41 = vadd.f32 %v13677_v37, %v3431_v40  ;;  %v3433_v42 = vpop.f32.mrb[211].mxu0  ;;  %v3675_v25 = vmax.f32 %v3429_v38, 0.0  ;;  %11864 = vmatpush3.bf16.msra.mxu1 %v12431_v50 }
 0x4dc   : > { %11865 = vmatprep.subr.bf16.mxu1 %v12432_v10 }
 0x4dd   : > { %v3676_v5 = vmax.f32 %v3432_v41, 0.0  ;;  %3643 = vmatmul.mubr.bf16.gmra.mrb[60].mxu0 %v13657_v3  ;;  %v12430_v3 = vld [vmem:[%s17034_s2 + $0x140] sm:$0xff]  }
 0x4de   : > { %11951 = vmatprep.subr.bf16.mxu0 %v12430_v3 }
 0x4df   : > { %v3743_v45 = vpack.c.bf16 %v3676_v5, %v3675_v25  ;;  %11952 = vmatpush3.bf16.msra.mxu0 %v12430_v3  ;;  %11866 = vmatpush3.bf16.msra.mxu1 %v12432_v10 }
 0x4e0   : > { %v3436_v46 = vpop.f32.mrb[212].mxu0  ;;  %11953 = vmatprep.subr.bf16.mxu0 %v12433_v6 }
 0x4e1   : > { %v3437_v47 = vadd.f32 %v13677_v37, %v3436_v46  ;;  %v3438_v30 = vpop.f32.mrb[213].mxu0  ;;  %11799 = vmatprep.mubr.bf16.mxu1 %v3743_v45 }
 0x4e2   : > { %v3439_v31 = vpop.f32.mrb[214].mxu0 }
 0x4e3   : > { %v3440_v54 = vadd.f32 %v13677_v37, %v3439_v31  ;;  %v3441_v17 = vpop.f32.mrb[215].mxu0  ;;  %v3677_v55 = vmax.f32 %v3437_v47, 0.0  ;;  %11954 = vmatpush3.bf16.msra.mxu0 %v12433_v6 }
 0x4e5   : > { %v3678_v24 = vmax.f32 %v3440_v54, 0.0 }
 0x4e7   : > { %v3744_v57 = vpack.c.bf16 %v3678_v24, %v3677_v55 }
 0x4e8   : > { %v3444_v18 = vpop.f32.mrb[216].mxu0 }
 0x4e9   : > { %v3445_v59 = vadd.f32 %v13677_v37, %v3444_v18  ;;  %v3446_v60 = vpop.f32.mrb[217].mxu0  ;;  %11800 = vmatmul.mubr.bf16.gmra.mrb[184].mxu1 %v3744_v57 }
 0x4ea   : > { %v3447_v61 = vpop.f32.mrb[218].mxu0 }
 0x4eb   : > { %v3448_v52 = vadd.f32 %v13677_v37, %v3447_v61  ;;  %v3449_v63 = vpop.f32.mrb[219].mxu0  ;;  %v3679_v4 = vmax.f32 %v3445_v59, 0.0  ;;  %v12434_v59 = vld [vmem:[%s17034_s2 + $0x130] sm:$0xff]  }
 0x4ec   : > { %11867 = vmatprep.subr.bf16.mxu1 %v12434_v59 }
 0x4ed   : > { %v3680_v44 = vmax.f32 %v3448_v52, 0.0  ;;  %11868 = vmatpush3.bf16.msra.mxu1 %v12434_v59 }
 0x4ef   : > { %v3745_v48 = vpack.c.bf16 %v3680_v44, %v3679_v4 }
 0x4f0   : > { %v3452_v51 = vpop.f32.mrb[220].mxu0 }
 0x4f1   : > { %v3453_v36 = vadd.f32 %v13677_v37, %v3452_v51  ;;  %v3454_v8 = vpop.f32.mrb[221].mxu0  ;;  %11803 = vmatprep.mubr.bf16.mxu1 %v3745_v48 }
 0x4f2   : > { %v3455_v15 = vpop.f32.mrb[222].mxu0 }
 0x4f3   : > { %v3456_v9 = vadd.f32 %v13677_v37, %v3455_v15  ;;  %v3457_v12 = vpop.f32.mrb[223].mxu0  ;;  %v3681_v21 = vmax.f32 %v3453_v36, 0.0 }
 0x4f5   : > { %v3682_v13 = vmax.f32 %v3456_v9, 0.0 }
 0x4f7   : > { %v3746_v14 = vpack.c.bf16 %v3682_v13, %v3681_v21 }
 0x4f8   : > { %v3460_v19 = vpop.f32.mrb[224].mxu0 }
 0x4f9   : > { %v3461_v43 = vadd.f32 %v13677_v37, %v3460_v19  ;;  %v3462_v16 = vpop.f32.mrb[225].mxu0  ;;  %11804 = vmatmul.mubr.bf16.gmra.mrb[188].mxu1 %v3746_v14 }
 0x4fa   : > { %v3463_v22 = vpop.f32.mrb[226].mxu0 }
 0x4fb   : > { %v3464_v23 = vadd.f32 %v13677_v37, %v3463_v22  ;;  %v3465_v53 = vpop.f32.mrb[227].mxu0  ;;  %v3683_v49 = vmax.f32 %v3461_v43, 0.0 }
 0x4fd   : > { %v3684_v7 = vmax.f32 %v3464_v23, 0.0  ;;  %v12435_v23 = vld [vmem:[%s17034_s2 + $0x138] sm:$0xff]  }
 0x4fe   : > { %11869 = vmatprep.subr.bf16.mxu1 %v12435_v23 }
 0x4ff   : > { %v3747_v26 = vpack.c.bf16 %v3684_v7, %v3683_v49  ;;  %11870 = vmatpush3.bf16.msra.mxu1 %v12435_v23 }
 0x500   : > { %v3468_v39 = vpop.f32.mrb[228].mxu0 }
 0x501   : > { %v3469_v58 = vadd.f32 %v13677_v37, %v3468_v39  ;;  %v3470_v62 = vpop.f32.mrb[229].mxu0  ;;  %11807 = vmatprep.mubr.bf16.mxu1 %v3747_v26 }
 0x502   : > { %v3471_v56 = vpop.f32.mrb[230].mxu0  ;;  %v12436_v62 = vld [vmem:[%s17034_s2 + $0x150] sm:$0xff]  }
 0x503   : > { %v3472_v27 = vadd.f32 %v13677_v37, %v3471_v56  ;;  %v3473_v11 = vpop.f32.mrb[231].mxu0  ;;  %v3685_v28 = vmax.f32 %v3469_v58, 0.0  ;;  %11955 = vmatprep.subr.bf16.mxu0 %v12436_v62 }
 0x504   : > { %11956 = vmatpush3.bf16.msra.mxu0 %v12436_v62 }
 0x505   : > { %v3686_v29 = vmax.f32 %v3472_v27, 0.0 }
 0x507   : > { %v3748_v0 = vpack.c.bf16 %v3686_v29, %v3685_v28 }
 0x508   : > { %v3476_v32 = vpop.f32.mrb[232].mxu0 }
 0x509   : > { %v3477_v2 = vadd.f32 %v13677_v37, %v3476_v32  ;;  %v3478_v33 = vpop.f32.mrb[233].mxu0  ;;  %11808 = vmatmul.mubr.bf16.gmra.mrb[192].mxu1 %v3748_v0 }
 0x50a   : > { %v3479_v35 = vpop.f32.mrb[234].mxu0 }
 0x50b   : > { %v3480_v38 = vadd.f32 %v13677_v37, %v3479_v35  ;;  %v3481_v1 = vpop.f32.mrb[235].mxu0  ;;  %v3687_v40 = vmax.f32 %v3477_v2, 0.0 }
 0x50d   : > { %v3688_v41 = vmax.f32 %v3480_v38, 0.0 }
 0x50f   : > { %v3749_v42 = vpack.c.bf16 %v3688_v41, %v3687_v40 }
 0x510   : > { %v3484_v25 = vpop.f32.mrb[236].mxu0 }
 0x511   : > { %v3485_v5 = vadd.f32 %v13677_v37, %v3484_v25  ;;  %v3486_v45 = vpop.f32.mrb[237].mxu0  ;;  %11811 = vmatprep.mubr.bf16.mxu1 %v3749_v42 }
 0x512   : > { %v3487_v20 = vpop.f32.mrb[238].mxu0 }
 0x513   : > { %v3488_v46 = vadd.f32 %v13677_v37, %v3487_v20  ;;  %v3489_v47 = vpop.f32.mrb[239].mxu0  ;;  %v3689_v30 = vmax.f32 %v3485_v5, 0.0 }
 0x515   : > { %v3690_v31 = vmax.f32 %v3488_v46, 0.0 }
 0x517   : > { %v3750_v54 = vpack.c.bf16 %v3690_v31, %v3689_v30 }
 0x518   : > { %v3492_v17 = vpop.f32.mrb[240].mxu0 }
 0x519   : > { %v3493_v3 = vadd.f32 %v13677_v37, %v3492_v17  ;;  %v3494_v55 = vpop.f32.mrb[241].mxu0  ;;  %11812 = vmatmul.mubr.bf16.gmra.mrb[196].mxu1 %v3750_v54 }
 0x51a   : > { %v3495_v24 = vpop.f32.mrb[242].mxu0 }
 0x51b   : > { %v3496_v57 = vadd.f32 %v13677_v37, %v3495_v24  ;;  %v3497_v18 = vpop.f32.mrb[243].mxu0  ;;  %v3691_v60 = vmax.f32 %v3493_v3, 0.0 }
 0x51d   : > { %v3692_v61 = vmax.f32 %v3496_v57, 0.0 }
 0x51f   : > { %v3751_v52 = vpack.c.bf16 %v3692_v61, %v3691_v60 }
 0x520   : > { %v3500_v63 = vpop.f32.mrb[244].mxu0 }
 0x521   : > { %v3501_v4 = vadd.f32 %v13677_v37, %v3500_v63  ;;  %v3502_v44 = vpop.f32.mrb[245].mxu0  ;;  %11815 = vmatprep.mubr.bf16.mxu1 %v3751_v52  ;;  %v12437_v63 = vld [vmem:[%s17034_s2 + $0x158] sm:$0xff]  }
 0x522   : > { %v3503_v48 = vpop.f32.mrb[246].mxu0  ;;  %11957 = vmatprep.subr.bf16.mxu0 %v12437_v63 }
 0x523   : > { %v3504_v51 = vadd.f32 %v13677_v37, %v3503_v48  ;;  %v3505_v36 = vpop.f32.mrb[247].mxu0  ;;  %v3693_v8 = vmax.f32 %v3501_v4, 0.0  ;;  %11958 = vmatpush3.bf16.msra.mxu0 %v12437_v63 }
 0x525   : > { %v3694_v15 = vmax.f32 %v3504_v51, 0.0 }
 0x527   : > { %v3752_v9 = vpack.c.bf16 %v3694_v15, %v3693_v8 }
 0x528   : > { %v3508_v12 = vpop.f32.mrb[248].mxu0 }
 0x529   : > { %v3509_v50 = vadd.f32 %v13677_v37, %v3508_v12  ;;  %v3510_v21 = vpop.f32.mrb[249].mxu0  ;;  %11816 = vmatmul.mubr.bf16.gmra.mrb[200].mxu1 %v3752_v9  ;;  %v13801_v9 = vld [vmem:[%s17037_s5 + $0x5] ss:$0 sm:$0xff] }
 0x52a   : > { %v3511_v13 = vpop.f32.mrb[250].mxu0 }
 0x52b   : > { %v3512_v14 = vadd.f32 %v13677_v37, %v3511_v13  ;;  %v3513_v19 = vpop.f32.mrb[251].mxu0  ;;  %v3695_v43 = vmax.f32 %v3509_v50, 0.0 }
 0x52d   : > { %v3696_v16 = vmax.f32 %v3512_v14, 0.0 }
 0x52f   : > { %v3753_v22 = vpack.c.bf16 %v3696_v16, %v3695_v43 }
 0x530   : > { %v3516_v53 = vpop.f32.mrb[252].mxu0 }
 0x531   : > { %v3517_v49 = vadd.f32 %v13677_v37, %v3516_v53  ;;  %v3518_v7 = vpop.f32.mrb[253].mxu0  ;;  %11819 = vmatprep.mubr.bf16.mxu1 %v3753_v22 }
 0x532   : > { %v3519_v26 = vpop.f32.mrb[254].mxu0 }
 0x533   : > { %v3520_v39 = vadd.f32 %v13677_v37, %v3519_v26  ;;  %v3521_v58 = vpop.f32.mrb[255].mxu0  ;;  %v3697_v56 = vmax.f32 %v3517_v49, 0.0 }
 0x535   : > { %v3698_v27 = vmax.f32 %v3520_v39, 0.0 }
 0x537   : > { %v3754_v11 = vpack.c.bf16 %v3698_v27, %v3697_v56 }
 0x538   : > { %v3524_v28 = vpop.f32.mrb[0].mxu0 }
 0x539   : > { %v3525_v29 = vadd.f32 %v13677_v37, %v3524_v28  ;;  %v3526_v10 = vpop.f32.mrb[1].mxu0  ;;  %11820 = vmatmul.mubr.bf16.gmra.mrb[204].mxu1 %v3754_v11 }
 0x53a   : > { %v3527_v6 = vpop.f32.mrb[2].mxu0 }
 0x53b   : > { %v3528_v0 = vadd.f32 %v13677_v37, %v3527_v6  ;;  %v3529_v32 = vpop.f32.mrb[3].mxu0  ;;  %v3699_v2 = vmax.f32 %v3525_v29, 0.0 }
 0x53d   : > { %v3700_v33 = vmax.f32 %v3528_v0, 0.0 }
 0x53f   : > { %v3755_v35 = vpack.c.bf16 %v3700_v33, %v3699_v2 }
 0x540   : > { %v3532_v38 = vpop.f32.mrb[4].mxu0 }
 0x541   : > { %v3533_v1 = vadd.f32 %v13677_v37, %v3532_v38  ;;  %v3534_v40 = vpop.f32.mrb[5].mxu0  ;;  %11823 = vmatprep.mubr.bf16.mxu1 %v3755_v35 }
 0x542   : > { %v3535_v41 = vpop.f32.mrb[6].mxu0 }
 0x543   : > { %v3536_v42 = vadd.f32 %v13677_v37, %v3535_v41  ;;  %v3537_v25 = vpop.f32.mrb[7].mxu0  ;;  %v3701_v5 = vmax.f32 %v3533_v1, 0.0 }
 0x545   : > { %v3702_v45 = vmax.f32 %v3536_v42, 0.0 }
 0x547   : > { %v3756_v20 = vpack.c.bf16 %v3702_v45, %v3701_v5 }
 0x548   : > { %v3540_v46 = vpop.f32.mrb[8].mxu0 }
 0x549   : > { %v3541_v47 = vadd.f32 %v13677_v37, %v3540_v46  ;;  %v3542_v30 = vpop.f32.mrb[9].mxu0  ;;  %11824 = vmatmul.mubr.bf16.gmra.mrb[208].mxu1 %v3756_v20 }
 0x54a   : > { %v3543_v31 = vpop.f32.mrb[10].mxu0 }
 0x54b   : > { %v3544_v54 = vadd.f32 %v13677_v37, %v3543_v31  ;;  %v3545_v17 = vpop.f32.mrb[11].mxu0  ;;  %v3703_v3 = vmax.f32 %v3541_v47, 0.0 }
 0x54d   : > { %v3704_v55 = vmax.f32 %v3544_v54, 0.0 }
 0x54f   : > { %v3757_v24 = vpack.c.bf16 %v3704_v55, %v3703_v3 }
 0x550   : > { %v3548_v57 = vpop.f32.mrb[12].mxu0 }
 0x551   : > { %v3549_v18 = vadd.f32 %v13677_v37, %v3548_v57  ;;  %v3550_v59 = vpop.f32.mrb[13].mxu0  ;;  %11827 = vmatprep.mubr.bf16.mxu1 %v3757_v24 }
 0x552   : > { %v3551_v60 = vpop.f32.mrb[14].mxu0 }
 0x553   : > { %v3552_v61 = vadd.f32 %v13677_v37, %v3551_v60  ;;  %v3553_v52 = vpop.f32.mrb[15].mxu0  ;;  %v3705_v4 = vmax.f32 %v3549_v18, 0.0 }
 0x555   : > { %v3706_v44 = vmax.f32 %v3552_v61, 0.0 }
 0x557   : > { %v3758_v48 = vpack.c.bf16 %v3706_v44, %v3705_v4 }
 0x558   : > { %v3556_v51 = vpop.f32.mrb[16].mxu0 }
 0x559   : > { %v3557_v36 = vadd.f32 %v13677_v37, %v3556_v51  ;;  %v3558_v8 = vpop.f32.mrb[17].mxu0  ;;  %11828 = vmatmul.mubr.bf16.gmra.mrb[212].mxu1 %v3758_v48 }
 0x55a   : > { %v3559_v15 = vpop.f32.mrb[18].mxu0 }
 0x55b   : > { %v3560_v12 = vadd.f32 %v13677_v37, %v3559_v15  ;;  %v3561_v50 = vpop.f32.mrb[19].mxu0  ;;  %v3707_v13 = vmax.f32 %v3557_v36, 0.0 }
 0x55c   : > { %v11777_v21 = vpop.f32.mrb[160].mxu1 }
 0x55d   : > { %v3708_v14 = vmax.f32 %v3560_v12, 0.0  ;;  %v3887_v19 = vadd.f32 %v11777_v21, %v13801_v9  ;;  %v3878_v43 = vpop.f32.mrb[161].mxu1 }
 0x55e   : > { %v3879_v16 = vadd.f32 %v13801_v9, %v3878_v43  ;;  %v11778_v22 = vpop.f32.mrb[162].mxu1 }
 0x55f   : > { %v3890_v23 = vadd.f32 %v11778_v22, %v13801_v9  ;;  %v3881_v53 = vpop.f32.mrb[163].mxu1  ;;  %v3759_v49 = vpack.c.bf16 %v3708_v14, %v3707_v13  ;;  %v4199_v39 = vmax.f32 %v3887_v19, 0.0 }
 0x560   : > { %v3882_v7 = vadd.f32 %v13801_v9, %v3881_v53  ;;  %v3564_v26 = vpop.f32.mrb[20].mxu0  ;;  %v4197_v27 = vmax.f32 %v3879_v16, 0.0 }
 0x561   : > { %v4200_v58 = vmax.f32 %v3890_v23, 0.0  ;;  %v3565_v62 = vadd.f32 %v13677_v37, %v3564_v26  ;;  %v3566_v56 = vpop.f32.mrb[21].mxu0  ;;  %11831 = vmatprep.mubr.bf16.mxu1 %v3759_v49 }
 0x562   : > { %v4198_v11 = vmax.f32 %v3882_v7, 0.0  ;;  %v3567_v28 = vpop.f32.mrb[22].mxu0 }
 0x563   : > { %v13809_v29 = vpack.c.bf16 %v4200_v58, %v4199_v39  ;;  %v3568_v10 = vadd.f32 %v13677_v37, %v3567_v28  ;;  %v3569_v6 = vpop.f32.mrb[23].mxu0  ;;  %v3709_v32 = vmax.f32 %v3565_v62, 0.0 }
 0x564   : > { %v13812_v0 = vpack.c.bf16 %v4198_v11, %v4197_v27 }
 0x565   : > { %v3710_v2 = vmax.f32 %v3568_v10, 0.0 }
 0x567   : > { %v3760_v33 = vpack.c.bf16 %v3710_v2, %v3709_v32 }
 0x568   : > { %v3572_v35 = vpop.f32.mrb[24].mxu0 }
 0x569   : > { %v3573_v38 = vadd.f32 %v13677_v37, %v3572_v35  ;;  %v3574_v1 = vpop.f32.mrb[25].mxu0  ;;  %11832 = vmatmul.mubr.bf16.gmra.mrb[216].mxu1 %v3760_v33 }
 0x56a   : > { %v3575_v40 = vpop.f32.mrb[26].mxu0 }
 0x56b   : > { %v3576_v41 = vadd.f32 %v13677_v37, %v3575_v40  ;;  %v3577_v42 = vpop.f32.mrb[27].mxu0  ;;  %v3711_v5 = vmax.f32 %v3573_v38, 0.0  ;;  %v12438_v38 = vld [vmem:[%s17034_s2 + $0x160] sm:$0xff]  }
 0x56c   : > { %v11781_v25 = vpop.f32.mrb[164].mxu1  ;;  %11959 = vmatprep.subr.bf16.mxu0 %v12438_v38 }
 0x56d   : > { %v3712_v45 = vmax.f32 %v3576_v41, 0.0  ;;  %v3903_v20 = vadd.f32 %v11781_v25, %v13801_v9  ;;  %v3894_v46 = vpop.f32.mrb[165].mxu1  ;;  %11960 = vmatpush3.bf16.msra.mxu0 %v12438_v38 }
 0x56e   : > { %v3895_v47 = vadd.f32 %v13801_v9, %v3894_v46  ;;  %v11782_v30 = vpop.f32.mrb[166].mxu1 }
 0x56f   : > { %v3906_v31 = vadd.f32 %v11782_v30, %v13801_v9  ;;  %v3897_v54 = vpop.f32.mrb[167].mxu1  ;;  %v3761_v17 = vpack.c.bf16 %v3712_v45, %v3711_v5  ;;  %v4203_v24 = vmax.f32 %v3903_v20, 0.0 }
 0x570   : > { %v3898_v3 = vadd.f32 %v13801_v9, %v3897_v54  ;;  %v3580_v55 = vpop.f32.mrb[28].mxu0  ;;  %v4201_v60 = vmax.f32 %v3895_v47, 0.0 }
 0x571   : > { %v4204_v57 = vmax.f32 %v3906_v31, 0.0  ;;  %v3581_v18 = vadd.f32 %v13677_v37, %v3580_v55  ;;  %v3582_v59 = vpop.f32.mrb[29].mxu0  ;;  %11835 = vmatprep.mubr.bf16.mxu1 %v3761_v17 }
 0x572   : > { %v4202_v61 = vmax.f32 %v3898_v3, 0.0  ;;  %v3583_v52 = vpop.f32.mrb[30].mxu0 }
 0x573   : > { %v3584_v63 = vadd.f32 %v13677_v37, %v3583_v52  ;;  %v3585_v4 = vpop.f32.mrb[31].mxu0  ;;  %v13822_v44 = vpack.c.bf16 %v4204_v57, %v4203_v24  ;;  %v3713_v51 = vmax.f32 %v3581_v18, 0.0 }
 0x574   : > { %v13824_v48 = vpack.c.bf16 %v4202_v61, %v4201_v60 }
 0x575   : > { %v3714_v36 = vmax.f32 %v3584_v63, 0.0 }
 0x577   : > { %v3762_v8 = vpack.c.bf16 %v3714_v36, %v3713_v51 }
 0x578   : > { %v3588_v15 = vpop.f32.mrb[32].mxu0 }
 0x579   : > { %v3589_v12 = vadd.f32 %v13677_v37, %v3588_v15  ;;  %v3590_v50 = vpop.f32.mrb[33].mxu0  ;;  %11836 = vmatmul.mubr.bf16.gmra.mrb[220].mxu1 %v3762_v8 }
 0x57a   : > { %v3591_v21 = vpop.f32.mrb[34].mxu0 }
 0x57b   : > { %v3592_v13 = vadd.f32 %v13677_v37, %v3591_v21  ;;  %v3593_v14 = vpop.f32.mrb[35].mxu0  ;;  %v3715_v43 = vmax.f32 %v3589_v12, 0.0 }
 0x57c   : > { %v11785_v19 = vpop.f32.mrb[168].mxu1 }
 0x57d   : > { %v3716_v16 = vmax.f32 %v3592_v13, 0.0  ;;  %v3919_v22 = vadd.f32 %v11785_v19, %v13801_v9  ;;  %v3910_v23 = vpop.f32.mrb[169].mxu1 }
 0x57e   : > { %v3911_v53 = vadd.f32 %v13801_v9, %v3910_v23  ;;  %v11786_v49 = vpop.f32.mrb[170].mxu1 }
 0x57f   : > { %v3922_v7 = vadd.f32 %v11786_v49, %v13801_v9  ;;  %v3913_v26 = vpop.f32.mrb[171].mxu1  ;;  %v3763_v39 = vpack.c.bf16 %v3716_v16, %v3715_v43  ;;  %v4207_v56 = vmax.f32 %v3919_v22, 0.0 }
 0x580   : > { %v3914_v58 = vadd.f32 %v13801_v9, %v3913_v26  ;;  %v3596_v62 = vpop.f32.mrb[36].mxu0  ;;  %v4205_v10 = vmax.f32 %v3911_v53, 0.0 }
 0x581   : > { %v4208_v27 = vmax.f32 %v3922_v7, 0.0  ;;  %v3597_v11 = vadd.f32 %v13677_v37, %v3596_v62  ;;  %v3598_v28 = vpop.f32.mrb[37].mxu0  ;;  %11839 = vmatprep.mubr.bf16.mxu1 %v3763_v39 }
 0x582   : > { %v4206_v6 = vmax.f32 %v3914_v58, 0.0  ;;  %v3599_v32 = vpop.f32.mrb[38].mxu0 }
 0x583   : > { %v3600_v2 = vadd.f32 %v13677_v37, %v3599_v32  ;;  %v3601_v33 = vpop.f32.mrb[39].mxu0  ;;  %v13834_v35 = vpack.c.bf16 %v4208_v27, %v4207_v56  ;;  %v3717_v40 = vmax.f32 %v3597_v11, 0.0 }
 0x584   : > { %v13839_v1 = vpack.c.bf16 %v4206_v6, %v4205_v10 }
 0x585   : > { %v3718_v41 = vmax.f32 %v3600_v2, 0.0 }
 0x587   : > { %v3764_v42 = vpack.c.bf16 %v3718_v41, %v3717_v40 }
 0x588   : > { %v3604_v25 = vpop.f32.mrb[40].mxu0 }
 0x589   : > { %v3605_v5 = vadd.f32 %v13677_v37, %v3604_v25  ;;  %v3606_v45 = vpop.f32.mrb[41].mxu0  ;;  %11840 = vmatmul.mubr.bf16.gmra.mrb[224].mxu1 %v3764_v42 }
 0x58a   : > { %v3607_v20 = vpop.f32.mrb[42].mxu0 }
 0x58b   : > { %v3608_v46 = vadd.f32 %v13677_v37, %v3607_v20  ;;  %v3609_v47 = vpop.f32.mrb[43].mxu0  ;;  %v3719_v31 = vmax.f32 %v3605_v5, 0.0 }
 0x58c   : > { %v11789_v30 = vpop.f32.mrb[172].mxu1 }
 0x58d   : > { %v3720_v54 = vmax.f32 %v3608_v46, 0.0  ;;  %v3935_v17 = vadd.f32 %v11789_v30, %v13801_v9  ;;  %v3926_v3 = vpop.f32.mrb[173].mxu1 }
 0x58e   : > { %v3927_v55 = vadd.f32 %v13801_v9, %v3926_v3  ;;  %v11790_v24 = vpop.f32.mrb[174].mxu1 }
 0x58f   : > { %v3938_v57 = vadd.f32 %v11790_v24, %v13801_v9  ;;  %v3929_v18 = vpop.f32.mrb[175].mxu1  ;;  %v3765_v59 = vpack.c.bf16 %v3720_v54, %v3719_v31  ;;  %v4211_v52 = vmax.f32 %v3935_v17, 0.0  ;;  %v12439_v54 = vld [vmem:[%s17034_s2 + $0x168] sm:$0xff]  }
 0x590   : > { %v3930_v60 = vadd.f32 %v13801_v9, %v3929_v18  ;;  %v3612_v61 = vpop.f32.mrb[44].mxu0  ;;  %v4209_v36 = vmax.f32 %v3927_v55, 0.0  ;;  %11961 = vmatprep.subr.bf16.mxu0 %v12439_v54  ;;  %v12898_v55 = vld [vmem:[%s17037_s5 + $0x4] ss:$0 sm:$0xff] }
 0x591   : > { %v4212_v63 = vmax.f32 %v3938_v57, 0.0  ;;  %v3613_v4 = vadd.f32 %v13677_v37, %v3612_v61  ;;  %v3614_v51 = vpop.f32.mrb[45].mxu0  ;;  %11843 = vmatprep.mubr.bf16.mxu1 %v3765_v59  ;;  %11962 = vmatpush3.bf16.msra.mxu0 %v12439_v54 }
 0x592   : > { %v4210_v8 = vmax.f32 %v3930_v60, 0.0  ;;  %v3615_v15 = vpop.f32.mrb[46].mxu0 }
 0x593   : > { %v3616_v12 = vadd.f32 %v13677_v37, %v3615_v15  ;;  %v3617_v50 = vpop.f32.mrb[47].mxu0  ;;  %v13849_v21 = vpack.c.bf16 %v4212_v63, %v4211_v52  ;;  %v3721_v14 = vmax.f32 %v3613_v4, 0.0 }
 0x594   : > { %v13851_v13 = vpack.c.bf16 %v4210_v8, %v4209_v36 }
 0x595   : > { %v3722_v19 = vmax.f32 %v3616_v12, 0.0 }
 0x597   : > { %v3766_v43 = vpack.c.bf16 %v3722_v19, %v3721_v14 }
 0x598   : > { %v3620_v16 = vpop.f32.mrb[48].mxu0 }
 0x599   : > { %v3621_v22 = vadd.f32 %v13677_v37, %v3620_v16  ;;  %v3622_v23 = vpop.f32.mrb[49].mxu0  ;;  %11844 = vmatmul.mubr.bf16.gmra.mrb[228].mxu1 %v3766_v43 }
 0x59a   : > { %v3623_v53 = vpop.f32.mrb[50].mxu0 }
 0x59b   : > { %v3624_v49 = vadd.f32 %v13677_v37, %v3623_v53  ;;  %v3625_v7 = vpop.f32.mrb[51].mxu0  ;;  %v3723_v39 = vmax.f32 %v3621_v22, 0.0 }
 0x59c   : > { %v11793_v26 = vpop.f32.mrb[176].mxu1 }
 0x59d   : > { %v3724_v58 = vmax.f32 %v3624_v49, 0.0  ;;  %v3951_v62 = vadd.f32 %v11793_v26, %v13801_v9  ;;  %v3942_v56 = vpop.f32.mrb[177].mxu1 }
 0x59e   : > { %v3943_v27 = vadd.f32 %v13801_v9, %v3942_v56  ;;  %v11794_v11 = vpop.f32.mrb[178].mxu1 }
 0x59f   : > { %v3954_v28 = vadd.f32 %v11794_v11, %v13801_v9  ;;  %v3945_v10 = vpop.f32.mrb[179].mxu1  ;;  %v3767_v6 = vpack.c.bf16 %v3724_v58, %v3723_v39  ;;  %v4215_v33 = vmax.f32 %v3951_v62, 0.0 }
 0x5a0   : > { %v3946_v32 = vadd.f32 %v13801_v9, %v3945_v10  ;;  %v3628_v2 = vpop.f32.mrb[52].mxu0  ;;  %v4213_v42 = vmax.f32 %v3943_v27, 0.0 }
 0x5a1   : > { %v4216_v38 = vmax.f32 %v3954_v28, 0.0  ;;  %v3629_v40 = vadd.f32 %v13677_v37, %v3628_v2  ;;  %v3630_v41 = vpop.f32.mrb[53].mxu0  ;;  %11847 = vmatprep.mubr.bf16.mxu1 %v3767_v6 }
 0x5a2   : > { %v4214_v25 = vmax.f32 %v3946_v32, 0.0  ;;  %v3631_v5 = vpop.f32.mrb[54].mxu0 }
 0x5a3   : > { %v13860_v45 = vpack.c.bf16 %v4216_v38, %v4215_v33  ;;  %v3632_v20 = vadd.f32 %v13677_v37, %v3631_v5  ;;  %v3633_v46 = vpop.f32.mrb[55].mxu0  ;;  %v3725_v30 = vmax.f32 %v3629_v40, 0.0 }
 0x5a4   : > { %v13863_v47 = vpack.c.bf16 %v4214_v25, %v4213_v42 }
 0x5a5   : > { %v3726_v31 = vmax.f32 %v3632_v20, 0.0 }
 0x5a7   : > { %v3768_v17 = vpack.c.bf16 %v3726_v31, %v3725_v30 }
 0x5a8   : > { %v3636_v3 = vpop.f32.mrb[56].mxu0 }
 0x5a9   : > { %v3637_v24 = vadd.f32 %v12898_v55, %v3636_v3  ;;  %v3638_v57 = vpop.f32.mrb[57].mxu0  ;;  %11848 = vmatmul.mubr.bf16.gmra.mrb[232].mxu1 %v3768_v17 }
 0x5aa   : > { %v3639_v37 = vpop.f32.mrb[58].mxu0  ;;  %v12440_v57 = vld [vmem:[%s17034_s2 + $0x170] sm:$0xff]  }
 0x5ab   : > { %v3640_v18 = vadd.f32 %v12898_v55, %v3639_v37  ;;  %v3641_v59 = vpop.f32.mrb[59].mxu0  ;;  %v3727_v61 = vmax.f32 %v3637_v24, 0.0  ;;  %11963 = vmatprep.subr.bf16.mxu0 %v12440_v57 }
 0x5ac   : > { %v11797_v60 = vpop.f32.mrb[180].mxu1  ;;  %11964 = vmatpush3.bf16.msra.mxu0 %v12440_v57 }
 0x5ad   : > { %v3728_v52 = vmax.f32 %v3640_v18, 0.0  ;;  %v3967_v63 = vadd.f32 %v11797_v60, %v13801_v9  ;;  %v3958_v4 = vpop.f32.mrb[181].mxu1 }
 0x5ae   : > { %v3959_v51 = vadd.f32 %v13801_v9, %v3958_v4  ;;  %v11798_v36 = vpop.f32.mrb[182].mxu1 }
 0x5af   : > { %v3970_v8 = vadd.f32 %v11798_v36, %v13801_v9  ;;  %v3961_v15 = vpop.f32.mrb[183].mxu1  ;;  %v3769_v12 = vpack.c.bf16 %v3728_v52, %v3727_v61  ;;  %v4219_v19 = vmax.f32 %v3967_v63, 0.0 }
 0x5b0   : > { %v3962_v50 = vadd.f32 %v13801_v9, %v3961_v15  ;;  %v3644_v14 = vpop.f32.mrb[60].mxu0  ;;  %v4217_v23 = vmax.f32 %v3959_v51, 0.0 }
 0x5b1   : > { %v4220_v43 = vmax.f32 %v3970_v8, 0.0  ;;  %v3645_v16 = vadd.f32 %v12898_v55, %v3644_v14  ;;  %v3646_v22 = vpop.f32.mrb[61].mxu0  ;;  %11851 = vmatprep.mubr.bf16.mxu1 %v3769_v12 }
 0x5b2   : > { %v4218_v53 = vmax.f32 %v3962_v50, 0.0  ;;  %v3647_v49 = vpop.f32.mrb[62].mxu0 }
 0x5b3   : > { %v13875_v7 = vpack.c.bf16 %v4220_v43, %v4219_v19  ;;  %v3648_v26 = vadd.f32 %v12898_v55, %v3647_v49  ;;  %v3649_v39 = vpop.f32.mrb[63].mxu0  ;;  %v3729_v62 = vmax.f32 %v3645_v16, 0.0 }
 0x5b4   : > { %v4287_v58 = vpack.c.bf16 %v4218_v53, %v4217_v23  ;;  %v12441_v39 = vld [vmem:[%s17034_s2 + $0x178] sm:$0xff]  }
 0x5b5   : > { %v3730_v56 = vmax.f32 %v3648_v26, 0.0  ;;  %11965 = vmatprep.subr.bf16.mxu0 %v12441_v39 }
 0x5b6   : > { %11966 = vmatpush3.bf16.msra.mxu0 %v12441_v39 }
 0x5b7   : > { %v3770_v27 = vpack.c.bf16 %v3730_v56, %v3729_v62  ;;  %7726 = vmatprep.subr.bf16.mxu0 %v12911_v34 }
 0x5b9   : > { %11852 = vmatmul.mubr.bf16.gmra.mrb[236].mxu1 %v3770_v27 }
 0x5ba   : > { %11871 = vmatprep.mubr.bf16.mxu1 %v13812_v0 }
 0x5bc   : > { %v11801_v11 = vpop.f32.mrb[184].mxu1 }
 0x5bd   : > { %v3983_v28 = vadd.f32 %v11801_v11, %v13801_v9  ;;  %v3974_v10 = vpop.f32.mrb[185].mxu1 }
 0x5be   : > { %v3975_v6 = vadd.f32 %v13801_v9, %v3974_v10  ;;  %v11802_v32 = vpop.f32.mrb[186].mxu1 }
 0x5bf   : > { %v3986_v2 = vadd.f32 %v11802_v32, %v13801_v9  ;;  %v3977_v33 = vpop.f32.mrb[187].mxu1  ;;  %v4223_v40 = vmax.f32 %v3983_v28, 0.0 }
 0x5c0   : > { %v3978_v38 = vadd.f32 %v13801_v9, %v3977_v33  ;;  %v4221_v42 = vmax.f32 %v3975_v6, 0.0 }
 0x5c1   : > { %v4224_v41 = vmax.f32 %v3986_v2, 0.0  ;;  %11872 = vmatmul.mubr.bf16.vlgmr.msra.gmra.mrb[240].mxu1 %v13809_v29 }
 0x5c2   : > { %v4222_v25 = vmax.f32 %v3978_v38, 0.0  ;;  %11875 = vmatprep.mubr.bf16.mxu1 %v13824_v48 }
 0x5c3   : > { %v4290_v0 = vpack.c.bf16 %v4224_v41, %v4223_v40 }
 0x5c4   : > { %v4289_v5 = vpack.c.bf16 %v4222_v25, %v4221_v42 }
 0x5c9   : > { %11876 = vmatmul.mubr.bf16.gmra.mrb[244].mxu1 %v13822_v44 }
 0x5ca   : > { %11879 = vmatprep.mubr.bf16.mxu1 %v13839_v1 }
 0x5cc   : > { %v11805_v20 = vpop.f32.mrb[188].mxu1 }
 0x5cd   : > { %v3999_v46 = vadd.f32 %v11805_v20, %v13801_v9  ;;  %v3990_v30 = vpop.f32.mrb[189].mxu1 }
 0x5ce   : > { %v3991_v31 = vadd.f32 %v13801_v9, %v3990_v30  ;;  %v11806_v54 = vpop.f32.mrb[190].mxu1 }
 0x5cf   : > { %v4002_v17 = vadd.f32 %v11806_v54, %v13801_v9  ;;  %v3993_v29 = vpop.f32.mrb[191].mxu1  ;;  %v4227_v55 = vmax.f32 %v3999_v46, 0.0 }
 0x5d0   : > { %v3994_v3 = vadd.f32 %v13801_v9, %v3993_v29  ;;  %v4225_v24 = vmax.f32 %v3991_v31, 0.0 }
 0x5d1   : > { %v4228_v48 = vmax.f32 %v4002_v17, 0.0  ;;  %11880 = vmatmul.mubr.bf16.gmra.mrb[248].mxu1 %v13834_v35 }
 0x5d2   : > { %v4226_v44 = vmax.f32 %v3994_v3, 0.0  ;;  %11883 = vmatprep.mubr.bf16.mxu1 %v13851_v13 }
 0x5d3   : > { %v4292_v1 = vpack.c.bf16 %v4228_v48, %v4227_v55 }
 0x5d4   : > { %v4291_v37 = vpack.c.bf16 %v4226_v44, %v4225_v24 }
 0x5d9   : > { %11884 = vmatmul.mubr.bf16.gmra.mrb[252].mxu1 %v13849_v21 }
 0x5da   : > { %11887 = vmatprep.mubr.bf16.mxu1 %v13863_v47 }
 0x5dc   : > { %v11809_v18 = vpop.f32.mrb[192].mxu1 }
 0x5dd   : > { %v4015_v59 = vadd.f32 %v11809_v18, %v13801_v9  ;;  %v4006_v35 = vpop.f32.mrb[193].mxu1 }
 0x5de   : > { %v4007_v60 = vadd.f32 %v13801_v9, %v4006_v35  ;;  %v11810_v61 = vpop.f32.mrb[194].mxu1 }
 0x5df   : > { %v4018_v13 = vadd.f32 %v11810_v61, %v13801_v9  ;;  %v4009_v52 = vpop.f32.mrb[195].mxu1  ;;  %v4231_v4 = vmax.f32 %v4015_v59, 0.0 }
 0x5e0   : > { %v4010_v63 = vadd.f32 %v13801_v9, %v4009_v52  ;;  %v4229_v36 = vmax.f32 %v4007_v60, 0.0 }
 0x5e1   : > { %v4232_v51 = vmax.f32 %v4018_v13, 0.0  ;;  %11888 = vmatmul.mubr.bf16.gmra.mrb[0].mxu1 %v13860_v45 }
 0x5e2   : > { %v4230_v21 = vmax.f32 %v4010_v63, 0.0  ;;  %11891 = vmatprep.mubr.bf16.mxu1 %v4287_v58 }
 0x5e3   : > { %v4294_v47 = vpack.c.bf16 %v4232_v51, %v4231_v4 }
 0x5e4   : > { %v4293_v8 = vpack.c.bf16 %v4230_v21, %v4229_v36 }
 0x5e9   : > { %11892 = vmatmul.mubr.bf16.gmra.mrb[4].mxu1 %v13875_v7 }
 0x5ea   : > { %11895 = vmatprep.mubr.bf16.mxu1 %v4289_v5 }
 0x5ec   : > { %v11813_v15 = vpop.f32.mrb[196].mxu1 }
 0x5ed   : > { %v4031_v12 = vadd.f32 %v11813_v15, %v13801_v9  ;;  %v4022_v50 = vpop.f32.mrb[197].mxu1 }
 0x5ee   : > { %v4023_v14 = vadd.f32 %v13801_v9, %v4022_v50  ;;  %v11814_v19 = vpop.f32.mrb[198].mxu1 }
 0x5ef   : > { %v4034_v43 = vadd.f32 %v11814_v19, %v13801_v9  ;;  %v4025_v16 = vpop.f32.mrb[199].mxu1  ;;  %v4235_v22 = vmax.f32 %v4031_v12, 0.0 }
 0x5f0   : > { %v4026_v45 = vadd.f32 %v13801_v9, %v4025_v16  ;;  %v4233_v53 = vmax.f32 %v4023_v14, 0.0 }
 0x5f1   : > { %v4236_v23 = vmax.f32 %v4034_v43, 0.0  ;;  %11896 = vmatmul.mubr.bf16.gmra.mrb[8].mxu1 %v4290_v0 }
 0x5f2   : > { %v4234_v49 = vmax.f32 %v4026_v45, 0.0  ;;  %11899 = vmatprep.mubr.bf16.mxu1 %v4291_v37 }
 0x5f3   : > { %v4296_v7 = vpack.c.bf16 %v4236_v23, %v4235_v22 }
 0x5f4   : > { %v4295_v26 = vpack.c.bf16 %v4234_v49, %v4233_v53 }
 0x5f9   : > { %11900 = vmatmul.mubr.bf16.gmra.mrb[12].mxu1 %v4292_v1 }
 0x5fa   : > { %11903 = vmatprep.mubr.bf16.mxu1 %v4293_v8 }
 0x5fc   : > { %v11817_v58 = vpop.f32.mrb[200].mxu1 }
 0x5fd   : > { %v4047_v62 = vadd.f32 %v11817_v58, %v13801_v9  ;;  %v4038_v56 = vpop.f32.mrb[201].mxu1 }
 0x5fe   : > { %v4039_v27 = vadd.f32 %v13801_v9, %v4038_v56  ;;  %v11818_v11 = vpop.f32.mrb[202].mxu1 }
 0x5ff   : > { %v4050_v28 = vadd.f32 %v11818_v11, %v13801_v9  ;;  %v4041_v10 = vpop.f32.mrb[203].mxu1  ;;  %v4239_v32 = vmax.f32 %v4047_v62, 0.0 }
 0x600   : > { %v4042_v6 = vadd.f32 %v13801_v9, %v4041_v10  ;;  %v4237_v33 = vmax.f32 %v4039_v27, 0.0 }
 0x601   : > { %v4240_v2 = vmax.f32 %v4050_v28, 0.0  ;;  %11904 = vmatmul.mubr.bf16.gmra.mrb[16].mxu1 %v4294_v47 }
 0x602   : > { %v4238_v38 = vmax.f32 %v4042_v6, 0.0  ;;  %11907 = vmatprep.mubr.bf16.mxu1 %v4295_v26 }
 0x603   : > { %v4298_v40 = vpack.c.bf16 %v4240_v2, %v4239_v32 }
 0x604   : > { %v4297_v41 = vpack.c.bf16 %v4238_v38, %v4237_v33 }
 0x609   : > { %11908 = vmatmul.mubr.bf16.gmra.mrb[20].mxu1 %v4296_v7 }
 0x60a   : > { %11911 = vmatprep.mubr.bf16.mxu1 %v4297_v41 }
 0x60c   : > { %v11821_v42 = vpop.f32.mrb[204].mxu1 }
 0x60d   : > { %v4063_v25 = vadd.f32 %v11821_v42, %v13801_v9  ;;  %v4054_v0 = vpop.f32.mrb[205].mxu1 }
 0x60e   : > { %v4055_v5 = vadd.f32 %v13801_v9, %v4054_v0  ;;  %v11822_v20 = vpop.f32.mrb[206].mxu1 }
 0x60f   : > { %v4066_v46 = vadd.f32 %v11822_v20, %v13801_v9  ;;  %v4057_v30 = vpop.f32.mrb[207].mxu1  ;;  %v4243_v54 = vmax.f32 %v4063_v25, 0.0 }
 0x610   : > { %v4058_v31 = vadd.f32 %v13801_v9, %v4057_v30  ;;  %v4241_v29 = vmax.f32 %v4055_v5, 0.0 }
 0x611   : > { %v4244_v17 = vmax.f32 %v4066_v46, 0.0  ;;  %11912 = vmatmul.mubr.bf16.gmra.mrb[24].mxu1 %v4298_v40 }
 0x612   : > { %v4242_v3 = vmax.f32 %v4058_v31, 0.0 }
 0x613   : > { %v4300_v55 = vpack.c.bf16 %v4244_v17, %v4243_v54  ;;  %v12442_v54 = vld [vmem:[%s17038_s6] ss:$8 sps:$4 sm:$0xff]   ;;  %v12444_v17 = vld [vmem:[%s17038_s6 + $0x4] ss:$8 sps:$4 sm:$0xff]  }
 0x614   : > { %v4299_v48 = vpack.c.bf16 %v4242_v3, %v4241_v29  ;;  %5517 = vmatprep.subr.bf16.mxu1 %v12444_v17 }
 0x615   : > { %5518 = vmatpush1.bf16.msra.mxu1 %v12442_v54 }
 0x616   : > { %11915 = vmatprep.mubr.bf16.mxu1 %v4299_v48 }
 0x619   : > { %11916 = vmatmul.mubr.bf16.gmra.mrb[28].mxu1 %v4300_v55 }
 0x61c   : > { %v11825_v24 = vpop.f32.mrb[208].mxu1 }
 0x61d   : > { %v4079_v44 = vadd.f32 %v11825_v24, %v13801_v9  ;;  %v4070_v1 = vpop.f32.mrb[209].mxu1 }
 0x61e   : > { %v4071_v57 = vadd.f32 %v13801_v9, %v4070_v1  ;;  %v11826_v37 = vpop.f32.mrb[210].mxu1 }
 0x61f   : > { %v4082_v18 = vadd.f32 %v11826_v37, %v13801_v9  ;;  %v4073_v59 = vpop.f32.mrb[211].mxu1  ;;  %v4247_v60 = vmax.f32 %v4079_v44, 0.0 }
 0x620   : > { %v4074_v35 = vadd.f32 %v13801_v9, %v4073_v59  ;;  %v4245_v13 = vmax.f32 %v4071_v57, 0.0 }
 0x621   : > { %v4248_v61 = vmax.f32 %v4082_v18, 0.0 }
 0x622   : > { %v4246_v52 = vmax.f32 %v4074_v35, 0.0 }
 0x623   : > { %v4302_v63 = vpack.c.bf16 %v4248_v61, %v4247_v60 }
 0x624   : > { %v4301_v4 = vpack.c.bf16 %v4246_v52, %v4245_v13 }
 0x626   : > { %11919 = vmatprep.mubr.bf16.mxu1 %v4301_v4 }
 0x627   : > { %11920 = vmatmul.mubr.bf16.gmra.mrb[32].mxu1 %v4302_v63 }
 0x62c   : > { %v11829_v51 = vpop.f32.mrb[212].mxu1 }
 0x62d   : > { %v4095_v36 = vadd.f32 %v11829_v51, %v13801_v9  ;;  %v4086_v21 = vpop.f32.mrb[213].mxu1 }
 0x62e   : > { %v4087_v47 = vadd.f32 %v13801_v9, %v4086_v21  ;;  %v11830_v8 = vpop.f32.mrb[214].mxu1 }
 0x62f   : > { %v4098_v15 = vadd.f32 %v11830_v8, %v13801_v9  ;;  %v4089_v12 = vpop.f32.mrb[215].mxu1  ;;  %v4251_v14 = vmax.f32 %v4095_v36, 0.0 }
 0x630   : > { %v4090_v50 = vadd.f32 %v13801_v9, %v4089_v12  ;;  %v4249_v43 = vmax.f32 %v4087_v47, 0.0 }
 0x631   : > { %v4252_v19 = vmax.f32 %v4098_v15, 0.0 }
 0x632   : > { %v4250_v16 = vmax.f32 %v4090_v50, 0.0 }
 0x633   : > { %v4304_v45 = vpack.c.bf16 %v4252_v19, %v4251_v14  ;;  %v12445_v19 = vld [vmem:[%s17038_s6 + $0x10] ss:$8 sps:$4 sm:$0xff]  }
 0x634   : > { %v4303_v22 = vpack.c.bf16 %v4250_v16, %v4249_v43  ;;  %v12447_v43 = vld [vmem:[%s17038_s6 + $0x14] ss:$8 sps:$4 sm:$0xff]  }
 0x635   : > { %5519 = vmatprep.subr.bf16.mxu1 %v12447_v43 }
 0x636   : > { %11923 = vmatprep.mubr.bf16.mxu1 %v4303_v22  ;;  %5520 = vmatpush1.bf16.msra.mxu1 %v12445_v19 }
 0x637   : > { %11924 = vmatmul.mubr.bf16.gmra.mrb[36].mxu1 %v4304_v45 }
 0x63c   : > { %v11833_v23 = vpop.f32.mrb[216].mxu1 }
 0x63d   : > { %v4111_v53 = vadd.f32 %v11833_v23, %v13801_v9  ;;  %v4102_v49 = vpop.f32.mrb[217].mxu1 }
 0x63e   : > { %v4103_v7 = vadd.f32 %v13801_v9, %v4102_v49  ;;  %v11834_v26 = vpop.f32.mrb[218].mxu1 }
 0x63f   : > { %v4114_v39 = vadd.f32 %v11834_v26, %v13801_v9  ;;  %v4105_v58 = vpop.f32.mrb[219].mxu1  ;;  %v4255_v56 = vmax.f32 %v4111_v53, 0.0 }
 0x640   : > { %v4106_v62 = vadd.f32 %v13801_v9, %v4105_v58  ;;  %v4253_v11 = vmax.f32 %v4103_v7, 0.0 }
 0x641   : > { %v4256_v27 = vmax.f32 %v4114_v39, 0.0 }
 0x642   : > { %v4254_v28 = vmax.f32 %v4106_v62, 0.0 }
 0x643   : > { %v4306_v10 = vpack.c.bf16 %v4256_v27, %v4255_v56  ;;  %v12448_v56 = vld [vmem:[%s17038_s6 + $0x20] ss:$8 sps:$4 sm:$0xff]   ;;  %v12450_v27 = vld [vmem:[%s17038_s6 + $0x24] ss:$8 sps:$4 sm:$0xff]  }
 0x644   : > { %v4305_v6 = vpack.c.bf16 %v4254_v28, %v4253_v11  ;;  %5521 = vmatprep.subr.bf16.mxu1 %v12450_v27 }
 0x645   : > { %5522 = vmatpush1.bf16.msra.mxu1 %v12448_v56 }
 0x646   : > { %11927 = vmatprep.mubr.bf16.mxu1 %v4305_v6 }
 0x647   : > { %11928 = vmatmul.mubr.bf16.gmra.mrb[40].mxu1 %v4306_v10 }
 0x64c   : > { %v11837_v32 = vpop.f32.mrb[220].mxu1 }
 0x64d   : > { %v4127_v2 = vadd.f32 %v11837_v32, %v13801_v9  ;;  %v4118_v33 = vpop.f32.mrb[221].mxu1 }
 0x64e   : > { %v4119_v38 = vadd.f32 %v13801_v9, %v4118_v33  ;;  %v11838_v40 = vpop.f32.mrb[222].mxu1 }
 0x64f   : > { %v4130_v41 = vadd.f32 %v11838_v40, %v13801_v9  ;;  %v4121_v42 = vpop.f32.mrb[223].mxu1  ;;  %v4259_v0 = vmax.f32 %v4127_v2, 0.0 }
 0x650   : > { %v4122_v25 = vadd.f32 %v13801_v9, %v4121_v42  ;;  %v4257_v20 = vmax.f32 %v4119_v38, 0.0 }
 0x651   : > { %v4260_v5 = vmax.f32 %v4130_v41, 0.0 }
 0x652   : > { %v4258_v46 = vmax.f32 %v4122_v25, 0.0 }
 0x653   : > { %v4308_v30 = vpack.c.bf16 %v4260_v5, %v4259_v0 }
 0x654   : > { %v4307_v31 = vpack.c.bf16 %v4258_v46, %v4257_v20 }
 0x656   : > { %11931 = vmatprep.mubr.bf16.mxu1 %v4307_v31 }
 0x657   : > { %11932 = vmatmul.mubr.bf16.gmra.mrb[44].mxu1 %v4308_v30  ;;  %v13972_v30 = vld [vmem:[%s17037_s5 + $0x6] ss:$0 sm:$0xff] }
 0x65c   : > { %v11841_v29 = vpop.f32.mrb[224].mxu1 }
 0x65d   : > { %v4143_v3 = vadd.f32 %v11841_v29, %v13801_v9  ;;  %v4134_v55 = vpop.f32.mrb[225].mxu1 }
 0x65e   : > { %v4135_v48 = vadd.f32 %v13801_v9, %v4134_v55  ;;  %v11842_v24 = vpop.f32.mrb[226].mxu1  ;;  %v12451_v55 = vld [vmem:[%s17038_s6 + $0x30] ss:$8 sps:$4 sm:$0xff]  }
 0x65f   : > { %v4146_v44 = vadd.f32 %v11842_v24, %v13801_v9  ;;  %v4137_v1 = vpop.f32.mrb[227].mxu1  ;;  %v4263_v37 = vmax.f32 %v4143_v3, 0.0 }
 0x660   : > { %v4138_v57 = vadd.f32 %v13801_v9, %v4137_v1  ;;  %v4261_v59 = vmax.f32 %v4135_v48, 0.0 }
 0x661   : > { %v4264_v18 = vmax.f32 %v4146_v44, 0.0 }
 0x662   : > { %v4262_v35 = vmax.f32 %v4138_v57, 0.0 }
 0x663   : > { %v4310_v60 = vpack.c.bf16 %v4264_v18, %v4263_v37 }
 0x664   : > { %v4309_v61 = vpack.c.bf16 %v4262_v35, %v4261_v59 }
 0x666   : > { %11935 = vmatprep.mubr.bf16.mxu1 %v4309_v61 }
 0x667   : > { %11936 = vmatmul.mubr.bf16.gmra.mrb[48].mxu1 %v4310_v60 }
 0x66c   : > { %v11845_v13 = vpop.f32.mrb[228].mxu1 }
 0x66d   : > { %v4159_v52 = vadd.f32 %v11845_v13, %v13801_v9  ;;  %v4150_v63 = vpop.f32.mrb[229].mxu1 }
 0x66e   : > { %v4151_v4 = vadd.f32 %v13801_v9, %v4150_v63  ;;  %v11846_v51 = vpop.f32.mrb[230].mxu1 }
 0x66f   : > { %v4162_v36 = vadd.f32 %v11846_v51, %v13801_v9  ;;  %v4153_v21 = vpop.f32.mrb[231].mxu1  ;;  %v4267_v8 = vmax.f32 %v4159_v52, 0.0 }
 0x670   : > { %v4154_v47 = vadd.f32 %v13801_v9, %v4153_v21  ;;  %v4265_v12 = vmax.f32 %v4151_v4, 0.0 }
 0x671   : > { %v4268_v15 = vmax.f32 %v4162_v36, 0.0 }
 0x672   : > { %v4266_v50 = vmax.f32 %v4154_v47, 0.0 }
 0x673   : > { %v4312_v14 = vpack.c.bf16 %v4268_v15, %v4267_v8 }
 0x674   : > { %v4311_v16 = vpack.c.bf16 %v4266_v50, %v4265_v12 }
 0x676   : > { %11939 = vmatprep.mubr.bf16.mxu1 %v4311_v16 }
 0x677   : > { %11940 = vmatmul.mubr.bf16.gmra.mrb[52].mxu1 %v4312_v14 }
 0x67c   : > { %v11849_v45 = vpop.f32.mrb[232].mxu1 }
 0x67d   : > { %v4175_v22 = vadd.f32 %v11849_v45, %v13801_v9  ;;  %v4166_v23 = vpop.f32.mrb[233].mxu1 }
 0x67e   : > { %v4167_v53 = vadd.f32 %v13801_v9, %v4166_v23  ;;  %v11850_v49 = vpop.f32.mrb[234].mxu1 }
 0x67f   : > { %v4178_v7 = vadd.f32 %v11850_v49, %v13801_v9  ;;  %v4169_v26 = vpop.f32.mrb[235].mxu1  ;;  %v4271_v58 = vmax.f32 %v4175_v22, 0.0 }
 0x680   : > { %v4170_v39 = vadd.f32 %v13801_v9, %v4169_v26  ;;  %v4269_v11 = vmax.f32 %v4167_v53, 0.0 }
 0x681   : > { %v4272_v62 = vmax.f32 %v4178_v7, 0.0 }
 0x682   : > { %v4270_v28 = vmax.f32 %v4170_v39, 0.0 }
 0x683   : > { %v4314_v10 = vpack.c.bf16 %v4272_v62, %v4271_v58 }
 0x684   : > { %v4313_v6 = vpack.c.bf16 %v4270_v28, %v4269_v11 }
 0x686   : > { %11943 = vmatprep.mubr.bf16.mxu1 %v4313_v6 }
 0x687   : > { %11944 = vmatmul.mubr.bf16.gmra.mrb[56].mxu1 %v4314_v10 }
 0x68c   : > { %v11853_v32 = vpop.f32.mrb[236].mxu1 }
 0x68d   : > { %v4191_v2 = vadd.f32 %v11853_v32, %v13801_v9  ;;  %v4182_v33 = vpop.f32.mrb[237].mxu1 }
 0x68e   : > { %v4183_v38 = vadd.f32 %v13801_v9, %v4182_v33  ;;  %v11854_v40 = vpop.f32.mrb[238].mxu1  ;;  %v12456_v33 = vld [vmem:[%s17038_s6 + $0x44] ss:$8 sps:$4 sm:$0xff]  }
 0x68f   : > { %v4194_v41 = vadd.f32 %v11854_v40, %v13801_v9  ;;  %v4185_v42 = vpop.f32.mrb[239].mxu1  ;;  %v4275_v0 = vmax.f32 %v4191_v2, 0.0  ;;  %v12454_v2 = vld [vmem:[%s17038_s6 + $0x40] ss:$8 sps:$4 sm:$0xff]  }
 0x690   : > { %v4186_v25 = vadd.f32 %v13801_v9, %v4185_v42  ;;  %v4273_v20 = vmax.f32 %v4183_v38, 0.0  ;;  %v12453_v9 = vld [vmem:[%s17038_s6 + $0x34] ss:$8 sps:$4 sm:$0xff]  }
 0x691   : > { %v4276_v5 = vmax.f32 %v4194_v41, 0.0  ;;  %5523 = vmatprep.subr.bf16.mxu1 %v12453_v9 }
 0x692   : > { %v4274_v46 = vmax.f32 %v4186_v25, 0.0  ;;  %5524 = vmatpush1.bf16.msra.mxu1 %v12451_v55 }
 0x693   : > { %v4316_v31 = vpack.c.bf16 %v4276_v5, %v4275_v0  ;;  %5525 = vmatprep.subr.bf16.mxu1 %v12456_v33 }
 0x694   : > { %v11873_v54 = vpop.f32.mrb[240].mxu1  ;;  %v4315_v17 = vpack.c.bf16 %v4274_v46, %v4273_v20 }
 0x695   : > { %v4433_v29 = vadd.f32 %v11873_v54, %v13972_v30  ;;  %v4424_v3 = vpop.f32.mrb[241].mxu1 }
 0x696   : > { %v4425_v48 = vadd.f32 %v13972_v30, %v4424_v3  ;;  %v11874_v24 = vpop.f32.mrb[242].mxu1  ;;  %11947 = vmatprep.mubr.bf16.mxu1 %v4315_v17  ;;  %5526 = vmatpush1.bf16.msra.mxu1 %v12454_v2 }
 0x697   : > { %v4436_v44 = vadd.f32 %v11874_v24, %v13972_v30  ;;  %v4427_v1 = vpop.f32.mrb[243].mxu1  ;;  %11948 = vmatmul.mubr.bf16.gmra.mrb[60].mxu1 %v4316_v31  ;;  %v4745_v37 = vmax.f32 %v4433_v29, 0.0 }
 0x698   : > { %v4428_v57 = vadd.f32 %v13972_v30, %v4427_v1  ;;  %5549 = vmatprep.mubr.bf16.mxu1 %v12911_v34  ;;  %v4743_v59 = vmax.f32 %v4425_v48, 0.0 }
 0x699   : > { %v4746_v18 = vmax.f32 %v4436_v44, 0.0 }
 0x69a   : > { %v4744_v35 = vmax.f32 %v4428_v57, 0.0 }
 0x69b   : > { %v4824_v60 = vpack.c.bf16 %v4746_v18, %v4745_v37 }
 0x69c   : > { %v11877_v61 = vpop.f32.mrb[244].mxu1  ;;  %v4823_v13 = vpack.c.bf16 %v4744_v35, %v4743_v59 }
 0x69d   : > { %v4449_v52 = vadd.f32 %v11877_v61, %v13972_v30  ;;  %v4440_v63 = vpop.f32.mrb[245].mxu1 }
 0x69e   : > { %v4441_v4 = vadd.f32 %v13972_v30, %v4440_v63  ;;  %v11878_v51 = vpop.f32.mrb[246].mxu1  ;;  %11967 = vmatprep.mubr.bf16.mxu0 %v4823_v13 }
 0x69f   : > { %v4452_v36 = vadd.f32 %v11878_v51, %v13972_v30  ;;  %v4443_v21 = vpop.f32.mrb[247].mxu1  ;;  %11968 = vmatmul.mubr.bf16.vlgmr.msra.gmra.mrb[64].mxu0 %v4824_v60  ;;  %v4749_v8 = vmax.f32 %v4449_v52, 0.0 }
 0x6a0   : > { %v4444_v47 = vadd.f32 %v13972_v30, %v4443_v21  ;;  %v4747_v12 = vmax.f32 %v4441_v4, 0.0  ;;  %v12457_v21 = vld [vmem:[%s17038_s6 + $0x50] ss:$8 sps:$4 sm:$0xff]  }
 0x6a1   : > { %v4750_v15 = vmax.f32 %v4452_v36, 0.0 }
 0x6a2   : > { %v4748_v50 = vmax.f32 %v4444_v47, 0.0  ;;  %v12459_v47 = vld [vmem:[%s17038_s6 + $0x54] ss:$8 sps:$4 sm:$0xff]  }
 0x6a3   : > { %v4826_v14 = vpack.c.bf16 %v4750_v15, %v4749_v8  ;;  %5527 = vmatprep.subr.bf16.mxu1 %v12459_v47 }
 0x6a4   : > { %v11881_v19 = vpop.f32.mrb[248].mxu1  ;;  %v4825_v43 = vpack.c.bf16 %v4748_v50, %v4747_v12  ;;  %5528 = vmatpush1.bf16.msra.mxu1 %v12457_v21 }
 0x6a5   : > { %v4465_v16 = vadd.f32 %v11881_v19, %v13972_v30  ;;  %v4456_v45 = vpop.f32.mrb[249].mxu1 }
 0x6a6   : > { %v4457_v22 = vadd.f32 %v13972_v30, %v4456_v45  ;;  %v11882_v23 = vpop.f32.mrb[250].mxu1  ;;  %11971 = vmatprep.mubr.bf16.mxu0 %v4825_v43 }
 0x6a7   : > { %v4468_v53 = vadd.f32 %v11882_v23, %v13972_v30  ;;  %v4459_v49 = vpop.f32.mrb[251].mxu1  ;;  %11972 = vmatmul.mubr.bf16.gmra.mrb[68].mxu0 %v4826_v14  ;;  %v4753_v26 = vmax.f32 %v4465_v16, 0.0 }
 0x6a8   : > { %v4460_v7 = vadd.f32 %v13972_v30, %v4459_v49  ;;  %v4751_v58 = vmax.f32 %v4457_v22, 0.0 }
 0x6a9   : > { %v4754_v39 = vmax.f32 %v4468_v53, 0.0 }
 0x6aa   : > { %v4752_v62 = vmax.f32 %v4460_v7, 0.0 }
 0x6ab   : > { %v4828_v56 = vpack.c.bf16 %v4754_v39, %v4753_v26 }
 0x6ac   : > { %v11885_v27 = vpop.f32.mrb[252].mxu1  ;;  %v4827_v11 = vpack.c.bf16 %v4752_v62, %v4751_v58 }
 0x6ad   : > { %v4481_v28 = vadd.f32 %v11885_v27, %v13972_v30  ;;  %v4472_v10 = vpop.f32.mrb[253].mxu1 }
 0x6ae   : > { %v4473_v6 = vadd.f32 %v13972_v30, %v4472_v10  ;;  %v11886_v32 = vpop.f32.mrb[254].mxu1  ;;  %11975 = vmatprep.mubr.bf16.mxu0 %v4827_v11 }
 0x6af   : > { %v4484_v38 = vadd.f32 %v11886_v32, %v13972_v30  ;;  %v4475_v40 = vpop.f32.mrb[255].mxu1  ;;  %11976 = vmatmul.mubr.bf16.gmra.mrb[72].mxu0 %v4828_v56  ;;  %v4757_v42 = vmax.f32 %v4481_v28, 0.0 }
 0x6b0   : > { %v4476_v41 = vadd.f32 %v13972_v30, %v4475_v40  ;;  %v4755_v0 = vmax.f32 %v4473_v6, 0.0  ;;  %v12460_v40 = vld [vmem:[%s17038_s6 + $0x60] ss:$8 sps:$4 sm:$0xff]  }
 0x6b1   : > { %v4758_v25 = vmax.f32 %v4484_v38, 0.0 }
 0x6b2   : > { %v4756_v5 = vmax.f32 %v4476_v41, 0.0  ;;  %v12462_v41 = vld [vmem:[%s17038_s6 + $0x64] ss:$8 sps:$4 sm:$0xff]  }
 0x6b3   : > { %v4830_v20 = vpack.c.bf16 %v4758_v25, %v4757_v42  ;;  %5529 = vmatprep.subr.bf16.mxu1 %v12462_v41 }
 0x6b4   : > { %v11889_v46 = vpop.f32.mrb[0].mxu1  ;;  %v4829_v31 = vpack.c.bf16 %v4756_v5, %v4755_v0  ;;  %5530 = vmatpush1.bf16.msra.mxu1 %v12460_v40 }
 0x6b5   : > { %v4497_v54 = vadd.f32 %v11889_v46, %v13972_v30  ;;  %v4488_v17 = vpop.f32.mrb[1].mxu1 }
 0x6b6   : > { %v4489_v29 = vadd.f32 %v13972_v30, %v4488_v17  ;;  %v11890_v3 = vpop.f32.mrb[2].mxu1  ;;  %11979 = vmatprep.mubr.bf16.mxu0 %v4829_v31 }
 0x6b7   : > { %v4500_v55 = vadd.f32 %v11890_v3, %v13972_v30  ;;  %v4491_v9 = vpop.f32.mrb[3].mxu1  ;;  %11980 = vmatmul.mubr.bf16.gmra.mrb[76].mxu0 %v4830_v20  ;;  %v4761_v24 = vmax.f32 %v4497_v54, 0.0 }
 0x6b8   : > { %v4492_v48 = vadd.f32 %v13972_v30, %v4491_v9  ;;  %v4759_v1 = vmax.f32 %v4489_v29, 0.0 }
 0x6b9   : > { %v4762_v44 = vmax.f32 %v4500_v55, 0.0 }
 0x6ba   : > { %v4760_v57 = vmax.f32 %v4492_v48, 0.0 }
 0x6bb   : > { %v4832_v37 = vpack.c.bf16 %v4762_v44, %v4761_v24 }
 0x6bc   : > { %v11893_v18 = vpop.f32.mrb[4].mxu1  ;;  %v4831_v59 = vpack.c.bf16 %v4760_v57, %v4759_v1 }
 0x6bd   : > { %v4513_v35 = vadd.f32 %v11893_v18, %v13972_v30  ;;  %v4504_v60 = vpop.f32.mrb[5].mxu1 }
 0x6be   : > { %v4505_v61 = vadd.f32 %v13972_v30, %v4504_v60  ;;  %v11894_v13 = vpop.f32.mrb[6].mxu1  ;;  %11983 = vmatprep.mubr.bf16.mxu0 %v4831_v59 }
 0x6bf   : > { %v4516_v52 = vadd.f32 %v11894_v13, %v13972_v30  ;;  %v4507_v63 = vpop.f32.mrb[7].mxu1  ;;  %11984 = vmatmul.mubr.bf16.gmra.mrb[80].mxu0 %v4832_v37  ;;  %v4765_v51 = vmax.f32 %v4513_v35, 0.0 }
 0x6c0   : > { %v4508_v4 = vadd.f32 %v13972_v30, %v4507_v63  ;;  %v4763_v8 = vmax.f32 %v4505_v61, 0.0 }
 0x6c1   : > { %v4766_v36 = vmax.f32 %v4516_v52, 0.0 }
 0x6c2   : > { %v4764_v15 = vmax.f32 %v4508_v4, 0.0 }
 0x6c3   : > { %v4834_v12 = vpack.c.bf16 %v4766_v36, %v4765_v51 }
 0x6c4   : > { %v11897_v50 = vpop.f32.mrb[8].mxu1  ;;  %v4833_v14 = vpack.c.bf16 %v4764_v15, %v4763_v8 }
 0x6c5   : > { %v4529_v19 = vadd.f32 %v11897_v50, %v13972_v30  ;;  %v4520_v43 = vpop.f32.mrb[9].mxu1  ;;  %v12463_v50 = vld [vmem:[%s17038_s6 + $0x70] ss:$8 sps:$4 sm:$0xff]  }
 0x6c6   : > { %v4521_v16 = vadd.f32 %v13972_v30, %v4520_v43  ;;  %v11898_v45 = vpop.f32.mrb[10].mxu1  ;;  %11987 = vmatprep.mubr.bf16.mxu0 %v4833_v14  ;;  %v12465_v14 = vld [vmem:[%s17038_s6 + $0x74] ss:$8 sps:$4 sm:$0xff]  }
 0x6c7   : > { %v4532_v22 = vadd.f32 %v11898_v45, %v13972_v30  ;;  %v4523_v23 = vpop.f32.mrb[11].mxu1  ;;  %11988 = vmatmul.mubr.bf16.gmra.mrb[84].mxu0 %v4834_v12  ;;  %v4769_v49 = vmax.f32 %v4529_v19, 0.0  ;;  %5531 = vmatprep.subr.bf16.mxu1 %v12465_v14 }
 0x6c8   : > { %v4524_v53 = vadd.f32 %v13972_v30, %v4523_v23  ;;  %v4767_v26 = vmax.f32 %v4521_v16, 0.0  ;;  %5532 = vmatpush1.bf16.msra.mxu1 %v12463_v50 }
 0x6c9   : > { %v4770_v7 = vmax.f32 %v4532_v22, 0.0 }
 0x6ca   : > { %v4768_v39 = vmax.f32 %v4524_v53, 0.0 }
 0x6cb   : > { %v4836_v58 = vpack.c.bf16 %v4770_v7, %v4769_v49 }
 0x6cc   : > { %v11901_v62 = vpop.f32.mrb[12].mxu1  ;;  %v4835_v56 = vpack.c.bf16 %v4768_v39, %v4767_v26 }
 0x6cd   : > { %v4545_v27 = vadd.f32 %v11901_v62, %v13972_v30  ;;  %v4536_v11 = vpop.f32.mrb[13].mxu1 }
 0x6ce   : > { %v4537_v28 = vadd.f32 %v13972_v30, %v4536_v11  ;;  %v11902_v10 = vpop.f32.mrb[14].mxu1  ;;  %11991 = vmatprep.mubr.bf16.mxu0 %v4835_v56 }
 0x6cf   : > { %v4548_v6 = vadd.f32 %v11902_v10, %v13972_v30  ;;  %v4539_v32 = vpop.f32.mrb[15].mxu1  ;;  %11992 = vmatmul.mubr.bf16.gmra.mrb[88].mxu0 %v4836_v58  ;;  %v4773_v33 = vmax.f32 %v4545_v27, 0.0 }
 0x6d0   : > { %v4540_v2 = vadd.f32 %v13972_v30, %v4539_v32  ;;  %v4771_v42 = vmax.f32 %v4537_v28, 0.0 }
 0x6d1   : > { %v4774_v38 = vmax.f32 %v4548_v6, 0.0 }
 0x6d2   : > { %v4772_v25 = vmax.f32 %v4540_v2, 0.0 }
 0x6d3   : > { %v4838_v0 = vpack.c.bf16 %v4774_v38, %v4773_v33 }
 0x6d4   : > { %v11905_v5 = vpop.f32.mrb[16].mxu1  ;;  %v4837_v20 = vpack.c.bf16 %v4772_v25, %v4771_v42 }
 0x6d5   : > { %v4561_v46 = vadd.f32 %v11905_v5, %v13972_v30  ;;  %v4552_v31 = vpop.f32.mrb[17].mxu1 }
 0x6d6   : > { %v4553_v54 = vadd.f32 %v13972_v30, %v4552_v31  ;;  %v11906_v17 = vpop.f32.mrb[18].mxu1  ;;  %11995 = vmatprep.mubr.bf16.mxu0 %v4837_v20 }
 0x6d7   : > { %v4564_v29 = vadd.f32 %v11906_v17, %v13972_v30  ;;  %v4555_v3 = vpop.f32.mrb[19].mxu1  ;;  %11996 = vmatmul.mubr.bf16.gmra.mrb[92].mxu0 %v4838_v0  ;;  %v4777_v9 = vmax.f32 %v4561_v46, 0.0 }
 0x6d8   : > { %v4556_v55 = vadd.f32 %v13972_v30, %v4555_v3  ;;  %v4775_v24 = vmax.f32 %v4553_v54, 0.0 }
 0x6d9   : > { %v4778_v48 = vmax.f32 %v4564_v29, 0.0 }
 0x6da   : > { %v4776_v44 = vmax.f32 %v4556_v55, 0.0 }
 0x6db   : > { %v4840_v1 = vpack.c.bf16 %v4778_v48, %v4777_v9 }
 0x6dc   : > { %v11909_v57 = vpop.f32.mrb[20].mxu1  ;;  %v4839_v37 = vpack.c.bf16 %v4776_v44, %v4775_v24 }
 0x6dd   : > { %v4577_v18 = vadd.f32 %v11909_v57, %v13972_v30  ;;  %v4568_v59 = vpop.f32.mrb[21].mxu1 }
 0x6de   : > { %v4569_v35 = vadd.f32 %v13972_v30, %v4568_v59  ;;  %v11910_v60 = vpop.f32.mrb[22].mxu1  ;;  %11999 = vmatprep.mubr.bf16.mxu0 %v4839_v37 }
 0x6df   : > { %v4580_v61 = vadd.f32 %v11910_v60, %v13972_v30  ;;  %v4571_v13 = vpop.f32.mrb[23].mxu1  ;;  %12000 = vmatmul.mubr.bf16.gmra.mrb[96].mxu0 %v4840_v1  ;;  %v4781_v63 = vmax.f32 %v4577_v18, 0.0 }
 0x6e0   : > { %v4572_v52 = vadd.f32 %v13972_v30, %v4571_v13  ;;  %v4779_v51 = vmax.f32 %v4569_v35, 0.0 }
 0x6e1   : > { %v4782_v4 = vmax.f32 %v4580_v61, 0.0 }
 0x6e2   : > { %v4780_v36 = vmax.f32 %v4572_v52, 0.0 }
 0x6e3   : > { %v4842_v21 = vpack.c.bf16 %v4782_v4, %v4781_v63 }
 0x6e4   : > { %v11913_v47 = vpop.f32.mrb[24].mxu1  ;;  %v4841_v8 = vpack.c.bf16 %v4780_v36, %v4779_v51 }
 0x6e5   : > { %v4593_v15 = vadd.f32 %v11913_v47, %v13972_v30  ;;  %v4584_v12 = vpop.f32.mrb[25].mxu1 }
 0x6e6   : > { %v4585_v19 = vadd.f32 %v13972_v30, %v4584_v12  ;;  %v11914_v43 = vpop.f32.mrb[26].mxu1  ;;  %12003 = vmatprep.mubr.bf16.mxu0 %v4841_v8 }
 0x6e7   : > { %v4596_v16 = vadd.f32 %v11914_v43, %v13972_v30  ;;  %v4587_v45 = vpop.f32.mrb[27].mxu1  ;;  %12004 = vmatmul.mubr.bf16.gmra.mrb[100].mxu0 %v4842_v21  ;;  %v4785_v23 = vmax.f32 %v4593_v15, 0.0 }
 0x6e8   : > { %v4588_v22 = vadd.f32 %v13972_v30, %v4587_v45  ;;  %v4783_v49 = vmax.f32 %v4585_v19, 0.0 }
 0x6e9   : > { %v4786_v53 = vmax.f32 %v4596_v16, 0.0 }
 0x6ea   : > { %v4784_v7 = vmax.f32 %v4588_v22, 0.0 }
 0x6eb   : > { %v4844_v26 = vpack.c.bf16 %v4786_v53, %v4785_v23 }
 0x6ec   : > { %v11917_v39 = vpop.f32.mrb[28].mxu1  ;;  %v4843_v58 = vpack.c.bf16 %v4784_v7, %v4783_v49 }
 0x6ed   : > { %v4609_v62 = vadd.f32 %v11917_v39, %v13972_v30  ;;  %v4600_v56 = vpop.f32.mrb[29].mxu1 }
 0x6ee   : > { %v4601_v27 = vadd.f32 %v13972_v30, %v4600_v56  ;;  %v11918_v11 = vpop.f32.mrb[30].mxu1  ;;  %12007 = vmatprep.mubr.bf16.mxu0 %v4843_v58 }
 0x6ef   : > { %v4612_v28 = vadd.f32 %v11918_v11, %v13972_v30  ;;  %v4603_v10 = vpop.f32.mrb[31].mxu1  ;;  %12008 = vmatmul.mubr.bf16.gmra.mrb[104].mxu0 %v4844_v26  ;;  %v4789_v32 = vmax.f32 %v4609_v62, 0.0 }
 0x6f0   : > { %v4604_v6 = vadd.f32 %v13972_v30, %v4603_v10  ;;  %v4787_v33 = vmax.f32 %v4601_v27, 0.0 }
 0x6f1   : > { %v4790_v2 = vmax.f32 %v4612_v28, 0.0 }
 0x6f2   : > { %v4788_v38 = vmax.f32 %v4604_v6, 0.0 }
 0x6f3   : > { %v4846_v40 = vpack.c.bf16 %v4790_v2, %v4789_v32  ;;  %v12466_v2 = vld [vmem:[%s17036_s4] sm:$0xff]  }
 0x6f4   : > { %v4845_v41 = vpack.c.bf16 %v4788_v38, %v4787_v33  ;;  %7727 = vmatpush1.bf16.msra.mxu0 %v12466_v2 }
 0x6f5   : > { %7728 = vmatprep.subr.bf16.mxu0 %v12911_v34 }
 0x6f6   : > { %12011 = vmatprep.mubr.bf16.mxu0 %v4845_v41 }
 0x6f7   : > { %12012 = vmatmul.mubr.bf16.gmra.mrb[108].mxu0 %v4846_v40 }
 0x6fa   : > { %v11921_v42 = vpop.f32.mrb[32].mxu1 }
 0x6fb   : > { %v4625_v25 = vadd.f32 %v11921_v42, %v13972_v30  ;;  %v4616_v0 = vpop.f32.mrb[33].mxu1 }
 0x6fc   : > { %v4617_v5 = vadd.f32 %v13972_v30, %v4616_v0  ;;  %v11922_v20 = vpop.f32.mrb[34].mxu1 }
 0x6fd   : > { %v4628_v46 = vadd.f32 %v11922_v20, %v13972_v30  ;;  %v4619_v31 = vpop.f32.mrb[35].mxu1  ;;  %v4793_v17 = vmax.f32 %v4625_v25, 0.0 }
 0x6fe   : > { %v4620_v54 = vadd.f32 %v13972_v30, %v4619_v31  ;;  %v4791_v3 = vmax.f32 %v4617_v5, 0.0 }
 0x6ff   : > { %v4794_v29 = vmax.f32 %v4628_v46, 0.0 }
 0x700   : > { %v4792_v55 = vmax.f32 %v4620_v54, 0.0 }
 0x701   : > { %v4848_v9 = vpack.c.bf16 %v4794_v29, %v4793_v17  ;;  %v12467_v29 = vld [vmem:[%s17036_s4 + $0x8] sm:$0xff]  }
 0x702   : > { %v4847_v48 = vpack.c.bf16 %v4792_v55, %v4791_v3  ;;  %7729 = vmatpush1.bf16.msra.mxu0 %v12467_v29 }
 0x703   : > { %7730 = vmatprep.subr.bf16.mxu0 %v12911_v34 }
 0x704   : > { %12015 = vmatprep.mubr.bf16.mxu0 %v4847_v48 }
 0x705   : > { %12016 = vmatmul.mubr.bf16.gmra.mrb[112].mxu0 %v4848_v9 }
 0x70a   : > { %v11925_v24 = vpop.f32.mrb[36].mxu1 }
 0x70b   : > { %v4641_v44 = vadd.f32 %v11925_v24, %v13972_v30  ;;  %v4632_v1 = vpop.f32.mrb[37].mxu1 }
 0x70c   : > { %v4633_v57 = vadd.f32 %v13972_v30, %v4632_v1  ;;  %v11926_v37 = vpop.f32.mrb[38].mxu1 }
 0x70d   : > { %v4644_v18 = vadd.f32 %v11926_v37, %v13972_v30  ;;  %v4635_v59 = vpop.f32.mrb[39].mxu1  ;;  %v4797_v60 = vmax.f32 %v4641_v44, 0.0 }
 0x70e   : > { %v4636_v35 = vadd.f32 %v13972_v30, %v4635_v59  ;;  %v4795_v13 = vmax.f32 %v4633_v57, 0.0  ;;  %v12468_v57 = vld [vmem:[%s17036_s4 + $0x10] sm:$0xff]  }
 0x70f   : > { %v4798_v61 = vmax.f32 %v4644_v18, 0.0  ;;  %7731 = vmatpush1.bf16.msra.mxu0 %v12468_v57 }
 0x710   : > { %v4796_v52 = vmax.f32 %v4636_v35, 0.0  ;;  %7732 = vmatprep.subr.bf16.mxu0 %v12911_v34 }
 0x711   : > { %v4850_v63 = vpack.c.bf16 %v4798_v61, %v4797_v60 }
 0x712   : > { %v4849_v4 = vpack.c.bf16 %v4796_v52, %v4795_v13  ;;  %v12469_v52 = vld [vmem:[%s17036_s4 + $0x18] sm:$0xff]  }
 0x713   : > { %7733 = vmatpush1.bf16.msra.mxu0 %v12469_v52 }
 0x714   : > { %12019 = vmatprep.mubr.bf16.mxu0 %v4849_v4  ;;  %7734 = vmatprep.subr.bf16.mxu0 %v12911_v34 }
 0x715   : > { %12020 = vmatmul.mubr.bf16.gmra.mrb[116].mxu0 %v4850_v63 }
 0x71a   : > { %v11929_v51 = vpop.f32.mrb[40].mxu1 }
 0x71b   : > { %v4657_v36 = vadd.f32 %v11929_v51, %v13972_v30  ;;  %v4648_v21 = vpop.f32.mrb[41].mxu1 }
 0x71c   : > { %v4649_v47 = vadd.f32 %v13972_v30, %v4648_v21  ;;  %v11930_v8 = vpop.f32.mrb[42].mxu1 }
 0x71d   : > { %v4660_v15 = vadd.f32 %v11930_v8, %v13972_v30  ;;  %v4651_v12 = vpop.f32.mrb[43].mxu1  ;;  %v4801_v14 = vmax.f32 %v4657_v36, 0.0 }
 0x71e   : > { %v4652_v50 = vadd.f32 %v13972_v30, %v4651_v12  ;;  %v4799_v43 = vmax.f32 %v4649_v47, 0.0 }
 0x71f   : > { %v4802_v19 = vmax.f32 %v4660_v15, 0.0 }
 0x720   : > { %v4800_v16 = vmax.f32 %v4652_v50, 0.0 }
 0x721   : > { %v4852_v45 = vpack.c.bf16 %v4802_v19, %v4801_v14 }
 0x722   : > { %v4851_v22 = vpack.c.bf16 %v4800_v16, %v4799_v43  ;;  %v12470_v43 = vld [vmem:[%s17036_s4 + $0x20] sm:$0xff]  }
 0x723   : > { %7735 = vmatpush1.bf16.msra.mxu0 %v12470_v43 }
 0x724   : > { %12023 = vmatprep.mubr.bf16.mxu0 %v4851_v22  ;;  %7736 = vmatprep.subr.bf16.mxu0 %v12911_v34 }
 0x725   : > { %12024 = vmatmul.mubr.bf16.gmra.mrb[120].mxu0 %v4852_v45 }
 0x72a   : > { %v11933_v23 = vpop.f32.mrb[44].mxu1 }
 0x72b   : > { %v4673_v53 = vadd.f32 %v11933_v23, %v13972_v30  ;;  %v4664_v49 = vpop.f32.mrb[45].mxu1 }
 0x72c   : > { %v4665_v7 = vadd.f32 %v13972_v30, %v4664_v49  ;;  %v11934_v26 = vpop.f32.mrb[46].mxu1  ;;  %v12471_v49 = vld [vmem:[%s17036_s4 + $0x28] sm:$0xff]  }
 0x72d   : > { %v4676_v39 = vadd.f32 %v11934_v26, %v13972_v30  ;;  %v4667_v58 = vpop.f32.mrb[47].mxu1  ;;  %v4805_v56 = vmax.f32 %v4673_v53, 0.0  ;;  %7737 = vmatpush1.bf16.msra.mxu0 %v12471_v49 }
 0x72e   : > { %v4668_v62 = vadd.f32 %v13972_v30, %v4667_v58  ;;  %v4803_v11 = vmax.f32 %v4665_v7, 0.0  ;;  %7738 = vmatprep.subr.bf16.mxu0 %v12911_v34 }
 0x72f   : > { %v4806_v27 = vmax.f32 %v4676_v39, 0.0 }
 0x730   : > { %v4804_v28 = vmax.f32 %v4668_v62, 0.0 }
 0x731   : > { %v4854_v10 = vpack.c.bf16 %v4806_v27, %v4805_v56 }
 0x732   : > { %v4853_v6 = vpack.c.bf16 %v4804_v28, %v4803_v11 }
 0x734   : > { %12027 = vmatprep.mubr.bf16.mxu0 %v4853_v6  ;;  %v12472_v6 = vld [vmem:[%s17036_s4 + $0x30] sm:$0xff]  }
 0x735   : > { %12028 = vmatmul.mubr.bf16.gmra.mrb[124].mxu0 %v4854_v10  ;;  %v14112_v10 = vld [vmem:[%s17037_s5 + $0x7] ss:$0 sm:$0xff] }
 0x736   : > { %7739 = vmatpush1.bf16.msra.mxu0 %v12472_v6 }
 0x737   : > { %7740 = vmatprep.subr.bf16.mxu0 %v12911_v34 }
 0x73a   : > { %v11937_v32 = vpop.f32.mrb[48].mxu1 }
 0x73b   : > { %v4689_v33 = vadd.f32 %v11937_v32, %v13972_v30  ;;  %v4680_v38 = vpop.f32.mrb[49].mxu1 }
 0x73c   : > { %v4681_v40 = vadd.f32 %v13972_v30, %v4680_v38  ;;  %v11938_v41 = vpop.f32.mrb[50].mxu1 }
 0x73d   : > { %v4692_v42 = vadd.f32 %v11938_v41, %v13972_v30  ;;  %v4683_v25 = vpop.f32.mrb[51].mxu1  ;;  %v4809_v5 = vmax.f32 %v4689_v33, 0.0 }
 0x73e   : > { %v4684_v0 = vadd.f32 %v13972_v30, %v4683_v25  ;;  %v4807_v46 = vmax.f32 %v4681_v40, 0.0 }
 0x73f   : > { %v4810_v20 = vmax.f32 %v4692_v42, 0.0 }
 0x740   : > { %v4808_v31 = vmax.f32 %v4684_v0, 0.0 }
 0x741   : > { %v4856_v54 = vpack.c.bf16 %v4810_v20, %v4809_v5 }
 0x742   : > { %v4855_v17 = vpack.c.bf16 %v4808_v31, %v4807_v46 }
 0x744   : > { %12031 = vmatprep.mubr.bf16.mxu0 %v4855_v17 }
 0x745   : > { %12032 = vmatmul.mubr.bf16.gmra.mrb[128].mxu0 %v4856_v54 }
 0x74a   : > { %v11941_v3 = vpop.f32.mrb[52].mxu1 }
 0x74b   : > { %v4705_v55 = vadd.f32 %v11941_v3, %v13972_v30  ;;  %v4696_v9 = vpop.f32.mrb[53].mxu1 }
 0x74c   : > { %v4697_v48 = vadd.f32 %v13972_v30, %v4696_v9  ;;  %v11942_v24 = vpop.f32.mrb[54].mxu1 }
 0x74d   : > { %v4708_v44 = vadd.f32 %v11942_v24, %v13972_v30  ;;  %v4699_v1 = vpop.f32.mrb[55].mxu1  ;;  %v4813_v18 = vmax.f32 %v4705_v55, 0.0 }
 0x74e   : > { %v4700_v37 = vadd.f32 %v13972_v30, %v4699_v1  ;;  %v4811_v35 = vmax.f32 %v4697_v48, 0.0 }
 0x74f   : > { %v4814_v59 = vmax.f32 %v4708_v44, 0.0 }
 0x750   : > { %v4812_v60 = vmax.f32 %v4700_v37, 0.0 }
 0x751   : > { %v4858_v61 = vpack.c.bf16 %v4814_v59, %v4813_v18 }
 0x752   : > { %v4857_v13 = vpack.c.bf16 %v4812_v60, %v4811_v35  ;;  %v12473_v35 = vld [vmem:[%s17036_s4 + $0x38] sm:$0xff]  }
 0x753   : > { %7741 = vmatpush1.bf16.msra.mxu0 %v12473_v35 }
 0x754   : > { %12035 = vmatprep.mubr.bf16.mxu0 %v4857_v13  ;;  %7742 = vmatprep.subr.bf16.mxu0 %v12911_v34 }
 0x755   : > { %12036 = vmatmul.mubr.bf16.gmra.mrb[132].mxu0 %v4858_v61 }
 0x75a   : > { %v11945_v63 = vpop.f32.mrb[56].mxu1 }
 0x75b   : > { %v4721_v4 = vadd.f32 %v11945_v63, %v13972_v30  ;;  %v4712_v51 = vpop.f32.mrb[57].mxu1 }
 0x75c   : > { %v4713_v36 = vadd.f32 %v13972_v30, %v4712_v51  ;;  %v11946_v21 = vpop.f32.mrb[58].mxu1 }
 0x75d   : > { %v4724_v47 = vadd.f32 %v11946_v21, %v13972_v30  ;;  %v4715_v8 = vpop.f32.mrb[59].mxu1  ;;  %v4817_v12 = vmax.f32 %v4721_v4, 0.0 }
 0x75e   : > { %v4716_v15 = vadd.f32 %v13972_v30, %v4715_v8  ;;  %v4815_v14 = vmax.f32 %v4713_v36, 0.0  ;;  %v12474_v36 = vld [vmem:[%s17036_s4 + $0x40] sm:$0xff]  }
 0x75f   : > { %v4818_v50 = vmax.f32 %v4724_v47, 0.0  ;;  %7743 = vmatpush1.bf16.msra.mxu0 %v12474_v36 }
 0x760   : > { %v4816_v19 = vmax.f32 %v4716_v15, 0.0  ;;  %7744 = vmatprep.subr.bf16.mxu0 %v12911_v34 }
 0x761   : > { %v4860_v16 = vpack.c.bf16 %v4818_v50, %v4817_v12 }
 0x762   : > { %v4859_v45 = vpack.c.bf16 %v4816_v19, %v4815_v14 }
 0x764   : > { %12039 = vmatprep.mubr.bf16.mxu0 %v4859_v45 }
 0x765   : > { %12040 = vmatmul.mubr.bf16.gmra.mrb[136].mxu0 %v4860_v16 }
 0x76a   : > { %v11949_v22 = vpop.f32.mrb[60].mxu1 }
 0x76b   : > { %v4737_v23 = vadd.f32 %v11949_v22, %v13972_v30  ;;  %v4728_v53 = vpop.f32.mrb[61].mxu1 }
 0x76c   : > { %v4729_v7 = vadd.f32 %v13972_v30, %v4728_v53  ;;  %v11950_v26 = vpop.f32.mrb[62].mxu1 }
 0x76d   : > { %v4740_v39 = vadd.f32 %v11950_v26, %v13972_v30  ;;  %v4731_v58 = vpop.f32.mrb[63].mxu1  ;;  %v4821_v56 = vmax.f32 %v4737_v23, 0.0 }
 0x76e   : > { %v4732_v62 = vadd.f32 %v13972_v30, %v4731_v58  ;;  %v4819_v11 = vmax.f32 %v4729_v7, 0.0 }
 0x76f   : > { %v4822_v27 = vmax.f32 %v4740_v39, 0.0 }
 0x770   : > { %v4820_v28 = vmax.f32 %v4732_v62, 0.0 }
 0x771   : > { %v4862_v32 = vpack.c.bf16 %v4822_v27, %v4821_v56  ;;  %v12475_v27 = vld [vmem:[%s17036_s4 + $0x48] sm:$0xff]  }
 0x772   : > { %v11969_v2 = vpop.f32.mrb[64].mxu0  ;;  %v4861_v33 = vpack.c.bf16 %v4820_v28, %v4819_v11  ;;  %7745 = vmatpush1.bf16.msra.mxu0 %v12475_v27 }
 0x773   : > { %v4979_v30 = vadd.f32 %v11969_v2, %v14112_v10  ;;  %v4970_v38 = vpop.f32.mrb[65].mxu0  ;;  %7746 = vmatprep.subr.bf16.mxu0 %v12911_v34 }
 0x774   : > { %v4971_v40 = vadd.f32 %v14112_v10, %v4970_v38  ;;  %v11970_v41 = vpop.f32.mrb[66].mxu0  ;;  %12043 = vmatprep.mubr.bf16.mxu0 %v4861_v33 }
 0x775   : > { %v4982_v42 = vadd.f32 %v11970_v41, %v14112_v10  ;;  %v4973_v25 = vpop.f32.mrb[67].mxu0  ;;  %12044 = vmatmul.mubr.bf16.gmra.mrb[140].mxu0 %v4862_v32  ;;  %v5291_v5 = vmax.f32 %v4979_v30, 0.0 }
 0x776   : > { %v4974_v0 = vadd.f32 %v14112_v10, %v4973_v25  ;;  %v5289_v46 = vmax.f32 %v4971_v40, 0.0 }
 0x777   : > { %v5292_v20 = vmax.f32 %v4982_v42, 0.0 }
 0x778   : > { %v5290_v31 = vmax.f32 %v4974_v0, 0.0 }
 0x779   : > { %v5370_v54 = vpack.c.bf16 %v5292_v20, %v5291_v5 }
 0x77a   : > { %v5369_v17 = vpack.c.bf16 %v5290_v31, %v5289_v46  ;;  %v11973_v29 = vpop.f32.mrb[68].mxu0 }
 0x77b   : > { %v4995_v3 = vadd.f32 %v11973_v29, %v14112_v10  ;;  %v4986_v55 = vpop.f32.mrb[69].mxu0 }
 0x77c   : > { %v4987_v9 = vadd.f32 %v14112_v10, %v4986_v55  ;;  %v11974_v48 = vpop.f32.mrb[70].mxu0  ;;  %5550 = vmatmul.mubr.bf16.vlgmr.msra.gmra.mrb[64].mxu1 %v5369_v17 }
 0x77d   : > { %v4998_v24 = vadd.f32 %v11974_v48, %v14112_v10  ;;  %v4989_v44 = vpop.f32.mrb[71].mxu0  ;;  %5559 = vmatprep.mubr.bf16.mxu1 %v12911_v34  ;;  %v5295_v57 = vmax.f32 %v4995_v3, 0.0 }
 0x77e   : > { %v4990_v1 = vadd.f32 %v14112_v10, %v4989_v44  ;;  %v5293_v18 = vmax.f32 %v4987_v9, 0.0 }
 0x77f   : > { %v5296_v37 = vmax.f32 %v4998_v24, 0.0 }
 0x780   : > { %v5294_v59 = vmax.f32 %v4990_v1, 0.0  ;;  %v12476_v1 = vld [vmem:[%s17036_s4 + $0x50] sm:$0xff]  }
 0x781   : > { %v5372_v60 = vpack.c.bf16 %v5296_v37, %v5295_v57  ;;  %7747 = vmatpush1.bf16.msra.mxu0 %v12476_v1 }
 0x782   : > { %v5371_v61 = vpack.c.bf16 %v5294_v59, %v5293_v18  ;;  %v11977_v13 = vpop.f32.mrb[72].mxu0  ;;  %7748 = vmatprep.subr.bf16.mxu0 %v12911_v34 }
 0x783   : > { %v5011_v52 = vadd.f32 %v11977_v13, %v14112_v10  ;;  %v5002_v63 = vpop.f32.mrb[73].mxu0 }
 0x784   : > { %v5003_v4 = vadd.f32 %v14112_v10, %v5002_v63  ;;  %v11978_v51 = vpop.f32.mrb[74].mxu0  ;;  %5560 = vmatmul.mubr.bf16.gmra.mrb[68].mxu1 %v5370_v54  ;;  %v12477_v63 = vld [vmem:[%s17036_s4 + $0x58] sm:$0xff]  }
 0x785   : > { %v5014_v21 = vadd.f32 %v11978_v51, %v14112_v10  ;;  %v5005_v47 = vpop.f32.mrb[75].mxu0  ;;  %5569 = vmatprep.mubr.bf16.mxu1 %v12911_v34  ;;  %v5299_v15 = vmax.f32 %v5011_v52, 0.0  ;;  %7749 = vmatpush1.bf16.msra.mxu0 %v12477_v63 }
 0x786   : > { %v5006_v8 = vadd.f32 %v14112_v10, %v5005_v47  ;;  %v5297_v50 = vmax.f32 %v5003_v4, 0.0  ;;  %7750 = vmatprep.subr.bf16.mxu0 %v12911_v34 }
 0x787   : > { %v5300_v12 = vmax.f32 %v5014_v21, 0.0 }
 0x788   : > { %v5298_v14 = vmax.f32 %v5006_v8, 0.0 }
 0x789   : > { %v5374_v19 = vpack.c.bf16 %v5300_v12, %v5299_v15 }
 0x78a   : > { %v5373_v43 = vpack.c.bf16 %v5298_v14, %v5297_v50  ;;  %v11981_v16 = vpop.f32.mrb[76].mxu0 }
 0x78b   : > { %v5027_v45 = vadd.f32 %v11981_v16, %v14112_v10  ;;  %v5018_v22 = vpop.f32.mrb[77].mxu0 }
 0x78c   : > { %v5019_v23 = vadd.f32 %v14112_v10, %v5018_v22  ;;  %v11982_v53 = vpop.f32.mrb[78].mxu0  ;;  %5570 = vmatmul.mubr.bf16.gmra.mrb[72].mxu1 %v5371_v61 }
 0x78d   : > { %v5030_v49 = vadd.f32 %v11982_v53, %v14112_v10  ;;  %v5021_v7 = vpop.f32.mrb[79].mxu0  ;;  %5579 = vmatprep.mubr.bf16.mxu1 %v12911_v34  ;;  %v5303_v39 = vmax.f32 %v5027_v45, 0.0 }
 0x78e   : > { %v5022_v26 = vadd.f32 %v14112_v10, %v5021_v7  ;;  %v5301_v62 = vmax.f32 %v5019_v23, 0.0 }
 0x78f   : > { %v5304_v58 = vmax.f32 %v5030_v49, 0.0 }
 0x790   : > { %v5302_v56 = vmax.f32 %v5022_v26, 0.0 }
 0x791   : > { %v14148_v11 = vpack.c.bf16 %v5304_v58, %v5303_v39  ;;  %v12478_v58 = vld [vmem:[%s17036_s4 + $0x60] sm:$0xff]  }
 0x792   : > { %v5375_v28 = vpack.c.bf16 %v5302_v56, %v5301_v62  ;;  %v11985_v6 = vpop.f32.mrb[80].mxu0  ;;  %7751 = vmatpush1.bf16.msra.mxu0 %v12478_v58 }
 0x793   : > { %v5043_v32 = vadd.f32 %v11985_v6, %v14112_v10  ;;  %v5034_v2 = vpop.f32.mrb[81].mxu0  ;;  %7752 = vmatprep.subr.bf16.mxu0 %v12911_v34 }
 0x794   : > { %v5035_v33 = vadd.f32 %v14112_v10, %v5034_v2  ;;  %v11986_v30 = vpop.f32.mrb[82].mxu0  ;;  %5580 = vmatmul.mubr.bf16.gmra.mrb[76].mxu1 %v5372_v60 }
 0x795   : > { %v5046_v38 = vadd.f32 %v11986_v30, %v14112_v10  ;;  %v5037_v40 = vpop.f32.mrb[83].mxu0  ;;  %5589 = vmatprep.mubr.bf16.mxu1 %v12911_v34  ;;  %v5307_v42 = vmax.f32 %v5043_v32, 0.0 }
 0x796   : > { %v5038_v41 = vadd.f32 %v14112_v10, %v5037_v40  ;;  %v5305_v0 = vmax.f32 %v5035_v33, 0.0 }
 0x797   : > { %v5308_v25 = vmax.f32 %v5046_v38, 0.0 }
 0x798   : > { %v5306_v5 = vmax.f32 %v5038_v41, 0.0 }
 0x799   : > { %v14156_v20 = vpack.c.bf16 %v5308_v25, %v5307_v42 }
 0x79a   : > { %v14158_v46 = vpack.c.bf16 %v5306_v5, %v5305_v0  ;;  %v11989_v31 = vpop.f32.mrb[84].mxu0 }
 0x79b   : > { %v5059_v54 = vadd.f32 %v11989_v31, %v14112_v10  ;;  %v5050_v17 = vpop.f32.mrb[85].mxu0 }
 0x79c   : > { %v5051_v29 = vadd.f32 %v14112_v10, %v5050_v17  ;;  %v11990_v3 = vpop.f32.mrb[86].mxu0  ;;  %5590 = vmatmul.mubr.bf16.gmra.mrb[80].mxu1 %v5373_v43 }
 0x79d   : > { %v5062_v55 = vadd.f32 %v11990_v3, %v14112_v10  ;;  %v5053_v9 = vpop.f32.mrb[87].mxu0  ;;  %5599 = vmatprep.mubr.bf16.mxu1 %v12911_v34  ;;  %v5311_v24 = vmax.f32 %v5059_v54, 0.0 }
 0x79e   : > { %v5054_v48 = vadd.f32 %v14112_v10, %v5053_v9  ;;  %v5309_v57 = vmax.f32 %v5051_v29, 0.0 }
 0x79f   : > { %v5312_v44 = vmax.f32 %v5062_v55, 0.0 }
 0x7a0   : > { %v5310_v37 = vmax.f32 %v5054_v48, 0.0 }
 0x7a1   : > { %v14168_v18 = vpack.c.bf16 %v5312_v44, %v5311_v24 }
 0x7a2   : > { %v14170_v59 = vpack.c.bf16 %v5310_v37, %v5309_v57  ;;  %v11993_v35 = vpop.f32.mrb[88].mxu0  ;;  %v12480_v37 = vld [vmem:[%s17036_s4 + $0x70] sm:$0xff]  }
 0x7a3   : > { %v5075_v60 = vadd.f32 %v11993_v35, %v14112_v10  ;;  %v5066_v61 = vpop.f32.mrb[89].mxu0 }
 0x7a4   : > { %v5067_v13 = vadd.f32 %v14112_v10, %v5066_v61  ;;  %v11994_v52 = vpop.f32.mrb[90].mxu0  ;;  %5600 = vmatmul.mubr.bf16.gmra.mrb[84].mxu1 %v5374_v19 }
 0x7a5   : > { %v5078_v4 = vadd.f32 %v11994_v52, %v14112_v10  ;;  %v5069_v51 = vpop.f32.mrb[91].mxu0  ;;  %5609 = vmatprep.mubr.bf16.mxu1 %v12911_v34  ;;  %v5315_v21 = vmax.f32 %v5075_v60, 0.0 }
 0x7a6   : > { %v5070_v36 = vadd.f32 %v14112_v10, %v5069_v51  ;;  %v5313_v8 = vmax.f32 %v5067_v13, 0.0 }
 0x7a7   : > { %v5316_v47 = vmax.f32 %v5078_v4, 0.0 }
 0x7a8   : > { %v5314_v15 = vmax.f32 %v5070_v36, 0.0 }
 0x7a9   : > { %v14182_v12 = vpack.c.bf16 %v5316_v47, %v5315_v21 }
 0x7aa   : > { %v14184_v50 = vpack.c.bf16 %v5314_v15, %v5313_v8  ;;  %v11997_v14 = vpop.f32.mrb[92].mxu0 }
 0x7ab   : > { %v5091_v19 = vadd.f32 %v11997_v14, %v14112_v10  ;;  %v5082_v43 = vpop.f32.mrb[93].mxu0 }
 0x7ac   : > { %v5083_v16 = vadd.f32 %v14112_v10, %v5082_v43  ;;  %v11998_v45 = vpop.f32.mrb[94].mxu0  ;;  %5610 = vmatmul.mubr.bf16.gmra.mrb[88].mxu1 %v5375_v28 }
 0x7ad   : > { %v5094_v22 = vadd.f32 %v11998_v45, %v14112_v10  ;;  %v5085_v23 = vpop.f32.mrb[95].mxu0  ;;  %5619 = vmatprep.mubr.bf16.mxu1 %v12911_v34  ;;  %v5319_v49 = vmax.f32 %v5091_v19, 0.0 }
 0x7ae   : > { %v5086_v53 = vadd.f32 %v14112_v10, %v5085_v23  ;;  %v5317_v26 = vmax.f32 %v5083_v16, 0.0 }
 0x7af   : > { %v5320_v7 = vmax.f32 %v5094_v22, 0.0 }
 0x7b0   : > { %v5318_v39 = vmax.f32 %v5086_v53, 0.0 }
 0x7b1   : > { %v14194_v62 = vpack.c.bf16 %v5320_v7, %v5319_v49 }
 0x7b2   : > { %v14196_v56 = vpack.c.bf16 %v5318_v39, %v5317_v26  ;;  %v12001_v27 = vpop.f32.mrb[96].mxu0 }
 0x7b3   : > { %v5107_v28 = vadd.f32 %v12001_v27, %v14112_v10  ;;  %v5098_v6 = vpop.f32.mrb[97].mxu0  ;;  %v12481_v27 = vld [vmem:[%s17036_s4 + $0x78] sm:$0xff]  }
 0x7b4   : > { %v5099_v32 = vadd.f32 %v14112_v10, %v5098_v6  ;;  %v12002_v2 = vpop.f32.mrb[98].mxu0  ;;  %5620 = vmatmul.mubr.bf16.gmra.mrb[92].mxu1 %v14148_v11  ;;  %v12479_v11 = vld [vmem:[%s17036_s4 + $0x68] sm:$0xff]  }
 0x7b5   : > { %v5110_v33 = vadd.f32 %v12002_v2, %v14112_v10  ;;  %v5101_v30 = vpop.f32.mrb[99].mxu0  ;;  %5629 = vmatprep.mubr.bf16.mxu1 %v12911_v34  ;;  %v5323_v40 = vmax.f32 %v5107_v28, 0.0  ;;  %7753 = vmatpush1.bf16.msra.mxu0 %v12479_v11 }
 0x7b6   : > { %v5102_v38 = vadd.f32 %v14112_v10, %v5101_v30  ;;  %v5321_v42 = vmax.f32 %v5099_v32, 0.0  ;;  %7754 = vmatprep.subr.bf16.mxu0 %v12911_v34 }
 0x7b7   : > { %v5324_v41 = vmax.f32 %v5110_v33, 0.0 }
 0x7b8   : > { %v5322_v25 = vmax.f32 %v5102_v38, 0.0 }
 0x7b9   : > { %v14205_v0 = vpack.c.bf16 %v5324_v41, %v5323_v40  ;;  %7755 = vmatpush1.bf16.msra.mxu0 %v12480_v37 }
 0x7ba   : > { %v14207_v5 = vpack.c.bf16 %v5322_v25, %v5321_v42  ;;  %v12005_v31 = vpop.f32.mrb[100].mxu0  ;;  %7756 = vmatprep.subr.bf16.mxu0 %v12911_v34 }
 0x7bb   : > { %v5123_v54 = vadd.f32 %v12005_v31, %v14112_v10  ;;  %v5114_v17 = vpop.f32.mrb[101].mxu0 }
 0x7bc   : > { %v5115_v29 = vadd.f32 %v14112_v10, %v5114_v17  ;;  %v12006_v3 = vpop.f32.mrb[102].mxu0  ;;  %5630 = vmatmul.mubr.bf16.gmra.mrb[96].mxu1 %v14158_v46 }
 0x7bd   : > { %v5126_v55 = vadd.f32 %v12006_v3, %v14112_v10  ;;  %v5117_v9 = vpop.f32.mrb[103].mxu0  ;;  %5639 = vmatprep.mubr.bf16.mxu1 %v12911_v34  ;;  %v5327_v24 = vmax.f32 %v5123_v54, 0.0  ;;  %7757 = vmatpush1.bf16.msra.mxu0 %v12481_v27 }
 0x7be   : > { %v5118_v48 = vadd.f32 %v14112_v10, %v5117_v9  ;;  %v5325_v1 = vmax.f32 %v5115_v29, 0.0 }
 0x7bf   : > { %v5328_v44 = vmax.f32 %v5126_v55, 0.0 }
 0x7c0   : > { %v5326_v57 = vmax.f32 %v5118_v48, 0.0 }
 0x7c1   : > { %v14222_v35 = vpack.c.bf16 %v5328_v44, %v5327_v24 }
 0x7c2   : > { %v14224_v46 = vpack.c.bf16 %v5326_v57, %v5325_v1  ;;  %v12009_v60 = vpop.f32.mrb[104].mxu0 }
 0x7c3   : > { %v5139_v61 = vadd.f32 %v12009_v60, %v14112_v10  ;;  %v5130_v13 = vpop.f32.mrb[105].mxu0 }
 0x7c4   : > { %v5131_v52 = vadd.f32 %v14112_v10, %v5130_v13  ;;  %v12010_v63 = vpop.f32.mrb[106].mxu0  ;;  %5640 = vmatmul.mubr.bf16.gmra.mrb[100].mxu1 %v14156_v20 }
 0x7c5   : > { %v5142_v4 = vadd.f32 %v12010_v63, %v14112_v10  ;;  %v5133_v51 = vpop.f32.mrb[107].mxu0  ;;  %5649 = vmatprep.mubr.bf16.mxu1 %v12911_v34  ;;  %v5331_v21 = vmax.f32 %v5139_v61, 0.0 }
 0x7c6   : > { %v5134_v36 = vadd.f32 %v14112_v10, %v5133_v51  ;;  %v5329_v8 = vmax.f32 %v5131_v52, 0.0 }
 0x7c7   : > { %v5332_v47 = vmax.f32 %v5142_v4, 0.0 }
 0x7c8   : > { %v5330_v15 = vmax.f32 %v5134_v36, 0.0 }
 0x7c9   : > { %v14233_v14 = vpack.c.bf16 %v5332_v47, %v5331_v21 }
 0x7ca   : > { %v14235_v19 = vpack.c.bf16 %v5330_v15, %v5329_v8  ;;  %v12013_v43 = vpop.f32.mrb[108].mxu0 }
 0x7cb   : > { %v5155_v16 = vadd.f32 %v12013_v43, %v14112_v10  ;;  %v5146_v45 = vpop.f32.mrb[109].mxu0 }
 0x7cc   : > { %v5147_v20 = vadd.f32 %v14112_v10, %v5146_v45  ;;  %v12014_v22 = vpop.f32.mrb[110].mxu0  ;;  %5650 = vmatmul.mubr.bf16.gmra.mrb[104].mxu1 %v14170_v59  ;;  %v12482_v59 = vld [vmem:[%s13005_s17 + $0x4] ss:$8 sps:$4 sm:$0xff]  }
 0x7cd   : > { %v5158_v23 = vadd.f32 %v12014_v22, %v14112_v10  ;;  %v5149_v53 = vpop.f32.mrb[111].mxu0  ;;  %5659 = vmatprep.mubr.bf16.mxu1 %v12911_v34  ;;  %v5335_v7 = vmax.f32 %v5155_v16, 0.0  ;;  %7758 = vmatprep.mubr.bf16.mxu0 %v12482_v59 }
 0x7ce   : > { %v5150_v49 = vadd.f32 %v14112_v10, %v5149_v53  ;;  %v5333_v39 = vmax.f32 %v5147_v20, 0.0 }
 0x7cf   : > { %v5336_v26 = vmax.f32 %v5158_v23, 0.0 }
 0x7d0   : > { %v5334_v58 = vmax.f32 %v5150_v49, 0.0 }
 0x7d1   : > { %v14246_v28 = vpack.c.bf16 %v5336_v26, %v5335_v7 }
 0x7d2   : > { %v14248_v6 = vpack.c.bf16 %v5334_v58, %v5333_v39 }
 0x7d4   : > { %5660 = vmatmul.mubr.bf16.gmra.mrb[108].mxu1 %v14168_v18 }
 0x7d5   : > { %5669 = vmatprep.mubr.bf16.mxu1 %v12911_v34 }
 0x7d8   : > { %v12017_v32 = vpop.f32.mrb[112].mxu0 }
 0x7d9   : > { %v5171_v2 = vadd.f32 %v12017_v32, %v14112_v10  ;;  %v5162_v33 = vpop.f32.mrb[113].mxu0 }
 0x7da   : > { %v5163_v30 = vadd.f32 %v14112_v10, %v5162_v33  ;;  %v12018_v38 = vpop.f32.mrb[114].mxu0 }
 0x7db   : > { %v5174_v40 = vadd.f32 %v12018_v38, %v14112_v10  ;;  %v5165_v41 = vpop.f32.mrb[115].mxu0  ;;  %v5339_v25 = vmax.f32 %v5171_v2, 0.0 }
 0x7dc   : > { %v5166_v42 = vadd.f32 %v14112_v10, %v5165_v41  ;;  %5670 = vmatmul.mubr.bf16.gmra.mrb[112].mxu1 %v14184_v50  ;;  %v5337_v18 = vmax.f32 %v5163_v30, 0.0 }
 0x7dd   : > { %v5340_v31 = vmax.f32 %v5174_v40, 0.0  ;;  %5679 = vmatprep.mubr.bf16.mxu1 %v12911_v34 }
 0x7de   : > { %v5338_v54 = vmax.f32 %v5166_v42, 0.0 }
 0x7df   : > { %v14259_v17 = vpack.c.bf16 %v5340_v31, %v5339_v25 }
 0x7e0   : > { %v14261_v11 = vpack.c.bf16 %v5338_v54, %v5337_v18 }
 0x7e4   : > { %5680 = vmatmul.mubr.bf16.gmra.mrb[116].mxu1 %v14182_v12 }
 0x7e5   : > { %5689 = vmatprep.mubr.bf16.mxu1 %v12911_v34 }
 0x7e8   : > { %v12021_v29 = vpop.f32.mrb[116].mxu0 }
 0x7e9   : > { %v5187_v3 = vadd.f32 %v12021_v29, %v14112_v10  ;;  %v5178_v55 = vpop.f32.mrb[117].mxu0 }
 0x7ea   : > { %v5179_v50 = vadd.f32 %v14112_v10, %v5178_v55  ;;  %v12022_v9 = vpop.f32.mrb[118].mxu0 }
 0x7eb   : > { %v5190_v48 = vadd.f32 %v12022_v9, %v14112_v10  ;;  %v5181_v24 = vpop.f32.mrb[119].mxu0  ;;  %v5343_v1 = vmax.f32 %v5187_v3, 0.0 }
 0x7ec   : > { %v5182_v44 = vadd.f32 %v14112_v10, %v5181_v24  ;;  %5690 = vmatmul.mubr.bf16.gmra.mrb[120].mxu1 %v14196_v56  ;;  %v5341_v12 = vmax.f32 %v5179_v50, 0.0 }
 0x7ed   : > { %v5344_v57 = vmax.f32 %v5190_v48, 0.0  ;;  %5699 = vmatprep.mubr.bf16.mxu1 %v12911_v34 }
 0x7ee   : > { %v5342_v37 = vmax.f32 %v5182_v44, 0.0 }
 0x7ef   : > { %v14271_v60 = vpack.c.bf16 %v5344_v57, %v5343_v1 }
 0x7f0   : > { %v14273_v61 = vpack.c.bf16 %v5342_v37, %v5341_v12 }
 0x7f4   : > { %5700 = vmatmul.mubr.bf16.gmra.mrb[124].mxu1 %v14194_v62 }
 0x7f5   : > { %5709 = vmatprep.mubr.bf16.mxu1 %v12911_v34 }
 0x7f8   : > { %v12025_v13 = vpop.f32.mrb[120].mxu0 }
 0x7f9   : > { %v5203_v52 = vadd.f32 %v12025_v13, %v14112_v10  ;;  %v5194_v63 = vpop.f32.mrb[121].mxu0 }
 0x7fa   : > { %v5195_v56 = vadd.f32 %v14112_v10, %v5194_v63  ;;  %v12026_v4 = vpop.f32.mrb[122].mxu0 }
 0x7fb   : > { %v5206_v51 = vadd.f32 %v12026_v4, %v14112_v10  ;;  %v5197_v36 = vpop.f32.mrb[123].mxu0  ;;  %v5347_v47 = vmax.f32 %v5203_v52, 0.0 }
 0x7fc   : > { %v5198_v21 = vadd.f32 %v14112_v10, %v5197_v36  ;;  %5710 = vmatmul.mubr.bf16.gmra.mrb[128].mxu1 %v14207_v5  ;;  %v5345_v62 = vmax.f32 %v5195_v56, 0.0 }
 0x7fd   : > { %v5348_v8 = vmax.f32 %v5206_v51, 0.0  ;;  %5719 = vmatprep.mubr.bf16.mxu1 %v12911_v34 }
 0x7fe   : > { %v5346_v15 = vmax.f32 %v5198_v21, 0.0 }
 0x7ff   : > { %v14283_v43 = vpack.c.bf16 %v5348_v8, %v5347_v47 }
 0x800   : > { %v14285_v16 = vpack.c.bf16 %v5346_v15, %v5345_v62 }
 0x804   : > { %5720 = vmatmul.mubr.bf16.gmra.mrb[132].mxu1 %v14205_v0 }
 0x805   : > { %5729 = vmatprep.mubr.bf16.mxu1 %v12911_v34 }
 0x808   : > { %v12029_v45 = vpop.f32.mrb[124].mxu0 }
 0x809   : > { %v5219_v20 = vadd.f32 %v12029_v45, %v14112_v10  ;;  %v5210_v22 = vpop.f32.mrb[125].mxu0 }
 0x80a   : > { %v5211_v5 = vadd.f32 %v14112_v10, %v5210_v22  ;;  %v12030_v23 = vpop.f32.mrb[126].mxu0 }
 0x80b   : > { %v5222_v53 = vadd.f32 %v12030_v23, %v14112_v10  ;;  %v5213_v49 = vpop.f32.mrb[127].mxu0  ;;  %v5351_v26 = vmax.f32 %v5219_v20, 0.0  ;;  %v17045_v20 = vlaneseq }
 0x80c   : > { %v5214_v7 = vadd.f32 %v14112_v10, %v5213_v49  ;;  %5730 = vmatmul.mubr.bf16.gmra.mrb[136].mxu1 %v14224_v46  ;;  %v5349_v0 = vmax.f32 %v5211_v5, 0.0  ;;  %v12490_v46 = vld [vmem:[%s17040_s8] sm:$0xff]  }
 0x80d   : > { %v5352_v39 = vmax.f32 %v5222_v53, 0.0  ;;  %5739 = vmatprep.mubr.bf16.mxu1 %v12911_v34  ;;  %12047 = vmatprep.subr.bf16.mxu1 %v12490_v46  ;;  %v5428_v22 = vshrl.u32 %v17045_v20, 7 }
 0x80e   : > { %v5350_v58 = vmax.f32 %v5214_v7, 0.0  ;;  %12048 = vmatpush3.bf16.msra.mxu1 %v12490_v46 }
 0x80f   : > { %v14295_v27 = vpack.c.bf16 %v5352_v39, %v5351_v26  ;;  %v5433_v49 = vsub.s32 1, %v5428_v22  ;;  %v5429_v39 = vsub.s32 0, %v5428_v22 }
 0x810   : > { %v14297_v59 = vpack.c.bf16 %v5350_v58, %v5349_v0 }
 0x814   : > { %5740 = vmatmul.mubr.bf16.gmra.mrb[140].mxu1 %v14222_v35 }
 0x815   : > { %5749 = vmatprep.mubr.bf16.mxu1 %v12911_v34 }
 0x818   : > { %v12033_v32 = vpop.f32.mrb[128].mxu0 }
 0x819   : > { %v5235_v2 = vadd.f32 %v12033_v32, %v14112_v10  ;;  %v5226_v33 = vpop.f32.mrb[129].mxu0 }
 0x81a   : > { %v5227_v30 = vadd.f32 %v14112_v10, %v5226_v33  ;;  %v12034_v38 = vpop.f32.mrb[130].mxu0 }
 0x81b   : > { %v5238_v40 = vadd.f32 %v12034_v38, %v14112_v10  ;;  %v5229_v41 = vpop.f32.mrb[131].mxu0  ;;  %v5355_v35 = vmax.f32 %v5235_v2, 0.0 }
 0x81c   : > { %v5230_v42 = vadd.f32 %v14112_v10, %v5229_v41  ;;  %5750 = vmatmul.mubr.bf16.gmra.mrb[144].mxu1 %v14235_v19  ;;  %v5353_v31 = vmax.f32 %v5227_v30, 0.0 }
 0x81d   : > { %v5356_v25 = vmax.f32 %v5238_v40, 0.0  ;;  %5759 = vmatprep.mubr.bf16.mxu1 %v12911_v34 }
 0x81e   : > { %v5354_v18 = vmax.f32 %v5230_v42, 0.0 }
 0x81f   : > { %v14310_v54 = vpack.c.bf16 %v5356_v25, %v5355_v35 }
 0x820   : > { %v14312_v29 = vpack.c.bf16 %v5354_v18, %v5353_v31 }
 0x824   : > { %5760 = vmatmul.mubr.bf16.gmra.mrb[148].mxu1 %v14233_v14 }
 0x825   : > { %5769 = vmatprep.mubr.bf16.mxu1 %v12911_v34 }
 0x828   : > { %v12037_v3 = vpop.f32.mrb[132].mxu0 }
 0x829   : > { %v5251_v55 = vadd.f32 %v12037_v3, %v14112_v10  ;;  %v5242_v50 = vpop.f32.mrb[133].mxu0 }
 0x82a   : > { %v5243_v19 = vadd.f32 %v14112_v10, %v5242_v50  ;;  %v12038_v9 = vpop.f32.mrb[134].mxu0 }
 0x82b   : > { %v5254_v48 = vadd.f32 %v12038_v9, %v14112_v10  ;;  %v5245_v24 = vpop.f32.mrb[135].mxu0  ;;  %v5359_v1 = vmax.f32 %v5251_v55, 0.0 }
 0x82c   : > { %v5246_v44 = vadd.f32 %v14112_v10, %v5245_v24  ;;  %5770 = vmatmul.mubr.bf16.gmra.mrb[152].mxu1 %v14248_v6  ;;  %v5357_v14 = vmax.f32 %v5243_v19, 0.0  ;;  %v12483_v19 = vld [vmem:[%s13005_s17 + $0x14] ss:$8 sps:$4 sm:$0xff]  }
 0x82d   : > { %v5360_v57 = vmax.f32 %v5254_v48, 0.0  ;;  %5779 = vmatprep.mubr.bf16.mxu1 %v12911_v34 }
 0x82e   : > { %v5358_v12 = vmax.f32 %v5246_v44, 0.0 }
 0x82f   : > { %v14322_v37 = vpack.c.bf16 %v5360_v57, %v5359_v1 }
 0x830   : > { %v14324_v13 = vpack.c.bf16 %v5358_v12, %v5357_v14 }
 0x834   : > { %5780 = vmatmul.mubr.bf16.gmra.mrb[156].mxu1 %v14246_v28 }
 0x835   : > { %5789 = vmatprep.mubr.bf16.mxu1 %v12911_v34 }
 0x838   : > { %v12041_v52 = vpop.f32.mrb[136].mxu0 }
 0x839   : > { %v5267_v63 = vadd.f32 %v12041_v52, %v14112_v10  ;;  %v5258_v56 = vpop.f32.mrb[137].mxu0 }
 0x83a   : > { %v5259_v6 = vadd.f32 %v14112_v10, %v5258_v56  ;;  %v12042_v4 = vpop.f32.mrb[138].mxu0 }
 0x83b   : > { %v5270_v51 = vadd.f32 %v12042_v4, %v14112_v10  ;;  %v5261_v36 = vpop.f32.mrb[139].mxu0  ;;  %v5363_v47 = vmax.f32 %v5267_v63, 0.0 }
 0x83c   : > { %v5262_v21 = vadd.f32 %v14112_v10, %v5261_v36  ;;  %5790 = vmatmul.mubr.bf16.gmra.mrb[160].mxu1 %v14261_v11  ;;  %v5361_v28 = vmax.f32 %v5259_v6, 0.0  ;;  %v12496_v11 = vld [vmem:[%s17040_s8 + $0x8] sm:$0xff]  }
 0x83d   : > { %v5364_v8 = vmax.f32 %v5270_v51, 0.0  ;;  %5799 = vmatprep.mubr.bf16.mxu1 %v12911_v34  ;;  %12049 = vmatprep.subr.bf16.mxu1 %v12496_v11  ;;  %v12484_v36 = vld [vmem:[%s13005_s17 + $0x24] ss:$8 sps:$4 sm:$0xff]  }
 0x83e   : > { %v5362_v62 = vmax.f32 %v5262_v21, 0.0  ;;  %12050 = vmatpush3.bf16.msra.mxu1 %v12496_v11 }
 0x83f   : > { %v14334_v15 = vpack.c.bf16 %v5364_v8, %v5363_v47 }
 0x840   : > { %v14336_v45 = vpack.c.bf16 %v5362_v62, %v5361_v28 }
 0x844   : > { %5800 = vmatmul.mubr.bf16.gmra.mrb[164].mxu1 %v14259_v17  ;;  %v5425_v17 = vld [vmem:[%s17039_s7] sm:$0x3] }
 0x845   : > { %5809 = vmatprep.mubr.bf16.mxu1 %v12911_v34  ;;  %v14352_v46 = vrot.slane %v5425_v17, %v5433_v49  ;;  %v14355_v40 = vrot.slane %v5425_v17, %v5429_v39 }
 0x848   : > { %v12045_v5 = vpop.f32.mrb[140].mxu0 }
 0x849   : > { %v5283_v23 = vadd.f32 %v12045_v5, %v14112_v10  ;;  %v5274_v53 = vpop.f32.mrb[141].mxu0 }
 0x84a   : > { %v5275_v7 = vadd.f32 %v14112_v10, %v5274_v53  ;;  %v12046_v26 = vpop.f32.mrb[142].mxu0 }
 0x84b   : > { %v5286_v0 = vadd.f32 %v12046_v26, %v14112_v10  ;;  %v5277_v58 = vpop.f32.mrb[143].mxu0  ;;  %v5367_v2 = vmax.f32 %v5283_v23, 0.0 }
 0x84c   : > { %v5278_v32 = vadd.f32 %v14112_v10, %v5277_v58  ;;  %5810 = vmatmul.mubr.bf16.gmra.mrb[168].mxu1 %v14273_v61  ;;  %v5365_v30 = vmax.f32 %v5275_v7, 0.0 }
 0x84d   : > { %v5368_v33 = vmax.f32 %v5286_v0, 0.0  ;;  %5819 = vmatprep.mubr.bf16.mxu1 %v12911_v34  ;;  %v12485_v0 = vld [vmem:[%s13005_s17 + $0x34] ss:$8 sps:$4 sm:$0xff]  }
 0x84e   : > { %v5366_v38 = vmax.f32 %v5278_v32, 0.0 }
 0x84f   : > { %v14357_v41 = vpack.c.bf16 %v5368_v33, %v5367_v2  ;;  %v5551_v42 = vpop.f32.mrb[64].mxu1 }
 0x850   : > { %v14359_v35 = vpack.c.bf16 %v5366_v38, %v5365_v30  ;;  %v5553_v25 = vpop.f32.mrb[65].mxu1  ;;  %v5552_v31 = vadd.f32 %v5551_v42, %v14355_v40 }
 0x851   : > { %v14362_v10 = vadd.f32 %v5553_v25, %v14352_v46  ;;  %v5555_v61 = vpop.f32.mrb[66].mxu1 }
 0x852   : > { %v5556_v18 = vadd.f32 %v5555_v61, %v14355_v40  ;;  %v5557_v3 = vpop.f32.mrb[67].mxu1 }
 0x853   : > { %v6030_v55 = vand.u32 2147483647, %v14362_v10  ;;  %v14368_v50 = vadd.f32 %v5557_v3, %v14352_v46 }
 0x854   : > { %v7150_v9 = vpack.c.bf16 %v5556_v18, %v5552_v31  ;;  %5820 = vmatmul.mubr.bf16.gmra.mrb[172].mxu1 %v14271_v60 }
 0x855   : > { %v6110_v48 = vsub.f32 0.0, %v6030_v55  ;;  %v6031_v24 = vand.u32 2147483647, %v14368_v50  ;;  %5829 = vmatprep.mubr.bf16.mxu1 %v12911_v34  ;;  %v5951_v3 = vmax.f32 %v14368_v50, 0.0 }
 0x856   : > { %7759 = vmatmul.mubr.bf16.vlgmr.msra.gmra.mrb[144].mxu0 %v7150_v9 }
 0x857   : > { %v6190_v44 = vmul.f32 1.442695, %v6110_v48  ;;  %v6111_v1 = vsub.f32 0.0, %v6031_v24  ;;  %v5561_v57 = vpop.f32.mrb[68].mxu1  ;;  %7766 = vmatprep.mubr.bf16.mxu0 %v12483_v19 }
 0x858   : > { %v5563_v14 = vpop.f32.mrb[69].mxu1  ;;  %v5562_v60 = vadd.f32 %v5561_v57, %v14355_v40 }
 0x859   : > { %12538 = vpow2.f32 %v6190_v44  ;;  %v6192_v12 = vmul.f32 1.442695, %v6111_v1  ;;  %v14375_v52 = vadd.f32 %v5563_v14, %v14352_v46  ;;  %v5565_v63 = vpop.f32.mrb[70].mxu1 }
 0x85a   : > { %v5566_v56 = vadd.f32 %v5565_v63, %v14355_v40  ;;  %v5567_v6 = vpop.f32.mrb[71].mxu1 }
 0x85b   : > { %12540 = vpow2.f32 %v6192_v12  ;;  %v6032_v4 = vand.u32 2147483647, %v14375_v52  ;;  %v14381_v51 = vadd.f32 %v5567_v6, %v14352_v46  ;;  %v5952_v57 = vmax.f32 %v14375_v52, 0.0 }
 0x85c   : > { %v7151_v21 = vpack.c.bf16 %v5566_v56, %v5562_v60  ;;  %5830 = vmatmul.mubr.bf16.gmra.mrb[176].mxu1 %v14285_v16  ;;  %v12486_v60 = vld [vmem:[%s13005_s17 + $0x44] ss:$8 sps:$4 sm:$0xff]  }
 0x85d   : > { %v6112_v47 = vsub.f32 0.0, %v6032_v4  ;;  %v6033_v8 = vand.u32 2147483647, %v14381_v51  ;;  %5839 = vmatprep.mubr.bf16.mxu1 %v12911_v34 }
 0x85e   : > { %7767 = vmatmul.mubr.bf16.gmra.mrb[148].mxu0 %v7151_v21 }
 0x85f   : > { %v6194_v28 = vmul.f32 1.442695, %v6112_v47  ;;  %v6113_v62 = vsub.f32 0.0, %v6033_v8  ;;  %v5571_v22 = vpop.f32.mrb[72].mxu1  ;;  %7774 = vmatprep.mubr.bf16.mxu0 %v12484_v36  ;;  %v5953_v8 = vmax.f32 %v14381_v51, 0.0 }
 0x860   : > { %v5573_v11 = vpop.f32.mrb[73].mxu1  ;;  %v5572_v16 = vadd.f32 %v5571_v22, %v14355_v40 }
 0x861   : > { %12542 = vpow2.f32 %v6194_v28  ;;  %v6196_v5 = vmul.f32 1.442695, %v6113_v62  ;;  %v14388_v23 = vadd.f32 %v5573_v11, %v14352_v46  ;;  %v5575_v53 = vpop.f32.mrb[74].mxu1 }
 0x862   : > { %v5576_v49 = vadd.f32 %v5575_v53, %v14355_v40  ;;  %v5577_v7 = vpop.f32.mrb[75].mxu1 }
 0x863   : > { %v14392_v26 = vpop.eup %12538  ;;  %12544 = vpow2.f32 %v6196_v5  ;;  %v6034_v17 = vand.u32 2147483647, %v14388_v23  ;;  %v14396_v39 = vadd.f32 %v5577_v7, %v14352_v46  ;;  %v5954_v28 = vmax.f32 %v14388_v23, 0.0 }
 0x864   : > { %v7152_v58 = vpack.c.bf16 %v5576_v49, %v5572_v16  ;;  %5840 = vmatmul.mubr.bf16.gmra.mrb[180].mxu1 %v14283_v43  ;;  %v6350_v32 = vadd.f32 1.0, %v14392_v26  ;;  %v5950_v43 = vmax.f32 %v14362_v10, 0.0  ;;  %v6353_v18 = vmul.f32 -0.5, %v14392_v26 }
 0x865   : > { %v14401_v2 = vpop.eup %12540  ;;  %v6114_v33 = vsub.f32 0.0, %v6034_v17  ;;  %v6035_v30 = vand.u32 2147483647, %v14396_v39  ;;  %5849 = vmatprep.mubr.bf16.mxu1 %v12911_v34  ;;  %v6356_v1 = vand.u32 2147483647, %v14392_v26  ;;  %v5955_v11 = vmax.f32 %v14396_v39, 0.0 }
 0x866   : > { %7775 = vmatmul.mubr.bf16.gmra.mrb[152].mxu0 %v7152_v58  ;;  %12546 = vlog2.f32 %v6350_v32  ;;  %v6359_v38 = vadd.f32 1.0, %v14401_v2  ;;  %v6362_v56 = vmul.f32 -0.5, %v14401_v2  ;;  %v6354_v4 = vadd.f32 1.0, %v6353_v18 }
 0x867   : > { %v6198_v42 = vmul.f32 1.442695, %v6114_v33  ;;  %v6115_v25 = vsub.f32 0.0, %v6035_v30  ;;  %v5581_v61 = vpop.f32.mrb[76].mxu1  ;;  %7782 = vmatprep.mubr.bf16.mxu0 %v12485_v0  ;;  %v6365_v36 = vand.u32 2147483647, %v14401_v2 }
 0x868   : > { %v5583_v31 = vpop.f32.mrb[77].mxu1  ;;  %12548 = vlog2.f32 %v6359_v38  ;;  %v5582_v48 = vadd.f32 %v5581_v61, %v14355_v40  ;;  %v6363_v7 = vadd.f32 1.0, %v6362_v56  ;;  %v6355_v32 = vmul.f32 %v14392_v26, %v6354_v4  ;;  %v12487_v56 = vld [vmem:[%s13005_s17 + $0x54] ss:$8 sps:$4 sm:$0xff]  }
 0x869   : > { %12550 = vpow2.f32 %v6198_v42  ;;  %v6200_v55 = vmul.f32 1.442695, %v6115_v25  ;;  %v14410_v19 = vadd.f32 %v5583_v31, %v14352_v46  ;;  %v5585_v9 = vpop.f32.mrb[78].mxu1  ;;  %vm14438_vm0 = vcmp.lt.f32.partialorder %v6356_v1, 0.0004427343 }
 0x86a   : > { %v5586_v24 = vadd.f32 %v5585_v9, %v14355_v40  ;;  %v5587_v44 = vpop.f32.mrb[79].mxu1  ;;  %vm14442_vm1 = vcmp.lt.f32.partialorder %v6365_v36, 0.0004427343 }
 0x86b   : > { %v14416_v14 = vpop.eup %12542  ;;  %12552 = vpow2.f32 %v6200_v55  ;;  %v6036_v12 = vand.u32 2147483647, %v14410_v19  ;;  %v14420_v63 = vadd.f32 %v5587_v44, %v14352_v46 }
 0x86c   : > { %v7153_v6 = vpack.c.bf16 %v5586_v24, %v5582_v48  ;;  %5850 = vmatmul.mubr.bf16.gmra.mrb[184].mxu1 %v14297_v59  ;;  %v6368_v21 = vadd.f32 1.0, %v14416_v14  ;;  %v6371_v59 = vmul.f32 -0.5, %v14416_v14  ;;  %v6374_v48 = vand.u32 2147483647, %v14416_v14  ;;  %v12502_v24 = vld [vmem:[%s17040_s8 + $0x10] sm:$0xff]  }
 0x86d   : > { %v14427_v47 = vpop.eup %12544  ;;  %v6116_v62 = vsub.f32 0.0, %v6036_v12  ;;  %v6037_v22 = vand.u32 2147483647, %v14420_v63  ;;  %5859 = vmatprep.mubr.bf16.mxu1 %v12911_v34  ;;  %12051 = vmatprep.subr.bf16.mxu1 %v12502_v24 }
 0x86e   : > { %7783 = vmatmul.mubr.bf16.gmra.mrb[156].mxu0 %v7153_v6  ;;  %12554 = vlog2.f32 %v6368_v21  ;;  %v6377_v5 = vadd.f32 1.0, %v14427_v47  ;;  %v6380_v17 = vmul.f32 -0.5, %v14427_v47  ;;  %v6372_v9 = vadd.f32 1.0, %v6371_v59  ;;  %12052 = vmatpush3.bf16.msra.mxu1 %v12502_v24 }
 0x86f   : > { %v6202_v53 = vmul.f32 1.442695, %v6116_v62  ;;  %v6117_v16 = vsub.f32 0.0, %v6037_v22  ;;  %v5591_v49 = vpop.f32.mrb[80].mxu1  ;;  %7790 = vmatprep.mubr.bf16.mxu0 %v12486_v60  ;;  %v6364_v60 = vmul.f32 %v14401_v2, %v6363_v7  ;;  %v6383_v62 = vand.u32 2147483647, %v14427_v47 }
 0x870   : > { %v12547_v0 = vpop.eup %12546  ;;  %v5593_v58 = vpop.f32.mrb[81].mxu1  ;;  %12556 = vlog2.f32 %v6377_v5  ;;  %v5592_v26 = vadd.f32 %v5591_v49, %v14355_v40  ;;  %v6381_v6 = vadd.f32 1.0, %v6380_v17  ;;  %vm14476_vm2 = vcmp.lt.f32.partialorder %v6374_v48, 0.0004427343 }
 0x871   : > { %12558 = vpow2.f32 %v6202_v53  ;;  %v6204_v38 = vmul.f32 1.442695, %v6117_v16  ;;  %v14447_v42 = vadd.f32 %v5593_v58, %v14352_v46  ;;  %v5595_v25 = vpop.f32.mrb[82].mxu1  ;;  %v6352_v61 = vmul.f32 0.6931472, %v12547_v0 }
 0x872   : > { %v12549_v31 = vpop.eup %12548  ;;  %v5596_v18 = vadd.f32 %v5595_v25, %v14355_v40  ;;  %v5597_v55 = vpop.f32.mrb[83].mxu1  ;;  %v6373_v53 = vmul.f32 %v14416_v14, %v6372_v9  ;;  %v6382_v33 = vmul.f32 %v14427_v47, %v6381_v6  ;;  %vm14486_vm3 = vcmp.lt.f32.partialorder %v6383_v62, 0.0004427343 }
 0x873   : > { %v14455_v44 = vpop.eup %12550  ;;  %v6038_v1 = vand.u32 2147483647, %v14447_v42  ;;  %v14459_v12 = vadd.f32 %v5597_v55, %v14352_v46  ;;  %v6358_v36 = vsel %vm14438_vm0, %v6355_v32, %v6352_v61  ;;  %v6361_v21 = vmul.f32 0.6931472, %v12549_v31  ;;  %v12488_v55 = vld [vmem:[%s13005_s17 + $0x64] ss:$8 sps:$4 sm:$0xff]  }
 0x874   : > { %v7154_v4 = vpack.c.bf16 %v5596_v18, %v5592_v26  ;;  %5860 = vmatmul.mubr.bf16.gmra.mrb[188].mxu1 %v14295_v27  ;;  %12560 = vpow2.f32 %v6204_v38  ;;  %v7070_v2 = vadd.f32 %v6358_v36, %v5950_v43  ;;  %v6386_v49 = vadd.f32 1.0, %v14455_v44 }
 0x875   : > { %v14467_v22 = vpop.eup %12552  ;;  %v6118_v59 = vsub.f32 0.0, %v6038_v1  ;;  %v6039_v5 = vand.u32 2147483647, %v14459_v12  ;;  %5869 = vmatprep.mubr.bf16.mxu1 %v12911_v34  ;;  %v6367_v27 = vsel %vm14442_vm1, %v6364_v60, %v6361_v21  ;;  %v6389_v43 = vmul.f32 -0.5, %v14455_v44 }
 0x876   : > { %7791 = vmatmul.mubr.bf16.gmra.mrb[160].mxu0 %v7154_v4  ;;  %9895 = vperm.xlu0 %12328, %v7070_v2   ;;  %v6395_v0 = vadd.f32 1.0, %v14467_v22  ;;  %v7071_v14 = vadd.f32 %v6367_v27, %v5951_v3  ;;  %12562 = vlog2.f32 %v6386_v49  ;;  %v6398_v47 = vmul.f32 -0.5, %v14467_v22 }
 0x877   : > { %v6206_v7 = vmul.f32 1.442695, %v6118_v59  ;;  %v6119_v17 = vsub.f32 0.0, %v6039_v5  ;;  %v5601_v10 = vpop.f32.mrb[84].mxu1  ;;  %7798 = vmatprep.mubr.bf16.mxu0 %v12487_v56  ;;  %v6390_v1 = vadd.f32 1.0, %v6389_v43  ;;  %v5956_v5 = vmax.f32 %v14410_v19, 0.0 }
 0x878   : > { %v12555_v58 = vpop.eup %12554  ;;  %v5603_v32 = vpop.f32.mrb[85].mxu1  ;;  %v5602_v18 = vadd.f32 %v5601_v10, %v14355_v40  ;;  %v6392_v60 = vand.u32 2147483647, %v14455_v44  ;;  %v6399_v59 = vadd.f32 1.0, %v6398_v47  ;;  %v5957_v2 = vmax.f32 %v14420_v63, 0.0 }
 0x879   : > { %12564 = vpow2.f32 %v6206_v7  ;;  %v6208_v38 = vmul.f32 1.442695, %v6119_v17  ;;  %v14491_v25 = vadd.f32 %v5603_v32, %v14352_v46  ;;  %v5605_v61 = vpop.f32.mrb[86].mxu1  ;;  %v6370_v31 = vmul.f32 0.6931472, %v12555_v58 }
 0x87a   : > { %v12557_v26 = vpop.eup %12556  ;;  %v5606_v50 = vadd.f32 %v5605_v61, %v14355_v40  ;;  %v5607_v3 = vpop.f32.mrb[87].mxu1  ;;  %12566 = vlog2.f32 %v6395_v0  ;;  %9900 = vperm.xlu0 %12328, %v7071_v14   ;;  %v5958_v16 = vmax.f32 %v14447_v42, 0.0  ;;  %v5959_v52 = vmax.f32 %v14459_v12, 0.0 }
 0x87b   : > { %v14497_v9 = vpop.eup %12558  ;;  %v6040_v48 = vand.u32 2147483647, %v14491_v25  ;;  %v14501_v24 = vadd.f32 %v5607_v3, %v14352_v46  ;;  %12568 = vpow2.f32 %v6208_v38  ;;  %v6376_v6 = vsel %vm14476_vm2, %v6373_v53, %v6370_v31 }
 0x87c   : > { %v7155_v56 = vpack.c.bf16 %v5606_v50, %v5602_v18  ;;  %5870 = vmatmul.mubr.bf16.gmra.mrb[192].mxu1 %v14312_v29  ;;  %v6379_v4 = vmul.f32 0.6931472, %v12557_v26  ;;  %v7072_v62 = vadd.f32 %v6376_v6, %v5952_v57  ;;  %v6404_v27 = vadd.f32 1.0, %v14497_v9 }
 0x87d   : > { %v6120_v36 = vsub.f32 0.0, %v6040_v48  ;;  %v6041_v21 = vand.u32 2147483647, %v14501_v24  ;;  %5879 = vmatprep.mubr.bf16.mxu1 %v12911_v34  ;;  %v5960_v17 = vmax.f32 %v14491_v25, 0.0  ;;  %v6391_v43 = vmul.f32 %v14455_v44, %v6390_v1 }
 0x87e   : > { %7799 = vmatmul.mubr.bf16.gmra.mrb[164].mxu0 %v7155_v56  ;;  %v6385_v29 = vsel %vm14486_vm3, %v6382_v33, %v6379_v4  ;;  %v14516_v53 = vpop.eup %12560  ;;  %9905 = vperm.xlu1 %12329, %v7072_v62   ;;  %vm14522_vm4 = vcmp.lt.f32.partialorder %v6392_v60, 0.0004427343  ;;  %12570 = vlog2.f32 %v6404_v27  ;;  %v6400_v33 = vmul.f32 %v14467_v22, %v6399_v59 }
 0x87f   : > { %v6210_v57 = vmul.f32 1.442695, %v6120_v36  ;;  %v6121_v49 = vsub.f32 0.0, %v6041_v21  ;;  %v5611_v7 = vpop.f32.mrb[88].mxu1  ;;  %7806 = vmatprep.mubr.bf16.mxu0 %v12488_v55  ;;  %v7073_v14 = vadd.f32 %v6385_v29, %v5953_v8  ;;  %v6401_v30 = vand.u32 2147483647, %v14467_v22 }
 0x880   : > { %v5613_v10 = vpop.f32.mrb[89].mxu1  ;;  %v12563_v38 = vpop.eup %12562  ;;  %v5612_v44 = vadd.f32 %v5611_v7, %v14355_v40  ;;  %v6407_v26 = vmul.f32 -0.5, %v14497_v9  ;;  %v6413_v18 = vadd.f32 1.0, %v14516_v53  ;;  %v12489_v22 = vld [vmem:[%s13005_s17 + $0x74] ss:$8 sps:$4 sm:$0xff]   ;;  %v6416_v4 = vmul.f32 -0.5, %v14516_v53 }
 0x881   : > { %v14527_v58 = vadd.f32 %v5613_v10, %v14352_v46  ;;  %v5615_v32 = vpop.f32.mrb[90].mxu1  ;;  %12572 = vpow2.f32 %v6210_v57  ;;  %v6212_v51 = vmul.f32 1.442695, %v6121_v49  ;;  %v6388_v48 = vmul.f32 0.6931472, %v12563_v38 }
 0x882   : > { %v5616_v61 = vadd.f32 %v5615_v32, %v14355_v40  ;;  %v5617_v31 = vpop.f32.mrb[91].mxu1  ;;  %9910 = vperm.xlu1 %12329, %v7073_v14   ;;  %v6410_v1 = vand.u32 2147483647, %v14497_v9  ;;  %12574 = vlog2.f32 %v6413_v18  ;;  %vm6402_vm5 = vcmp.lt.f32.partialorder %v6401_v30, 0.0004427343 }
 0x883   : > { %v14537_v50 = vpop.eup %12564  ;;  %v6042_v8 = vand.u32 2147483647, %v14527_v58  ;;  %v14541_v3 = vadd.f32 %v5617_v31, %v14352_v46  ;;  %v6394_v21 = vsel %vm14522_vm4, %v6391_v43, %v6388_v48  ;;  %12576 = vpow2.f32 %v6212_v51  ;;  %v12491_v18 = vld [vmem:[%s13005_s17 + $0x84] ss:$8 sps:$4 sm:$0xff]  }
 0x884   : > { %v12567_v55 = vpop.eup %12566  ;;  %v7156_v47 = vpack.c.bf16 %v5616_v61, %v5612_v44  ;;  %5880 = vmatmul.mubr.bf16.gmra.mrb[196].mxu1 %v14310_v54  ;;  %v6408_v54 = vadd.f32 1.0, %v6407_v26  ;;  %v6422_v62 = vadd.f32 1.0, %v14537_v50  ;;  %v7074_v29 = vadd.f32 %v6394_v21, %v5954_v28 }
 0x885   : > { %v6122_v60 = vsub.f32 0.0, %v6042_v8  ;;  %v6043_v56 = vand.u32 2147483647, %v14541_v3  ;;  %v6397_v6 = vmul.f32 0.6931472, %v12567_v55  ;;  %5889 = vmatprep.mubr.bf16.mxu1 %v12911_v34  ;;  %v14549_v36 = vpop.eup %12568  ;;  %v5961_v49 = vmax.f32 %v14501_v24, 0.0 }
 0x886   : > { %7807 = vmatmul.mubr.bf16.gmra.mrb[168].mxu0 %v7156_v47  ;;  %vm14559_vm6 = vcmp.lt.f32.partialorder %v6410_v1, 0.0004427343  ;;  %v5962_v32 = vmax.f32 %v14527_v58, 0.0  ;;  %9915 = vperm.xlu0 %12328, %v7074_v29   ;;  %v6417_v14 = vadd.f32 1.0, %v6416_v4  ;;  %12578 = vlog2.f32 %v6422_v62 }
 0x887   : > { %v6214_v59 = vmul.f32 1.442695, %v6122_v60  ;;  %v5621_v27 = vpop.f32.mrb[92].mxu1  ;;  %v6403_v57 = vsel %vm6402_vm5, %v6400_v33, %v6397_v6  ;;  %7814 = vmatprep.mubr.bf16.mxu0 %v12489_v22  ;;  %v6123_v7 = vsub.f32 0.0, %v6043_v56  ;;  %v6419_v33 = vand.u32 2147483647, %v14516_v53 }
 0x888   : > { %v5623_v10 = vpop.f32.mrb[93].mxu1  ;;  %v7075_v43 = vadd.f32 %v6403_v57, %v5955_v11  ;;  %v12571_v30 = vpop.eup %12570  ;;  %v5622_v38 = vadd.f32 %v5621_v27, %v14355_v40  ;;  %v6431_v44 = vadd.f32 1.0, %v14549_v36  ;;  %v6409_v26 = vmul.f32 %v14497_v9, %v6408_v54 }
 0x889   : > { %v14565_v23 = vadd.f32 %v5623_v10, %v14352_v46  ;;  %v5625_v28 = vpop.f32.mrb[94].mxu1  ;;  %12580 = vpow2.f32 %v6214_v59  ;;  %v6216_v51 = vmul.f32 1.442695, %v6123_v7  ;;  %v6406_v22 = vmul.f32 0.6931472, %v12571_v30 }
 0x88a   : > { %9920 = vperm.xlu1 %12329, %v7075_v43   ;;  %v5626_v39 = vadd.f32 %v5625_v28, %v14355_v40  ;;  %v5627_v11 = vpop.f32.mrb[95].mxu1  ;;  %v6425_v55 = vmul.f32 -0.5, %v14537_v50  ;;  %v5963_v48 = vmax.f32 %v14541_v3, 0.0  ;;  %12582 = vlog2.f32 %v6431_v44 }
 0x88b   : > { %v6044_v61 = vand.u32 2147483647, %v14565_v23  ;;  %v14573_v31 = vadd.f32 %v5627_v11, %v14352_v46  ;;  %v14579_v47 = vpop.eup %12572  ;;  %v6412_v9 = vsel %vm14559_vm6, %v6409_v26, %v6406_v22  ;;  %vm14587_vm7 = vcmp.lt.f32.partialorder %v6419_v33, 0.0004427343 }
 0x88c   : > { %v7157_v8 = vpack.c.bf16 %v5626_v39, %v5622_v38  ;;  %5890 = vmatmul.mubr.bf16.gmra.mrb[200].mxu1 %v14324_v13  ;;  %v12575_v56 = vpop.eup %12574  ;;  %v6418_v13 = vmul.f32 %v14516_v53, %v6417_v14  ;;  %v6428_v4 = vand.u32 2147483647, %v14537_v50  ;;  %v7076_v54 = vadd.f32 %v6412_v9, %v5956_v5  ;;  %v12492_v39 = vld [vmem:[%s13005_s17 + $0x94] ss:$8 sps:$4 sm:$0xff]  }
 0x88d   : > { %v6124_v1 = vsub.f32 0.0, %v6044_v61  ;;  %v6045_v60 = vand.u32 2147483647, %v14573_v31  ;;  %5899 = vmatprep.mubr.bf16.mxu1 %v12911_v34  ;;  %v6415_v59 = vmul.f32 0.6931472, %v12575_v56  ;;  %v6434_v29 = vmul.f32 -0.5, %v14549_v36  ;;  %v14596_v10 = vpop.eup %12576 }
 0x88e   : > { %7815 = vmatmul.mubr.bf16.gmra.mrb[172].mxu0 %v7157_v8  ;;  %12584 = vpow2.f32 %v6216_v51  ;;  %v6426_v53 = vadd.f32 1.0, %v6425_v55  ;;  %v6440_v7 = vadd.f32 1.0, %v14579_v47  ;;  %v5964_v43 = vmax.f32 %v14565_v23, 0.0  ;;  %9925 = vperm.xlu0 %12328, %v7076_v54  }
 0x88f   : > { %v6125_v21 = vsub.f32 0.0, %v6045_v60  ;;  %v5631_v62 = vpop.f32.mrb[96].mxu1  ;;  %7822 = vmatprep.mubr.bf16.mxu0 %v12491_v18  ;;  %v6218_v27 = vmul.f32 1.442695, %v6124_v1  ;;  %v6421_v5 = vsel %vm14587_vm7, %v6418_v13, %v6415_v59  ;;  %v6437_v28 = vand.u32 2147483647, %v14549_v36 }
 0x890   : > { %v5633_v57 = vpop.f32.mrb[97].mxu1  ;;  %v5632_v14 = vadd.f32 %v5631_v62, %v14355_v40  ;;  %v7077_v33 = vadd.f32 %v6421_v5, %v5957_v2  ;;  %12586 = vlog2.f32 %v6440_v7  ;;  %v6435_v26 = vadd.f32 1.0, %v6434_v29  ;;  %v12579_v18 = vpop.eup %12578 }
 0x891   : > { %v14600_v19 = vadd.f32 %v5633_v57, %v14352_v46  ;;  %v5635_v0 = vpop.f32.mrb[98].mxu1  ;;  %v6220_v11 = vmul.f32 1.442695, %v6125_v21  ;;  %12588 = vpow2.f32 %v6218_v27  ;;  %v6427_v63 = vmul.f32 %v14537_v50, %v6426_v53 }
 0x892   : > { %v5636_v30 = vadd.f32 %v5635_v0, %v14355_v40  ;;  %v5637_v38 = vpop.f32.mrb[99].mxu1  ;;  %9930 = vperm.xlu1 %12329, %v7077_v33   ;;  %v6449_v2 = vadd.f32 1.0, %v14596_v10  ;;  %v6424_v1 = vmul.f32 0.6931472, %v12579_v18  ;;  %v6443_v60 = vmul.f32 -0.5, %v14579_v47 }
 0x893   : > { %v6046_v44 = vand.u32 2147483647, %v14600_v19  ;;  %v14612_v61 = vadd.f32 %v5637_v38, %v14352_v46  ;;  %v14617_v8 = vpop.eup %12580  ;;  %v5965_v56 = vmax.f32 %v14573_v31, 0.0  ;;  %vm6429_vm8 = vcmp.lt.f32.partialorder %v6428_v4, 0.0004427343 }
 0x894   : > { %v7158_v51 = vpack.c.bf16 %v5636_v30, %v5632_v14  ;;  %5900 = vmatmul.mubr.bf16.gmra.mrb[204].mxu1 %v14322_v37  ;;  %vm14623_vm9 = vcmp.lt.f32.partialorder %v6437_v28, 0.0004427343  ;;  %12590 = vlog2.f32 %v6449_v2  ;;  %v12583_v50 = vpop.eup %12582  ;;  %v6430_v13 = vsel %vm6429_vm8, %v6427_v63, %v6424_v1  ;;  %v12493_v14 = vld [vmem:[%s13005_s17 + $0xa4] ss:$8 sps:$4 sm:$0xff]  }
 0x895   : > { %v6126_v22 = vsub.f32 0.0, %v6046_v44  ;;  %v6047_v55 = vand.u32 2147483647, %v14612_v61  ;;  %5909 = vmatprep.mubr.bf16.mxu1 %v12911_v34  ;;  %12592 = vpow2.f32 %v6220_v11  ;;  %v6436_v21 = vmul.f32 %v14549_v36, %v6435_v26 }
 0x896   : > { %7823 = vmatmul.mubr.bf16.gmra.mrb[176].mxu0 %v7158_v51  ;;  %v5966_v54 = vmax.f32 %v14600_v19, 0.0  ;;  %v7078_v4 = vadd.f32 %v6430_v13, %v5958_v16  ;;  %v6433_v59 = vmul.f32 0.6931472, %v12583_v50  ;;  %v6452_v29 = vmul.f32 -0.5, %v14596_v10 }
 0x897   : > { %v6127_v9 = vsub.f32 0.0, %v6047_v55  ;;  %v5641_v6 = vpop.f32.mrb[100].mxu1  ;;  %7830 = vmatprep.mubr.bf16.mxu0 %v12492_v39  ;;  %v6222_v27 = vmul.f32 1.442695, %v6126_v22  ;;  %v6444_v7 = vadd.f32 1.0, %v6443_v60  ;;  %v6458_v33 = vadd.f32 1.0, %v14617_v8 }
 0x898   : > { %v5643_v62 = vpop.f32.mrb[101].mxu1  ;;  %v6446_v5 = vand.u32 2147483647, %v14579_v47  ;;  %v14636_v36 = vpop.eup %12584  ;;  %9935 = vperm.xlu0 %12328, %v7078_v4   ;;  %v5642_v0 = vadd.f32 %v5641_v6, %v14355_v40  ;;  %v6439_v42 = vsel %vm14623_vm9, %v6436_v21, %v6433_v59  ;;  %v6455_v11 = vand.u32 2147483647, %v14596_v10 }
 0x899   : > { %v14633_v57 = vadd.f32 %v5643_v62, %v14352_v46  ;;  %v5645_v53 = vpop.f32.mrb[102].mxu1  ;;  %v6224_v30 = vmul.f32 1.442695, %v6127_v9  ;;  %v7079_v39 = vadd.f32 %v6439_v42, %v5959_v52  ;;  %v6453_v51 = vadd.f32 1.0, %v6452_v29  ;;  %v12508_v62 = vld [vmem:[%s17040_s8 + $0x18] sm:$0xff]  }
 0x89a   : > { %v5646_v16 = vadd.f32 %v5645_v53, %v14355_v40  ;;  %v5647_v28 = vpop.f32.mrb[103].mxu1  ;;  %v12587_v44 = vpop.eup %12586  ;;  %12594 = vlog2.f32 %v6458_v33  ;;  %v6445_v2 = vmul.f32 %v14579_v47, %v6444_v7  ;;  %vm14653_vm10 = vcmp.lt.f32.partialorder %v6446_v5, 0.0004427343  ;;  %12053 = vmatprep.subr.bf16.mxu1 %v12508_v62 }
 0x89b   : > { %v6048_v38 = vand.u32 2147483647, %v14633_v57  ;;  %v14649_v18 = vadd.f32 %v5647_v28, %v14352_v46  ;;  %12596 = vpow2.f32 %v6222_v27  ;;  %9940 = vperm.xlu1 %12329, %v7079_v39   ;;  %v6442_v63 = vmul.f32 0.6931472, %v12587_v44  ;;  %v14658_v12 = vpop.eup %12588  ;;  %12054 = vmatpush3.bf16.msra.mxu1 %v12508_v62 }
 0x89c   : > { %v7159_v26 = vpack.c.bf16 %v5646_v16, %v5642_v0  ;;  %5910 = vmatmul.mubr.bf16.gmra.mrb[208].mxu1 %v14336_v45  ;;  %v6461_v45 = vmul.f32 -0.5, %v14617_v8  ;;  %v6467_v1 = vadd.f32 1.0, %v14636_v36  ;;  %v5967_v60 = vmax.f32 %v14612_v61, 0.0 }
 0x89d   : > { %5919 = vmatprep.mubr.bf16.mxu1 %v12911_v34  ;;  %v6128_v52 = vsub.f32 0.0, %v6048_v38  ;;  %v6049_v55 = vand.u32 2147483647, %v14649_v18  ;;  %12598 = vpow2.f32 %v6224_v30  ;;  %v6448_v47 = vsel %vm14653_vm10, %v6445_v2, %v6442_v63  ;;  %v12494_v30 = vld [vmem:[%s13005_s17 + $0xb4] ss:$8 sps:$4 sm:$0xff]  }
 0x89e   : > { %7831 = vmatmul.mubr.bf16.gmra.mrb[180].mxu0 %v7159_v26  ;;  %vm14666_vm11 = vcmp.lt.f32.partialorder %v6455_v11, 0.0004427343  ;;  %v12591_v9 = vpop.eup %12590  ;;  %v7080_v6 = vadd.f32 %v6448_v47, %v5960_v17  ;;  %v6454_v4 = vmul.f32 %v14596_v10, %v6453_v51  ;;  %12600 = vlog2.f32 %v6467_v1 }
 0x89f   : > { %v5651_v37 = vpop.f32.mrb[104].mxu1  ;;  %7838 = vmatprep.mubr.bf16.mxu0 %v12493_v14  ;;  %v6129_v13 = vsub.f32 0.0, %v6049_v55  ;;  %v14676_v59 = vpop.eup %12592  ;;  %v6451_v27 = vmul.f32 0.6931472, %v12591_v9  ;;  %v6464_v7 = vand.u32 2147483647, %v14617_v8 }
 0x8a0   : > { %v5653_v21 = vpop.f32.mrb[105].mxu1  ;;  %v6470_v25 = vmul.f32 -0.5, %v14636_v36  ;;  %v6226_v17 = vmul.f32 1.442695, %v6128_v52  ;;  %9945 = vperm.xlu0 %12328, %v7080_v6   ;;  %v5652_v10 = vadd.f32 %v5651_v37, %v14355_v40  ;;  %v6462_v42 = vadd.f32 1.0, %v6461_v45 }
 0x8a1   : > { %v14679_v29 = vadd.f32 %v5653_v21, %v14352_v46  ;;  %v5655_v53 = vpop.f32.mrb[106].mxu1  ;;  %v6228_v16 = vmul.f32 1.442695, %v6129_v13  ;;  %v6457_v14 = vsel %vm14666_vm11, %v6454_v4, %v6451_v27  ;;  %v5968_v38 = vmax.f32 %v14633_v57, 0.0 }
 0x8a2   : > { %v5656_v5 = vadd.f32 %v5655_v53, %v14355_v40  ;;  %v5657_v0 = vpop.f32.mrb[107].mxu1  ;;  %v7081_v39 = vadd.f32 %v6457_v14, %v5961_v49  ;;  %v6473_v44 = vand.u32 2147483647, %v14636_v36  ;;  %v5969_v26 = vmax.f32 %v14649_v18, 0.0 }
 0x8a3   : > { %v6050_v28 = vand.u32 2147483647, %v14679_v29  ;;  %v14689_v33 = vadd.f32 %v5657_v0, %v14352_v46  ;;  %vm14699_vm12 = vcmp.lt.f32.partialorder %v6464_v7, 0.0004427343  ;;  %12602 = vpow2.f32 %v6226_v17 }
 0x8a4   : > { %v7160_v11 = vpack.c.bf16 %v5656_v5, %v5652_v10  ;;  %5920 = vmatmul.mubr.bf16.gmra.mrb[212].mxu1 %v14334_v15  ;;  %v12595_v22 = vpop.eup %12594  ;;  %9950 = vperm.xlu1 %12329, %v7081_v39   ;;  %v6463_v24 = vmul.f32 %v14617_v8, %v6462_v42  ;;  %v6476_v15 = vadd.f32 1.0, %v14658_v12  ;;  %v6485_v49 = vadd.f32 1.0, %v14676_v59  ;;  %v12495_v5 = vld [vmem:[%s13005_s17 + $0xc4] ss:$8 sps:$4 sm:$0xff]  }
 0x8a5   : > { %v6130_v51 = vsub.f32 0.0, %v6050_v28  ;;  %v6051_v63 = vand.u32 2147483647, %v14689_v33  ;;  %5929 = vmatprep.mubr.bf16.mxu1 %v12911_v34  ;;  %v14707_v52 = vpop.eup %12596  ;;  %12604 = vpow2.f32 %v6228_v16  ;;  %v6460_v55 = vmul.f32 0.6931472, %v12595_v22 }
 0x8a6   : > { %7839 = vmatmul.mubr.bf16.gmra.mrb[184].mxu0 %v7160_v11  ;;  %v6471_v1 = vadd.f32 1.0, %v6470_v25  ;;  %v6479_v47 = vmul.f32 -0.5, %v14658_v12  ;;  %v5970_v37 = vmax.f32 %v14679_v29, 0.0  ;;  %vm14711_vm13 = vcmp.lt.f32.partialorder %v6473_v44, 0.0004427343 }
 0x8a7   : > { %v5661_v45 = vpop.f32.mrb[108].mxu1  ;;  %7846 = vmatprep.mubr.bf16.mxu0 %v12494_v30  ;;  %v6131_v50 = vsub.f32 0.0, %v6051_v63  ;;  %12606 = vlog2.f32 %v6476_v15  ;;  %v14715_v13 = vpop.eup %12598  ;;  %v6230_v6 = vmul.f32 1.442695, %v6130_v51  ;;  %v6466_v21 = vsel %vm14699_vm12, %v6463_v24, %v6460_v55 }
 0x8a8   : > { %v5663_v9 = vpop.f32.mrb[109].mxu1  ;;  %v6482_v27 = vand.u32 2147483647, %v14658_v12  ;;  %v12601_v53 = vpop.eup %12600  ;;  %v7082_v7 = vadd.f32 %v6466_v21, %v5962_v32  ;;  %v5662_v25 = vadd.f32 %v5661_v45, %v14355_v40  ;;  %12608 = vlog2.f32 %v6485_v49 }
 0x8a9   : > { %v14720_v4 = vadd.f32 %v5663_v9, %v14352_v46  ;;  %v5665_v62 = vpop.f32.mrb[110].mxu1  ;;  %v6469_v42 = vmul.f32 0.6931472, %v12601_v53  ;;  %v6472_v16 = vmul.f32 %v14636_v36, %v6471_v1  ;;  %v6480_v28 = vadd.f32 1.0, %v6479_v47 }
 0x8aa   : > { %v5666_v17 = vadd.f32 %v5665_v62, %v14355_v40  ;;  %v5667_v10 = vpop.f32.mrb[111].mxu1  ;;  %v6232_v14 = vmul.f32 1.442695, %v6131_v50  ;;  %9955 = vperm.xlu0 %12328, %v7082_v7   ;;  %v6488_v58 = vmul.f32 -0.5, %v14676_v59  ;;  %v6491_v44 = vand.u32 2147483647, %v14676_v59 }
 0x8ab   : > { %v6052_v0 = vand.u32 2147483647, %v14720_v4  ;;  %v14731_v39 = vadd.f32 %v5667_v10, %v14352_v46  ;;  %v6475_v11 = vsel %vm14711_vm13, %v6472_v16, %v6469_v42  ;;  %v6494_v36 = vadd.f32 1.0, %v14707_v52  ;;  %v12497_v7 = vld [vmem:[%s13005_s17 + $0xd4] ss:$8 sps:$4 sm:$0xff]  }
 0x8ac   : > { %v7161_v30 = vpack.c.bf16 %v5666_v17, %v5662_v25  ;;  %5930 = vmatmul.mubr.bf16.gmra.mrb[216].mxu1 %v14359_v35  ;;  %12610 = vpow2.f32 %v6230_v6  ;;  %v7083_v51 = vadd.f32 %v6475_v11, %v5963_v48  ;;  %v6497_v35 = vmul.f32 -0.5, %v14707_v52 }
 0x8ad   : > { %v6132_v32 = vsub.f32 0.0, %v6052_v0  ;;  %5939 = vmatprep.mubr.bf16.mxu1 %v12911_v34  ;;  %v6053_v63 = vand.u32 2147483647, %v14731_v39  ;;  %v5971_v2 = vmax.f32 %v14689_v33, 0.0  ;;  %v6481_v22 = vmul.f32 %v14658_v12, %v6480_v28  ;;  %v14750_v15 = vpop.eup %12602 }
 0x8ae   : > { %7847 = vmatmul.mubr.bf16.gmra.mrb[188].mxu0 %v7161_v30  ;;  %vm14746_vm14 = vcmp.lt.f32.partialorder %v6482_v27, 0.0004427343  ;;  %12612 = vlog2.f32 %v6494_v36  ;;  %v5972_v3 = vmax.f32 %v14720_v4, 0.0  ;;  %9960 = vperm.xlu1 %12329, %v7083_v51   ;;  %v6489_v55 = vadd.f32 1.0, %v6488_v58 }
 0x8af   : > { %v5671_v34 = vpop.f32.mrb[112].mxu1  ;;  %7854 = vmatprep.mubr.bf16.mxu0 %v12495_v5  ;;  %12614 = vpow2.f32 %v6232_v14  ;;  %v6133_v48 = vsub.f32 0.0, %v6053_v63  ;;  %v14753_v45 = vpop.eup %12604  ;;  %v6234_v12 = vmul.f32 1.442695, %v6132_v32  ;;  %v5973_v1 = vmax.f32 %v14731_v39, 0.0 }
 0x8b0   : > { %v5673_v49 = vpop.f32.mrb[113].mxu1  ;;  %vm14759_vm15 = vcmp.lt.f32.partialorder %v6491_v44, 0.0004427343  ;;  %v5672_v6 = vadd.f32 %v5671_v34, %v14355_v40  ;;  %v6498_v27 = vadd.f32 1.0, %v6497_v35  ;;  %v6503_v53 = vadd.f32 1.0, %v14715_v13 }
 0x8b1   : > { %v14757_v47 = vadd.f32 %v5673_v49, %v14352_v46  ;;  %v5675_v9 = vpop.f32.mrb[114].mxu1  ;;  %v12607_v8 = vpop.eup %12606  ;;  %v6500_v5 = vand.u32 2147483647, %v14707_v52  ;;  %v6236_v42 = vmul.f32 1.442695, %v6133_v48  ;;  %v6490_v16 = vmul.f32 %v14676_v59, %v6489_v55 }
 0x8b2   : > { %v5676_v21 = vadd.f32 %v5675_v9, %v14355_v40  ;;  %v5677_v62 = vpop.f32.mrb[115].mxu1  ;;  %v6478_v25 = vmul.f32 0.6931472, %v12607_v8  ;;  %v12609_v0 = vpop.eup %12608  ;;  %v6506_v14 = vmul.f32 -0.5, %v14715_v13  ;;  %12616 = vpow2.f32 %v6234_v12 }
 0x8b3   : > { %v6054_v17 = vand.u32 2147483647, %v14757_v47  ;;  %v14769_v10 = vadd.f32 %v5677_v62, %v14352_v46  ;;  %v6487_v32 = vmul.f32 0.6931472, %v12609_v0  ;;  %v6499_v36 = vmul.f32 %v14707_v52, %v6498_v27 }
 0x8b4   : > { %v7162_v28 = vpack.c.bf16 %v5676_v21, %v5672_v6  ;;  %5940 = vmatmul.mubr.bf16.gmra.mrb[220].mxu1 %v14357_v41  ;;  %v6484_v30 = vsel %vm14746_vm14, %v6481_v22, %v6478_v25  ;;  %12618 = vlog2.f32 %v6503_v53  ;;  %v5974_v59 = vmax.f32 %v14757_v47, 0.0  ;;  %v12498_v21 = vld [vmem:[%s13005_s17 + $0xe4] ss:$8 sps:$4 sm:$0xff]  }
 0x8b5   : > { %v6134_v58 = vsub.f32 0.0, %v6054_v17  ;;  %v7084_v11 = vadd.f32 %v6484_v30, %v5964_v43  ;;  %v6055_v44 = vand.u32 2147483647, %v14769_v10  ;;  %v6493_v41 = vsel %vm14759_vm15, %v6490_v16, %v6487_v32 }
 0x8b6   : > { %7855 = vmatmul.mubr.bf16.gmra.mrb[192].mxu0 %v7162_v28  ;;  %vm14784_vm0 = vcmp.lt.f32.partialorder %v6500_v5, 0.0004427343  ;;  %v6512_v23 = vadd.f32 1.0, %v14750_v15  ;;  %v14789_v43 = vpop.eup %12610  ;;  %12620 = vpow2.f32 %v6236_v42  ;;  %v7085_v52 = vadd.f32 %v6493_v41, %v5965_v56 }
 0x8b7   : > { %v5681_v63 = vpop.f32.mrb[116].mxu1  ;;  %7862 = vmatprep.mubr.bf16.mxu0 %v12497_v7  ;;  %9965 = vperm.xlu0 %12328, %v7084_v11   ;;  %v6135_v35 = vsub.f32 0.0, %v6055_v44  ;;  %v6507_v24 = vadd.f32 1.0, %v6506_v14  ;;  %v6238_v48 = vmul.f32 1.442695, %v6134_v58  ;;  %v6521_v6 = vadd.f32 1.0, %v14753_v45 }
 0x8b8   : > { %v5683_v22 = vpop.f32.mrb[117].mxu1  ;;  %v12613_v34 = vpop.eup %12612  ;;  %v5682_v49 = vadd.f32 %v5681_v63, %v14355_v40  ;;  %v6509_v12 = vand.u32 2147483647, %v14715_v13  ;;  %9970 = vperm.xlu1 %12329, %v7085_v52   ;;  %12622 = vlog2.f32 %v6512_v23  ;;  %v6515_v53 = vmul.f32 -0.5, %v14750_v15 }
 0x8b9   : > { %v14795_v55 = vadd.f32 %v5683_v22, %v14352_v46  ;;  %v5685_v50 = vpop.f32.mrb[118].mxu1  ;;  %v14798_v9 = vpop.eup %12614  ;;  %v6496_v8 = vmul.f32 0.6931472, %v12613_v34  ;;  %v6518_v7 = vand.u32 2147483647, %v14750_v15  ;;  %v5975_v25 = vmax.f32 %v14769_v10, 0.0 }
 0x8ba   : > { %v5686_v31 = vadd.f32 %v5685_v50, %v14355_v40  ;;  %v5687_v56 = vpop.f32.mrb[119].mxu1  ;;  %v6240_v17 = vmul.f32 1.442695, %v6135_v35  ;;  %12624 = vpow2.f32 %v6238_v48  ;;  %v6508_v14 = vmul.f32 %v14715_v13, %v6507_v24 }
 0x8bb   : > { %v6056_v62 = vand.u32 2147483647, %v14795_v55  ;;  %v14805_v27 = vadd.f32 %v5687_v56, %v14352_v46  ;;  %v6502_v5 = vsel %vm14784_vm0, %v6499_v36, %v6496_v8  ;;  %vm14816_vm1 = vcmp.lt.f32.partialorder %v6509_v12, 0.0004427343  ;;  %v12513_v56 = vld [vmem:[%s17040_s8 + $0x20] sm:$0xff]  }
 0x8bc   : > { %v7163_v0 = vpack.c.bf16 %v5686_v31, %v5682_v49  ;;  %v7086_v42 = vadd.f32 %v6502_v5, %v5966_v54  ;;  %12626 = vlog2.f32 %v6521_v6  ;;  %v6524_v58 = vmul.f32 -0.5, %v14753_v45  ;;  %v14821_v32 = vpop.eup %12616  ;;  %v12499_v31 = vld [vmem:[%s13005_s17 + $0xf4] ss:$8 sps:$4 sm:$0xff]   ;;  %12055 = vmatprep.subr.bf16.mxu1 %v12513_v56 }
 0x8bd   : > { %v6136_v16 = vsub.f32 0.0, %v6056_v62  ;;  %v6057_v28 = vand.u32 2147483647, %v14805_v27  ;;  %v5976_v11 = vmax.f32 %v14795_v55, 0.0  ;;  %v6516_v19 = vadd.f32 1.0, %v6515_v53  ;;  %12056 = vmatpush3.bf16.msra.mxu1 %v12513_v56 }
 0x8be   : > { %7863 = vmatmul.mubr.bf16.gmra.mrb[196].mxu0 %v7163_v0  ;;  %9975 = vperm.xlu0 %12328, %v7086_v42   ;;  %vm14824_vm2 = vcmp.lt.f32.partialorder %v6518_v7, 0.0004427343  ;;  %v6530_v13 = vadd.f32 1.0, %v14789_v43  ;;  %v12619_v36 = vpop.eup %12618  ;;  %12628 = vpow2.f32 %v6240_v17  ;;  %v5977_v41 = vmax.f32 %v14805_v27, 0.0  ;;  %v12515_v7 = vld [vmem:[%s17040_s8 + $0x28] sm:$0xff]  }
 0x8bf   : > { %v5691_v44 = vpop.f32.mrb[120].mxu1  ;;  %7870 = vmatprep.mubr.bf16.mxu0 %v12498_v21  ;;  %v6137_v51 = vsub.f32 0.0, %v6057_v28  ;;  %v6527_v23 = vand.u32 2147483647, %v14753_v45  ;;  %v6242_v52 = vmul.f32 1.442695, %v6136_v16  ;;  %v6517_v21 = vmul.f32 %v14750_v15, %v6516_v19  ;;  %12057 = vmatprep.subr.bf16.mxu1 %v12515_v7 }
 0x8c0   : > { %v5693_v63 = vpop.f32.mrb[121].mxu1  ;;  %v6505_v35 = vmul.f32 0.6931472, %v12619_v36  ;;  %v6533_v34 = vmul.f32 -0.5, %v14789_v43  ;;  %v14835_v48 = vpop.eup %12620  ;;  %v5692_v49 = vadd.f32 %v5691_v44, %v14355_v40  ;;  %v6525_v12 = vadd.f32 1.0, %v6524_v58 }
 0x8c1   : > { %v14832_v22 = vadd.f32 %v5693_v63, %v14352_v46  ;;  %v5695_v24 = vpop.f32.mrb[122].mxu1  ;;  %12630 = vlog2.f32 %v6530_v13  ;;  %v6536_v53 = vand.u32 2147483647, %v14789_v43  ;;  %v6244_v0 = vmul.f32 1.442695, %v6137_v51  ;;  %12058 = vmatpush3.bf16.msra.mxu1 %v12515_v7 }
 0x8c2   : > { %v5696_v50 = vadd.f32 %v5695_v24, %v14355_v40  ;;  %v5697_v8 = vpop.f32.mrb[123].mxu1  ;;  %v6511_v6 = vsel %vm14816_vm1, %v6508_v14, %v6505_v35  ;;  %v12623_v17 = vpop.eup %12622  ;;  %12632 = vpow2.f32 %v6242_v52  ;;  %vm14856_vm3 = vcmp.lt.f32.partialorder %v6527_v23, 0.0004427343 }
 0x8c3   : > { %v6058_v62 = vand.u32 2147483647, %v14832_v22  ;;  %v7087_v5 = vadd.f32 %v6511_v6, %v5967_v60  ;;  %v14854_v16 = vadd.f32 %v5697_v8, %v14352_v46  ;;  %v6514_v15 = vmul.f32 0.6931472, %v12623_v17 }
 0x8c4   : > { %v7164_v42 = vpack.c.bf16 %v5696_v50, %v5692_v49  ;;  %v6539_v14 = vadd.f32 1.0, %v14798_v9  ;;  %v6526_v61 = vmul.f32 %v14753_v45, %v6525_v12  ;;  %v6534_v58 = vadd.f32 1.0, %v6533_v34  ;;  %v14863_v19 = vpop.eup %12624 }
 0x8c5   : > { %9980 = vperm.xlu1 %12329, %v7087_v5   ;;  %v6138_v30 = vsub.f32 0.0, %v6058_v62  ;;  %v6059_v60 = vand.u32 2147483647, %v14854_v16  ;;  %v6520_v44 = vsel %vm14824_vm2, %v6517_v21, %v6514_v15  ;;  %v6542_v36 = vmul.f32 -0.5, %v14798_v9  ;;  %v12516_v15 = vld [vmem:[%s17040_s8 + $0x30] sm:$0xff]  }
 0x8c6   : > { %7871 = vmatmul.mubr.bf16.gmra.mrb[200].mxu0 %v7164_v42  ;;  %12634 = vlog2.f32 %v6539_v14  ;;  %v6548_v51 = vadd.f32 1.0, %v14821_v32  ;;  %v12627_v63 = vpop.eup %12626  ;;  %v7088_v45 = vadd.f32 %v6520_v44, %v5968_v38  ;;  %vm14871_vm4 = vcmp.lt.f32.partialorder %v6536_v53, 0.0004427343  ;;  %v12500_v53 = vld [vmem:[%s13005_s17 + $0x104] ss:$8 sps:$4 sm:$0xff]   ;;  %12059 = vmatprep.subr.bf16.mxu1 %v12516_v15 }
 0x8c7   : > { %v5701_v13 = vpop.f32.mrb[124].mxu1  ;;  %7878 = vmatprep.mubr.bf16.mxu0 %v12499_v31  ;;  %12636 = vpow2.f32 %v6244_v0  ;;  %v6139_v23 = vsub.f32 0.0, %v6059_v60  ;;  %v5978_v35 = vmax.f32 %v14832_v22, 0.0  ;;  %v6523_v24 = vmul.f32 0.6931472, %v12627_v63  ;;  %v12518_v60 = vld [vmem:[%s17040_s8 + $0x38] sm:$0xff]   ;;  %12060 = vmatpush3.bf16.msra.mxu1 %v12516_v15 }
 0x8c8   : > { %v5703_v54 = vpop.f32.mrb[125].mxu1  ;;  %v6545_v49 = vand.u32 2147483647, %v14798_v9  ;;  %v14880_v50 = vpop.eup %12628  ;;  %9985 = vperm.xlu0 %12328, %v7088_v45   ;;  %v6246_v57 = vmul.f32 1.442695, %v6138_v30  ;;  %v5702_v38 = vadd.f32 %v5701_v13, %v14355_v40  ;;  %12638 = vlog2.f32 %v6548_v51  ;;  %12061 = vmatprep.subr.bf16.mxu1 %v12518_v60 }
 0x8c9   : > { %v14877_v34 = vadd.f32 %v5703_v54, %v14352_v46  ;;  %v5705_v12 = vpop.f32.mrb[126].mxu1  ;;  %v6529_v56 = vsel %vm14856_vm3, %v6526_v61, %v6523_v24  ;;  %v6543_v21 = vadd.f32 1.0, %v6542_v36  ;;  %v6248_v5 = vmul.f32 1.442695, %v6139_v23 }
 0x8ca   : > { %v5706_v8 = vadd.f32 %v5705_v12, %v14355_v40  ;;  %v5707_v31 = vpop.f32.mrb[127].mxu1  ;;  %v7089_v17 = vadd.f32 %v6529_v56, %v5969_v26  ;;  %v6551_v42 = vmul.f32 -0.5, %v14821_v32  ;;  %v6535_v14 = vmul.f32 %v14789_v43, %v6534_v58 }
 0x8cb   : > { %v6060_v6 = vand.u32 2147483647, %v14877_v34  ;;  %v14888_v62 = vadd.f32 %v5707_v31, %v14352_v46  ;;  %v12631_v7 = vpop.eup %12630  ;;  %12640 = vpow2.f32 %v6246_v57  ;;  %v5979_v18 = vmax.f32 %v14854_v16, 0.0  ;;  %12062 = vmatpush3.bf16.msra.mxu1 %v12518_v60 }
 0x8cc   : > { %v7165_v0 = vpack.c.bf16 %v5706_v8, %v5702_v38  ;;  %v6532_v28 = vmul.f32 0.6931472, %v12631_v7  ;;  %9990 = vperm.xlu1 %12329, %v7089_v17   ;;  %vm14903_vm5 = vcmp.lt.f32.partialorder %v6545_v49, 0.0004427343  ;;  %v6557_v44 = vadd.f32 1.0, %v14835_v48  ;;  %v14908_v13 = vpop.eup %12632 }
 0x8cd   : > { %v6140_v30 = vsub.f32 0.0, %v6060_v6  ;;  %v6061_v61 = vand.u32 2147483647, %v14888_v62  ;;  %v6544_v58 = vmul.f32 %v14798_v9, %v6543_v21  ;;  %v6552_v51 = vadd.f32 1.0, %v6551_v42  ;;  %v12501_v6 = vld [vmem:[%s13005_s17 + $0x114] ss:$8 sps:$4 sm:$0xff]  }
 0x8ce   : > { %7879 = vmatmul.mubr.bf16.gmra.mrb[204].mxu0 %v7165_v0  ;;  %v6538_v43 = vsel %vm14871_vm4, %v6535_v14, %v6532_v28  ;;  %12642 = vpow2.f32 %v6248_v5  ;;  %v5980_v23 = vmax.f32 %v14877_v34, 0.0  ;;  %v5981_v54 = vmax.f32 %v14888_v62, 0.0 }
 0x8cf   : > { %v6141_v36 = vsub.f32 0.0, %v6061_v61  ;;  %v5711_v63 = vpop.f32.mrb[128].mxu1  ;;  %7886 = vmatprep.mubr.bf16.mxu0 %v12500_v53  ;;  %v7090_v45 = vadd.f32 %v6538_v43, %v5970_v37  ;;  %v6250_v49 = vmul.f32 1.442695, %v6140_v30  ;;  %v6554_v9 = vand.u32 2147483647, %v14821_v32 }
 0x8d0   : > { %v5713_v24 = vpop.f32.mrb[129].mxu1  ;;  %v12635_v52 = vpop.eup %12634  ;;  %v6560_v57 = vmul.f32 -0.5, %v14835_v48  ;;  %v5712_v8 = vadd.f32 %v5711_v63, %v14355_v40  ;;  %12644 = vlog2.f32 %v6557_v44  ;;  %v6553_v53 = vmul.f32 %v14821_v32, %v6552_v51 }
 0x8d1   : > { %v14919_v12 = vadd.f32 %v5713_v24, %v14352_v46  ;;  %v5715_v38 = vpop.f32.mrb[130].mxu1  ;;  %v14922_v29 = vpop.eup %12636  ;;  %9995 = vperm.xlu0 %12328, %v7090_v45   ;;  %v6541_v37 = vmul.f32 0.6931472, %v12635_v52  ;;  %v6252_v21 = vmul.f32 1.442695, %v6141_v36  ;;  %v6566_v28 = vadd.f32 1.0, %v14863_v19 }
 0x8d2   : > { %v5716_v31 = vadd.f32 %v5715_v38, %v14355_v40  ;;  %v5717_v56 = vpop.f32.mrb[131].mxu1  ;;  %v6563_v17 = vand.u32 2147483647, %v14835_v48  ;;  %v12639_v5 = vpop.eup %12638  ;;  %12646 = vpow2.f32 %v6250_v49  ;;  %vm6555_vm6 = vcmp.lt.f32.partialorder %v6554_v9, 0.0004427343 }
 0x8d3   : > { %v6062_v7 = vand.u32 2147483647, %v14919_v12  ;;  %v6547_v0 = vsel %vm14903_vm5, %v6544_v58, %v6541_v37  ;;  %v14933_v15 = vadd.f32 %v5717_v56, %v14352_v46  ;;  %v6550_v32 = vmul.f32 0.6931472, %v12639_v5 }
 0x8d4   : > { %v7166_v42 = vpack.c.bf16 %v5716_v31, %v5712_v8  ;;  %v7091_v14 = vadd.f32 %v6547_v0, %v5971_v2  ;;  %v6561_v61 = vadd.f32 1.0, %v6560_v57  ;;  %12648 = vlog2.f32 %v6566_v28 }
 0x8d5   : > { %v6142_v30 = vsub.f32 0.0, %v6062_v7  ;;  %v6063_v44 = vand.u32 2147483647, %v14933_v15  ;;  %v6556_v26 = vsel %vm6555_vm6, %v6553_v53, %v6550_v32  ;;  %vm14939_vm7 = vcmp.lt.f32.partialorder %v6563_v17, 0.0004427343  ;;  %v14945_v2 = vpop.eup %12640 }
 0x8d6   : > { %7887 = vmatmul.mubr.bf16.gmra.mrb[208].mxu0 %v7166_v42  ;;  %10000 = vperm.xlu1 %12329, %v7091_v14   ;;  %v6569_v60 = vmul.f32 -0.5, %v14863_v19  ;;  %v6575_v33 = vadd.f32 1.0, %v14880_v50  ;;  %12650 = vpow2.f32 %v6252_v21  ;;  %v7092_v36 = vadd.f32 %v6556_v26, %v5972_v3  ;;  %v12503_v53 = vld [vmem:[%s13005_s17 + $0x124] ss:$8 sps:$4 sm:$0xff]  }
 0x8d7   : > { %v5721_v58 = vpop.f32.mrb[132].mxu1  ;;  %7894 = vmatprep.mubr.bf16.mxu0 %v12501_v6  ;;  %v5982_v51 = vmax.f32 %v14919_v12, 0.0  ;;  %v6143_v63 = vsub.f32 0.0, %v6063_v44  ;;  %v6254_v24 = vmul.f32 1.442695, %v6142_v30  ;;  %v6578_v9 = vmul.f32 -0.5, %v14880_v50 }
 0x8d8   : > { %v5723_v45 = vpop.f32.mrb[133].mxu1  ;;  %v6572_v52 = vand.u32 2147483647, %v14863_v19  ;;  %v14955_v38 = vpop.eup %12642  ;;  %10005 = vperm.xlu0 %12328, %v7092_v36   ;;  %v6562_v4 = vmul.f32 %v14835_v48, %v6561_v61  ;;  %v5722_v3 = vadd.f32 %v5721_v58, %v14355_v40  ;;  %12652 = vlog2.f32 %v6575_v33 }
 0x8d9   : > { %v14952_v49 = vadd.f32 %v5723_v45, %v14352_v46  ;;  %v5725_v57 = vpop.f32.mrb[134].mxu1  ;;  %v5983_v31 = vmax.f32 %v14933_v15, 0.0  ;;  %v6570_v56 = vadd.f32 1.0, %v6569_v60  ;;  %v6256_v17 = vmul.f32 1.442695, %v6143_v63 }
 0x8da   : > { %v5726_v37 = vadd.f32 %v5725_v57, %v14355_v40  ;;  %v5727_v8 = vpop.f32.mrb[135].mxu1  ;;  %v12645_v7 = vpop.eup %12644  ;;  %v6581_v5 = vand.u32 2147483647, %v14880_v50  ;;  %v6584_v0 = vadd.f32 1.0, %v14908_v13  ;;  %12654 = vpow2.f32 %v6254_v24 }
 0x8db   : > { %v6064_v6 = vand.u32 2147483647, %v14952_v49  ;;  %v14963_v21 = vadd.f32 %v5727_v8, %v14352_v46  ;;  %v6559_v42 = vmul.f32 0.6931472, %v12645_v7  ;;  %vm14968_vm8 = vcmp.lt.f32.partialorder %v6572_v52, 0.0004427343 }
 0x8dc   : > { %v7167_v48 = vpack.c.bf16 %v5726_v37, %v5722_v3  ;;  %v6579_v14 = vadd.f32 1.0, %v6578_v9  ;;  %12656 = vlog2.f32 %v6584_v0  ;;  %v6587_v61 = vmul.f32 -0.5, %v14908_v13  ;;  %v14974_v44 = vpop.eup %12646 }
 0x8dd   : > { %v6144_v32 = vsub.f32 0.0, %v6064_v6  ;;  %v6065_v30 = vand.u32 2147483647, %v14963_v21  ;;  %v6565_v26 = vsel %vm14939_vm7, %v6562_v4, %v6559_v42  ;;  %v6571_v60 = vmul.f32 %v14863_v19, %v6570_v56 }
 0x8de   : > { %7895 = vmatmul.mubr.bf16.gmra.mrb[212].mxu0 %v7167_v48  ;;  %v5984_v58 = vmax.f32 %v14952_v49, 0.0  ;;  %v6593_v36 = vadd.f32 1.0, %v14922_v29  ;;  %v12649_v63 = vpop.eup %12648  ;;  %v7093_v45 = vadd.f32 %v6565_v26, %v5973_v1  ;;  %12658 = vpow2.f32 %v6256_v17 }
 0x8df   : > { %v5731_v33 = vpop.f32.mrb[136].mxu1  ;;  %7902 = vmatprep.mubr.bf16.mxu0 %v12503_v53  ;;  %vm14983_vm9 = vcmp.lt.f32.partialorder %v6581_v5, 0.0004427343  ;;  %v6145_v52 = vsub.f32 0.0, %v6065_v30  ;;  %v6568_v9 = vmul.f32 0.6931472, %v12649_v63  ;;  %v6580_v1 = vmul.f32 %v14880_v50, %v6579_v14 }
 0x8e0   : > { %v5733_v43 = vpop.f32.mrb[137].mxu1  ;;  %v6590_v19 = vand.u32 2147483647, %v14908_v13  ;;  %v6596_v4 = vmul.f32 -0.5, %v14922_v29  ;;  %v14992_v37 = vpop.eup %12650  ;;  %10010 = vperm.xlu1 %12329, %v7093_v45   ;;  %v6258_v39 = vmul.f32 1.442695, %v6144_v32  ;;  %12660 = vlog2.f32 %v6593_v36 }
 0x8e1   : > { %v14989_v57 = vadd.f32 %v5733_v43, %v14352_v46  ;;  %v5735_v3 = vpop.f32.mrb[138].mxu1  ;;  %v6588_v8 = vadd.f32 1.0, %v6587_v61  ;;  %v6574_v6 = vsel %vm14968_vm8, %v6571_v60, %v6568_v9  ;;  %v5985_v53 = vmax.f32 %v14963_v21, 0.0  ;;  %v12504_v14 = vld [vmem:[%s13005_s17 + $0x134] ss:$8 sps:$4 sm:$0xff]  }
 0x8e2   : > { %v5737_v56 = vpop.f32.mrb[139].mxu1  ;;  %v6260_v7 = vmul.f32 1.442695, %v6145_v52  ;;  %v12653_v5 = vpop.eup %12652  ;;  %v7094_v48 = vadd.f32 %v6574_v6, %v5974_v59  ;;  %v5732_v0 = vadd.f32 %v5731_v33, %v14355_v40  ;;  %v6599_v42 = vand.u32 2147483647, %v14922_v29 }
 0x8e3   : > { %v6066_v17 = vand.u32 2147483647, %v14989_v57  ;;  %v5736_v50 = vadd.f32 %v5735_v3, %v14355_v40  ;;  %v6577_v32 = vmul.f32 0.6931472, %v12653_v5  ;;  %vm15005_vm10 = vcmp.lt.f32.partialorder %v6590_v19, 0.0004427343 }
 0x8e4   : > { %v6597_v30 = vadd.f32 1.0, %v6596_v4  ;;  %v15010_v61 = vadd.f32 %v5737_v56, %v14352_v46  ;;  %10015 = vperm.xlu0 %12328, %v7094_v48   ;;  %12662 = vpow2.f32 %v6258_v39  ;;  %v6589_v47 = vmul.f32 %v14908_v13, %v6588_v8  ;;  %v15014_v60 = vpop.eup %12654 }
 0x8e5   : > { %v7168_v59 = vpack.c.bf16 %v5736_v50, %v5732_v0  ;;  %v6602_v26 = vadd.f32 1.0, %v14945_v2  ;;  %v6583_v33 = vsel %vm14983_vm9, %v6580_v1, %v6577_v32  ;;  %12664 = vpow2.f32 %v6260_v7  ;;  %v12505_v32 = vld [vmem:[%s13005_s17 + $0x144] ss:$8 sps:$4 sm:$0xff]  }
 0x8e6   : > { %v6146_v36 = vsub.f32 0.0, %v6066_v17  ;;  %v6067_v63 = vand.u32 2147483647, %v15010_v61  ;;  %v12657_v52 = vpop.eup %12656  ;;  %v7095_v43 = vadd.f32 %v6583_v33, %v5975_v25  ;;  %v5986_v9 = vmax.f32 %v14989_v57, 0.0 }
 0x8e7   : > { %v5741_v45 = vpop.f32.mrb[140].mxu1  ;;  %vm15022_vm11 = vcmp.lt.f32.partialorder %v6599_v42, 0.0004427343  ;;  %12666 = vlog2.f32 %v6602_v26  ;;  %7903 = vmatmul.mubr.bf16.gmra.mrb[216].mxu0 %v7168_v59  ;;  %v6586_v24 = vmul.f32 0.6931472, %v12657_v52  ;;  %v6598_v4 = vmul.f32 %v14922_v29, %v6597_v30 }
 0x8e8   : > { %v5743_v19 = vpop.f32.mrb[141].mxu1  ;;  %v6147_v3 = vsub.f32 0.0, %v6067_v63  ;;  %v6605_v39 = vmul.f32 -0.5, %v14945_v2  ;;  %7910 = vmatprep.mubr.bf16.mxu0 %v12504_v14  ;;  %v15028_v8 = vpop.eup %12658  ;;  %10020 = vperm.xlu1 %12329, %v7095_v43   ;;  %v6608_v10 = vand.u32 2147483647, %v14945_v2  ;;  %v6611_v56 = vadd.f32 1.0, %v14955_v38 }
 0x8e9   : > { %v5745_v1 = vpop.f32.mrb[142].mxu1  ;;  %v15032_v25 = vadd.f32 %v5743_v19, %v14352_v46  ;;  %v6614_v6 = vmul.f32 -0.5, %v14955_v38  ;;  %v6592_v29 = vsel %vm15005_vm10, %v6589_v47, %v6586_v24  ;;  %v6262_v17 = vmul.f32 1.442695, %v6146_v36  ;;  %v12506_v63 = vld [vmem:[%s13005_s17 + $0x154] ss:$8 sps:$4 sm:$0xff]  }
 0x8ea   : > { %v5747_v7 = vpop.f32.mrb[143].mxu1  ;;  %v5742_v5 = vadd.f32 %v5741_v45, %v14355_v40  ;;  %v5746_v48 = vadd.f32 %v5745_v1, %v14355_v40  ;;  %v12661_v0 = vpop.eup %12660  ;;  %v7096_v42 = vadd.f32 %v6592_v29, %v5976_v11  ;;  %v6264_v50 = vmul.f32 1.442695, %v6147_v3 }
 0x8eb   : > { %v6068_v14 = vand.u32 2147483647, %v15032_v25  ;;  %12668 = vlog2.f32 %v6611_v56  ;;  %v6595_v30 = vmul.f32 0.6931472, %v12661_v0  ;;  %v5987_v59 = vmax.f32 %v15010_v61, 0.0 }
 0x8ec   : > { %v6606_v26 = vadd.f32 1.0, %v6605_v39  ;;  %v6617_v28 = vand.u32 2147483647, %v14955_v38  ;;  %10025 = vperm.xlu0 %12328, %v7096_v42   ;;  %v6615_v47 = vadd.f32 1.0, %v6614_v6  ;;  %v7169_v33 = vpack.c.bf16 %v5746_v48, %v5742_v5 }
 0x8ed   : > { %v15047_v36 = vadd.f32 %v5747_v7, %v14352_v46  ;;  %v6620_v55 = vadd.f32 1.0, %v14974_v44  ;;  %12670 = vpow2.f32 %v6262_v17  ;;  %v6601_v11 = vsel %vm15022_vm11, %v6598_v4, %v6595_v30 }
 0x8ee   : > { %vm15052_vm12 = vcmp.lt.f32.partialorder %v6608_v10, 0.0004427343  ;;  %v6148_v45 = vsub.f32 0.0, %v6068_v14  ;;  %v15056_v43 = vpop.eup %12662  ;;  %v7097_v19 = vadd.f32 %v6601_v11, %v5977_v41  ;;  %12672 = vpow2.f32 %v6264_v50 }
 0x8ef   : > { %v5751_v52 = vpop.f32.mrb[144].mxu1  ;;  %v6069_v24 = vand.u32 2147483647, %v15047_v36  ;;  %v6623_v3 = vmul.f32 -0.5, %v14974_v44  ;;  %7911 = vmatmul.mubr.bf16.gmra.mrb[220].mxu0 %v7169_v33  ;;  %v15062_v13 = vpop.eup %12664  ;;  %v6607_v4 = vmul.f32 %v14945_v2, %v6606_v26  ;;  %v5988_v1 = vmax.f32 %v15032_v25, 0.0 }
 0x8f0   : > { %v5753_v39 = vpop.f32.mrb[145].mxu1  ;;  %12674 = vlog2.f32 %v6620_v55  ;;  %v6626_v10 = vand.u32 2147483647, %v14974_v44  ;;  %7918 = vmatprep.mubr.bf16.mxu0 %v12505_v32  ;;  %10030 = vperm.xlu1 %12329, %v7097_v19   ;;  %v6616_v41 = vmul.f32 %v14955_v38, %v6615_v47  ;;  %vm15068_vm13 = vcmp.lt.f32.partialorder %v6617_v28, 0.0004427343 }
 0x8f1   : > { %v5755_v56 = vpop.f32.mrb[146].mxu1  ;;  %v12667_v27 = vpop.eup %12666  ;;  %v15073_v7 = vadd.f32 %v5753_v39, %v14352_v46  ;;  %v6629_v2 = vadd.f32 1.0, %v14992_v37  ;;  %v6266_v5 = vmul.f32 1.442695, %v6148_v45  ;;  %v5989_v48 = vmax.f32 %v15047_v36, 0.0 }
 0x8f2   : > { %v5757_v29 = vpop.f32.mrb[147].mxu1  ;;  %v6604_v17 = vmul.f32 0.6931472, %v12667_v27  ;;  %v6149_v0 = vsub.f32 0.0, %v6069_v24  ;;  %v6624_v42 = vadd.f32 1.0, %v6623_v3  ;;  %v6632_v38 = vmul.f32 -0.5, %v14992_v37 }
 0x8f3   : > { %v6070_v50 = vand.u32 2147483647, %v15073_v7  ;;  %12676 = vlog2.f32 %v6629_v2  ;;  %vm15081_vm14 = vcmp.lt.f32.partialorder %v6626_v10, 0.0004427343  ;;  %v5752_v30 = vadd.f32 %v5751_v52, %v14355_v40 }
 0x8f4   : > { %v6610_v14 = vsel %vm15052_vm12, %v6607_v4, %v6604_v17  ;;  %v5756_v26 = vadd.f32 %v5755_v56, %v14355_v40  ;;  %v6635_v55 = vand.u32 2147483647, %v14992_v37  ;;  %v15091_v11 = vadd.f32 %v5757_v29, %v14352_v46 }
 0x8f5   : > { %v12669_v28 = vpop.eup %12668  ;;  %v7098_v47 = vadd.f32 %v6610_v14, %v5978_v35  ;;  %v6150_v33 = vsub.f32 0.0, %v6070_v50  ;;  %v6268_v19 = vmul.f32 1.442695, %v6149_v0  ;;  %v6638_v3 = vadd.f32 1.0, %v15014_v60 }
 0x8f6   : > { %v6613_v45 = vmul.f32 0.6931472, %v12669_v28  ;;  %v7170_v24 = vpack.c.bf16 %v5756_v26, %v5752_v30  ;;  %12678 = vpow2.f32 %v6266_v5  ;;  %v6625_v52 = vmul.f32 %v14974_v44, %v6624_v42 }
 0x8f7   : > { %v5761_v39 = vpop.f32.mrb[148].mxu1  ;;  %10035 = vperm.xlu0 %12328, %v7098_v47   ;;  %v6633_v4 = vadd.f32 1.0, %v6632_v38  ;;  %v6071_v22 = vand.u32 2147483647, %v15091_v11  ;;  %v15097_v35 = vpop.eup %12670  ;;  %v5990_v56 = vmax.f32 %v15073_v7, 0.0  ;;  %12680 = vlog2.f32 %v6638_v3 }
 0x8f8   : > { %v6619_v10 = vsel %vm15068_vm13, %v6616_v41, %v6613_v45  ;;  %v6641_v27 = vmul.f32 -0.5, %v15014_v60  ;;  %7919 = vmatmul.mubr.bf16.gmra.mrb[224].mxu0 %v7170_v24  ;;  %v5763_v2 = vpop.f32.mrb[149].mxu1  ;;  %v15103_v29 = vpop.eup %12672  ;;  %v6270_v17 = vmul.f32 1.442695, %v6150_v33  ;;  %vm15107_vm15 = vcmp.lt.f32.partialorder %v6635_v55, 0.0004427343 }
 0x8f9   : > { %v7099_v44 = vadd.f32 %v6619_v10, %v5979_v18  ;;  %v6151_v0 = vsub.f32 0.0, %v6071_v22  ;;  %v5765_v6 = vpop.f32.mrb[150].mxu1  ;;  %7926 = vmatprep.mubr.bf16.mxu0 %v12506_v63  ;;  %12682 = vpow2.f32 %v6268_v19  ;;  %v15112_v42 = vadd.f32 %v5763_v2, %v14352_v46  ;;  %v12507_v24 = vld [vmem:[%s13005_s17 + $0x164] ss:$8 sps:$4 sm:$0xff]  }
 0x8fa   : > { %v12675_v41 = vpop.eup %12674  ;;  %v6647_v50 = vadd.f32 1.0, %v15028_v8  ;;  %v6650_v38 = vmul.f32 -0.5, %v15028_v8  ;;  %v5767_v16 = vpop.f32.mrb[151].mxu1  ;;  %v6634_v14 = vmul.f32 %v14992_v37, %v6633_v4  ;;  %v5991_v30 = vmax.f32 %v15091_v11, 0.0  ;;  %v15368_v11 = vld [vmem:[%s17037_s5 + $0x8] ss:$0 sm:$0xff] }
 0x8fb   : > { %10040 = vperm.xlu1 %12329, %v7099_v44   ;;  %v6622_v18 = vmul.f32 0.6931472, %v12675_v41  ;;  %v6644_v26 = vand.u32 2147483647, %v15014_v60  ;;  %v6642_v28 = vadd.f32 1.0, %v6641_v27  ;;  %v5762_v47 = vadd.f32 %v5761_v39, %v14355_v40 }
 0x8fc   : > { %v6072_v33 = vand.u32 2147483647, %v15112_v42  ;;  %12684 = vlog2.f32 %v6647_v50  ;;  %v6272_v45 = vmul.f32 1.442695, %v6151_v0  ;;  %v5766_v19 = vadd.f32 %v5765_v6, %v14355_v40 }
 0x8fd   : > { %v12677_v55 = vpop.eup %12676  ;;  %v6628_v63 = vsel %vm15081_vm14, %v6625_v52, %v6622_v18  ;;  %12686 = vpow2.f32 %v6270_v17  ;;  %v6651_v4 = vadd.f32 1.0, %v6650_v38  ;;  %v6653_v22 = vand.u32 2147483647, %v15028_v8 }
 0x8fe   : > { %v7100_v37 = vadd.f32 %v6628_v63, %v5980_v23  ;;  %v6631_v3 = vmul.f32 0.6931472, %v12677_v55  ;;  %v6152_v10 = vsub.f32 0.0, %v6072_v33  ;;  %v7171_v27 = vpack.c.bf16 %v5766_v19, %v5762_v47  ;;  %v12509_v23 = vld [vmem:[%s13005_s17 + $0x174] ss:$8 sps:$4 sm:$0xff]  }
 0x8ff   : > { %v5771_v39 = vpop.f32.mrb[152].mxu1  ;;  %v15129_v2 = vadd.f32 %v5767_v16, %v14352_v46  ;;  %v6656_v32 = vadd.f32 1.0, %v15056_v43  ;;  %v6643_v34 = vmul.f32 %v15014_v60, %v6642_v28  ;;  %vm15135_vm0 = vcmp.lt.f32.partialorder %v6644_v26, 0.0004427343 }
 0x900   : > { %v5773_v52 = vpop.f32.mrb[153].mxu1  ;;  %10045 = vperm.xlu0 %12328, %v7100_v37   ;;  %v6637_v44 = vsel %vm15107_vm15, %v6634_v14, %v6631_v3  ;;  %v6659_v17 = vmul.f32 -0.5, %v15056_v43  ;;  %v15140_v6 = vpop.eup %12678  ;;  %v5992_v50 = vmax.f32 %v15112_v42, 0.0  ;;  %7927 = vmatmul.mubr.bf16.gmra.mrb[228].mxu0 %v7171_v27  ;;  %v6652_v16 = vmul.f32 %v15028_v8, %v6651_v4 }
 0x901   : > { %v5775_v0 = vpop.f32.mrb[154].mxu1  ;;  %v7101_v41 = vadd.f32 %v6637_v44, %v5981_v54  ;;  %v6073_v38 = vand.u32 2147483647, %v15129_v2  ;;  %12688 = vlog2.f32 %v6656_v32  ;;  %v12681_v60 = vpop.eup %12680  ;;  %vm15147_vm1 = vcmp.lt.f32.partialorder %v6653_v22, 0.0004427343  ;;  %7934 = vmatprep.mubr.bf16.mxu0 %v12507_v24 }
 0x902   : > { %v5777_v5 = vpop.f32.mrb[155].mxu1  ;;  %12690 = vpow2.f32 %v6272_v45  ;;  %v15152_v14 = vadd.f32 %v5773_v52, %v14352_v46  ;;  %v6640_v62 = vmul.f32 0.6931472, %v12681_v60  ;;  %v6274_v54 = vmul.f32 1.442695, %v6152_v10 }
 0x903   : > { %10050 = vperm.xlu1 %12329, %v7101_v41   ;;  %v6153_v26 = vsub.f32 0.0, %v6073_v38  ;;  %v6665_v28 = vadd.f32 1.0, %v15062_v13  ;;  %v15155_v47 = vpop.eup %12682  ;;  %v6660_v33 = vadd.f32 1.0, %v6659_v17  ;;  %v6662_v55 = vand.u32 2147483647, %v15056_v43 }
 0x904   : > { %v5772_v8 = vadd.f32 %v5771_v39, %v14355_v40  ;;  %v6074_v63 = vand.u32 2147483647, %v15152_v14  ;;  %v6646_v45 = vsel %vm15135_vm0, %v6643_v34, %v6640_v62  ;;  %v5993_v19 = vmax.f32 %v15129_v2, 0.0 }
 0x905   : > { %12692 = vlog2.f32 %v6665_v28  ;;  %v6668_v24 = vmul.f32 -0.5, %v15062_v13  ;;  %v7102_v3 = vadd.f32 %v6646_v45, %v5982_v51  ;;  %v6276_v4 = vmul.f32 1.442695, %v6153_v26 }
 0x906   : > { %v12685_v37 = vpop.eup %12684  ;;  %v6671_v22 = vand.u32 2147483647, %v15062_v13  ;;  %v5776_v39 = vadd.f32 %v5775_v0, %v14355_v40  ;;  %12694 = vpow2.f32 %v6274_v54  ;;  %v6154_v52 = vsub.f32 0.0, %v6074_v63 }
 0x907   : > { %v5781_v10 = vpop.f32.mrb[156].mxu1  ;;  %v15168_v27 = vpop.eup %12686  ;;  %v6649_v32 = vmul.f32 0.6931472, %v12685_v37  ;;  %v15171_v44 = vadd.f32 %v5777_v5, %v14352_v46  ;;  %10055 = vperm.xlu0 %12328, %v7102_v3   ;;  %v6661_v12 = vmul.f32 %v15056_v43, %v6660_v33  ;;  %vm15175_vm2 = vcmp.lt.f32.partialorder %v6662_v55, 0.0004427343 }
 0x908   : > { %v5783_v34 = vpop.f32.mrb[157].mxu1  ;;  %v7172_v17 = vpack.c.bf16 %v5776_v39, %v5772_v8  ;;  %v6674_v0 = vadd.f32 1.0, %v15097_v35  ;;  %v5994_v60 = vmax.f32 %v15152_v14, 0.0  ;;  %v6677_v62 = vmul.f32 -0.5, %v15097_v35 }
 0x909   : > { %v5785_v41 = vpop.f32.mrb[158].mxu1  ;;  %v6655_v38 = vsel %vm15147_vm1, %v6652_v16, %v6649_v32  ;;  %v6075_v5 = vand.u32 2147483647, %v15171_v44  ;;  %12696 = vpow2.f32 %v6276_v4  ;;  %v6669_v26 = vadd.f32 1.0, %v6668_v24 }
 0x90a   : > { %v5787_v54 = vpop.f32.mrb[159].mxu1  ;;  %v7103_v43 = vadd.f32 %v6655_v38, %v5983_v31  ;;  %vm15187_vm3 = vcmp.lt.f32.partialorder %v6671_v22, 0.0004427343  ;;  %7935 = vmatmul.mubr.bf16.gmra.mrb[232].mxu0 %v7172_v17  ;;  %v6278_v18 = vmul.f32 1.442695, %v6154_v52  ;;  %12698 = vlog2.f32 %v6674_v0 }
 0x90b   : > { %v12689_v33 = vpop.eup %12688  ;;  %v6155_v16 = vsub.f32 0.0, %v6075_v5  ;;  %v15192_v55 = vadd.f32 %v5783_v34, %v14352_v46  ;;  %7942 = vmatprep.mubr.bf16.mxu0 %v12509_v23  ;;  %v6680_v31 = vand.u32 2147483647, %v15097_v35  ;;  %v6683_v63 = vadd.f32 1.0, %v15103_v29  ;;  %v12510_v5 = vld [vmem:[%s13005_s17 + $0x184] ss:$8 sps:$4 sm:$0xff]  }
 0x90c   : > { %v15194_v8 = vpop.eup %12690  ;;  %10060 = vperm.xlu1 %12329, %v7103_v43   ;;  %v6658_v15 = vmul.f32 0.6931472, %v12689_v33  ;;  %v6686_v45 = vmul.f32 -0.5, %v15103_v29  ;;  %v6678_v24 = vadd.f32 1.0, %v6677_v62  ;;  %v5782_v37 = vadd.f32 %v5781_v10, %v14355_v40 }
 0x90d   : > { %v6076_v3 = vand.u32 2147483647, %v15192_v55  ;;  %v5786_v4 = vadd.f32 %v5785_v41, %v14355_v40  ;;  %v6670_v39 = vmul.f32 %v15062_v13, %v6669_v26  ;;  %v6280_v32 = vmul.f32 1.442695, %v6155_v16 }
 0x90e   : > { %v6664_v22 = vsel %vm15175_vm2, %v6661_v12, %v6658_v15  ;;  %12700 = vlog2.f32 %v6683_v63  ;;  %v6687_v0 = vadd.f32 1.0, %v6686_v45  ;;  %v5995_v41 = vmax.f32 %v15171_v44, 0.0 }
 0x90f   : > { %v5791_v52 = vpop.f32.mrb[160].mxu1  ;;  %v12693_v34 = vpop.eup %12692  ;;  %v7104_v23 = vadd.f32 %v6664_v22, %v5984_v58  ;;  %v6156_v17 = vsub.f32 0.0, %v6076_v3  ;;  %v7173_v38 = vpack.c.bf16 %v5786_v4, %v5782_v37  ;;  %v6689_v51 = vand.u32 2147483647, %v15103_v29 }
 0x910   : > { %v5793_v10 = vpop.f32.mrb[161].mxu1  ;;  %v6667_v62 = vmul.f32 0.6931472, %v12693_v34  ;;  %v15211_v12 = vadd.f32 %v5787_v54, %v14352_v46  ;;  %v15213_v43 = vpop.eup %12694  ;;  %12702 = vpow2.f32 %v6278_v18  ;;  %v6679_v49 = vmul.f32 %v15097_v35, %v6678_v24 }
 0x911   : > { %v5795_v13 = vpop.f32.mrb[162].mxu1  ;;  %10065 = vperm.xlu0 %12328, %v7104_v23   ;;  %vm15216_vm4 = vcmp.lt.f32.partialorder %v6680_v31, 0.0004427343  ;;  %v6692_v26 = vadd.f32 1.0, %v15140_v6  ;;  %12704 = vpow2.f32 %v6280_v32  ;;  %v5996_v54 = vmax.f32 %v15192_v55, 0.0 }
 0x912   : > { %v6673_v33 = vsel %vm15187_vm3, %v6670_v39, %v6667_v62  ;;  %v6077_v16 = vand.u32 2147483647, %v15211_v12  ;;  %7943 = vmatmul.mubr.bf16.gmra.mrb[236].mxu0 %v7173_v38  ;;  %v5797_v15 = vpop.f32.mrb[163].mxu1  ;;  %v6282_v35 = vmul.f32 1.442695, %v6156_v17  ;;  %v6688_v31 = vmul.f32 %v15103_v29, %v6687_v0 }
 0x913   : > { %v7105_v18 = vadd.f32 %v6673_v33, %v5985_v53  ;;  %v6695_v63 = vmul.f32 -0.5, %v15140_v6  ;;  %7950 = vmatprep.mubr.bf16.mxu0 %v12510_v5  ;;  %v15229_v45 = vpop.eup %12696  ;;  %vm15231_vm5 = vcmp.lt.f32.partialorder %v6689_v51, 0.0004427343  ;;  %12706 = vlog2.f32 %v6692_v26  ;;  %v12526_v33 = vld [vmem:[%s17041_s9] sm:$0xff]  }
 0x914   : > { %v15236_v24 = vadd.f32 %v5793_v10, %v14352_v46  ;;  %v6701_v37 = vadd.f32 1.0, %v15155_v47  ;;  %v12699_v21 = vpop.eup %12698  ;;  %v6157_v53 = vsub.f32 0.0, %v6077_v16  ;;  %v6698_v29 = vand.u32 2147483647, %v15140_v6  ;;  %v12511_v10 = vld [vmem:[%s13005_s17 + $0x194] ss:$8 sps:$4 sm:$0xff]   ;;  %12143 = vmatprep.subr.bf16.mxu0 %v12526_v33 }
 0x915   : > { %10070 = vperm.xlu1 %12329, %v7105_v18   ;;  %v5792_v3 = vadd.f32 %v5791_v52, %v14355_v40  ;;  %v5796_v4 = vadd.f32 %v5795_v13, %v14355_v40  ;;  %v6676_v22 = vmul.f32 0.6931472, %v12699_v21  ;;  %v5997_v39 = vmax.f32 %v15211_v12, 0.0  ;;  %12144 = vmatpush3.bf16.msra.mxu0 %v12526_v33 }
 0x916   : > { %12708 = vlog2.f32 %v6701_v37  ;;  %v6704_v32 = vmul.f32 -0.5, %v15155_v47  ;;  %v6696_v23 = vadd.f32 1.0, %v6695_v63  ;;  %v6078_v17 = vand.u32 2147483647, %v15236_v24 }
 0x917   : > { %v5801_v34 = vpop.f32.mrb[164].mxu1  ;;  %12710 = vpow2.f32 %v6282_v35  ;;  %v7174_v0 = vpack.c.bf16 %v5796_v4, %v5792_v3  ;;  %v6682_v52 = vsel %vm15216_vm4, %v6679_v49, %v6676_v22  ;;  %v6707_v62 = vand.u32 2147483647, %v15155_v47 }
 0x918   : > { %v5803_v38 = vpop.f32.mrb[165].mxu1  ;;  %v12701_v5 = vpop.eup %12700  ;;  %v15250_v51 = vadd.f32 %v5797_v15, %v14352_v46  ;;  %v6710_v13 = vadd.f32 1.0, %v15168_v27  ;;  %v7106_v16 = vadd.f32 %v6682_v52, %v5986_v9  ;;  %v6284_v35 = vmul.f32 1.442695, %v6157_v53 }
 0x919   : > { %v5805_v26 = vpop.f32.mrb[166].mxu1  ;;  %v6685_v18 = vmul.f32 0.6931472, %v12701_v5  ;;  %v6158_v63 = vsub.f32 0.0, %v6078_v17  ;;  %v6705_v49 = vadd.f32 1.0, %v6704_v32  ;;  %v6713_v15 = vmul.f32 -0.5, %v15168_v27 }
 0x91a   : > { %v5807_v58 = vpop.f32.mrb[167].mxu1  ;;  %v6079_v37 = vand.u32 2147483647, %v15250_v51  ;;  %12712 = vlog2.f32 %v6710_v13  ;;  %7951 = vmatmul.mubr.bf16.gmra.mrb[240].mxu0 %v7174_v0  ;;  %v15260_v21 = vpop.eup %12702  ;;  %10075 = vperm.xlu0 %12328, %v7106_v16   ;;  %v6697_v57 = vmul.f32 %v15140_v6, %v6696_v23  ;;  %vm15265_vm6 = vcmp.lt.f32.partialorder %v6698_v29, 0.0004427343 }
 0x91b   : > { %v6691_v3 = vsel %vm15231_vm5, %v6688_v31, %v6685_v18  ;;  %v5998_v53 = vmax.f32 %v15236_v24, 0.0  ;;  %7958 = vmatprep.mubr.bf16.mxu0 %v12511_v10  ;;  %v15270_v4 = vpop.eup %12704  ;;  %v6286_v32 = vmul.f32 1.442695, %v6158_v63  ;;  %v15275_v0 = vadd.f32 %v5803_v38, %v14352_v46  ;;  %v12512_v63 = vld [vmem:[%s13005_s17 + $0x1a4] ss:$8 sps:$4 sm:$0xff]  }
 0x91c   : > { %v7107_v22 = vadd.f32 %v6691_v3, %v5987_v59  ;;  %v6159_v17 = vsub.f32 0.0, %v6079_v37  ;;  %vm15277_vm7 = vcmp.lt.f32.partialorder %v6707_v62, 0.0004427343  ;;  %v6716_v31 = vand.u32 2147483647, %v15168_v27 }
 0x91d   : > { %v6719_v28 = vadd.f32 1.0, %v15194_v8  ;;  %v6722_v29 = vmul.f32 -0.5, %v15194_v8  ;;  %v12707_v23 = vpop.eup %12706  ;;  %12714 = vpow2.f32 %v6284_v35  ;;  %v6706_v61 = vmul.f32 %v15155_v47, %v6705_v49 }
 0x91e   : > { %10080 = vperm.xlu1 %12329, %v7107_v22   ;;  %v5999_v59 = vmax.f32 %v15250_v51, 0.0  ;;  %v6714_v38 = vadd.f32 1.0, %v6713_v15  ;;  %v6694_v5 = vmul.f32 0.6931472, %v12707_v23  ;;  %v5802_v52 = vadd.f32 %v5801_v34, %v14355_v40  ;;  %v12522_v51 = vld [vmem:[%s13005_s17 + $0x204] ss:$8 sps:$4 sm:$0xff]  }
 0x91f   : > { %v5811_v10 = vpop.f32.mrb[168].mxu1  ;;  %v6080_v62 = vand.u32 2147483647, %v15275_v0  ;;  %12716 = vlog2.f32 %v6719_v28  ;;  %v6288_v16 = vmul.f32 1.442695, %v6159_v17  ;;  %v5806_v18 = vadd.f32 %v5805_v26, %v14355_v40 }
 0x920   : > { %v5813_v13 = vpop.f32.mrb[169].mxu1  ;;  %v12709_v33 = vpop.eup %12708  ;;  %12718 = vpow2.f32 %v6286_v32  ;;  %v15290_v35 = vadd.f32 %v5807_v58, %v14352_v46  ;;  %v6700_v37 = vsel %vm15265_vm6, %v6697_v57, %v6694_v5  ;;  %vm15297_vm8 = vcmp.lt.f32.partialorder %v6716_v31, 0.0004427343 }
 0x921   : > { %v5815_v47 = vpop.f32.mrb[170].mxu1  ;;  %v15293_v49 = vpop.eup %12710  ;;  %v6703_v34 = vmul.f32 0.6931472, %v12709_v33  ;;  %v6723_v3 = vadd.f32 1.0, %v6722_v29  ;;  %v7108_v26 = vadd.f32 %v6700_v37, %v5988_v1  ;;  %v6715_v58 = vmul.f32 %v15168_v27, %v6714_v38 }
 0x922   : > { %v5817_v22 = vpop.f32.mrb[171].mxu1  ;;  %v6725_v32 = vand.u32 2147483647, %v15194_v8  ;;  %v7175_v17 = vpack.c.bf16 %v5806_v18, %v5802_v52  ;;  %v6160_v9 = vsub.f32 0.0, %v6080_v62  ;;  %v6081_v57 = vand.u32 2147483647, %v15290_v35 }
 0x923   : > { %v6709_v28 = vsel %vm15277_vm7, %v6706_v61, %v6703_v34  ;;  %v6728_v31 = vadd.f32 1.0, %v15213_v43  ;;  %10085 = vperm.xlu0 %12328, %v7108_v26   ;;  %12720 = vpow2.f32 %v6288_v16  ;;  %v6000_v25 = vmax.f32 %v15275_v0, 0.0 }
 0x924   : > { %v12713_v23 = vpop.eup %12712  ;;  %v7109_v29 = vadd.f32 %v6709_v28, %v5989_v48  ;;  %v6731_v1 = vmul.f32 -0.5, %v15213_v43  ;;  %7959 = vmatmul.mubr.bf16.gmra.mrb[244].mxu0 %v7175_v17  ;;  %v6724_v6 = vmul.f32 %v15194_v8, %v6723_v3  ;;  %v6161_v61 = vsub.f32 0.0, %v6081_v57 }
 0x925   : > { %v6712_v27 = vmul.f32 0.6931472, %v12713_v23  ;;  %12722 = vlog2.f32 %v6728_v31  ;;  %7966 = vmatprep.mubr.bf16.mxu0 %v12512_v63  ;;  %vm15314_vm9 = vcmp.lt.f32.partialorder %v6725_v32, 0.0004427343  ;;  %v15319_v36 = vadd.f32 %v5813_v13, %v14352_v46  ;;  %v12514_v32 = vld [vmem:[%s13005_s17 + $0x1b4] ss:$8 sps:$4 sm:$0xff]  }
 0x926   : > { %10090 = vperm.xlu1 %12329, %v7109_v29   ;;  %v6737_v48 = vadd.f32 1.0, %v15229_v45  ;;  %v6740_v5 = vmul.f32 -0.5, %v15229_v45  ;;  %v6290_v62 = vmul.f32 1.442695, %v6160_v9  ;;  %v6734_v16 = vand.u32 2147483647, %v15213_v43 }
 0x927   : > { %v5821_v52 = vpop.f32.mrb[172].mxu1  ;;  %v6718_v8 = vsel %vm15297_vm8, %v6715_v58, %v6712_v27  ;;  %v15327_v63 = vpop.eup %12714  ;;  %v6732_v37 = vadd.f32 1.0, %v6731_v1  ;;  %v6082_v34 = vand.u32 2147483647, %v15319_v36  ;;  %v6292_v58 = vmul.f32 1.442695, %v6161_v61 }
 0x928   : > { %v5823_v18 = vpop.f32.mrb[173].mxu1  ;;  %v7110_v13 = vadd.f32 %v6718_v8, %v5990_v56  ;;  %12724 = vlog2.f32 %v6737_v48  ;;  %v5812_v17 = vadd.f32 %v5811_v10, %v14355_v40  ;;  %v6743_v28 = vand.u32 2147483647, %v15229_v45 }
 0x929   : > { %v5825_v3 = vpop.f32.mrb[174].mxu1  ;;  %v7760_v26 = vpop.f32.mrb[144].mxu0  ;;  %v5816_v9 = vadd.f32 %v5815_v47, %v14355_v40  ;;  %v6741_v56 = vadd.f32 1.0, %v6740_v5  ;;  %v15339_v29 = vadd.f32 %v5817_v22, %v14352_v46  ;;  %v6746_v1 = vadd.f32 1.0, %v15260_v21 }
 0x92a   : > { %v12717_v15 = vpop.eup %12716  ;;  %v5827_v57 = vpop.f32.mrb[175].mxu1  ;;  %10095 = vperm.xlu0 %12328, %v7110_v13   ;;  %12726 = vpow2.f32 %v6290_v62  ;;  %vm15342_vm10 = vcmp.lt.f32.partialorder %v6734_v16, 0.0004427343  ;;  %v6162_v61 = vsub.f32 0.0, %v6082_v34  ;;  %v6733_v13 = vmul.f32 %v15213_v43, %v6732_v37 }
 0x92b   : > { %v7762_v31 = vpop.f32.mrb[145].mxu0  ;;  %v15336_v23 = vpop.eup %12718  ;;  %v6721_v7 = vmul.f32 0.6931472, %v12717_v15  ;;  %v7176_v47 = vpack.c.bf16 %v5816_v9, %v5812_v17  ;;  %v6083_v5 = vand.u32 2147483647, %v15339_v29  ;;  %v6749_v22 = vmul.f32 -0.5, %v15260_v21 }
 0x92c   : > { %v7763_v27 = vpop.f32.mrb[146].mxu0  ;;  %12728 = vlog2.f32 %v6746_v1  ;;  %v6752_v16 = vand.u32 2147483647, %v15260_v21  ;;  %vm15358_vm11 = vcmp.lt.f32.partialorder %v6743_v28, 0.0004427343  ;;  %v15363_v38 = vadd.f32 %v5823_v18, %v14352_v46 }
 0x92d   : > { %v7765_v48 = vpop.f32.mrb[147].mxu0  ;;  %v6727_v8 = vsel %vm15314_vm9, %v6724_v6, %v6721_v7  ;;  %7967 = vmatmul.mubr.bf16.gmra.mrb[248].mxu0 %v7176_v47  ;;  %v15355_v34 = vpop.eup %12720  ;;  %12730 = vpow2.f32 %v6292_v58  ;;  %v6742_v6 = vmul.f32 %v15229_v45, %v6741_v56  ;;  %v6294_v58 = vmul.f32 1.442695, %v6162_v61 }
 0x92e   : > { %v7111_v15 = vadd.f32 %v6727_v8, %v5991_v30  ;;  %7974 = vmatprep.mubr.bf16.mxu0 %v12514_v32  ;;  %v6163_v17 = vsub.f32 0.0, %v6083_v5  ;;  %v6755_v28 = vadd.f32 1.0, %v15270_v4  ;;  %v6750_v18 = vadd.f32 1.0, %v6749_v22 }
 0x92f   : > { %v15370_v30 = vpop.f32.mrb[176].mxu1  ;;  %v12723_v37 = vpop.eup %12722  ;;  %v5822_v7 = vadd.f32 %v5821_v52, %v14355_v40  ;;  %v5826_v56 = vadd.f32 %v5825_v3, %v14355_v40  ;;  %vm15376_vm12 = vcmp.lt.f32.partialorder %v6752_v16, 0.0004427343  ;;  %v6084_v61 = vand.u32 2147483647, %v15363_v38 }
 0x930   : > { %10100 = vperm.xlu1 %12329, %v7111_v15   ;;  %v5833_v9 = vpop.f32.mrb[177].mxu1  ;;  %v6730_v31 = vmul.f32 0.6931472, %v12723_v37  ;;  %12732 = vlog2.f32 %v6755_v28  ;;  %v6758_v47 = vmul.f32 -0.5, %v15270_v4  ;;  %v6761_v52 = vand.u32 2147483647, %v15270_v4 }
 0x931   : > { %v5835_v1 = vpop.f32.mrb[178].mxu1  ;;  %v15382_v48 = vpop.f32.mrb[148].mxu0  ;;  %v7177_v22 = vpack.c.bf16 %v5826_v56, %v5822_v7  ;;  %v7761_v3 = vadd.f32 %v15368_v11, %v7760_v26  ;;  %v12517_v37 = vld [vmem:[%s13005_s17 + $0x1c4] ss:$8 sps:$4 sm:$0xff]   ;;  %v6296_v45 = vmul.f32 1.442695, %v6163_v17  ;;  %12734 = vpow2.f32 %v6294_v58 }
 0x932   : > { %v12725_v8 = vpop.eup %12724  ;;  %v6736_v5 = vsel %vm15342_vm10, %v6733_v13, %v6730_v31  ;;  %v15388_v15 = vpop.f32.mrb[179].mxu1  ;;  %v6164_v62 = vsub.f32 0.0, %v6084_v61  ;;  %v15396_v10 = vadd.f32 %v5827_v57, %v14352_v46  ;;  %v7764_v13 = vadd.f32 %v15368_v11, %v7763_v27 }
 0x933   : > { %v7770_v16 = vpop.f32.mrb[149].mxu0  ;;  %v7112_v28 = vadd.f32 %v6736_v5, %v5992_v50  ;;  %v6739_v20 = vmul.f32 0.6931472, %v12725_v8  ;;  %v6764_v26 = vadd.f32 1.0, %v15293_v49  ;;  %v6751_v50 = vmul.f32 %v15260_v21, %v6750_v18 }
 0x934   : > { %v15393_v33 = vpop.f32.mrb[150].mxu0  ;;  %v15400_v7 = vpop.eup %12726  ;;  %v6004_v17 = vmax.f32 %v15363_v38, 0.0  ;;  %v6759_v56 = vadd.f32 1.0, %v6758_v47  ;;  %v8079_v58 = vmax.f32 %v7761_v3, 0.0  ;;  %v6085_v27 = vand.u32 2147483647, %v15396_v10 }
 0x935   : > { %v7773_v31 = vpop.f32.mrb[151].mxu0  ;;  %10105 = vperm.xlu0 %12328, %v7112_v28   ;;  %v6745_v42 = vsel %vm15358_vm11, %v6742_v6, %v6739_v20  ;;  %7975 = vmatmul.mubr.bf16.gmra.mrb[252].mxu0 %v7177_v22  ;;  %v8080_v61 = vmax.f32 %v7764_v13, 0.0  ;;  %12736 = vpow2.f32 %v6296_v45  ;;  %v6298_v43 = vmul.f32 1.442695, %v6164_v62 }
 0x936   : > { %v7113_v57 = vadd.f32 %v6745_v42, %v5993_v19  ;;  %7982 = vmatprep.mubr.bf16.mxu0 %v12517_v37  ;;  %v12729_v5 = vpop.eup %12728  ;;  %vm15411_vm13 = vcmp.lt.f32.partialorder %v6761_v52, 0.0004427343  ;;  %v6767_v21 = vmul.f32 -0.5, %v15293_v49  ;;  %v6165_v19 = vsub.f32 0.0, %v6085_v27 }
 0x937   : > { %v15409_v8 = vpop.f32.mrb[180].mxu1  ;;  %v15416_v18 = vpop.eup %12730  ;;  %v6748_v2 = vmul.f32 0.6931472, %v12729_v5  ;;  %v8159_v47 = vpack.c.bf16 %v8080_v61, %v8079_v58  ;;  %12738 = vlog2.f32 %v6764_v26  ;;  %v6760_v3 = vmul.f32 %v15270_v4, %v6759_v56 }
 0x938   : > { %v5843_v6 = vpop.f32.mrb[181].mxu1  ;;  %10110 = vperm.xlu1 %12329, %v7113_v57   ;;  %v6770_v62 = vand.u32 2147483647, %v15293_v49  ;;  %v15423_v45 = vadd.f32 %v5833_v9, %v14352_v46  ;;  %v6773_v52 = vadd.f32 1.0, %v15327_v63  ;;  %v6005_v13 = vmax.f32 %v15396_v10, 0.0 }
 0x939   : > { %v15418_v22 = vpop.f32.mrb[182].mxu1  ;;  %v15426_v16 = vpop.f32.mrb[152].mxu0  ;;  %v6754_v28 = vsel %vm15376_vm12, %v6751_v50, %v6748_v2  ;;  %v5832_v4 = vadd.f32 %v15370_v30, %v14355_v40  ;;  %v5836_v26 = vadd.f32 %v5835_v1, %v14355_v40  ;;  %12063 = vmatprep.mubr.bf16.mxu1 %v8159_v47  ;;  %v6776_v57 = vmul.f32 -0.5, %v15327_v63  ;;  %v12519_v50 = vld [vmem:[%s13005_s17 + $0x1d4] ss:$8 sps:$4 sm:$0xff]  }
 0x93a   : > { %v15428_v37 = vpop.f32.mrb[183].mxu1  ;;  %v7778_v9 = vpop.f32.mrb[153].mxu0  ;;  %v7114_v42 = vadd.f32 %v6754_v28, %v5994_v60  ;;  %v6086_v56 = vand.u32 2147483647, %v15423_v45  ;;  %12740 = vlog2.f32 %v6773_v52  ;;  %v6300_v27 = vmul.f32 1.442695, %v6165_v19 }
 0x93b   : > { %v12733_v31 = vpop.eup %12732  ;;  %v15440_v32 = vpop.f32.mrb[154].mxu0  ;;  %12742 = vpow2.f32 %v6298_v43  ;;  %v6768_v30 = vadd.f32 1.0, %v6767_v21  ;;  %v7178_v5 = vpack.c.bf16 %v5836_v26, %v5832_v4  ;;  %v7769_v14 = vadd.f32 %v15368_v11, %v15382_v48 }
 0x93c   : > { %v6757_v58 = vmul.f32 0.6931472, %v12733_v31  ;;  %v7781_v61 = vpop.f32.mrb[155].mxu0  ;;  %10115 = vperm.xlu0 %12328, %v7114_v42   ;;  %v6166_v1 = vsub.f32 0.0, %v6086_v56  ;;  %v15447_v60 = vadd.f32 %v15388_v15, %v14352_v46  ;;  %v15449_v2 = vpop.eup %12734  ;;  %v6779_v43 = vand.u32 2147483647, %v15327_v63 }
 0x93d   : > { %v7772_v21 = vadd.f32 %v15368_v11, %v15393_v33  ;;  %v6782_v19 = vadd.f32 1.0, %v15336_v23  ;;  %vm15461_vm14 = vcmp.lt.f32.partialorder %v6770_v62, 0.0004427343  ;;  %v6777_v4 = vadd.f32 1.0, %v6776_v57  ;;  %7983 = vmatmul.mubr.bf16.gmra.mrb[0].mxu0 %v7178_v5 }
 0x93e   : > { %v6763_v47 = vsel %vm15411_vm13, %v6760_v3, %v6757_v58  ;;  %v6302_v28 = vmul.f32 1.442695, %v6166_v1  ;;  %v8081_v3 = vmax.f32 %v7769_v14, 0.0  ;;  %v6087_v26 = vand.u32 2147483647, %v15447_v60  ;;  %7990 = vmatprep.mubr.bf16.mxu0 %v12519_v50 }
 0x93f   : > { %v15457_v52 = vpop.f32.mrb[184].mxu1  ;;  %v7115_v48 = vadd.f32 %v6763_v47, %v5995_v41  ;;  %v8082_v33 = vmax.f32 %v7772_v21, 0.0  ;;  %12744 = vlog2.f32 %v6782_v19  ;;  %v15472_v44 = vpop.eup %12736  ;;  %v6769_v41 = vmul.f32 %v15293_v49, %v6768_v30 }
 0x940   : > { %v15465_v20 = vpop.f32.mrb[185].mxu1  ;;  %12746 = vpow2.f32 %v6300_v27  ;;  %v6006_v62 = vmax.f32 %v15423_v45, 0.0  ;;  %v15477_v42 = vadd.f32 %v5843_v6, %v14352_v46  ;;  %vm15481_vm15 = vcmp.lt.f32.partialorder %v6779_v43, 0.0004427343 }
 0x941   : > { %v15468_v9 = vpop.f32.mrb[186].mxu1  ;;  %v15470_v31 = vpop.f32.mrb[156].mxu0  ;;  %10120 = vperm.xlu1 %12329, %v7115_v48   ;;  %v8160_v61 = vpack.c.bf16 %v8082_v33, %v8081_v3  ;;  %v6785_v1 = vmul.f32 -0.5, %v15336_v23  ;;  %v6791_v27 = vadd.f32 1.0, %v15355_v34  ;;  %12748 = vpow2.f32 %v6302_v28 }
 0x942   : > { %v15479_v56 = vpop.f32.mrb[187].mxu1  ;;  %v7786_v57 = vpop.f32.mrb[157].mxu0  ;;  %v6167_v6 = vsub.f32 0.0, %v6087_v26  ;;  %v6788_v30 = vand.u32 2147483647, %v15336_v23  ;;  %v6778_v14 = vmul.f32 %v15327_v63, %v6777_v4  ;;  %v5842_v3 = vadd.f32 %v15409_v8, %v14355_v40 }
 0x943   : > { %v12739_v58 = vpop.eup %12738  ;;  %v15487_v5 = vpop.f32.mrb[158].mxu0  ;;  %v6088_v43 = vand.u32 2147483647, %v15477_v42  ;;  %12750 = vlog2.f32 %v6791_v27  ;;  %12064 = vmatmul.mubr.bf16.vlgmr.msra.gmra.mrb[224].mxu1 %v8160_v61  ;;  %v6794_v28 = vmul.f32 -0.5, %v15355_v34  ;;  %v5846_v26 = vadd.f32 %v15418_v22, %v14355_v40  ;;  %v12520_v63 = vld [vmem:[%s13005_s17 + $0x1e4] ss:$8 sps:$4 sm:$0xff]  }
 0x944   : > { %v6766_v49 = vmul.f32 0.6931472, %v12739_v58  ;;  %v7789_v21 = vpop.f32.mrb[159].mxu0  ;;  %v12741_v19 = vpop.eup %12740  ;;  %v6786_v58 = vadd.f32 1.0, %v6785_v1  ;;  %v6304_v15 = vmul.f32 1.442695, %v6167_v6  ;;  %v7777_v22 = vadd.f32 %v15368_v11, %v15426_v16 }
 0x945   : > { %v15501_v4 = vpop.eup %12742  ;;  %v6775_v57 = vmul.f32 0.6931472, %v12741_v19  ;;  %v6168_v61 = vsub.f32 0.0, %v6088_v43  ;;  %vm15507_vm0 = vcmp.lt.f32.partialorder %v6788_v30, 0.0004427343  ;;  %v7179_v8 = vpack.c.bf16 %v5846_v26, %v5842_v3 }
 0x946   : > { %v6772_v48 = vsel %vm15461_vm14, %v6769_v41, %v6766_v49  ;;  %v15520_v1 = vadd.f32 %v15428_v37, %v14352_v46  ;;  %v7780_v6 = vadd.f32 %v15368_v11, %v15440_v32  ;;  %v6795_v21 = vadd.f32 1.0, %v6794_v28 }
 0x947   : > { %v7116_v33 = vadd.f32 %v6772_v48, %v5996_v54  ;;  %v15505_v27 = vpop.f32.mrb[188].mxu1  ;;  %v6781_v55 = vsel %vm15481_vm15, %v6778_v14, %v6775_v57  ;;  %v6797_v54 = vand.u32 2147483647, %v15355_v34  ;;  %v6306_v43 = vmul.f32 1.442695, %v6168_v61  ;;  %7991 = vmatmul.mubr.bf16.gmra.mrb[4].mxu0 %v7179_v8 }
 0x948   : > { %v15513_v49 = vpop.f32.mrb[189].mxu1  ;;  %v7117_v16 = vadd.f32 %v6781_v55, %v5997_v39  ;;  %v6800_v19 = vadd.f32 1.0, %v15400_v7  ;;  %v8083_v37 = vmax.f32 %v7777_v22, 0.0  ;;  %v6089_v3 = vand.u32 2147483647, %v15520_v1  ;;  %7998 = vmatprep.mubr.bf16.mxu0 %v12520_v63 }
 0x949   : > { %10125 = vperm.xlu0 %12328, %v7116_v33   ;;  %v15524_v30 = vpop.f32.mrb[190].mxu1  ;;  %v15529_v50 = vpop.f32.mrb[160].mxu0  ;;  %v8084_v26 = vmax.f32 %v7780_v6, 0.0  ;;  %v6803_v32 = vmul.f32 -0.5, %v15400_v7  ;;  %v6787_v28 = vmul.f32 %v15336_v23, %v6786_v58  ;;  %v15543_v55 = vadd.f32 %v15465_v20, %v14352_v46 }
 0x94a   : > { %v15531_v14 = vpop.f32.mrb[191].mxu1  ;;  %v12745_v48 = vpop.eup %12744  ;;  %10130 = vperm.xlu1 %12329, %v7117_v16   ;;  %12752 = vlog2.f32 %v6800_v19  ;;  %v6169_v8 = vsub.f32 0.0, %v6089_v3  ;;  %v6796_v23 = vmul.f32 %v15355_v34, %v6795_v21  ;;  %vm15550_vm1 = vcmp.lt.f32.partialorder %v6797_v54, 0.0004427343 }
 0x94b   : > { %v7794_v33 = vpop.f32.mrb[161].mxu0  ;;  %v15535_v12 = vpop.eup %12746  ;;  %v6784_v39 = vmul.f32 0.6931472, %v12745_v48  ;;  %12754 = vpow2.f32 %v6304_v15  ;;  %v8161_v22 = vpack.c.bf16 %v8084_v26, %v8083_v37  ;;  %v6809_v15 = vadd.f32 1.0, %v15416_v18 }
 0x94c   : > { %v15539_v61 = vpop.f32.mrb[162].mxu0  ;;  %v15545_v6 = vpop.eup %12748  ;;  %12756 = vpow2.f32 %v6306_v43  ;;  %v6804_v20 = vadd.f32 1.0, %v6803_v32  ;;  %v6090_v37 = vand.u32 2147483647, %v15543_v55  ;;  %v6806_v34 = vand.u32 2147483647, %v15400_v7 }
 0x94d   : > { %v7797_v63 = vpop.f32.mrb[163].mxu0  ;;  %v6790_v16 = vsel %vm15507_vm0, %v6787_v28, %v6784_v39  ;;  %v12751_v19 = vpop.eup %12750  ;;  %12067 = vmatprep.mubr.bf16.mxu1 %v8161_v22  ;;  %12758 = vlog2.f32 %v6809_v15  ;;  %v6812_v54 = vmul.f32 -0.5, %v15416_v18  ;;  %v6308_v26 = vmul.f32 1.442695, %v6169_v8  ;;  %v12521_v22 = vld [vmem:[%s13005_s17 + $0x1f4] ss:$8 sps:$4 sm:$0xff]  }
 0x94e   : > { %v7118_v48 = vadd.f32 %v6790_v16, %v5998_v53  ;;  %v6793_v41 = vmul.f32 0.6931472, %v12751_v19  ;;  %v5852_v24 = vadd.f32 %v15457_v52, %v14355_v40  ;;  %v6170_v53 = vsub.f32 0.0, %v6090_v37 }
 0x94f   : > { %v15558_v3 = vpop.f32.mrb[192].mxu1  ;;  %v5856_v43 = vadd.f32 %v15468_v9, %v14355_v40  ;;  %v6815_v39 = vand.u32 2147483647, %v15416_v18  ;;  %v7785_v28 = vadd.f32 %v15368_v11, %v15470_v31  ;;  %v15577_v8 = vadd.f32 %v15479_v56, %v14352_v46 }
 0x950   : > { %v15562_v21 = vpop.f32.mrb[193].mxu1  ;;  %10135 = vperm.xlu0 %12328, %v7118_v48   ;;  %v6799_v33 = vsel %vm15550_vm1, %v6796_v23, %v6793_v41  ;;  %v6813_v23 = vadd.f32 1.0, %v6812_v54  ;;  %v6805_v19 = vmul.f32 %v15400_v7, %v6804_v20  ;;  %vm15588_vm2 = vcmp.lt.f32.partialorder %v6806_v34, 0.0004427343 }
 0x951   : > { %v15568_v32 = vpop.f32.mrb[194].mxu1  ;;  %v15580_v52 = vpop.f32.mrb[164].mxu0  ;;  %v7119_v9 = vadd.f32 %v6799_v33, %v5999_v59  ;;  %v7180_v58 = vpack.c.bf16 %v5856_v43, %v5852_v24  ;;  %v6091_v56 = vand.u32 2147483647, %v15577_v8  ;;  %v7788_v48 = vadd.f32 %v15368_v11, %v15487_v5 }
 0x952   : > { %v15582_v63 = vpop.f32.mrb[195].mxu1  ;;  %v7802_v15 = vpop.f32.mrb[165].mxu0  ;;  %12760 = vpow2.f32 %v6308_v26  ;;  %v6310_v59 = vmul.f32 1.442695, %v6170_v53  ;;  %v6818_v41 = vadd.f32 1.0, %v15449_v2  ;;  %v8085_v54 = vmax.f32 %v7785_v28, 0.0 }
 0x953   : > { %v15595_v37 = vpop.f32.mrb[166].mxu0  ;;  %10140 = vperm.xlu1 %12329, %v7119_v9   ;;  %7999 = vmatmul.mubr.bf16.gmra.mrb[8].mxu0 %v7180_v58  ;;  %vm15599_vm3 = vcmp.lt.f32.partialorder %v6815_v39, 0.0004427343  ;;  %v8086_v24 = vmax.f32 %v7788_v48, 0.0  ;;  %v15605_v5 = vadd.f32 %v15513_v49, %v14352_v46  ;;  %v6814_v53 = vmul.f32 %v15416_v18, %v6813_v23 }
 0x954   : > { %v7805_v7 = vpop.f32.mrb[167].mxu0  ;;  %v12753_v20 = vpop.eup %12752  ;;  %8006 = vmatprep.mubr.bf16.mxu0 %v12521_v22  ;;  %12762 = vlog2.f32 %v6818_v41  ;;  %v6821_v33 = vmul.f32 -0.5, %v15449_v2  ;;  %v6171_v39 = vsub.f32 0.0, %v6091_v56  ;;  %v6824_v28 = vand.u32 2147483647, %v15449_v2 }
 0x955   : > { %v15607_v26 = vpop.eup %12754  ;;  %v6802_v43 = vmul.f32 0.6931472, %v12753_v20  ;;  %v8162_v58 = vpack.c.bf16 %v8086_v24, %v8085_v54  ;;  %v6092_v15 = vand.u32 2147483647, %v15605_v5  ;;  %12764 = vpow2.f32 %v6310_v59 }
 0x956   : > { %v15617_v49 = vpop.eup %12756  ;;  %v6827_v23 = vadd.f32 1.0, %v15472_v44  ;;  %v5862_v20 = vadd.f32 %v15505_v27, %v14355_v40  ;;  %v6830_v24 = vmul.f32 -0.5, %v15472_v44  ;;  %v5866_v18 = vadd.f32 %v15524_v30, %v14355_v40 }
 0x957   : > { %v15611_v9 = vpop.f32.mrb[196].mxu1  ;;  %v6808_v22 = vsel %vm15588_vm2, %v6805_v19, %v6802_v43  ;;  %v12759_v56 = vpop.eup %12758  ;;  %v6172_v54 = vsub.f32 0.0, %v6092_v15  ;;  %12068 = vmatmul.mubr.bf16.gmra.mrb[228].mxu1 %v8162_v58  ;;  %v6822_v43 = vadd.f32 1.0, %v6821_v33  ;;  %vm15637_vm4 = vcmp.lt.f32.partialorder %v6824_v28, 0.0004427343 }
 0x958   : > { %v15615_v48 = vpop.f32.mrb[197].mxu1  ;;  %v7120_v7 = vadd.f32 %v6808_v22, %v6000_v25  ;;  %v6811_v59 = vmul.f32 0.6931472, %v12759_v56  ;;  %12766 = vlog2.f32 %v6827_v23  ;;  %v6312_v25 = vmul.f32 1.442695, %v6171_v39 }
 0x959   : > { %v15623_v41 = vpop.f32.mrb[198].mxu1  ;;  %v15630_v19 = vpop.f32.mrb[168].mxu0  ;;  %v7793_v58 = vadd.f32 %v15368_v11, %v15529_v50  ;;  %v15645_v15 = vadd.f32 %v15531_v14, %v14352_v46  ;;  %v6833_v22 = vand.u32 2147483647, %v15472_v44  ;;  %v7181_v23 = vpack.c.bf16 %v5866_v18, %v5862_v20 }
 0x95a   : > { %v15632_v31 = vpop.f32.mrb[199].mxu1  ;;  %v7810_v0 = vpop.f32.mrb[169].mxu0  ;;  %10145 = vperm.xlu0 %12328, %v7120_v7   ;;  %v6817_v30 = vsel %vm15599_vm3, %v6814_v53, %v6811_v59  ;;  %v7796_v39 = vadd.f32 %v15368_v11, %v15539_v61  ;;  %v17150_v56 = vmax.f32 %v15290_v35, 0.0  ;;  %v6831_v14 = vadd.f32 1.0, %v6830_v24  ;;  %v12531_v24 = vld [vmem:[%s17041_s9 + $0x8] sm:$0xff]  }
 0x95b   : > { %v15647_v33 = vpop.f32.mrb[170].mxu0  ;;  %v6314_v0 = vmul.f32 1.442695, %v6172_v54  ;;  %v8087_v57 = vmax.f32 %v7793_v58, 0.0  ;;  %v6093_v34 = vand.u32 2147483647, %v15645_v15  ;;  %8007 = vmatmul.mubr.bf16.gmra.mrb[12].mxu0 %v7181_v23  ;;  %12768 = vpow2.f32 %v6312_v25  ;;  %12145 = vmatprep.subr.bf16.mxu0 %v12531_v24 }
 0x95c   : > { %v7813_v28 = vpop.f32.mrb[171].mxu0  ;;  %v7121_v7 = vadd.f32 %v6817_v30, %v17150_v56  ;;  %v15657_v16 = vpop.eup %12760  ;;  %v8088_v53 = vmax.f32 %v7796_v39, 0.0  ;;  %v6836_v59 = vadd.f32 1.0, %v15501_v4  ;;  %v6839_v35 = vmul.f32 -0.5, %v15501_v4  ;;  %8014 = vmatprep.mubr.bf16.mxu0 %v12522_v51  ;;  %12146 = vmatpush3.bf16.msra.mxu0 %v12531_v24 }
 0x95d   : > { %v15666_v61 = vadd.f32 %v15562_v21, %v14352_v46  ;;  %v6845_v20 = vadd.f32 1.0, %v15535_v12  ;;  %vm15674_vm5 = vcmp.lt.f32.partialorder %v6833_v22, 0.0004427343  ;;  %v6173_v25 = vsub.f32 0.0, %v6093_v34 }
 0x95e   : > { %10150 = vperm.xlu1 %12329, %v7121_v7   ;;  %v12763_v58 = vpop.eup %12762  ;;  %v8163_v23 = vpack.c.bf16 %v8088_v53, %v8087_v57  ;;  %12770 = vlog2.f32 %v6836_v59  ;;  %v6823_v28 = vmul.f32 %v15449_v2, %v6822_v43  ;;  %v6842_v51 = vand.u32 2147483647, %v15501_v4 }
 0x95f   : > { %v15661_v18 = vpop.f32.mrb[200].mxu1  ;;  %v6820_v21 = vmul.f32 0.6931472, %v12763_v58  ;;  %12772 = vlog2.f32 %v6845_v20  ;;  %v15684_v7 = vpop.eup %12764  ;;  %v6832_v22 = vmul.f32 %v15472_v44, %v6831_v14  ;;  %v6094_v34 = vand.u32 2147483647, %v15666_v61 }
 0x960   : > { %v15669_v54 = vpop.f32.mrb[201].mxu1  ;;  %12774 = vpow2.f32 %v6314_v0  ;;  %12071 = vmatprep.mubr.bf16.mxu1 %v8163_v23  ;;  %v6840_v43 = vadd.f32 1.0, %v6839_v35  ;;  %v5872_v59 = vadd.f32 %v15558_v3, %v14355_v40  ;;  %v5876_v0 = vadd.f32 %v15568_v32, %v14355_v40  ;;  %v12523_v20 = vld [vmem:[%s13005_s17 + $0x214] ss:$8 sps:$4 sm:$0xff]   ;;  %v12524_v35 = vld [vmem:[%s13005_s17 + $0x224] ss:$8 sps:$4 sm:$0xff]  }
 0x961   : > { %v15678_v39 = vpop.f32.mrb[202].mxu1  ;;  %v15682_v56 = vpop.f32.mrb[172].mxu0  ;;  %v6826_v2 = vsel %vm15637_vm4, %v6823_v28, %v6820_v21  ;;  %v17153_v58 = vmax.f32 %v15319_v36, 0.0  ;;  %v6316_v23 = vmul.f32 1.442695, %v6173_v25  ;;  %v6174_v50 = vsub.f32 0.0, %v6094_v34 }
 0x962   : > { %v15689_v53 = vpop.f32.mrb[203].mxu1  ;;  %v7818_v44 = vpop.f32.mrb[173].mxu0  ;;  %v6848_v24 = vmul.f32 -0.5, %v15535_v12  ;;  %vm15703_vm6 = vcmp.lt.f32.partialorder %v6842_v51, 0.0004427343  ;;  %v7182_v3 = vpack.c.bf16 %v5876_v0, %v5872_v59  ;;  %v7801_v32 = vadd.f32 %v15368_v11, %v15580_v52 }
 0x963   : > { %v12767_v14 = vpop.eup %12766  ;;  %v7122_v57 = vadd.f32 %v6826_v2, %v17153_v58  ;;  %v15701_v47 = vpop.f32.mrb[174].mxu0  ;;  %v6318_v28 = vmul.f32 1.442695, %v6174_v50  ;;  %v6851_v36 = vand.u32 2147483647, %v15535_v12  ;;  %v15712_v25 = vadd.f32 %v15582_v63, %v14352_v46 }
 0x964   : > { %v6829_v27 = vmul.f32 0.6931472, %v12767_v14  ;;  %v7821_v21 = vpop.f32.mrb[175].mxu0  ;;  %v7804_v34 = vadd.f32 %v15368_v11, %v15595_v37  ;;  %v6841_v59 = vmul.f32 %v15501_v4, %v6840_v43  ;;  %v6854_v50 = vadd.f32 1.0, %v15545_v6  ;;  %8015 = vmatmul.mubr.bf16.gmra.mrb[16].mxu0 %v7182_v3 }
 0x965   : > { %10155 = vperm.xlu0 %12328, %v7122_v57   ;;  %v17156_v63 = vmax.f32 %v15339_v29, 0.0  ;;  %12776 = vpow2.f32 %v6316_v23  ;;  %v6849_v44 = vadd.f32 1.0, %v6848_v24  ;;  %v6095_v37 = vand.u32 2147483647, %v15712_v25  ;;  %8022 = vmatprep.mubr.bf16.mxu0 %v12523_v20  ;;  %v15730_v30 = vpop.eup %12768 }
 0x966   : > { %v6835_v2 = vsel %vm15674_vm5, %v6832_v22, %v6829_v27  ;;  %v8089_v4 = vmax.f32 %v7801_v32, 0.0  ;;  %v8090_v22 = vmax.f32 %v7804_v34, 0.0  ;;  %12778 = vlog2.f32 %v6854_v50 }
 0x967   : > { %v15716_v51 = vpop.f32.mrb[204].mxu1  ;;  %v7123_v0 = vadd.f32 %v6835_v2, %v17156_v63  ;;  %v6857_v43 = vmul.f32 -0.5, %v15545_v6  ;;  %12780 = vpow2.f32 %v6318_v28  ;;  %vm15737_vm7 = vcmp.lt.f32.partialorder %v6851_v36, 0.0004427343 }
 0x968   : > { %v15723_v57 = vpop.f32.mrb[205].mxu1  ;;  %v12771_v29 = vpop.eup %12770  ;;  %v15743_v20 = vadd.f32 %v15615_v48, %v14352_v46  ;;  %v6863_v24 = vadd.f32 1.0, %v15607_v26  ;;  %v6175_v34 = vsub.f32 0.0, %v6095_v37  ;;  %v8164_v2 = vpack.c.bf16 %v8090_v22, %v8089_v4 }
 0x969   : > { %v15728_v14 = vpop.f32.mrb[206].mxu1  ;;  %v15733_v58 = vpop.f32.mrb[176].mxu0  ;;  %10160 = vperm.xlu1 %12329, %v7123_v0   ;;  %v6838_v21 = vmul.f32 0.6931472, %v12771_v29  ;;  %v6866_v50 = vmul.f32 -0.5, %v15607_v26  ;;  %v6850_v0 = vmul.f32 %v15535_v12, %v6849_v44  ;;  %v6858_v4 = vadd.f32 1.0, %v6857_v43 }
 0x96a   : > { %v15735_v27 = vpop.f32.mrb[207].mxu1  ;;  %v7826_v3 = vpop.f32.mrb[177].mxu0  ;;  %v6860_v48 = vand.u32 2147483647, %v15545_v6  ;;  %12782 = vlog2.f32 %v6863_v24  ;;  %v6096_v22 = vand.u32 2147483647, %v15743_v20  ;;  %12072 = vmatmul.mubr.bf16.gmra.mrb[232].mxu1 %v8164_v2  ;;  %v5882_v12 = vadd.f32 %v15611_v9, %v14355_v40 }
 0x96b   : > { %v12773_v32 = vpop.eup %12772  ;;  %v15747_v63 = vpop.f32.mrb[178].mxu0  ;;  %v6844_v3 = vsel %vm15703_vm6, %v6841_v59, %v6838_v21  ;;  %v6320_v43 = vmul.f32 1.442695, %v6175_v34  ;;  %v6867_v21 = vadd.f32 1.0, %v6866_v50  ;;  %v7809_v23 = vadd.f32 %v15368_v11, %v15630_v19 }
 0x96c   : > { %v15749_v28 = vpop.eup %12774  ;;  %v6847_v36 = vmul.f32 0.6931472, %v12773_v32  ;;  %v7829_v52 = vpop.f32.mrb[179].mxu0  ;;  %v7124_v29 = vadd.f32 %v6844_v3, %v6004_v17  ;;  %v6176_v24 = vsub.f32 0.0, %v6096_v22  ;;  %v15776_v9 = vadd.f32 %v15632_v31, %v14352_v46 }
 0x96d   : > { %v5886_v52 = vadd.f32 %v15623_v41, %v14355_v40  ;;  %v7812_v41 = vadd.f32 %v15368_v11, %v15647_v33  ;;  %v6859_v10 = vmul.f32 %v15545_v6, %v6858_v4  ;;  %vm15783_vm8 = vcmp.lt.f32.partialorder %v6860_v48, 0.0004427343 }
 0x96e   : > { %v6853_v32 = vsel %vm15737_vm7, %v6850_v0, %v6847_v36  ;;  %10165 = vperm.xlu0 %12328, %v7124_v29   ;;  %17159 = vst [vmem:[#allocation4_spill] sm:$0xff] %v15776_v9  ;;  %v6869_v34 = vand.u32 2147483647, %v15607_v26  ;;  %v6872_v19 = vadd.f32 1.0, %v15617_v49  ;;  %v8091_v36 = vmax.f32 %v7809_v23, 0.0 }
 0x96f   : > { %v15766_v59 = vpop.f32.mrb[208].mxu1  ;;  %v7125_v44 = vadd.f32 %v6853_v32, %v6005_v13  ;;  %v7183_v17 = vpack.c.bf16 %v5886_v52, %v5882_v12  ;;  %v15789_v50 = vpop.eup %12776  ;;  %v6097_v33 = vand.u32 2147483647, %v15776_v9  ;;  %v8092_v0 = vmax.f32 %v7812_v41, 0.0 }
 0x970   : > { %v15770_v38 = vpop.f32.mrb[209].mxu1  ;;  %v12779_v6 = vpop.eup %12778  ;;  %12784 = vpow2.f32 %v6320_v43  ;;  %v6322_v48 = vmul.f32 1.442695, %v6176_v24  ;;  %v6868_v4 = vmul.f32 %v15607_v26, %v6867_v21  ;;  %v6875_v22 = vmul.f32 -0.5, %v15617_v49 }
 0x971   : > { %v15780_v2 = vpop.f32.mrb[210].mxu1  ;;  %10170 = vperm.xlu1 %12329, %v7125_v44   ;;  %8023 = vmatmul.mubr.bf16.gmra.mrb[20].mxu0 %v7183_v17  ;;  %v15793_v3 = vpop.f32.mrb[180].mxu0  ;;  %v6856_v52 = vmul.f32 0.6931472, %v12779_v6  ;;  %v6177_v44 = vsub.f32 0.0, %v6097_v33  ;;  %v8165_v23 = vpack.c.bf16 %v8092_v0, %v8091_v36  ;;  %12786 = vlog2.f32 %v6872_v19 }
 0x972   : > { %8030 = vmatprep.mubr.bf16.mxu0 %v12524_v35  ;;  %v15797_v29 = vpop.f32.mrb[211].mxu1  ;;  %v7834_v32 = vpop.f32.mrb[181].mxu0  ;;  %vm15803_vm9 = vcmp.lt.f32.partialorder %v6869_v34, 0.0004427343  ;;  %v6878_v26 = vand.u32 2147483647, %v15617_v49  ;;  %v15810_v35 = vadd.f32 %v15669_v54, %v14352_v46  ;;  %v5892_v34 = vadd.f32 %v15661_v18, %v14355_v40 }
 0x973   : > { %v15799_v12 = vpop.eup %12780  ;;  %v15801_v17 = vpop.f32.mrb[182].mxu0  ;;  %v6881_v24 = vadd.f32 1.0, %v15657_v16  ;;  %v6862_v36 = vsel %vm15783_vm8, %v6859_v10, %v6856_v52  ;;  %v5896_v33 = vadd.f32 %v15678_v39, %v14355_v40  ;;  %12075 = vmatprep.mubr.bf16.mxu1 %v8165_v23  ;;  %v12525_v0 = vld [vmem:[%s13005_s17 + $0x234] ss:$8 sps:$4 sm:$0xff]   ;;  %v6884_v10 = vmul.f32 -0.5, %v15657_v16 }
 0x974   : > { %17164 = vst [vmem:[#allocation5_spill] sm:$0xff] %v15810_v35  ;;  %v7837_v21 = vpop.f32.mrb[183].mxu0  ;;  %v12783_v41 = vpop.eup %12782  ;;  %v7126_v54 = vadd.f32 %v6862_v36, %v6006_v62  ;;  %12788 = vpow2.f32 %v6322_v48  ;;  %v6324_v52 = vmul.f32 1.442695, %v6177_v44  ;;  %v6876_v18 = vadd.f32 1.0, %v6875_v22 }
 0x975   : > { %v6865_v32 = vmul.f32 0.6931472, %v12783_v41  ;;  %v6098_v21 = vand.u32 2147483647, %v15810_v35  ;;  %v7184_v19 = vpack.c.bf16 %v5896_v33, %v5892_v34  ;;  %12790 = vlog2.f32 %v6881_v24 }
 0x976   : > { %10175 = vperm.xlu0 %12328, %v7126_v54   ;;  %v7817_v23 = vadd.f32 %v15368_v11, %v15682_v56  ;;  %v17165_v48 = vmax.f32 %v15447_v60, 0.0  ;;  %vm15841_vm10 = vcmp.lt.f32.partialorder %v6878_v26, 0.0004427343  ;;  %v15847_v34 = vadd.f32 %v15689_v53, %v14352_v46 }
 0x977   : > { %v15821_v6 = vpop.f32.mrb[212].mxu1  ;;  %v6871_v45 = vsel %vm15803_vm9, %v6868_v4, %v6865_v32  ;;  %v6178_v62 = vsub.f32 0.0, %v6098_v21  ;;  %v7820_v4 = vadd.f32 %v15368_v11, %v15701_v47  ;;  %v6885_v56 = vadd.f32 1.0, %v6884_v10 }
 0x978   : > { %v15827_v13 = vpop.f32.mrb[213].mxu1  ;;  %v7127_v22 = vadd.f32 %v6871_v45, %v17165_v48  ;;  %17168 = vst [vmem:[#allocation6_spill] sm:$0xff] %v15847_v34  ;;  %v6887_v24 = vand.u32 2147483647, %v15657_v16  ;;  %v6890_v60 = vadd.f32 1.0, %v15684_v7  ;;  %v6893_v26 = vmul.f32 -0.5, %v15684_v7 }
 0x979   : > { %v15829_v31 = vpop.f32.mrb[214].mxu1  ;;  %v15831_v39 = vpop.f32.mrb[184].mxu0  ;;  %8031 = vmatmul.mubr.bf16.gmra.mrb[24].mxu0 %v7184_v19  ;;  %v6877_v54 = vmul.f32 %v15617_v49, %v6876_v18  ;;  %v8093_v53 = vmax.f32 %v7817_v23, 0.0  ;;  %v6099_v32 = vand.u32 2147483647, %v15847_v34  ;;  %v8094_v21 = vmax.f32 %v7820_v4, 0.0 }
 0x97a   : > { %v15837_v41 = vpop.f32.mrb[215].mxu1  ;;  %v7842_v36 = vpop.f32.mrb[185].mxu0  ;;  %8038 = vmatprep.mubr.bf16.mxu0 %v12525_v0  ;;  %10180 = vperm.xlu1 %12329, %v7127_v22   ;;  %12792 = vpow2.f32 %v6324_v52  ;;  %v6326_v10 = vmul.f32 1.442695, %v6178_v62  ;;  %v15863_v45 = vadd.f32 %v15723_v57, %v14352_v46  ;;  %v6896_v49 = vand.u32 2147483647, %v15684_v7 }
 0x97b   : > { %v15851_v43 = vpop.f32.mrb[186].mxu0  ;;  %v15858_v47 = vpop.eup %12784  ;;  %v6179_v0 = vsub.f32 0.0, %v6099_v32  ;;  %v8166_v48 = vpack.c.bf16 %v8094_v21, %v8093_v53  ;;  %12794 = vlog2.f32 %v6890_v60  ;;  %v6886_v22 = vmul.f32 %v15657_v16, %v6885_v56 }
 0x97c   : > { %v7845_v33 = vpop.f32.mrb[187].mxu0  ;;  %17169 = vst [vmem:[#allocation7_spill] sm:$0xff] %v15863_v45  ;;  %v12787_v36 = vpop.eup %12786  ;;  %vm15869_vm11 = vcmp.lt.f32.partialorder %v6887_v24, 0.0004427343  ;;  %v6894_v62 = vadd.f32 1.0, %v6893_v26  ;;  %v5902_v60 = vadd.f32 %v15716_v51, %v14355_v40  ;;  %v6899_v53 = vadd.f32 1.0, %v15730_v30 }
 0x97d   : > { %v6874_v23 = vmul.f32 0.6931472, %v12787_v36  ;;  %v6100_v33 = vand.u32 2147483647, %v15863_v45  ;;  %12076 = vmatmul.mubr.bf16.gmra.mrb[236].mxu1 %v8166_v48  ;;  %v6328_v56 = vmul.f32 1.442695, %v6179_v0  ;;  %v5906_v26 = vadd.f32 %v15728_v14, %v14355_v40 }
 0x97e   : > { %v6902_v24 = vmul.f32 -0.5, %v15730_v30  ;;  %v15889_v36 = vpop.eup %12788  ;;  %v17172_v51 = vmax.f32 %v15477_v42, 0.0  ;;  %12796 = vpow2.f32 %v6326_v10  ;;  %vm15893_vm12 = vcmp.lt.f32.partialorder %v6896_v49, 0.0004427343 }
 0x97f   : > { %v15866_v18 = vpop.f32.mrb[216].mxu1  ;;  %v6880_v16 = vsel %vm15841_vm10, %v6877_v54, %v6874_v23  ;;  %v7825_v44 = vadd.f32 %v15368_v11, %v15733_v58  ;;  %v12527_v54 = vld [vmem:[%s13005_s17 + $0x244] ss:$8 sps:$4 sm:$0xff]   ;;  %v12791_v14 = vpop.eup %12790  ;;  %v6895_v23 = vmul.f32 %v15684_v7, %v6894_v62  ;;  %12798 = vlog2.f32 %v6899_v53  ;;  %v15911_v11 = vld [vmem:[%s17037_s5 + $0x8] ss:$0 sm:$0xff] }
 0x980   : > { %v15873_v4 = vpop.f32.mrb[217].mxu1  ;;  %v7128_v57 = vadd.f32 %v6880_v16, %v17172_v51  ;;  %v6905_v19 = vand.u32 2147483647, %v15730_v30  ;;  %v7185_v37 = vpack.c.bf16 %v5906_v26, %v5902_v60  ;;  %v6883_v10 = vmul.f32 0.6931472, %v12791_v14 }
 0x981   : > { %v15885_v32 = vpop.f32.mrb[218].mxu1  ;;  %v15887_v21 = vpop.f32.mrb[188].mxu0  ;;  %v6180_v49 = vsub.f32 0.0, %v6100_v33  ;;  %v15906_v16 = vadd.f32 %v15735_v27, %v14352_v46  ;;  %v7828_v7 = vadd.f32 %v15911_v11, %v15747_v63  ;;  %12800 = vpow2.f32 %v6328_v56 }
 0x982   : > { %v15900_v0 = vpop.f32.mrb[219].mxu1  ;;  %v7850_v42 = vpop.f32.mrb[189].mxu0  ;;  %10185 = vperm.xlu0 %12328, %v7128_v57   ;;  %v6903_v57 = vadd.f32 1.0, %v6902_v24  ;;  %v6908_v60 = vadd.f32 1.0, %v15749_v28  ;;  %8039 = vmatmul.mubr.bf16.gmra.mrb[28].mxu0 %v7185_v37  ;;  %v6889_v27 = vsel %vm15869_vm11, %v6886_v22, %v6883_v10  ;;  %v8095_v53 = vmax.f32 %v7825_v44, 0.0 }
 0x983   : > { %v15915_v58 = vpop.f32.mrb[190].mxu0  ;;  %v6101_v26 = vand.u32 2147483647, %v15906_v16  ;;  %v8096_v51 = vmax.f32 %v7828_v7, 0.0  ;;  %8046 = vmatprep.mubr.bf16.mxu0 %v12527_v54  ;;  %v17175_v56 = vmax.f32 %v15520_v1, 0.0  ;;  %v6911_v37 = vmul.f32 -0.5, %v15749_v28 }
 0x984   : > { %v7853_v33 = vpop.f32.mrb[191].mxu0  ;;  %v15924_v63 = vpop.eup %12792  ;;  %vm15928_vm13 = vcmp.lt.f32.partialorder %v6905_v19, 0.0004427343  ;;  %12802 = vlog2.f32 %v6908_v60  ;;  %v6330_v44 = vmul.f32 1.442695, %v6180_v49  ;;  %v15937_v7 = vadd.f32 %v15770_v38, %v14352_v46 }
 0x985   : > { %v7129_v42 = vadd.f32 %v6889_v27, %v17175_v56  ;;  %v12795_v52 = vpop.eup %12794  ;;  %v6181_v10 = vsub.f32 0.0, %v6101_v26  ;;  %v8167_v54 = vpack.c.bf16 %v8096_v51, %v8095_v53  ;;  %v6904_v60 = vmul.f32 %v15730_v30, %v6903_v57 }
 0x986   : > { %v6892_v19 = vmul.f32 0.6931472, %v12795_v52  ;;  %v6917_v27 = vadd.f32 1.0, %v15789_v50  ;;  %v6920_v56 = vmul.f32 -0.5, %v15789_v50  ;;  %v6914_v26 = vand.u32 2147483647, %v15749_v28 }
 0x987   : > { %v15922_v14 = vpop.f32.mrb[220].mxu1  ;;  %10190 = vperm.xlu1 %12329, %v7129_v42   ;;  %v5912_v38 = vadd.f32 %v15766_v59, %v14355_v40  ;;  %v6102_v51 = vand.u32 2147483647, %v15937_v7  ;;  %v5916_v42 = vadd.f32 %v15780_v2, %v14355_v40  ;;  %12079 = vmatprep.mubr.bf16.mxu1 %v8167_v54  ;;  %v6332_v57 = vmul.f32 1.442695, %v6181_v10 }
 0x988   : > { %v15933_v22 = vpop.f32.mrb[221].mxu1  ;;  %v6898_v30 = vsel %vm15893_vm12, %v6895_v23, %v6892_v19  ;;  %v6912_v62 = vadd.f32 1.0, %v6911_v37  ;;  %12804 = vlog2.f32 %v6917_v27  ;;  %v15959_v34 = vpop.eup %12796  ;;  %v17180_v59 = vmax.f32 %v15543_v55, 0.0  ;;  %v12529_v37 = vld [vmem:[%s13005_s17 + $0x264] ss:$8 sps:$4 sm:$0xff]  }
 0x989   : > { %v15939_v33 = vpop.f32.mrb[222].mxu1  ;;  %v15941_v1 = vpop.f32.mrb[192].mxu0  ;;  %12806 = vpow2.f32 %v6330_v44  ;;  %v6182_v9 = vsub.f32 0.0, %v6102_v51  ;;  %v6021_v54 = vmax.f32 %v15906_v16, 0.0  ;;  %v7833_v48 = vadd.f32 %v15911_v11, %v15793_v3 }
 0x98a   : > { %v15946_v49 = vpop.f32.mrb[223].mxu1  ;;  %v7858_v53 = vpop.f32.mrb[193].mxu0  ;;  %v7130_v35 = vadd.f32 %v6898_v30, %v17180_v59  ;;  %v15968_v23 = vadd.f32 %v15797_v29, %v14352_v46  ;;  %vm15970_vm14 = vcmp.lt.f32.partialorder %v6914_v26, 0.0004427343  ;;  %v7836_v55 = vadd.f32 %v15911_v11, %v15801_v17 }
 0x98b   : > { %17178 = vst [vmem:[#allocation8_spill] sm:$0xff] %v15946_v49  ;;  %v15954_v52 = vpop.f32.mrb[194].mxu0  ;;  %v12528_v53 = vld [vmem:[%s13005_s17 + $0x254] ss:$8 sps:$4 sm:$0xff]   ;;  %v7186_v49 = vpack.c.bf16 %v5916_v42, %v5912_v38  ;;  %v12799_v2 = vpop.eup %12798  ;;  %v6926_v44 = vadd.f32 1.0, %v15799_v12  ;;  %12808 = vpow2.f32 %v6332_v57  ;;  %v6913_v3 = vmul.f32 %v15749_v28, %v6912_v62 }
 0x98c   : > { %17179 = vst [vmem:[#allocation9_spill] sm:$0xff] %v15954_v52  ;;  %v7861_v45 = vpop.f32.mrb[195].mxu0  ;;  %v6921_v52 = vadd.f32 1.0, %v6920_v56  ;;  %10195 = vperm.xlu0 %12328, %v7130_v35   ;;  %v15977_v10 = vpop.eup %12800  ;;  %v6923_v29 = vand.u32 2147483647, %v15789_v50  ;;  %v8097_v56 = vmax.f32 %v7833_v48, 0.0 }
 0x98d   : > { %v6901_v45 = vmul.f32 0.6931472, %v12799_v2  ;;  %8047 = vmatmul.mubr.bf16.gmra.mrb[32].mxu0 %v7186_v49  ;;  %v6103_v35 = vand.u32 2147483647, %v15968_v23  ;;  %v6334_v27 = vmul.f32 1.442695, %v6182_v9  ;;  %12810 = vlog2.f32 %v6926_v44 }
 0x98e   : > { %8054 = vmatprep.mubr.bf16.mxu0 %v12528_v53  ;;  %v8098_v26 = vmax.f32 %v7836_v55, 0.0  ;;  %v12803_v38 = vpop.eup %12802  ;;  %v17183_v49 = vmax.f32 %v15577_v8, 0.0  ;;  %v6022_v42 = vmax.f32 %v15937_v7, 0.0  ;;  %v6922_v28 = vmul.f32 %v15789_v50, %v6921_v52 }
 0x98f   : > { %v6907_v19 = vsel %vm15928_vm13, %v6904_v60, %v6901_v45  ;;  %v6910_v30 = vmul.f32 0.6931472, %v12803_v38  ;;  %v6183_v57 = vsub.f32 0.0, %v6103_v35  ;;  %v6929_v24 = vmul.f32 -0.5, %v15799_v12 }
 0x990   : > { %v7131_v51 = vadd.f32 %v6907_v19, %v17183_v49  ;;  %v8168_v53 = vpack.c.bf16 %v8098_v26, %v8097_v56  ;;  %vm15993_vm15 = vcmp.lt.f32.partialorder %v6923_v29, 0.0004427343  ;;  %v6023_v8 = vmax.f32 %v15968_v23, 0.0 }
 0x991   : > { %v15984_v17 = vpop.f32.mrb[196].mxu0  ;;  %v16000_v50 = vadd.f32 %v15827_v13, %v14352_v46  ;;  %v6935_v52 = vadd.f32 1.0, %v15858_v47  ;;  %v6916_v2 = vsel %vm15970_vm14, %v6913_v3, %v6910_v30  ;;  %12812 = vpow2.f32 %v6334_v27 }
 0x992   : > { %v7866_v62 = vpop.f32.mrb[197].mxu0  ;;  %10200 = vperm.xlu1 %12329, %v7131_v51   ;;  %v6932_v48 = vand.u32 2147483647, %v15799_v12  ;;  %v5926_v45 = vadd.f32 %v15829_v31, %v14355_v40  ;;  %12080 = vmatmul.mubr.bf16.gmra.mrb[240].mxu1 %v8168_v53  ;;  %v12805_v55 = vpop.eup %12804  ;;  %v17186_v44 = vmax.f32 %v15605_v5, 0.0  ;;  %v5922_v13 = vadd.f32 %v15821_v6, %v14355_v40 }
 0x993   : > { %v15991_v9 = vpop.f32.mrb[198].mxu0  ;;  %v6104_v35 = vand.u32 2147483647, %v16000_v50  ;;  %v6938_v19 = vmul.f32 -0.5, %v15858_v47  ;;  %v16015_v3 = vpop.eup %12806  ;;  %v6919_v27 = vmul.f32 0.6931472, %v12805_v55  ;;  %12814 = vlog2.f32 %v6935_v52 }
 0x994   : > { %v7869_v59 = vpop.f32.mrb[199].mxu0  ;;  %v7132_v29 = vadd.f32 %v6916_v2, %v17186_v44  ;;  %v6336_v56 = vmul.f32 1.442695, %v6183_v57  ;;  %v6930_v26 = vadd.f32 1.0, %v6929_v24  ;;  %v7187_v38 = vpack.c.bf16 %v5926_v45, %v5922_v13 }
 0x995   : > { %v6184_v31 = vsub.f32 0.0, %v6104_v35  ;;  %v7841_v5 = vadd.f32 %v15911_v11, %v15831_v39  ;;  %v16021_v6 = vadd.f32 %v15837_v41, %v14352_v46  ;;  %v6925_v49 = vsel %vm15993_vm15, %v6922_v28, %v6919_v27  ;;  %v16034_v53 = vpop.eup %12808 }
 0x996   : > { %10205 = vperm.xlu0 %12328, %v7132_v29   ;;  %vm16025_vm0 = vcmp.lt.f32.partialorder %v6932_v48, 0.0004427343  ;;  %v7844_v62 = vadd.f32 %v15911_v11, %v15851_v43  ;;  %v6944_v30 = vadd.f32 1.0, %v15889_v36  ;;  %v17189_v39 = vmax.f32 %v15645_v15, 0.0  ;;  %8055 = vmatmul.mubr.bf16.gmra.mrb[36].mxu0 %v7187_v38 }
 0x997   : > { %v6338_v24 = vmul.f32 1.442695, %v6184_v31  ;;  %v6939_v52 = vadd.f32 1.0, %v6938_v19  ;;  %v6941_v28 = vand.u32 2147483647, %v15858_v47  ;;  %v8099_v59 = vmax.f32 %v7841_v5, 0.0  ;;  %8062 = vmatprep.mubr.bf16.mxu0 %v12529_v37  ;;  %v12811_v45 = vpop.eup %12810 }
 0x998   : > { %v7133_v41 = vadd.f32 %v6925_v49, %v17189_v39  ;;  %v6105_v2 = vand.u32 2147483647, %v16021_v6  ;;  %v8100_v48 = vmax.f32 %v7844_v62, 0.0  ;;  %12816 = vlog2.f32 %v6944_v30 }
 0x999   : > { %v16032_v57 = vpop.f32.mrb[200].mxu0  ;;  %12818 = vpow2.f32 %v6336_v56  ;;  %v6931_v15 = vmul.f32 %v15799_v12, %v6930_v26  ;;  %v6024_v55 = vmax.f32 %v16000_v50, 0.0  ;;  %v16046_v44 = vadd.f32 %v15873_v4, %v14352_v46 }
 0x99a   : > { %v7874_v60 = vpop.f32.mrb[201].mxu0  ;;  %10210 = vperm.xlu1 %12329, %v7133_v41   ;;  %v6928_v13 = vmul.f32 0.6931472, %v12811_v45  ;;  %v8169_v35 = vpack.c.bf16 %v8100_v48, %v8099_v59  ;;  %v6947_v19 = vmul.f32 -0.5, %v15889_v36  ;;  %v6950_v37 = vand.u32 2147483647, %v15889_v36 }
 0x99b   : > { %v16040_v43 = vpop.f32.mrb[202].mxu0  ;;  %vm16050_vm1 = vcmp.lt.f32.partialorder %v6941_v28, 0.0004427343  ;;  %v6185_v56 = vsub.f32 0.0, %v6105_v2  ;;  %v6106_v12 = vand.u32 2147483647, %v16046_v44  ;;  %v16056_v31 = vpop.eup %12812  ;;  %12820 = vpow2.f32 %v6338_v24 }
 0x99c   : > { %v7877_v29 = vpop.f32.mrb[203].mxu0  ;;  %v6953_v26 = vadd.f32 1.0, %v15924_v63  ;;  %v6934_v4 = vsel %vm16025_vm0, %v6931_v15, %v6928_v13  ;;  %v6940_v38 = vmul.f32 %v15858_v47, %v6939_v52  ;;  %v6025_v5 = vmax.f32 %v16021_v6, 0.0  ;;  %12083 = vmatprep.mubr.bf16.mxu1 %v8169_v35 }
 0x99d   : > { %v17192_v49 = vmax.f32 %v15666_v61, 0.0  ;;  %v5932_v30 = vadd.f32 %v15866_v18, %v14355_v40  ;;  %v6956_v39 = vmul.f32 -0.5, %v15924_v63  ;;  %v12815_v41 = vpop.eup %12814  ;;  %v6948_v28 = vadd.f32 1.0, %v6947_v19  ;;  %v12530_v61 = vld [vmem:[%s13005_s17 + $0x274] ss:$8 sps:$4 sm:$0xff]  }
 0x99e   : > { %12822 = vlog2.f32 %v6953_v26  ;;  %vm16067_vm2 = vcmp.lt.f32.partialorder %v6950_v37, 0.0004427343  ;;  %v5936_v47 = vadd.f32 %v15885_v32, %v14355_v40  ;;  %v7849_v24 = vadd.f32 %v15911_v11, %v15887_v21 }
 0x99f   : > { %v7134_v62 = vadd.f32 %v6934_v4, %v17192_v49  ;;  %v6937_v18 = vmul.f32 0.6931472, %v12815_v41  ;;  %v6340_v60 = vmul.f32 1.442695, %v6185_v56  ;;  %v6186_v59 = vsub.f32 0.0, %v6106_v12 }
 0x9a0   : > { %v16080_v2 = vadd.f32 %v15900_v0, %v14352_v46  ;;  %v6026_v48 = vmax.f32 %v16046_v44, 0.0  ;;  %v6959_v45 = vand.u32 2147483647, %v15924_v63  ;;  %v7188_v15 = vpack.c.bf16 %v5936_v47, %v5932_v30 }
 0x9a1   : > { %v16076_v52 = vpop.f32.mrb[204].mxu0  ;;  %10215 = vperm.xlu0 %12328, %v7134_v62   ;;  %v7852_v32 = vadd.f32 %v15911_v11, %v15915_v58  ;;  %v6943_v29 = vsel %vm16050_vm1, %v6940_v38, %v6937_v18  ;;  %v6957_v13 = vadd.f32 1.0, %v6956_v39  ;;  %v8101_v35 = vmax.f32 %v7849_v24, 0.0 }
 0x9a2   : > { %v7882_v21 = vpop.f32.mrb[205].mxu0  ;;  %v6107_v19 = vand.u32 2147483647, %v16080_v2  ;;  %v12817_v0 = vpop.eup %12816  ;;  %v17195_v56 = vmax.f32 %v15712_v25, 0.0  ;;  %v6962_v4 = vadd.f32 1.0, %v15959_v34  ;;  %v6965_v49 = vmul.f32 -0.5, %v15959_v34  ;;  %8063 = vmatmul.mubr.bf16.gmra.mrb[40].mxu0 %v7188_v15 }
 0x9a3   : > { %v16089_v37 = vpop.f32.mrb[206].mxu0  ;;  %v8102_v26 = vmax.f32 %v7852_v32, 0.0  ;;  %v16095_v62 = vpop.eup %12818  ;;  %12824 = vpow2.f32 %v6340_v60  ;;  %v6946_v27 = vmul.f32 0.6931472, %v12817_v0  ;;  %v6949_v38 = vmul.f32 %v15889_v36, %v6948_v28  ;;  %8070 = vmatprep.mubr.bf16.mxu0 %v12530_v61 }
 0x9a4   : > { %v7135_v12 = vadd.f32 %v6943_v29, %v17195_v56  ;;  %v7885_v58 = vpop.f32.mrb[207].mxu0  ;;  %v6342_v30 = vmul.f32 1.442695, %v6186_v59  ;;  %vm16098_vm3 = vcmp.lt.f32.partialorder %v6959_v45, 0.0004427343  ;;  %12826 = vlog2.f32 %v6962_v4 }
 0x9a5   : > { %v8170_v25 = vpack.c.bf16 %v8102_v26, %v8101_v35  ;;  %v16104_v41 = vadd.f32 %v15933_v22, %v14352_v46  ;;  %v6952_v47 = vsel %vm16067_vm2, %v6949_v38, %v6946_v27  ;;  %v6187_v24 = vsub.f32 0.0, %v6107_v19  ;;  %v16110_v28 = vpop.eup %12820  ;;  %v17203_v27 = vld [vmem:[#allocation4_spill] sm:$0xff] }
 0x9a6   : > { %10220 = vperm.xlu1 %12329, %v7135_v12   ;;  %v6968_v18 = vand.u32 2147483647, %v15959_v34  ;;  %v6971_v36 = vadd.f32 1.0, %v15977_v10  ;;  %v17198_v61 = vmax.f32 %v15743_v20, 0.0  ;;  %v6958_v59 = vmul.f32 %v15924_v63, %v6957_v13  ;;  %v17201_v12 = vld [vmem:[#allocation8_spill] sm:$0xff] }
 0x9a7   : > { %v6966_v45 = vadd.f32 1.0, %v6965_v49  ;;  %v6108_v15 = vand.u32 2147483647, %v16104_v41  ;;  %12084 = vmatmul.mubr.bf16.gmra.mrb[244].mxu1 %v8170_v25  ;;  %12828 = vpow2.f32 %v6342_v30  ;;  %v5942_v32 = vadd.f32 %v15922_v14, %v14355_v40 }
 0x9a8   : > { %v7136_v60 = vadd.f32 %v6952_v47, %v17198_v61  ;;  %v12823_v51 = vpop.eup %12822  ;;  %v6974_v21 = vmul.f32 -0.5, %v15977_v10  ;;  %v5946_v29 = vadd.f32 %v15939_v33, %v14355_v40  ;;  %v6027_v63 = vmax.f32 %v16080_v2, 0.0 }
 0x9a9   : > { %v16116_v22 = vpop.f32.mrb[208].mxu0  ;;  %v6955_v35 = vmul.f32 0.6931472, %v12823_v51  ;;  %12830 = vlog2.f32 %v6971_v36  ;;  %v7857_v13 = vadd.f32 %v15911_v11, %v15941_v1  ;;  %v6344_v0 = vmul.f32 1.442695, %v6187_v24  ;;  %v17202_v1 = vld [vmem:[#allocation9_spill] sm:$0xff] }
 0x9aa   : > { %v7890_v20 = vpop.f32.mrb[209].mxu0  ;;  %10225 = vperm.xlu0 %12328, %v7136_v60   ;;  %vm16128_vm4 = vcmp.lt.f32.partialorder %v6968_v18, 0.0004427343  ;;  %v7189_v14 = vpack.c.bf16 %v5946_v29, %v5942_v32  ;;  %v16134_v40 = vadd.f32 %v17201_v12, %v14352_v46  ;;  %v6967_v4 = vmul.f32 %v15959_v34, %v6966_v45 }
 0x9ab   : > { %v16126_v19 = vpop.f32.mrb[210].mxu0  ;;  %v6961_v26 = vsel %vm16098_vm3, %v6958_v59, %v6955_v35  ;;  %v6188_v49 = vsub.f32 0.0, %v6108_v15  ;;  %v7860_v58 = vadd.f32 %v15911_v11, %v17202_v1  ;;  %v17204_v38 = vmax.f32 %v17203_v27, 0.0 }
 0x9ac   : > { %v7893_v33 = vpop.f32.mrb[211].mxu0  ;;  %v6975_v25 = vadd.f32 1.0, %v6974_v21  ;;  %v6977_v47 = vand.u32 2147483647, %v15977_v10  ;;  %v6109_v24 = vand.u32 2147483647, %v16134_v40  ;;  %8071 = vmatmul.mubr.bf16.gmra.mrb[44].mxu0 %v7189_v14  ;;  %12832 = vpow2.f32 %v6344_v0 }
 0x9ad   : > { %v7137_v30 = vadd.f32 %v6961_v26, %v17204_v38  ;;  %v8103_v46 = vmax.f32 %v7857_v13, 0.0  ;;  %v8104_v18 = vmax.f32 %v7860_v58, 0.0  ;;  %v6980_v39 = vadd.f32 1.0, %v16015_v3  ;;  %v16147_v34 = vpop.eup %12824 }
 0x9ae   : > { %v6983_v36 = vmul.f32 -0.5, %v16015_v3  ;;  %v6189_v61 = vsub.f32 0.0, %v6109_v24  ;;  %v6989_v60 = vadd.f32 1.0, %v16034_v53  ;;  %v6992_v59 = vmul.f32 -0.5, %v16034_v53  ;;  %v12827_v45 = vpop.eup %12826 }
 0x9af   : > { %10230 = vperm.xlu1 %12329, %v7137_v30   ;;  %v6346_v15 = vmul.f32 1.442695, %v6188_v49  ;;  %v8171_v51 = vpack.c.bf16 %v8104_v18, %v8103_v46  ;;  %12834 = vlog2.f32 %v6980_v39  ;;  %v6986_v32 = vand.u32 2147483647, %v16015_v3  ;;  %v17207_v30 = vld [vmem:[#allocation5_spill] sm:$0xff] }
 0x9b0   : > { %v6964_v29 = vmul.f32 0.6931472, %v12827_v45  ;;  %v6976_v20 = vmul.f32 %v15977_v10, %v6975_v25  ;;  %vm16155_vm5 = vcmp.lt.f32.partialorder %v6977_v47, 0.0004427343  ;;  %12836 = vlog2.f32 %v6989_v60 }
 0x9b1   : > { %v16152_v21 = vpop.f32.mrb[212].mxu0  ;;  %v6348_v13 = vmul.f32 1.442695, %v6189_v61  ;;  %v6984_v0 = vadd.f32 1.0, %v6983_v36  ;;  %v6995_v14 = vand.u32 2147483647, %v16034_v53  ;;  %v7865_v12 = vadd.f32 %v15911_v11, %v15984_v17  ;;  %12087 = vmatprep.mubr.bf16.mxu1 %v8171_v51  ;;  %v16162_v26 = vpop.eup %12828 }
 0x9b2   : > { %v7898_v33 = vpop.f32.mrb[213].mxu0  ;;  %v6970_v49 = vsel %vm16128_vm4, %v6967_v4, %v6964_v29  ;;  %v6993_v10 = vadd.f32 1.0, %v6992_v59  ;;  %v7868_v1 = vadd.f32 %v15911_v11, %v15991_v9  ;;  %v6998_v58 = vadd.f32 1.0, %v16056_v31 }
 0x9b3   : > { %v16169_v27 = vpop.f32.mrb[214].mxu0  ;;  %v12831_v38 = vpop.eup %12830  ;;  %v17208_v25 = vmax.f32 %v17207_v30, 0.0  ;;  %12838 = vpow2.f32 %v6346_v15  ;;  %vm16173_vm6 = vcmp.lt.f32.partialorder %v6986_v32, 0.0004427343  ;;  %v8105_v24 = vmax.f32 %v7865_v12, 0.0  ;;  %v17213_v15 = vld [vmem:[#allocation6_spill] sm:$0xff] }
 0x9b4   : > { %v7901_v56 = vpop.f32.mrb[215].mxu0  ;;  %v6973_v4 = vmul.f32 0.6931472, %v12831_v38  ;;  %v8106_v46 = vmax.f32 %v7868_v1, 0.0  ;;  %12840 = vlog2.f32 %v6998_v58  ;;  %v7001_v9 = vmul.f32 -0.5, %v16056_v31 }
 0x9b5   : > { %v7138_v47 = vadd.f32 %v6970_v49, %v17208_v25  ;;  %12842 = vpow2.f32 %v6348_v13  ;;  %v6985_v18 = vmul.f32 %v16015_v3, %v6984_v0  ;;  %vm16179_vm7 = vcmp.lt.f32.partialorder %v6995_v14, 0.0004427343 }
 0x9b6   : > { %v7007_v36 = vadd.f32 1.0, %v16095_v62  ;;  %v6979_v61 = vsel %vm16155_vm5, %v6976_v20, %v6973_v4  ;;  %v6994_v60 = vmul.f32 %v16034_v53, %v6993_v10  ;;  %v8172_v59 = vpack.c.bf16 %v8106_v46, %v8105_v24  ;;  %v16193_v13 = vpop.eup %12832 }
 0x9b7   : > { %10235 = vperm.xlu0 %12328, %v7138_v47   ;;  %v7873_v45 = vadd.f32 %v15911_v11, %v16032_v57  ;;  %v17214_v51 = vmax.f32 %v17213_v15, 0.0  ;;  %v7004_v3 = vand.u32 2147483647, %v16056_v31  ;;  %v7010_v29 = vmul.f32 -0.5, %v16095_v62 }
 0x9b8   : > { %12844 = vlog2.f32 %v7007_v36  ;;  %v7002_v0 = vadd.f32 1.0, %v7001_v9  ;;  %v7013_v35 = vand.u32 2147483647, %v16095_v62  ;;  %12088 = vmatmul.mubr.bf16.gmra.mrb[248].mxu1 %v8172_v59  ;;  %v7876_v53 = vadd.f32 %v15911_v11, %v16040_v43 }
 0x9b9   : > { %v7139_v32 = vadd.f32 %v6979_v61, %v17214_v51  ;;  %v7016_v20 = vadd.f32 1.0, %v16110_v28  ;;  %v12835_v57 = vpop.eup %12834  ;;  %v8107_v14 = vmax.f32 %v7873_v45, 0.0  ;;  %v7019_v12 = vmul.f32 -0.5, %v16110_v28  ;;  %v17219_v45 = vld [vmem:[#allocation7_spill] sm:$0xff] }
 0x9ba   : > { %v7022_v33 = vand.u32 2147483647, %v16110_v28  ;;  %v7025_v49 = vadd.f32 1.0, %v16147_v34  ;;  %v16202_v10 = vpop.f32.mrb[216].mxu0  ;;  %v12837_v1 = vpop.eup %12836  ;;  %v6982_v58 = vmul.f32 0.6931472, %v12835_v57  ;;  %v7003_v46 = vmul.f32 %v16056_v31, %v7002_v0 }
 0x9bb   : > { %10240 = vperm.xlu1 %12329, %v7139_v32   ;;  %v8108_v38 = vmax.f32 %v7876_v53, 0.0  ;;  %12846 = vlog2.f32 %v7016_v20  ;;  %v7028_v30 = vmul.f32 -0.5, %v16147_v34  ;;  %v7906_v43 = vpop.f32.mrb[217].mxu0  ;;  %v6991_v25 = vmul.f32 0.6931472, %v12837_v1 }
 0x9bc   : > { %vm16205_vm8 = vcmp.lt.f32.partialorder %v7004_v3, 0.0004427343  ;;  %v7011_v24 = vadd.f32 1.0, %v7010_v29  ;;  %12848 = vlog2.f32 %v7025_v49  ;;  %v16209_v56 = vpop.f32.mrb[218].mxu0  ;;  %v6988_v4 = vsel %vm16173_vm6, %v6985_v18, %v6982_v58 }
 0x9bd   : > { %vm16214_vm9 = vcmp.lt.f32.partialorder %v7013_v35, 0.0004427343  ;;  %v8173_v36 = vpack.c.bf16 %v8108_v38, %v8107_v14  ;;  %v7909_v61 = vpop.f32.mrb[219].mxu0  ;;  %v16218_v59 = vpop.eup %12838  ;;  %v17220_v15 = vmax.f32 %v17219_v45, 0.0  ;;  %v6997_v32 = vsel %vm16179_vm7, %v6994_v60, %v6991_v25 }
 0x9be   : > { %v7020_v3 = vadd.f32 1.0, %v7019_v12  ;;  %v7881_v17 = vadd.f32 %v15911_v11, %v16076_v52  ;;  %v12841_v18 = vpop.eup %12840  ;;  %v7141_v31 = vadd.f32 %v6997_v32, %v6021_v54  ;;  %vm16228_vm10 = vcmp.lt.f32.partialorder %v7022_v33, 0.0004427343  ;;  %v12532_v54 = vld [vmem:[%s17041_s9 + $0x10] sm:$0xff]   ;;  %v12533_v12 = vld [vmem:[%s17041_s9 + $0x18] sm:$0xff]  }
 0x9bf   : > { %v7140_v51 = vadd.f32 %v6988_v4, %v17220_v15  ;;  %v7029_v0 = vadd.f32 1.0, %v7028_v30  ;;  %12091 = vmatprep.mubr.bf16.mxu1 %v8173_v36  ;;  %v7884_v35 = vadd.f32 %v15911_v11, %v16089_v37  ;;  %v16234_v53 = vpop.eup %12842  ;;  %v7000_v39 = vmul.f32 0.6931472, %v12841_v18  ;;  %12147 = vmatprep.subr.bf16.mxu0 %v12532_v54 }
 0x9c0   : > { %v7012_v60 = vmul.f32 %v16095_v62, %v7011_v24  ;;  %v7034_v52 = vadd.f32 1.0, %v16162_v26  ;;  %v7037_v16 = vmul.f32 -0.5, %v16162_v26  ;;  %10250 = vperm.xlu1 %12329, %v7141_v31   ;;  %v7031_v20 = vand.u32 2147483647, %v16147_v34  ;;  %12148 = vmatpush3.bf16.msra.mxu0 %v12532_v54 }
 0x9c1   : > { %10245 = vperm.xlu0 %12328, %v7140_v51   ;;  %v8109_v57 = vmax.f32 %v7881_v17, 0.0  ;;  %v8110_v14 = vmax.f32 %v7884_v35, 0.0  ;;  %v7043_v37 = vadd.f32 1.0, %v16193_v13  ;;  %v7006_v33 = vsel %vm16205_vm8, %v7003_v46, %v7000_v39  ;;  %12149 = vmatprep.subr.bf16.mxu0 %v12533_v12 }
 0x9c2   : > { %v12845_v62 = vpop.eup %12844  ;;  %v7021_v49 = vmul.f32 %v16110_v28, %v7020_v3  ;;  %12850 = vlog2.f32 %v7034_v52  ;;  %v7046_v1 = vmul.f32 -0.5, %v16193_v13  ;;  %v7912_v58 = vpop.f32.mrb[220].mxu0  ;;  %v7142_v38 = vadd.f32 %v7006_v33, %v6022_v42 }
 0x9c3   : > { %v7009_v30 = vmul.f32 0.6931472, %v12845_v62  ;;  %v7030_v43 = vmul.f32 %v16147_v34, %v7029_v0  ;;  %v8174_v25 = vpack.c.bf16 %v8110_v14, %v8109_v57  ;;  %v7914_v24 = vpop.f32.mrb[221].mxu0  ;;  %v7038_v4 = vadd.f32 1.0, %v7037_v16 }
 0x9c4   : > { %v7040_v47 = vand.u32 2147483647, %v16162_v26  ;;  %12852 = vlog2.f32 %v7043_v37  ;;  %v7049_v28 = vand.u32 2147483647, %v16193_v13  ;;  %v7915_v46 = vpop.f32.mrb[222].mxu0  ;;  %v7889_v42 = vadd.f32 %v15911_v11, %v16116_v22  ;;  %12150 = vmatpush3.bf16.msra.mxu0 %v12533_v12 }
 0x9c5   : > { %v12847_v36 = vpop.eup %12846  ;;  %10255 = vperm.xlu0 %12328, %v7142_v38   ;;  %v7015_v7 = vsel %vm16214_vm9, %v7012_v60, %v7009_v30  ;;  %12092 = vmatmul.mubr.bf16.gmra.mrb[252].mxu1 %v8174_v25  ;;  %v7892_v34 = vadd.f32 %v15911_v11, %v16126_v19  ;;  %v7052_v61 = vadd.f32 1.0, %v16218_v59  ;;  %v7917_v45 = vpop.f32.mrb[223].mxu0  ;;  %v7047_v3 = vadd.f32 1.0, %v7046_v1 }
 0x9c6   : > { %v12849_v15 = vpop.eup %12848  ;;  %v7143_v51 = vadd.f32 %v7015_v7, %v6023_v8  ;;  %v7018_v32 = vmul.f32 0.6931472, %v12847_v36  ;;  %v7055_v17 = vmul.f32 -0.5, %v16218_v59  ;;  %v8111_v18 = vmax.f32 %v7889_v42, 0.0 }
 0x9c7   : > { %v7027_v9 = vmul.f32 0.6931472, %v12849_v15  ;;  %v8112_v31 = vmax.f32 %v7892_v34, 0.0  ;;  %12854 = vlog2.f32 %v7052_v61  ;;  %vm7032_vm11 = vcmp.lt.f32.partialorder %v7031_v20, 0.0004427343 }
 0x9c8   : > { %10260 = vperm.xlu1 %12329, %v7143_v51   ;;  %v7024_v22 = vsel %vm16228_vm10, %v7021_v49, %v7018_v32  ;;  %vm16268_vm12 = vcmp.lt.f32.partialorder %v7040_v47, 0.0004427343  ;;  %v7061_v23 = vadd.f32 1.0, %v16234_v53  ;;  %v7056_v39 = vadd.f32 1.0, %v7055_v17 }
 0x9c9   : > { %v7144_v8 = vadd.f32 %v7024_v22, %v6024_v55  ;;  %v7033_v0 = vsel %vm7032_vm11, %v7030_v43, %v7027_v9  ;;  %v8175_v35 = vpack.c.bf16 %v8112_v31, %v8111_v18  ;;  %v7039_v52 = vmul.f32 %v16162_v26, %v7038_v4 }
 0x9ca   : > { %v7145_v60 = vadd.f32 %v7033_v0, %v6025_v5  ;;  %vm16278_vm13 = vcmp.lt.f32.partialorder %v7049_v28, 0.0004427343  ;;  %12856 = vlog2.f32 %v7061_v23  ;;  %v7048_v16 = vmul.f32 %v16193_v13, %v7047_v3 }
 0x9cb   : > { %10265 = vperm.xlu0 %12328, %v7144_v8   ;;  %v7058_v54 = vand.u32 2147483647, %v16218_v59  ;;  %v7897_v50 = vadd.f32 %v15911_v11, %v16152_v21  ;;  %12095 = vmatprep.mubr.bf16.mxu1 %v8175_v35  ;;  %v7900_v6 = vadd.f32 %v15911_v11, %v16169_v27  ;;  %v7920_v55 = vpop.f32.mrb[224].mxu0  ;;  %v7905_v26 = vadd.f32 %v15911_v11, %v16202_v10 }
 0x9cc   : > { %v12851_v5 = vpop.eup %12850  ;;  %10270 = vperm.xlu1 %12329, %v7145_v60   ;;  %v7908_v20 = vadd.f32 %v15911_v11, %v16209_v56  ;;  %v7913_v13 = vadd.f32 %v15911_v11, %v7912_v58  ;;  %v7916_v57 = vadd.f32 %v15911_v11, %v7915_v46  ;;  %v7922_v14 = vpop.f32.mrb[225].mxu0  ;;  %v7057_v21 = vmul.f32 %v16218_v59, %v7056_v39 }
 0x9cd   : > { %v7036_v37 = vmul.f32 0.6931472, %v12851_v5  ;;  %v7064_v12 = vmul.f32 -0.5, %v16234_v53  ;;  %v8113_v27 = vmax.f32 %v7897_v50, 0.0  ;;  %v7923_v62 = vpop.f32.mrb[226].mxu0  ;;  %v8114_v49 = vmax.f32 %v7900_v6, 0.0 }
 0x9ce   : > { %v12853_v33 = vpop.eup %12852  ;;  %v8115_v1 = vmax.f32 %v7905_v26, 0.0  ;;  %v8116_v38 = vmax.f32 %v7908_v20, 0.0  ;;  %v8117_v10 = vmax.f32 %v7913_v13, 0.0  ;;  %v7925_v30 = vpop.f32.mrb[227].mxu0  ;;  %v8118_v43 = vmax.f32 %v7916_v57, 0.0 }
 0x9cf   : > { %v7042_v56 = vsel %vm16268_vm12, %v7039_v52, %v7036_v37  ;;  %v7045_v58 = vmul.f32 0.6931472, %v12853_v33  ;;  %v7921_v25 = vadd.f32 %v15911_v11, %v7920_v55  ;;  %v8176_v24 = vpack.c.bf16 %v8114_v49, %v8113_v27 }
 0x9d0   : > { %v7146_v59 = vadd.f32 %v7042_v56, %v6026_v48  ;;  %v8177_v4 = vpack.c.bf16 %v8116_v38, %v8115_v1  ;;  %v7924_v47 = vadd.f32 %v15911_v11, %v7923_v62  ;;  %v7065_v36 = vadd.f32 1.0, %v7064_v12 }
 0x9d1   : > { %v12855_v28 = vpop.eup %12854  ;;  %v7051_v46 = vsel %vm16278_vm13, %v7048_v16, %v7045_v58  ;;  %v7067_v7 = vand.u32 2147483647, %v16234_v53  ;;  %v8178_v42 = vpack.c.bf16 %v8118_v43, %v8117_v10  ;;  %12096 = vmatmul.mubr.bf16.gmra.mrb[0].mxu1 %v8176_v24  ;;  %v8119_v44 = vmax.f32 %v7921_v25, 0.0 }
 0x9d2   : > { %10275 = vperm.xlu0 %12328, %v7146_v59   ;;  %v7147_v34 = vadd.f32 %v7051_v46, %v6027_v63  ;;  %v7054_v61 = vmul.f32 0.6931472, %v12855_v28  ;;  %v8120_v48 = vmax.f32 %v7924_v47, 0.0  ;;  %v6028_v45 = vmax.f32 %v16104_v41, 0.0  ;;  %12099 = vmatprep.mubr.bf16.mxu1 %v8177_v4 }
 0x9d3   : > { %vm7059_vm14 = vcmp.lt.f32.partialorder %v7058_v54, 0.0004427343  ;;  %v7928_v3 = vpop.f32.mrb[228].mxu0  ;;  %v7066_v18 = vmul.f32 %v16234_v53, %v7065_v36  ;;  %v6029_v31 = vmax.f32 %v16134_v40, 0.0  ;;  %vm7068_vm15 = vcmp.lt.f32.partialorder %v7067_v7, 0.0004427343 }
 0x9d4   : > { %v12857_v15 = vpop.eup %12856  ;;  %10280 = vperm.xlu1 %12329, %v7147_v34   ;;  %v7060_v51 = vsel %vm7059_vm14, %v7057_v21, %v7054_v61  ;;  %v8179_v32 = vpack.c.bf16 %v8120_v48, %v8119_v44  ;;  %v7929_v2 = vadd.f32 %v15911_v11, %v7928_v3  ;;  %v7930_v63 = vpop.f32.mrb[229].mxu0  ;;  %vm8783_vm0 = vcmask 523264  }
 0x9d5   : > { %v7148_v17 = vadd.f32 %v7060_v51, %v6028_v45  ;;  %v7063_v9 = vmul.f32 0.6931472, %v12857_v15  ;;  %v7931_v22 = vpop.f32.mrb[230].mxu0  ;;  %vm10373_vm2 = vcmask 31744  }
 0x9d6   : > { %v7932_v19 = vadd.f32 %v15911_v11, %v7931_v22  ;;  %v7933_v23 = vpop.f32.mrb[231].mxu0  ;;  %v8121_v0 = vmax.f32 %v7929_v2, 0.0 }
 0x9d7   : > { %10285 = vperm.xlu0 %12328, %v7148_v17   ;;  %v7069_v41 = vsel %vm7068_vm15, %v7066_v18, %v7063_v9  ;;  %v16326_v17 = vld [vmem:[%s17037_s5 + $0x8] ss:$0 sm:$0xff] }
 0x9d8   : > { %v7149_v8 = vadd.f32 %v7069_v41, %v6029_v31  ;;  %v8122_v35 = vmax.f32 %v7932_v19, 0.0 }
 0x9d9   : > { %12100 = vmatmul.mubr.bf16.gmra.mrb[4].mxu1 %v8178_v42 }
 0x9da   : > { %10290 = vperm.xlu1 %12329, %v7149_v8   ;;  %12103 = vmatprep.mubr.bf16.mxu1 %v8179_v32  ;;  %v8180_v39 = vpack.c.bf16 %v8122_v35, %v8121_v0  ;;  %v16334_v0 = vld [vmem:[%s17043_s11] ss:$0 sm:$0xff] }
 0x9dd   : > { %v7936_v53 = vpop.f32.mrb[232].mxu0 }
 0x9de   : > { %v7937_v60 = vadd.f32 %v15911_v11, %v7936_v53  ;;  %v7938_v52 = vpop.f32.mrb[233].mxu0 }
 0x9df   : > { %v7939_v29 = vpop.f32.mrb[234].mxu0 }
 0x9e0   : > { %v7940_v40 = vadd.f32 %v15911_v11, %v7939_v29  ;;  %v7941_v16 = vpop.f32.mrb[235].mxu0  ;;  %v8123_v54 = vmax.f32 %v7937_v60, 0.0 }
 0x9e1   : > { %12104 = vmatmul.mubr.bf16.gmra.mrb[8].mxu1 %v8180_v39 }
 0x9e2   : > { %v8124_v50 = vmax.f32 %v7940_v40, 0.0 }
 0x9e4   : > { %v8181_v6 = vpack.c.bf16 %v8124_v50, %v8123_v54 }
 0x9e5   : > { %v7944_v55 = vpop.f32.mrb[236].mxu0 }
 0x9e6   : > { %v7945_v5 = vadd.f32 %v15911_v11, %v7944_v55  ;;  %v7946_v26 = vpop.f32.mrb[237].mxu0  ;;  %12107 = vmatprep.mubr.bf16.mxu1 %v8181_v6 }
 0x9e7   : > { %v7947_v20 = vpop.f32.mrb[238].mxu0 }
 0x9e8   : > { %v7948_v13 = vadd.f32 %v15911_v11, %v7947_v20  ;;  %v7949_v57 = vpop.f32.mrb[239].mxu0  ;;  %v8125_v14 = vmax.f32 %v7945_v5, 0.0 }
 0x9ea   : > { %v8126_v37 = vmax.f32 %v7948_v13, 0.0 }
 0x9ec   : > { %v8182_v21 = vpack.c.bf16 %v8126_v37, %v8125_v14 }
 0x9ed   : > { %v7952_v12 = vpop.f32.mrb[240].mxu0 }
 0x9ee   : > { %v7953_v27 = vadd.f32 %v15911_v11, %v7952_v12  ;;  %v7954_v62 = vpop.f32.mrb[241].mxu0  ;;  %12108 = vmatmul.mubr.bf16.gmra.mrb[12].mxu1 %v8182_v21 }
 0x9ef   : > { %v7955_v33 = vpop.f32.mrb[242].mxu0 }
 0x9f0   : > { %v7956_v49 = vadd.f32 %v15911_v11, %v7955_v33  ;;  %v7957_v1 = vpop.f32.mrb[243].mxu0  ;;  %v8127_v38 = vmax.f32 %v7953_v27, 0.0 }
 0x9f2   : > { %v8128_v10 = vmax.f32 %v7956_v49, 0.0 }
 0x9f4   : > { %v8183_v30 = vpack.c.bf16 %v8128_v10, %v8127_v38 }
 0x9f6   : > { %12111 = vmatprep.mubr.bf16.mxu1 %v8183_v30 }
 0x9f7   : > { %v7960_v56 = vpop.f32.mrb[244].mxu0 }
 0x9f8   : > { %v7961_v58 = vadd.f32 %v15911_v11, %v7960_v56  ;;  %v7962_v43 = vpop.f32.mrb[245].mxu0 }
 0x9f9   : > { %v7963_v25 = vpop.f32.mrb[246].mxu0 }
 0x9fa   : > { %v7964_v59 = vadd.f32 %v15911_v11, %v7963_v25  ;;  %v7965_v24 = vpop.f32.mrb[247].mxu0  ;;  %v8129_v4 = vmax.f32 %v7961_v58, 0.0 }
 0x9fc   : > { %v8130_v47 = vmax.f32 %v7964_v59, 0.0 }
 0x9fe   : > { %v8184_v28 = vpack.c.bf16 %v8130_v47, %v8129_v4 }
 0xa00   : > { %v7968_v46 = vpop.f32.mrb[248].mxu0  ;;  %12112 = vmatmul.mubr.bf16.gmra.mrb[16].mxu1 %v8184_v28 }
 0xa01   : > { %v7969_v36 = vadd.f32 %v15911_v11, %v7968_v46  ;;  %v7970_v7 = vpop.f32.mrb[249].mxu0 }
 0xa02   : > { %v7971_v42 = vpop.f32.mrb[250].mxu0 }
 0xa03   : > { %v7972_v34 = vadd.f32 %v15911_v11, %v7971_v42  ;;  %v7973_v61 = vpop.f32.mrb[251].mxu0  ;;  %v8131_v44 = vmax.f32 %v7969_v36, 0.0 }
 0xa05   : > { %v8132_v48 = vmax.f32 %v7972_v34, 0.0 }
 0xa07   : > { %v8185_v45 = vpack.c.bf16 %v8132_v48, %v8131_v44 }
 0xa08   : > { %v7976_v15 = vpop.f32.mrb[252].mxu0 }
 0xa09   : > { %v7977_v51 = vadd.f32 %v15911_v11, %v7976_v15  ;;  %v7978_v32 = vpop.f32.mrb[253].mxu0  ;;  %12115 = vmatprep.mubr.bf16.mxu1 %v8185_v45 }
 0xa0a   : > { %v7979_v3 = vpop.f32.mrb[254].mxu0 }
 0xa0b   : > { %v7980_v9 = vadd.f32 %v16326_v17, %v7979_v3  ;;  %v7981_v18 = vpop.f32.mrb[255].mxu0  ;;  %v8133_v2 = vmax.f32 %v7977_v51, 0.0 }
 0xa0d   : > { %v8134_v63 = vmax.f32 %v7980_v9, 0.0 }
 0xa0f   : > { %v8186_v31 = vpack.c.bf16 %v8134_v63, %v8133_v2 }
 0xa10   : > { %v7984_v22 = vpop.f32.mrb[0].mxu0 }
 0xa11   : > { %12116 = vmatmul.mubr.bf16.gmra.mrb[20].mxu1 %v8186_v31  ;;  %v7985_v41 = vadd.f32 %v16326_v17, %v7984_v22  ;;  %v7986_v19 = vpop.f32.mrb[1].mxu0 }
 0xa12   : > { %v7987_v11 = vpop.f32.mrb[2].mxu0 }
 0xa13   : > { %v7988_v23 = vadd.f32 %v16326_v17, %v7987_v11  ;;  %v7989_v8 = vpop.f32.mrb[3].mxu0  ;;  %v8135_v35 = vmax.f32 %v7985_v41, 0.0 }
 0xa15   : > { %v8136_v39 = vmax.f32 %v7988_v23, 0.0 }
 0xa16   : > { %v12065_v53 = vpop.f32.mrb[224].mxu1 }
 0xa17   : > { %v8313_v60 = vadd.f32 %v12065_v53, %v16334_v0  ;;  %v8304_v52 = vpop.f32.mrb[225].mxu1  ;;  %v8187_v29 = vpack.c.bf16 %v8136_v39, %v8135_v35 }
 0xa18   : > { %v8305_v40 = vadd.f32 %v16334_v0, %v8304_v52  ;;  %v12066_v16 = vpop.f32.mrb[226].mxu1 }
 0xa19   : > { %v8316_v54 = vadd.f32 %v12066_v16, %v16334_v0  ;;  %v8307_v50 = vpop.f32.mrb[227].mxu1  ;;  %12119 = vmatprep.mubr.bf16.mxu1 %v8187_v29  ;;  %v8625_v55 = vmax.f32 %v8313_v60, 0.0 }
 0xa1a   : > { %v8308_v6 = vadd.f32 %v16334_v0, %v8307_v50  ;;  %v7992_v26 = vpop.f32.mrb[4].mxu0  ;;  %v8623_v20 = vmax.f32 %v8305_v40, 0.0 }
 0xa1b   : > { %v8626_v5 = vmax.f32 %v8316_v54, 0.0  ;;  %v7993_v57 = vadd.f32 %v16326_v17, %v7992_v26  ;;  %v7994_v14 = vpop.f32.mrb[5].mxu0 }
 0xa1c   : > { %v8624_v13 = vmax.f32 %v8308_v6, 0.0  ;;  %v7995_v21 = vpop.f32.mrb[6].mxu0 }
 0xa1d   : > { %v8704_v37 = vpack.c.bf16 %v8626_v5, %v8625_v55  ;;  %v7996_v27 = vadd.f32 %v16326_v17, %v7995_v21  ;;  %v7997_v62 = vpop.f32.mrb[7].mxu0  ;;  %v8137_v33 = vmax.f32 %v7993_v57, 0.0 }
 0xa1e   : > { %v8703_v12 = vpack.c.bf16 %v8624_v13, %v8623_v20 }
 0xa1f   : > { %v8138_v49 = vmax.f32 %v7996_v27, 0.0 }
 0xa20   : > { %12151 = vmatprep.mubr.msk.bf16.mxu0 %vm8783_vm0, %v8703_v12 }
 0xa21   : > { %12152 = vmatmul.mubr.msk.bf16.vlgmr.msra.gmra.mrb[48].mxu0 %vm8783_vm0, %v8704_v37  ;;  %v8188_v1 = vpack.c.bf16 %v8138_v49, %v8137_v33 }
 0xa23   : > { %12120 = vmatmul.mubr.bf16.gmra.mrb[24].mxu1 %v8188_v1 }
 0xa26   : > { %v8000_v38 = vpop.f32.mrb[8].mxu0 }
 0xa27   : > { %v8001_v10 = vadd.f32 %v16326_v17, %v8000_v38  ;;  %v8002_v30 = vpop.f32.mrb[9].mxu0 }
 0xa28   : > { %v8003_v56 = vpop.f32.mrb[10].mxu0 }
 0xa29   : > { %v8004_v58 = vadd.f32 %v16326_v17, %v8003_v56  ;;  %v8005_v43 = vpop.f32.mrb[11].mxu0  ;;  %v8139_v25 = vmax.f32 %v8001_v10, 0.0 }
 0xa2a   : > { %v12069_v24 = vpop.f32.mrb[228].mxu1 }
 0xa2b   : > { %v8140_v59 = vmax.f32 %v8004_v58, 0.0  ;;  %v8329_v4 = vadd.f32 %v12069_v24, %v16334_v0  ;;  %v8320_v47 = vpop.f32.mrb[229].mxu1 }
 0xa2c   : > { %v8321_v46 = vadd.f32 %v16334_v0, %v8320_v47  ;;  %v12070_v36 = vpop.f32.mrb[230].mxu1 }
 0xa2d   : > { %v8189_v28 = vpack.c.bf16 %v8140_v59, %v8139_v25  ;;  %v8332_v7 = vadd.f32 %v12070_v36, %v16334_v0  ;;  %v8323_v42 = vpop.f32.mrb[231].mxu1  ;;  %v8629_v61 = vmax.f32 %v8329_v4, 0.0 }
 0xa2e   : > { %v8324_v34 = vadd.f32 %v16334_v0, %v8323_v42  ;;  %v8008_v48 = vpop.f32.mrb[12].mxu0  ;;  %v8627_v45 = vmax.f32 %v8321_v46, 0.0 }
 0xa2f   : > { %12123 = vmatprep.mubr.bf16.mxu1 %v8189_v28  ;;  %v8630_v44 = vmax.f32 %v8332_v7, 0.0  ;;  %v8009_v51 = vadd.f32 %v16326_v17, %v8008_v48  ;;  %v8010_v32 = vpop.f32.mrb[13].mxu0 }
 0xa30   : > { %v8628_v15 = vmax.f32 %v8324_v34, 0.0  ;;  %v8011_v9 = vpop.f32.mrb[14].mxu0 }
 0xa31   : > { %v8706_v3 = vpack.c.bf16 %v8630_v44, %v8629_v61  ;;  %v8012_v2 = vadd.f32 %v16326_v17, %v8011_v9  ;;  %v8013_v63 = vpop.f32.mrb[15].mxu0  ;;  %v8141_v31 = vmax.f32 %v8009_v51, 0.0 }
 0xa32   : > { %v8705_v18 = vpack.c.bf16 %v8628_v15, %v8627_v45 }
 0xa33   : > { %v8142_v22 = vmax.f32 %v8012_v2, 0.0 }
 0xa34   : > { %12155 = vmatprep.mubr.msk.bf16.mxu0 %vm8783_vm0, %v8705_v18 }
 0xa35   : > { %12156 = vmatmul.mubr.msk.bf16.gmra.mrb[52].mxu0 %vm8783_vm0, %v8706_v3  ;;  %v8190_v41 = vpack.c.bf16 %v8142_v22, %v8141_v31 }
 0xa37   : > { %v8016_v19 = vpop.f32.mrb[16].mxu0  ;;  %12124 = vmatmul.mubr.bf16.gmra.mrb[28].mxu1 %v8190_v41 }
 0xa38   : > { %v8017_v11 = vadd.f32 %v16326_v17, %v8016_v19  ;;  %v8018_v23 = vpop.f32.mrb[17].mxu0 }
 0xa39   : > { %v8019_v8 = vpop.f32.mrb[18].mxu0 }
 0xa3a   : > { %v8020_v35 = vadd.f32 %v16326_v17, %v8019_v8  ;;  %v8021_v39 = vpop.f32.mrb[19].mxu0  ;;  %v8143_v53 = vmax.f32 %v8017_v11, 0.0 }
 0xa3c   : > { %v8144_v60 = vmax.f32 %v8020_v35, 0.0 }
 0xa3d   : > { %v12073_v52 = vpop.f32.mrb[232].mxu1 }
 0xa3e   : > { %v8191_v29 = vpack.c.bf16 %v8144_v60, %v8143_v53  ;;  %v8345_v40 = vadd.f32 %v12073_v52, %v16334_v0  ;;  %v8336_v16 = vpop.f32.mrb[233].mxu1 }
 0xa3f   : > { %v8337_v54 = vadd.f32 %v16334_v0, %v8336_v16  ;;  %v12074_v50 = vpop.f32.mrb[234].mxu1 }
 0xa40   : > { %v8348_v6 = vadd.f32 %v12074_v50, %v16334_v0  ;;  %v8339_v55 = vpop.f32.mrb[235].mxu1  ;;  %12127 = vmatprep.mubr.bf16.mxu1 %v8191_v29  ;;  %v8633_v26 = vmax.f32 %v8345_v40, 0.0 }
 0xa41   : > { %v8340_v5 = vadd.f32 %v16334_v0, %v8339_v55  ;;  %v8631_v57 = vmax.f32 %v8337_v54, 0.0 }
 0xa42   : > { %v8634_v20 = vmax.f32 %v8348_v6, 0.0 }
 0xa43   : > { %v8632_v14 = vmax.f32 %v8340_v5, 0.0 }
 0xa44   : > { %v8024_v13 = vpop.f32.mrb[20].mxu0  ;;  %v8708_v12 = vpack.c.bf16 %v8634_v20, %v8633_v26 }
 0xa45   : > { %v8025_v37 = vadd.f32 %v16326_v17, %v8024_v13  ;;  %v8026_v21 = vpop.f32.mrb[21].mxu0  ;;  %v8707_v62 = vpack.c.bf16 %v8632_v14, %v8631_v57 }
 0xa46   : > { %v8027_v27 = vpop.f32.mrb[22].mxu0 }
 0xa47   : > { %v8028_v33 = vadd.f32 %v16326_v17, %v8027_v27  ;;  %v8029_v49 = vpop.f32.mrb[23].mxu0  ;;  %v8145_v1 = vmax.f32 %v8025_v37, 0.0  ;;  %12159 = vmatprep.mubr.msk.bf16.mxu0 %vm8783_vm0, %v8707_v62  ;;  %v12534_v37 = vld [vmem:[%s17042_s10] sm:$0xff]  }
 0xa48   : > { %12160 = vmatmul.mubr.msk.bf16.gmra.mrb[56].mxu0 %vm8783_vm0, %v8708_v12  ;;  %12231 = vmatprep.subr.bf16.mxu1 %v12534_v37 }
 0xa49   : > { %v8146_v38 = vmax.f32 %v8028_v33, 0.0  ;;  %12232 = vmatpush3.bf16.msra.mxu1 %v12534_v37 }
 0xa4b   : > { %v8192_v10 = vpack.c.bf16 %v8146_v38, %v8145_v1 }
 0xa4c   : > { %v8032_v30 = vpop.f32.mrb[24].mxu0 }
 0xa4d   : > { %v8033_v56 = vadd.f32 %v16326_v17, %v8032_v30  ;;  %v8034_v58 = vpop.f32.mrb[25].mxu0  ;;  %12128 = vmatmul.mubr.bf16.gmra.mrb[32].mxu1 %v8192_v10  ;;  %v12535_v30 = vld [vmem:[%s17042_s10 + $0x8] sm:$0xff]  }
 0xa4e   : > { %v8035_v43 = vpop.f32.mrb[26].mxu0  ;;  %12233 = vmatprep.subr.bf16.mxu1 %v12535_v30 }
 0xa4f   : > { %v8036_v25 = vadd.f32 %v16326_v17, %v8035_v43  ;;  %v8037_v59 = vpop.f32.mrb[27].mxu0  ;;  %v8147_v24 = vmax.f32 %v8033_v56, 0.0  ;;  %12234 = vmatpush3.bf16.msra.mxu1 %v12535_v30 }
 0xa50   : > { %v12077_v47 = vpop.f32.mrb[236].mxu1 }
 0xa51   : > { %v8148_v4 = vmax.f32 %v8036_v25, 0.0  ;;  %v8361_v46 = vadd.f32 %v12077_v47, %v16334_v0  ;;  %v8352_v36 = vpop.f32.mrb[237].mxu1 }
 0xa52   : > { %v8353_v7 = vadd.f32 %v16334_v0, %v8352_v36  ;;  %v12078_v42 = vpop.f32.mrb[238].mxu1 }
 0xa53   : > { %v8193_v28 = vpack.c.bf16 %v8148_v4, %v8147_v24  ;;  %v8364_v34 = vadd.f32 %v12078_v42, %v16334_v0  ;;  %v8355_v61 = vpop.f32.mrb[239].mxu1  ;;  %v8637_v48 = vmax.f32 %v8361_v46, 0.0 }
 0xa54   : > { %v8356_v44 = vadd.f32 %v16334_v0, %v8355_v61  ;;  %v8635_v51 = vmax.f32 %v8353_v7, 0.0 }
 0xa55   : > { %12131 = vmatprep.mubr.bf16.mxu1 %v8193_v28  ;;  %v8638_v45 = vmax.f32 %v8364_v34, 0.0  ;;  %v8040_v15 = vpop.f32.mrb[28].mxu0 }
 0xa56   : > { %v8636_v32 = vmax.f32 %v8356_v44, 0.0  ;;  %v8041_v3 = vadd.f32 %v16326_v17, %v8040_v15  ;;  %v8042_v9 = vpop.f32.mrb[29].mxu0 }
 0xa57   : > { %v8710_v18 = vpack.c.bf16 %v8638_v45, %v8637_v48  ;;  %v8043_v2 = vpop.f32.mrb[30].mxu0  ;;  %v12536_v48 = vld [vmem:[%s17042_s10 + $0x10] sm:$0xff]  }
 0xa58   : > { %v8709_v63 = vpack.c.bf16 %v8636_v32, %v8635_v51  ;;  %v8044_v31 = vadd.f32 %v16326_v17, %v8043_v2  ;;  %v8045_v22 = vpop.f32.mrb[31].mxu0  ;;  %v8149_v41 = vmax.f32 %v8041_v3, 0.0  ;;  %12235 = vmatprep.subr.bf16.mxu1 %v12536_v48  ;;  %v12537_v2 = vld [vmem:[%s17042_s10 + $0x18] sm:$0xff]  }
 0xa59   : > { %12236 = vmatpush3.bf16.msra.mxu1 %v12536_v48 }
 0xa5a   : > { %v8150_v19 = vmax.f32 %v8044_v31, 0.0  ;;  %12163 = vmatprep.mubr.msk.bf16.mxu0 %vm8783_vm0, %v8709_v63  ;;  %12237 = vmatprep.subr.bf16.mxu1 %v12537_v2 }
 0xa5b   : > { %12164 = vmatmul.mubr.msk.bf16.gmra.mrb[60].mxu0 %vm8783_vm0, %v8710_v18 }
 0xa5c   : > { %v8194_v11 = vpack.c.bf16 %v8150_v19, %v8149_v41 }
 0xa5d   : > { %12238 = vmatpush3.bf16.msra.mxu1 %v12537_v2 }
 0xa5e   : > { %12132 = vmatmul.mubr.bf16.gmra.mrb[36].mxu1 %v8194_v11 }
 0xa60   : > { %v8048_v23 = vpop.f32.mrb[32].mxu0 }
 0xa61   : > { %v8049_v8 = vadd.f32 %v16326_v17, %v8048_v23  ;;  %v8050_v35 = vpop.f32.mrb[33].mxu0 }
 0xa62   : > { %v8051_v39 = vpop.f32.mrb[34].mxu0 }
 0xa63   : > { %v8052_v53 = vadd.f32 %v16326_v17, %v8051_v39  ;;  %v8053_v60 = vpop.f32.mrb[35].mxu0  ;;  %v8151_v52 = vmax.f32 %v8049_v8, 0.0 }
 0xa65   : > { %v8152_v29 = vmax.f32 %v8052_v53, 0.0  ;;  %v12081_v40 = vpop.f32.mrb[240].mxu1 }
 0xa66   : > { %v8377_v54 = vadd.f32 %v12081_v40, %v16334_v0  ;;  %v8368_v50 = vpop.f32.mrb[241].mxu1 }
 0xa67   : > { %v8195_v16 = vpack.c.bf16 %v8152_v29, %v8151_v52  ;;  %v8369_v6 = vadd.f32 %v16334_v0, %v8368_v50  ;;  %v12082_v55 = vpop.f32.mrb[242].mxu1 }
 0xa68   : > { %v8380_v5 = vadd.f32 %v12082_v55, %v16334_v0  ;;  %v8371_v26 = vpop.f32.mrb[243].mxu1  ;;  %v8641_v13 = vmax.f32 %v8377_v54, 0.0 }
 0xa69   : > { %12135 = vmatprep.mubr.bf16.mxu1 %v8195_v16  ;;  %v8372_v20 = vadd.f32 %v16334_v0, %v8371_v26  ;;  %v8056_v14 = vpop.f32.mrb[36].mxu0  ;;  %v8639_v21 = vmax.f32 %v8369_v6, 0.0 }
 0xa6a   : > { %v8642_v57 = vmax.f32 %v8380_v5, 0.0  ;;  %v8057_v27 = vadd.f32 %v16326_v17, %v8056_v14  ;;  %v8058_v62 = vpop.f32.mrb[37].mxu0 }
 0xa6b   : > { %v8640_v12 = vmax.f32 %v8372_v20, 0.0  ;;  %v8059_v49 = vpop.f32.mrb[38].mxu0 }
 0xa6c   : > { %v8712_v33 = vpack.c.bf16 %v8642_v57, %v8641_v13  ;;  %v8060_v38 = vadd.f32 %v16326_v17, %v8059_v49  ;;  %v8061_v10 = vpop.f32.mrb[39].mxu0  ;;  %v8153_v56 = vmax.f32 %v8057_v27, 0.0 }
 0xa6d   : > { %v8711_v1 = vpack.c.bf16 %v8640_v12, %v8639_v21 }
 0xa6e   : > { %v8154_v58 = vmax.f32 %v8060_v38, 0.0 }
 0xa6f   : > { %12167 = vmatprep.mubr.msk.bf16.mxu0 %vm8783_vm0, %v8711_v1 }
 0xa70   : > { %12168 = vmatmul.mubr.msk.bf16.gmra.mrb[64].mxu0 %vm8783_vm0, %v8712_v33  ;;  %v8196_v43 = vpack.c.bf16 %v8154_v58, %v8153_v56 }
 0xa72   : > { %12136 = vmatmul.mubr.bf16.gmra.mrb[40].mxu1 %v8196_v43 }
 0xa75   : > { %v8064_v25 = vpop.f32.mrb[40].mxu0 }
 0xa76   : > { %v8065_v59 = vadd.f32 %v16326_v17, %v8064_v25  ;;  %v8066_v24 = vpop.f32.mrb[41].mxu0 }
 0xa77   : > { %v8067_v4 = vpop.f32.mrb[42].mxu0 }
 0xa78   : > { %v8068_v47 = vadd.f32 %v16326_v17, %v8067_v4  ;;  %v8069_v28 = vpop.f32.mrb[43].mxu0  ;;  %v8155_v36 = vmax.f32 %v8065_v59, 0.0 }
 0xa7a   : > { %v12085_v46 = vpop.f32.mrb[244].mxu1  ;;  %v8156_v7 = vmax.f32 %v8068_v47, 0.0 }
 0xa7b   : > { %v8393_v42 = vadd.f32 %v12085_v46, %v16334_v0  ;;  %v8384_v34 = vpop.f32.mrb[245].mxu1 }
 0xa7c   : > { %v8385_v61 = vadd.f32 %v16334_v0, %v8384_v34  ;;  %v12086_v44 = vpop.f32.mrb[246].mxu1  ;;  %v8197_v45 = vpack.c.bf16 %v8156_v7, %v8155_v36 }
 0xa7d   : > { %v8396_v15 = vadd.f32 %v12086_v44, %v16334_v0  ;;  %v8387_v51 = vpop.f32.mrb[247].mxu1  ;;  %v8645_v3 = vmax.f32 %v8393_v42, 0.0 }
 0xa7e   : > { %v8388_v32 = vadd.f32 %v16334_v0, %v8387_v51  ;;  %12139 = vmatprep.mubr.bf16.mxu1 %v8197_v45  ;;  %v8643_v63 = vmax.f32 %v8385_v61, 0.0 }
 0xa7f   : > { %v8646_v9 = vmax.f32 %v8396_v15, 0.0  ;;  %v8072_v18 = vpop.f32.mrb[44].mxu0 }
 0xa80   : > { %v8644_v31 = vmax.f32 %v8388_v32, 0.0  ;;  %v8073_v22 = vadd.f32 %v16326_v17, %v8072_v18  ;;  %v8074_v41 = vpop.f32.mrb[45].mxu0 }
 0xa81   : > { %v8714_v19 = vpack.c.bf16 %v8646_v9, %v8645_v3  ;;  %v8075_v11 = vpop.f32.mrb[46].mxu0 }
 0xa82   : > { %v8713_v23 = vpack.c.bf16 %v8644_v31, %v8643_v63  ;;  %v8076_v8 = vadd.f32 %v16326_v17, %v8075_v11  ;;  %v8077_v35 = vpop.f32.mrb[47].mxu0  ;;  %v8157_v39 = vmax.f32 %v8073_v22, 0.0 }
 0xa84   : > { %v8158_v53 = vmax.f32 %v8076_v8, 0.0  ;;  %12171 = vmatprep.mubr.msk.bf16.mxu0 %vm8783_vm0, %v8713_v23 }
 0xa85   : > { %12172 = vmatmul.mubr.msk.bf16.gmra.mrb[68].mxu0 %vm8783_vm0, %v8714_v19 }
 0xa86   : > { %v8198_v60 = vpack.c.bf16 %v8158_v53, %v8157_v39 }
 0xa88   : > { %12140 = vmatmul.mubr.bf16.gmra.mrb[44].mxu1 %v8198_v60 }
 0xa8b   : > { %v12089_v52 = vpop.f32.mrb[248].mxu1 }
 0xa8c   : > { %v8409_v29 = vadd.f32 %v12089_v52, %v16334_v0  ;;  %v8400_v40 = vpop.f32.mrb[249].mxu1 }
 0xa8d   : > { %v8401_v16 = vadd.f32 %v16334_v0, %v8400_v40  ;;  %v12090_v54 = vpop.f32.mrb[250].mxu1 }
 0xa8e   : > { %v8412_v50 = vadd.f32 %v12090_v54, %v16334_v0  ;;  %v8403_v17 = vpop.f32.mrb[251].mxu1  ;;  %v8649_v55 = vmax.f32 %v8409_v29, 0.0 }
 0xa8f   : > { %v8404_v6 = vadd.f32 %v16334_v0, %v8403_v17  ;;  %v8647_v26 = vmax.f32 %v8401_v16, 0.0 }
 0xa90   : > { %v8650_v5 = vmax.f32 %v8412_v50, 0.0 }
 0xa91   : > { %v8648_v20 = vmax.f32 %v8404_v6, 0.0 }
 0xa92   : > { %v8716_v13 = vpack.c.bf16 %v8650_v5, %v8649_v55 }
 0xa93   : > { %v8715_v57 = vpack.c.bf16 %v8648_v20, %v8647_v26 }
 0xa95   : > { %12175 = vmatprep.mubr.msk.bf16.mxu0 %vm8783_vm0, %v8715_v57 }
 0xa96   : > { %12176 = vmatmul.mubr.msk.bf16.gmra.mrb[72].mxu0 %vm8783_vm0, %v8716_v13 }
 0xa98   : > { %v12093_v14 = vpop.f32.mrb[252].mxu1 }
 0xa99   : > { %v8425_v37 = vadd.f32 %v12093_v14, %v16334_v0  ;;  %v8416_v21 = vpop.f32.mrb[253].mxu1 }
 0xa9a   : > { %v8417_v12 = vadd.f32 %v16334_v0, %v8416_v21  ;;  %v12094_v27 = vpop.f32.mrb[254].mxu1 }
 0xa9b   : > { %v8428_v62 = vadd.f32 %v12094_v27, %v16334_v0  ;;  %v8419_v33 = vpop.f32.mrb[255].mxu1  ;;  %v8653_v1 = vmax.f32 %v8425_v37, 0.0 }
 0xa9c   : > { %v8420_v49 = vadd.f32 %v16334_v0, %v8419_v33  ;;  %v8651_v10 = vmax.f32 %v8417_v12, 0.0 }
 0xa9d   : > { %v8654_v38 = vmax.f32 %v8428_v62, 0.0 }
 0xa9e   : > { %v8652_v30 = vmax.f32 %v8420_v49, 0.0 }
 0xa9f   : > { %v8718_v56 = vpack.c.bf16 %v8654_v38, %v8653_v1 }
 0xaa0   : > { %v8717_v58 = vpack.c.bf16 %v8652_v30, %v8651_v10 }
 0xaa2   : > { %12179 = vmatprep.mubr.msk.bf16.mxu0 %vm8783_vm0, %v8717_v58 }
 0xaa3   : > { %12180 = vmatmul.mubr.msk.bf16.gmra.mrb[76].mxu0 %vm8783_vm0, %v8718_v56 }
 0xaa4   : > { %v12097_v43 = vpop.f32.mrb[0].mxu1 }
 0xaa5   : > { %v8441_v25 = vadd.f32 %v12097_v43, %v16334_v0  ;;  %v8432_v59 = vpop.f32.mrb[1].mxu1 }
 0xaa6   : > { %v8433_v24 = vadd.f32 %v16334_v0, %v8432_v59  ;;  %v12098_v4 = vpop.f32.mrb[2].mxu1 }
 0xaa7   : > { %v8444_v47 = vadd.f32 %v12098_v4, %v16334_v0  ;;  %v8435_v28 = vpop.f32.mrb[3].mxu1  ;;  %v8657_v36 = vmax.f32 %v8441_v25, 0.0 }
 0xaa8   : > { %v8436_v46 = vadd.f32 %v16334_v0, %v8435_v28  ;;  %v8655_v42 = vmax.f32 %v8433_v24, 0.0 }
 0xaa9   : > { %v8658_v7 = vmax.f32 %v8444_v47, 0.0 }
 0xaaa   : > { %v8656_v34 = vmax.f32 %v8436_v46, 0.0 }
 0xaab   : > { %v8720_v61 = vpack.c.bf16 %v8658_v7, %v8657_v36 }
 0xaac   : > { %v8719_v44 = vpack.c.bf16 %v8656_v34, %v8655_v42  ;;  %v12101_v48 = vpop.f32.mrb[4].mxu1 }
 0xaad   : > { %v8457_v45 = vadd.f32 %v12101_v48, %v16334_v0  ;;  %v8448_v15 = vpop.f32.mrb[5].mxu1 }
 0xaae   : > { %12183 = vmatprep.mubr.msk.bf16.mxu0 %vm8783_vm0, %v8719_v44  ;;  %v8449_v51 = vadd.f32 %v16334_v0, %v8448_v15  ;;  %v12102_v32 = vpop.f32.mrb[6].mxu1 }
 0xaaf   : > { %12184 = vmatmul.mubr.msk.bf16.gmra.mrb[80].mxu0 %vm8783_vm0, %v8720_v61  ;;  %v8460_v3 = vadd.f32 %v12102_v32, %v16334_v0  ;;  %v8451_v9 = vpop.f32.mrb[7].mxu1  ;;  %v8661_v2 = vmax.f32 %v8457_v45, 0.0 }
 0xab0   : > { %v8452_v18 = vadd.f32 %v16334_v0, %v8451_v9  ;;  %v8659_v31 = vmax.f32 %v8449_v51, 0.0 }
 0xab1   : > { %v8662_v63 = vmax.f32 %v8460_v3, 0.0 }
 0xab2   : > { %v8660_v22 = vmax.f32 %v8452_v18, 0.0  ;;  %v16457_v18 = vld [vmem:[%s17043_s11 + $0x1] ss:$0 sm:$0xff] }
 0xab3   : > { %v8722_v41 = vpack.c.bf16 %v8662_v63, %v8661_v2 }
 0xab4   : > { %v8721_v19 = vpack.c.bf16 %v8660_v22, %v8659_v31  ;;  %v12105_v11 = vpop.f32.mrb[8].mxu1 }
 0xab5   : > { %v8473_v23 = vadd.f32 %v12105_v11, %v16334_v0  ;;  %v8464_v8 = vpop.f32.mrb[9].mxu1 }
 0xab6   : > { %12187 = vmatprep.mubr.msk.bf16.mxu0 %vm8783_vm0, %v8721_v19  ;;  %v8465_v35 = vadd.f32 %v16334_v0, %v8464_v8  ;;  %v12106_v39 = vpop.f32.mrb[10].mxu1 }
 0xab7   : > { %12188 = vmatmul.mubr.msk.bf16.gmra.mrb[84].mxu0 %vm8783_vm0, %v8722_v41  ;;  %v8476_v53 = vadd.f32 %v12106_v39, %v16334_v0  ;;  %v8467_v60 = vpop.f32.mrb[11].mxu1  ;;  %v8665_v29 = vmax.f32 %v8473_v23, 0.0 }
 0xab8   : > { %v8468_v52 = vadd.f32 %v16334_v0, %v8467_v60  ;;  %v8663_v16 = vmax.f32 %v8465_v35, 0.0 }
 0xab9   : > { %v8666_v40 = vmax.f32 %v8476_v53, 0.0 }
 0xaba   : > { %v8664_v54 = vmax.f32 %v8468_v52, 0.0 }
 0xabb   : > { %v8724_v50 = vpack.c.bf16 %v8666_v40, %v8665_v29 }
 0xabc   : > { %v8723_v17 = vpack.c.bf16 %v8664_v54, %v8663_v16 }
 0xabe   : > { %12191 = vmatprep.mubr.msk.bf16.mxu0 %vm8783_vm0, %v8723_v17 }
 0xabf   : > { %12192 = vmatmul.mubr.msk.bf16.gmra.mrb[88].mxu0 %vm8783_vm0, %v8724_v50 }
 0xac1   : > { %v12109_v6 = vpop.f32.mrb[12].mxu1 }
 0xac2   : > { %v8489_v55 = vadd.f32 %v12109_v6, %v16334_v0  ;;  %v8480_v5 = vpop.f32.mrb[13].mxu1 }
 0xac3   : > { %v8481_v26 = vadd.f32 %v16334_v0, %v8480_v5  ;;  %v12110_v20 = vpop.f32.mrb[14].mxu1 }
 0xac4   : > { %v8492_v13 = vadd.f32 %v12110_v20, %v16334_v0  ;;  %v8483_v57 = vpop.f32.mrb[15].mxu1  ;;  %v8669_v37 = vmax.f32 %v8489_v55, 0.0 }
 0xac5   : > { %v8484_v14 = vadd.f32 %v16334_v0, %v8483_v57  ;;  %v8667_v12 = vmax.f32 %v8481_v26, 0.0 }
 0xac6   : > { %v8670_v21 = vmax.f32 %v8492_v13, 0.0 }
 0xac7   : > { %v8668_v27 = vmax.f32 %v8484_v14, 0.0 }
 0xac8   : > { %v8726_v62 = vpack.c.bf16 %v8670_v21, %v8669_v37 }
 0xac9   : > { %v8725_v33 = vpack.c.bf16 %v8668_v27, %v8667_v12 }
 0xacb   : > { %12195 = vmatprep.mubr.msk.bf16.mxu0 %vm8783_vm0, %v8725_v33 }
 0xacc   : > { %12196 = vmatmul.mubr.msk.bf16.gmra.mrb[92].mxu0 %vm8783_vm0, %v8726_v62 }
 0xad3   : > { %v12113_v49 = vpop.f32.mrb[16].mxu1 }
 0xad4   : > { %v8505_v1 = vadd.f32 %v12113_v49, %v16334_v0  ;;  %v8496_v38 = vpop.f32.mrb[17].mxu1 }
 0xad5   : > { %v8497_v10 = vadd.f32 %v16334_v0, %v8496_v38  ;;  %v12114_v30 = vpop.f32.mrb[18].mxu1 }
 0xad6   : > { %v8508_v56 = vadd.f32 %v12114_v30, %v16334_v0  ;;  %v8499_v58 = vpop.f32.mrb[19].mxu1  ;;  %v8673_v25 = vmax.f32 %v8505_v1, 0.0 }
 0xad7   : > { %v8500_v43 = vadd.f32 %v16334_v0, %v8499_v58  ;;  %v8671_v24 = vmax.f32 %v8497_v10, 0.0 }
 0xad8   : > { %v8674_v59 = vmax.f32 %v8508_v56, 0.0 }
 0xad9   : > { %v8672_v4 = vmax.f32 %v8500_v43, 0.0 }
 0xada   : > { %v8728_v47 = vpack.c.bf16 %v8674_v59, %v8673_v25 }
 0xadb   : > { %v8727_v28 = vpack.c.bf16 %v8672_v4, %v8671_v24 }
 0xadd   : > { %12199 = vmatprep.mubr.msk.bf16.mxu0 %vm8783_vm0, %v8727_v28 }
 0xade   : > { %12200 = vmatmul.mubr.msk.bf16.gmra.mrb[96].mxu0 %vm8783_vm0, %v8728_v47 }
 0xae4   : > { %v12117_v46 = vpop.f32.mrb[20].mxu1 }
 0xae5   : > { %v8521_v36 = vadd.f32 %v12117_v46, %v16334_v0  ;;  %v8512_v7 = vpop.f32.mrb[21].mxu1 }
 0xae6   : > { %v8513_v42 = vadd.f32 %v16334_v0, %v8512_v7  ;;  %v12118_v34 = vpop.f32.mrb[22].mxu1 }
 0xae7   : > { %v8524_v61 = vadd.f32 %v12118_v34, %v16334_v0  ;;  %v8515_v44 = vpop.f32.mrb[23].mxu1  ;;  %v8677_v45 = vmax.f32 %v8521_v36, 0.0 }
 0xae8   : > { %v8516_v48 = vadd.f32 %v16334_v0, %v8515_v44  ;;  %v8675_v51 = vmax.f32 %v8513_v42, 0.0 }
 0xae9   : > { %v8678_v15 = vmax.f32 %v8524_v61, 0.0 }
 0xaea   : > { %v8676_v32 = vmax.f32 %v8516_v48, 0.0 }
 0xaeb   : > { %v8730_v3 = vpack.c.bf16 %v8678_v15, %v8677_v45 }
 0xaec   : > { %v8729_v9 = vpack.c.bf16 %v8676_v32, %v8675_v51 }
 0xaee   : > { %12203 = vmatprep.mubr.msk.bf16.mxu0 %vm8783_vm0, %v8729_v9 }
 0xaef   : > { %12204 = vmatmul.mubr.msk.bf16.gmra.mrb[100].mxu0 %vm8783_vm0, %v8730_v3 }
 0xaf4   : > { %v12153_v2 = vpop.f32.mrb[48].mxu0 }
 0xaf5   : > { %v8947_v63 = vadd.f32 %v12153_v2, %v16457_v18  ;;  %v8938_v31 = vpop.f32.mrb[49].mxu0 }
 0xaf6   : > { %v8939_v22 = vadd.f32 %v16457_v18, %v8938_v31  ;;  %v12154_v41 = vpop.f32.mrb[50].mxu0  ;;  %v12121_v19 = vpop.f32.mrb[24].mxu1 }
 0xaf7   : > { %v8950_v11 = vadd.f32 %v12154_v41, %v16457_v18  ;;  %v8941_v23 = vpop.f32.mrb[51].mxu0  ;;  %v8537_v8 = vadd.f32 %v12121_v19, %v16334_v0  ;;  %v8528_v35 = vpop.f32.mrb[25].mxu1  ;;  %v9259_v53 = vmax.f32 %v8947_v63, 0.0 }
 0xaf8   : > { %v8942_v39 = vadd.f32 %v16457_v18, %v8941_v23  ;;  %v8529_v52 = vadd.f32 %v16334_v0, %v8528_v35  ;;  %v12122_v29 = vpop.f32.mrb[26].mxu1  ;;  %v9257_v40 = vmax.f32 %v8939_v22, 0.0 }
 0xaf9   : > { %v9260_v60 = vmax.f32 %v8950_v11, 0.0  ;;  %v8540_v54 = vadd.f32 %v12122_v29, %v16334_v0  ;;  %v8531_v50 = vpop.f32.mrb[27].mxu1  ;;  %v8681_v55 = vmax.f32 %v8537_v8, 0.0 }
 0xafa   : > { %v9258_v16 = vmax.f32 %v8942_v39, 0.0  ;;  %v8532_v6 = vadd.f32 %v16334_v0, %v8531_v50  ;;  %v8679_v20 = vmax.f32 %v8529_v52, 0.0 }
 0xafb   : > { %v9338_v17 = vpack.c.bf16 %v9260_v60, %v9259_v53  ;;  %v8682_v26 = vmax.f32 %v8540_v54, 0.0 }
 0xafc   : > { %v9337_v5 = vpack.c.bf16 %v9258_v16, %v9257_v40  ;;  %v8680_v13 = vmax.f32 %v8532_v6, 0.0 }
 0xafd   : > { %v8732_v57 = vpack.c.bf16 %v8682_v26, %v8681_v55 }
 0xafe   : > { %12239 = vmatprep.mubr.msk.bf16.mxu1 %vm8783_vm0, %v9337_v5  ;;  %v8731_v14 = vpack.c.bf16 %v8680_v13, %v8679_v20 }
 0xaff   : > { %12240 = vmatmul.mubr.msk.bf16.vlgmr.msra.gmra.mrb[48].mxu1 %vm8783_vm0, %v9338_v17 }
 0xb00   : > { %12207 = vmatprep.mubr.msk.bf16.mxu0 %vm8783_vm0, %v8731_v14 }
 0xb01   : > { %12208 = vmatmul.mubr.msk.bf16.gmra.mrb[104].mxu0 %vm8783_vm0, %v8732_v57 }
 0xb08   : > { %v12157_v37 = vpop.f32.mrb[52].mxu0 }
 0xb09   : > { %v8963_v21 = vadd.f32 %v12157_v37, %v16457_v18  ;;  %v8954_v12 = vpop.f32.mrb[53].mxu0 }
 0xb0a   : > { %v8955_v27 = vadd.f32 %v16457_v18, %v8954_v12  ;;  %v12158_v62 = vpop.f32.mrb[54].mxu0  ;;  %v12125_v33 = vpop.f32.mrb[28].mxu1 }
 0xb0b   : > { %v8966_v49 = vadd.f32 %v12158_v62, %v16457_v18  ;;  %v8957_v1 = vpop.f32.mrb[55].mxu0  ;;  %v8553_v38 = vadd.f32 %v12125_v33, %v16334_v0  ;;  %v8544_v10 = vpop.f32.mrb[29].mxu1  ;;  %v9263_v56 = vmax.f32 %v8963_v21, 0.0 }
 0xb0c   : > { %v8958_v30 = vadd.f32 %v16457_v18, %v8957_v1  ;;  %v8545_v43 = vadd.f32 %v16334_v0, %v8544_v10  ;;  %v12126_v25 = vpop.f32.mrb[30].mxu1  ;;  %v9261_v59 = vmax.f32 %v8955_v27, 0.0 }
 0xb0d   : > { %v9264_v58 = vmax.f32 %v8966_v49, 0.0  ;;  %v8556_v4 = vadd.f32 %v12126_v25, %v16334_v0  ;;  %v8547_v47 = vpop.f32.mrb[31].mxu1  ;;  %v8685_v36 = vmax.f32 %v8553_v38, 0.0 }
 0xb0e   : > { %v9262_v24 = vmax.f32 %v8958_v30, 0.0  ;;  %v8548_v46 = vadd.f32 %v16334_v0, %v8547_v47  ;;  %v8683_v34 = vmax.f32 %v8545_v43, 0.0 }
 0xb0f   : > { %v9340_v28 = vpack.c.bf16 %v9264_v58, %v9263_v56  ;;  %v8686_v42 = vmax.f32 %v8556_v4, 0.0 }
 0xb10   : > { %v9339_v7 = vpack.c.bf16 %v9262_v24, %v9261_v59  ;;  %v8684_v61 = vmax.f32 %v8548_v46, 0.0 }
 0xb11   : > { %v8734_v44 = vpack.c.bf16 %v8686_v42, %v8685_v36 }
 0xb12   : > { %12243 = vmatprep.mubr.msk.bf16.mxu1 %vm8783_vm0, %v9339_v7  ;;  %v8733_v48 = vpack.c.bf16 %v8684_v61, %v8683_v34 }
 0xb13   : > { %12244 = vmatmul.mubr.msk.bf16.gmra.mrb[52].mxu1 %vm8783_vm0, %v9340_v28 }
 0xb14   : > { %12211 = vmatprep.mubr.msk.bf16.mxu0 %vm8783_vm0, %v8733_v48 }
 0xb15   : > { %12212 = vmatmul.mubr.msk.bf16.gmra.mrb[108].mxu0 %vm8783_vm0, %v8734_v44 }
 0xb1b   : > { %v12161_v45 = vpop.f32.mrb[56].mxu0 }
 0xb1c   : > { %v8979_v15 = vadd.f32 %v12161_v45, %v16457_v18  ;;  %v8970_v51 = vpop.f32.mrb[57].mxu0 }
 0xb1d   : > { %v8971_v32 = vadd.f32 %v16457_v18, %v8970_v51  ;;  %v12162_v3 = vpop.f32.mrb[58].mxu0 }
 0xb1e   : > { %v8982_v2 = vadd.f32 %v12162_v3, %v16457_v18  ;;  %v8973_v63 = vpop.f32.mrb[59].mxu0  ;;  %v9267_v19 = vmax.f32 %v8979_v15, 0.0 }
 0xb1f   : > { %v8974_v41 = vadd.f32 %v16457_v18, %v8973_v63  ;;  %v9265_v35 = vmax.f32 %v8971_v32, 0.0 }
 0xb20   : > { %v12129_v9 = vpop.f32.mrb[32].mxu1  ;;  %v9268_v11 = vmax.f32 %v8982_v2, 0.0 }
 0xb21   : > { %v8569_v31 = vadd.f32 %v12129_v9, %v16334_v0  ;;  %v8560_v22 = vpop.f32.mrb[33].mxu1  ;;  %v9266_v39 = vmax.f32 %v8974_v41, 0.0 }
 0xb22   : > { %v8561_v23 = vadd.f32 %v16334_v0, %v8560_v22  ;;  %v12130_v8 = vpop.f32.mrb[34].mxu1  ;;  %v9342_v52 = vpack.c.bf16 %v9268_v11, %v9267_v19 }
 0xb23   : > { %v8572_v53 = vadd.f32 %v12130_v8, %v16334_v0  ;;  %v8563_v60 = vpop.f32.mrb[35].mxu1  ;;  %v8689_v40 = vmax.f32 %v8569_v31, 0.0  ;;  %v9341_v16 = vpack.c.bf16 %v9266_v39, %v9265_v35 }
 0xb24   : > { %v8564_v29 = vadd.f32 %v16334_v0, %v8563_v60  ;;  %v8687_v50 = vmax.f32 %v8561_v23, 0.0 }
 0xb25   : > { %v8690_v54 = vmax.f32 %v8572_v53, 0.0  ;;  %12247 = vmatprep.mubr.msk.bf16.mxu1 %vm8783_vm0, %v9341_v16 }
 0xb26   : > { %v8688_v17 = vmax.f32 %v8564_v29, 0.0  ;;  %12248 = vmatmul.mubr.msk.bf16.gmra.mrb[56].mxu1 %vm8783_vm0, %v9342_v52 }
 0xb27   : > { %v8736_v6 = vpack.c.bf16 %v8690_v54, %v8689_v40 }
 0xb28   : > { %v8735_v55 = vpack.c.bf16 %v8688_v17, %v8687_v50 }
 0xb2a   : > { %12215 = vmatprep.mubr.msk.bf16.mxu0 %vm8783_vm0, %v8735_v55 }
 0xb2b   : > { %12216 = vmatmul.mubr.msk.bf16.gmra.mrb[112].mxu0 %vm8783_vm0, %v8736_v6 }
 0xb2e   : > { %v12165_v5 = vpop.f32.mrb[60].mxu0 }
 0xb2f   : > { %v8995_v26 = vadd.f32 %v12165_v5, %v16457_v18  ;;  %v8986_v20 = vpop.f32.mrb[61].mxu0 }
 0xb30   : > { %v8987_v13 = vadd.f32 %v16457_v18, %v8986_v20  ;;  %v12166_v57 = vpop.f32.mrb[62].mxu0 }
 0xb31   : > { %v12133_v14 = vpop.f32.mrb[36].mxu1  ;;  %v8998_v37 = vadd.f32 %v12166_v57, %v16457_v18  ;;  %v8989_v21 = vpop.f32.mrb[63].mxu0  ;;  %v9271_v33 = vmax.f32 %v8995_v26, 0.0  ;;  %v12901_v26 = vld [vmem:[%s17043_s11] ss:$0 sm:$0xff] }
 0xb32   : > { %v8585_v12 = vadd.f32 %v12133_v14, %v16334_v0  ;;  %v8576_v27 = vpop.f32.mrb[37].mxu1  ;;  %v8990_v62 = vadd.f32 %v16457_v18, %v8989_v21  ;;  %v9269_v10 = vmax.f32 %v8987_v13, 0.0 }
 0xb33   : > { %v9272_v49 = vmax.f32 %v8998_v37, 0.0  ;;  %v8577_v1 = vadd.f32 %v16334_v0, %v8576_v27  ;;  %v12134_v38 = vpop.f32.mrb[38].mxu1 }
 0xb34   : > { %v9270_v30 = vmax.f32 %v8990_v62, 0.0  ;;  %v8588_v56 = vadd.f32 %v12134_v38, %v16334_v0  ;;  %v8579_v58 = vpop.f32.mrb[39].mxu1  ;;  %v8693_v59 = vmax.f32 %v8585_v12, 0.0 }
 0xb35   : > { %v9344_v43 = vpack.c.bf16 %v9272_v49, %v9271_v33  ;;  %v8580_v25 = vadd.f32 %v16334_v0, %v8579_v58  ;;  %v8691_v47 = vmax.f32 %v8577_v1, 0.0 }
 0xb36   : > { %v9343_v24 = vpack.c.bf16 %v9270_v30, %v9269_v10  ;;  %v8694_v4 = vmax.f32 %v8588_v56, 0.0 }
 0xb37   : > { %v8692_v28 = vmax.f32 %v8580_v25, 0.0 }
 0xb38   : > { %v8738_v46 = vpack.c.bf16 %v8694_v4, %v8693_v59  ;;  %12251 = vmatprep.mubr.msk.bf16.mxu1 %vm8783_vm0, %v9343_v24 }
 0xb39   : > { %v8737_v36 = vpack.c.bf16 %v8692_v28, %v8691_v47  ;;  %12252 = vmatmul.mubr.msk.bf16.gmra.mrb[60].mxu1 %vm8783_vm0, %v9344_v43 }
 0xb3b   : > { %12219 = vmatprep.mubr.msk.bf16.mxu0 %vm8783_vm0, %v8737_v36 }
 0xb3c   : > { %12220 = vmatmul.mubr.msk.bf16.gmra.mrb[116].mxu0 %vm8783_vm0, %v8738_v46 }
 0xb43   : > { %v12169_v7 = vpop.f32.mrb[64].mxu0 }
 0xb44   : > { %v9011_v42 = vadd.f32 %v12169_v7, %v16457_v18  ;;  %v9002_v34 = vpop.f32.mrb[65].mxu0 }
 0xb45   : > { %v9003_v61 = vadd.f32 %v16457_v18, %v9002_v34  ;;  %v12170_v44 = vpop.f32.mrb[66].mxu0  ;;  %v12137_v48 = vpop.f32.mrb[40].mxu1 }
 0xb46   : > { %v9014_v45 = vadd.f32 %v12170_v44, %v16457_v18  ;;  %v9005_v15 = vpop.f32.mrb[67].mxu0  ;;  %v8601_v51 = vadd.f32 %v12137_v48, %v16334_v0  ;;  %v8592_v32 = vpop.f32.mrb[41].mxu1  ;;  %v9275_v9 = vmax.f32 %v9011_v42, 0.0 }
 0xb47   : > { %v9006_v3 = vadd.f32 %v16457_v18, %v9005_v15  ;;  %v8593_v63 = vadd.f32 %v16334_v0, %v8592_v32  ;;  %v12138_v31 = vpop.f32.mrb[42].mxu1  ;;  %v9273_v22 = vmax.f32 %v9003_v61, 0.0 }
 0xb48   : > { %v9276_v2 = vmax.f32 %v9014_v45, 0.0  ;;  %v8604_v19 = vadd.f32 %v12138_v31, %v16334_v0  ;;  %v8595_v11 = vpop.f32.mrb[43].mxu1  ;;  %v8697_v35 = vmax.f32 %v8601_v51, 0.0 }
 0xb49   : > { %v9274_v41 = vmax.f32 %v9006_v3, 0.0  ;;  %v8596_v8 = vadd.f32 %v16334_v0, %v8595_v11  ;;  %v8695_v60 = vmax.f32 %v8593_v63, 0.0 }
 0xb4a   : > { %v9346_v23 = vpack.c.bf16 %v9276_v2, %v9275_v9  ;;  %v8698_v53 = vmax.f32 %v8604_v19, 0.0 }
 0xb4b   : > { %v9345_v39 = vpack.c.bf16 %v9274_v41, %v9273_v22  ;;  %v8696_v52 = vmax.f32 %v8596_v8, 0.0 }
 0xb4c   : > { %v8740_v29 = vpack.c.bf16 %v8698_v53, %v8697_v35 }
 0xb4d   : > { %12255 = vmatprep.mubr.msk.bf16.mxu1 %vm8783_vm0, %v9345_v39  ;;  %v8739_v40 = vpack.c.bf16 %v8696_v52, %v8695_v60 }
 0xb4e   : > { %12256 = vmatmul.mubr.msk.bf16.gmra.mrb[64].mxu1 %vm8783_vm0, %v9346_v23 }
 0xb4f   : > { %12223 = vmatprep.mubr.msk.bf16.mxu0 %vm8783_vm0, %v8739_v40 }
 0xb50   : > { %12224 = vmatmul.mubr.msk.bf16.gmra.mrb[120].mxu0 %vm8783_vm0, %v8740_v29 }
 0xb58   : > { %v12173_v16 = vpop.f32.mrb[68].mxu0 }
 0xb59   : > { %v9027_v54 = vadd.f32 %v12173_v16, %v16457_v18  ;;  %v9018_v50 = vpop.f32.mrb[69].mxu0 }
 0xb5a   : > { %v9019_v0 = vadd.f32 %v16457_v18, %v9018_v50  ;;  %v12174_v17 = vpop.f32.mrb[70].mxu0 }
 0xb5b   : > { %v12141_v6 = vpop.f32.mrb[44].mxu1  ;;  %v9030_v55 = vadd.f32 %v12174_v17, %v16457_v18  ;;  %v9021_v5 = vpop.f32.mrb[71].mxu0  ;;  %v9279_v14 = vmax.f32 %v9027_v54, 0.0 }
 0xb5c   : > { %v8617_v20 = vadd.f32 %v12901_v26, %v12141_v6  ;;  %v8608_v13 = vpop.f32.mrb[45].mxu1  ;;  %v9022_v57 = vadd.f32 %v16457_v18, %v9021_v5  ;;  %v9277_v27 = vmax.f32 %v9019_v0, 0.0 }
 0xb5d   : > { %v9280_v37 = vmax.f32 %v9030_v55, 0.0  ;;  %v8609_v21 = vadd.f32 %v12901_v26, %v8608_v13  ;;  %v12142_v12 = vpop.f32.mrb[46].mxu1 }
 0xb5e   : > { %v9278_v62 = vmax.f32 %v9022_v57, 0.0  ;;  %v8620_v33 = vadd.f32 %v12901_v26, %v12142_v12  ;;  %v8611_v49 = vpop.f32.mrb[47].mxu1  ;;  %v8701_v10 = vmax.f32 %v8617_v20, 0.0 }
 0xb5f   : > { %v9348_v1 = vpack.c.bf16 %v9280_v37, %v9279_v14  ;;  %v8612_v38 = vadd.f32 %v12901_v26, %v8611_v49  ;;  %v8699_v58 = vmax.f32 %v8609_v21, 0.0 }
 0xb60   : > { %v9347_v30 = vpack.c.bf16 %v9278_v62, %v9277_v27  ;;  %v8702_v56 = vmax.f32 %v8620_v33, 0.0 }
 0xb61   : > { %v8700_v43 = vmax.f32 %v8612_v38, 0.0 }
 0xb62   : > { %v8742_v25 = vpack.c.bf16 %v8702_v56, %v8701_v10  ;;  %12259 = vmatprep.mubr.msk.bf16.mxu1 %vm8783_vm0, %v9347_v30 }
 0xb63   : > { %v8741_v59 = vpack.c.bf16 %v8700_v43, %v8699_v58  ;;  %12260 = vmatmul.mubr.msk.bf16.gmra.mrb[68].mxu1 %vm8783_vm0, %v9348_v1 }
 0xb65   : > { %12227 = vmatprep.mubr.msk.bf16.mxu0 %vm8783_vm0, %v8741_v59 }
 0xb66   : > { %12228 = vmatmul.mubr.msk.bf16.gmra.mrb[124].mxu0 %vm8783_vm0, %v8742_v25 }
 0xb69   : > { %v12177_v24 = vpop.f32.mrb[72].mxu0 }
 0xb6a   : > { %v9043_v4 = vadd.f32 %v12177_v24, %v16457_v18  ;;  %v9034_v47 = vpop.f32.mrb[73].mxu0 }
 0xb6b   : > { %v9035_v28 = vadd.f32 %v16457_v18, %v9034_v47  ;;  %v12178_v46 = vpop.f32.mrb[74].mxu0 }
 0xb6c   : > { %v9046_v36 = vadd.f32 %v12178_v46, %v16457_v18  ;;  %v9037_v7 = vpop.f32.mrb[75].mxu0  ;;  %v9283_v34 = vmax.f32 %v9043_v4, 0.0 }
 0xb6d   : > { %v9038_v42 = vadd.f32 %v16457_v18, %v9037_v7  ;;  %v9281_v44 = vmax.f32 %v9035_v28, 0.0 }
 0xb6e   : > { %v9284_v61 = vmax.f32 %v9046_v36, 0.0 }
 0xb6f   : > { %v9282_v48 = vmax.f32 %v9038_v42, 0.0 }
 0xb70   : > { %v9350_v45 = vpack.c.bf16 %v9284_v61, %v9283_v34 }
 0xb71   : > { %v9349_v15 = vpack.c.bf16 %v9282_v48, %v9281_v44 }
 0xb73   : > { %12263 = vmatprep.mubr.msk.bf16.mxu1 %vm8783_vm0, %v9349_v15 }
 0xb74   : > { %12264 = vmatmul.mubr.msk.bf16.gmra.mrb[72].mxu1 %vm8783_vm0, %v9350_v45 }
 0xb76   : > { %v12181_v51 = vpop.f32.mrb[76].mxu0 }
 0xb77   : > { %v9059_v32 = vadd.f32 %v12181_v51, %v16457_v18  ;;  %v9050_v3 = vpop.f32.mrb[77].mxu0 }
 0xb78   : > { %v9051_v9 = vadd.f32 %v16457_v18, %v9050_v3  ;;  %v12182_v2 = vpop.f32.mrb[78].mxu0 }
 0xb79   : > { %v9062_v63 = vadd.f32 %v12182_v2, %v16457_v18  ;;  %v9053_v31 = vpop.f32.mrb[79].mxu0  ;;  %v9287_v41 = vmax.f32 %v9059_v32, 0.0 }
 0xb7a   : > { %v9054_v22 = vadd.f32 %v16457_v18, %v9053_v31  ;;  %v9285_v11 = vmax.f32 %v9051_v9, 0.0 }
 0xb7b   : > { %v9288_v19 = vmax.f32 %v9062_v63, 0.0 }
 0xb7c   : > { %v9286_v23 = vmax.f32 %v9054_v22, 0.0 }
 0xb7d   : > { %v9352_v8 = vpack.c.bf16 %v9288_v19, %v9287_v41 }
 0xb7e   : > { %v9351_v35 = vpack.c.bf16 %v9286_v23, %v9285_v11 }
 0xb80   : > { %12267 = vmatprep.mubr.msk.bf16.mxu1 %vm8783_vm0, %v9351_v35 }
 0xb81   : > { %12268 = vmatmul.mubr.msk.bf16.gmra.mrb[76].mxu1 %vm8783_vm0, %v9352_v8 }
 0xb82   : > { %v12185_v39 = vpop.f32.mrb[80].mxu0 }
 0xb83   : > { %v9075_v53 = vadd.f32 %v12185_v39, %v16457_v18  ;;  %v9066_v60 = vpop.f32.mrb[81].mxu0 }
 0xb84   : > { %v9067_v52 = vadd.f32 %v16457_v18, %v9066_v60  ;;  %v12186_v29 = vpop.f32.mrb[82].mxu0 }
 0xb85   : > { %v9078_v40 = vadd.f32 %v12186_v29, %v16457_v18  ;;  %v9069_v16 = vpop.f32.mrb[83].mxu0  ;;  %v9291_v50 = vmax.f32 %v9075_v53, 0.0 }
 0xb86   : > { %v9070_v54 = vadd.f32 %v16457_v18, %v9069_v16  ;;  %v9289_v17 = vmax.f32 %v9067_v52, 0.0 }
 0xb87   : > { %v9292_v0 = vmax.f32 %v9078_v40, 0.0 }
 0xb88   : > { %v9290_v6 = vmax.f32 %v9070_v54, 0.0 }
 0xb89   : > { %v9354_v55 = vpack.c.bf16 %v9292_v0, %v9291_v50 }
 0xb8a   : > { %v9353_v5 = vpack.c.bf16 %v9290_v6, %v9289_v17  ;;  %v12189_v26 = vpop.f32.mrb[84].mxu0 }
 0xb8b   : > { %v9091_v20 = vadd.f32 %v12189_v26, %v16457_v18  ;;  %v9082_v13 = vpop.f32.mrb[85].mxu0 }
 0xb8c   : > { %12271 = vmatprep.mubr.msk.bf16.mxu1 %vm8783_vm0, %v9353_v5  ;;  %v9083_v57 = vadd.f32 %v16457_v18, %v9082_v13  ;;  %v12190_v14 = vpop.f32.mrb[86].mxu0 }
 0xb8d   : > { %12272 = vmatmul.mubr.msk.bf16.gmra.mrb[80].mxu1 %vm8783_vm0, %v9354_v55  ;;  %v9094_v37 = vadd.f32 %v12190_v14, %v16457_v18  ;;  %v9085_v21 = vpop.f32.mrb[87].mxu0  ;;  %v9295_v27 = vmax.f32 %v9091_v20, 0.0 }
 0xb8e   : > { %v9086_v12 = vadd.f32 %v16457_v18, %v9085_v21  ;;  %v9293_v33 = vmax.f32 %v9083_v57, 0.0 }
 0xb8f   : > { %v9296_v62 = vmax.f32 %v9094_v37, 0.0 }
 0xb90   : > { %v9294_v49 = vmax.f32 %v9086_v12, 0.0  ;;  %v17227_v12 = vlaneseq }
 0xb91   : > { %v9356_v1 = vpack.c.bf16 %v9296_v62, %v9295_v27  ;;  %v9906_v62 = vpop.permute.xlu1 %9905 }
 0xb92   : > { %v9355_v38 = vpack.c.bf16 %v9294_v49, %v9293_v33  ;;  %v12193_v10 = vpop.f32.mrb[88].mxu0  ;;  %v16579_v27 = vand.u32 127, %v17227_v12  ;;  %v16584_v33 = vld [vmem:[%s17043_s11 + $0x2] ss:$0 sm:$0xff]  ;;  %v9896_v49 = vpop.permute.xlu0 %9895 }
 0xb93   : > { %v9107_v30 = vadd.f32 %v12193_v10, %v16457_v18  ;;  %v9098_v56 = vpop.f32.mrb[89].mxu0 }
 0xb94   : > { %12275 = vmatprep.mubr.msk.bf16.mxu1 %vm8783_vm0, %v9355_v38  ;;  %v9099_v58 = vadd.f32 %v16457_v18, %v9098_v56  ;;  %v12194_v43 = vpop.f32.mrb[90].mxu0  ;;  %vm9892_vm1 = vcmp.eq.s32.totalorder %v16579_v27, 3 }
 0xb95   : > { %12276 = vmatmul.mubr.msk.bf16.gmra.mrb[84].mxu1 %vm8783_vm0, %v9356_v1  ;;  %v9110_v25 = vadd.f32 %v12194_v43, %v16457_v18  ;;  %v9101_v59 = vpop.f32.mrb[91].mxu0  ;;  %v9299_v4 = vmax.f32 %v9107_v30, 0.0 }
 0xb96   : > { %v9102_v24 = vadd.f32 %v16457_v18, %v9101_v59  ;;  %v9297_v28 = vmax.f32 %v9099_v58, 0.0 }
 0xb97   : > { %v9300_v47 = vmax.f32 %v9110_v25, 0.0 }
 0xb98   : > { %v9298_v46 = vmax.f32 %v9102_v24, 0.0  ;;  %v9911_v24 = vpop.permute.xlu1 %9910 }
 0xb99   : > { %v9358_v36 = vpack.c.bf16 %v9300_v47, %v9299_v4 }
 0xb9a   : > { %v9357_v7 = vpack.c.bf16 %v9298_v46, %v9297_v28 }
 0xb9c   : > { %12279 = vmatprep.mubr.msk.bf16.mxu1 %vm8783_vm0, %v9357_v7 }
 0xb9d   : > { %12280 = vmatmul.mubr.msk.bf16.gmra.mrb[88].mxu1 %vm8783_vm0, %v9358_v36  ;;  %v9901_v36 = vpop.permute.xlu0 %9900 }
 0xb9f   : > { %v12197_v42 = vpop.f32.mrb[92].mxu0 }
 0xba0   : > { %v9123_v34 = vadd.f32 %v12197_v42, %v16457_v18  ;;  %v9114_v61 = vpop.f32.mrb[93].mxu0 }
 0xba1   : > { %v9115_v44 = vadd.f32 %v16457_v18, %v9114_v61  ;;  %v12198_v48 = vpop.f32.mrb[94].mxu0 }
 0xba2   : > { %v9126_v45 = vadd.f32 %v12198_v48, %v16457_v18  ;;  %v9117_v15 = vpop.f32.mrb[95].mxu0  ;;  %v9303_v32 = vmax.f32 %v9123_v34, 0.0 }
 0xba3   : > { %v9118_v51 = vadd.f32 %v16457_v18, %v9117_v15  ;;  %v9301_v9 = vmax.f32 %v9115_v44, 0.0 }
 0xba4   : > { %v9304_v3 = vmax.f32 %v9126_v45, 0.0 }
 0xba5   : > { %v9302_v2 = vmax.f32 %v9118_v51, 0.0 }
 0xba6   : > { %v9360_v63 = vpack.c.bf16 %v9304_v3, %v9303_v32 }
 0xba7   : > { %v9359_v31 = vpack.c.bf16 %v9302_v2, %v9301_v9 }
 0xba9   : > { %12283 = vmatprep.mubr.msk.bf16.mxu1 %vm8783_vm0, %v9359_v31  ;;  %v9921_v31 = vpop.permute.xlu1 %9920 }
 0xbaa   : > { %12284 = vmatmul.mubr.msk.bf16.gmra.mrb[92].mxu1 %vm8783_vm0, %v9360_v63  ;;  %v9916_v63 = vpop.permute.xlu0 %9915 }
 0xbb1   : > { %v12201_v22 = vpop.f32.mrb[96].mxu0 }
 0xbb2   : > { %v9139_v41 = vadd.f32 %v12201_v22, %v16457_v18  ;;  %v9130_v19 = vpop.f32.mrb[97].mxu0 }
 0xbb3   : > { %v9131_v11 = vadd.f32 %v16457_v18, %v9130_v19  ;;  %v12202_v23 = vpop.f32.mrb[98].mxu0 }
 0xbb4   : > { %v9142_v8 = vadd.f32 %v12202_v23, %v16457_v18  ;;  %v9133_v35 = vpop.f32.mrb[99].mxu0  ;;  %v9307_v53 = vmax.f32 %v9139_v41, 0.0 }
 0xbb5   : > { %v9134_v39 = vadd.f32 %v16457_v18, %v9133_v35  ;;  %v9305_v52 = vmax.f32 %v9131_v11, 0.0  ;;  %v9926_v11 = vpop.permute.xlu0 %9925 }
 0xbb6   : > { %v9308_v60 = vmax.f32 %v9142_v8, 0.0 }
 0xbb7   : > { %v9306_v29 = vmax.f32 %v9134_v39, 0.0 }
 0xbb8   : > { %v9362_v40 = vpack.c.bf16 %v9308_v60, %v9307_v53 }
 0xbb9   : > { %v9361_v16 = vpack.c.bf16 %v9306_v29, %v9305_v52  ;;  %v9931_v52 = vpop.permute.xlu1 %9930  ;;  %v9936_v12 = vpop.permute.xlu0 %9935 }
 0xbbb   : > { %12287 = vmatprep.mubr.msk.bf16.mxu1 %vm8783_vm0, %v9361_v16 }
 0xbbc   : > { %12288 = vmatmul.mubr.msk.bf16.gmra.mrb[96].mxu1 %vm8783_vm0, %v9362_v40 }
 0xbc2   : > { %v12205_v54 = vpop.f32.mrb[100].mxu0 }
 0xbc3   : > { %v9155_v50 = vadd.f32 %v12205_v54, %v16457_v18  ;;  %v9146_v0 = vpop.f32.mrb[101].mxu0 }
 0xbc4   : > { %v9147_v17 = vadd.f32 %v16457_v18, %v9146_v0  ;;  %v12206_v6 = vpop.f32.mrb[102].mxu0 }
 0xbc5   : > { %v9158_v55 = vadd.f32 %v12206_v6, %v16457_v18  ;;  %v9149_v5 = vpop.f32.mrb[103].mxu0  ;;  %v9311_v20 = vmax.f32 %v9155_v50, 0.0 }
 0xbc6   : > { %v9150_v26 = vadd.f32 %v16457_v18, %v9149_v5  ;;  %v9309_v57 = vmax.f32 %v9147_v17, 0.0 }
 0xbc7   : > { %v9312_v13 = vmax.f32 %v9158_v55, 0.0 }
 0xbc8   : > { %v9310_v14 = vmax.f32 %v9150_v26, 0.0 }
 0xbc9   : > { %v9364_v37 = vpack.c.bf16 %v9312_v13, %v9311_v20 }
 0xbca   : > { %v9363_v21 = vpack.c.bf16 %v9310_v14, %v9309_v57 }
 0xbcc   : > { %12291 = vmatprep.mubr.msk.bf16.mxu1 %vm8783_vm0, %v9363_v21 }
 0xbcd   : > { %12292 = vmatmul.mubr.msk.bf16.gmra.mrb[100].mxu1 %vm8783_vm0, %v9364_v37 }
 0xbd2   : > { %v12241_v1 = vpop.f32.mrb[48].mxu1 }
 0xbd3   : > { %v9580_v38 = vadd.f32 %v12241_v1, %v16584_v33  ;;  %v9571_v10 = vpop.f32.mrb[49].mxu1 }
 0xbd4   : > { %v9572_v30 = vadd.f32 %v16584_v33, %v9571_v10  ;;  %v12242_v56 = vpop.f32.mrb[50].mxu1  ;;  %v12209_v43 = vpop.f32.mrb[104].mxu0 }
 0xbd5   : > { %v10295_v58 = vsel %vm9892_vm1, %v9906_v62, %v9580_v38  ;;  %v9583_v25 = vadd.f32 %v12242_v56, %v16584_v33  ;;  %v9574_v59 = vpop.f32.mrb[51].mxu1  ;;  %v9171_v47 = vadd.f32 %v12209_v43, %v16457_v18  ;;  %v9162_v28 = vpop.f32.mrb[105].mxu0 }
 0xbd6   : > { %10376 = vst.msk [vmem:[%s16592_s18 + $0x10] sm:$0xff] %vm10373_vm2, %v10295_v58  ;;  %v10293_v4 = vsel %vm9892_vm1, %v9896_v49, %v9572_v30  ;;  %v9575_v46 = vadd.f32 %v16584_v33, %v9574_v59  ;;  %v9163_v42 = vadd.f32 %v16457_v18, %v9162_v28  ;;  %v12210_v34 = vpop.f32.mrb[106].mxu0  ;;  %v9941_v62 = vpop.permute.xlu1 %9940 }
 0xbd7   : > { %10374 = vst.msk [vmem:[%s16592_s18] sm:$0xff] %vm10373_vm2, %v10293_v4  ;;  %v10296_v7 = vsel %vm9892_vm1, %v9911_v24, %v9583_v25  ;;  %v9174_v44 = vadd.f32 %v12210_v34, %v16457_v18  ;;  %v9165_v48 = vpop.f32.mrb[107].mxu0  ;;  %v9315_v15 = vmax.f32 %v9171_v47, 0.0  ;;  %v9946_v10 = vpop.permute.xlu0 %9945 }
 0xbd8   : > { %10377 = vst.msk [vmem:[%s16592_s18 + $0x18] sm:$0xff] %vm10373_vm2, %v10296_v7  ;;  %v10294_v61 = vsel %vm9892_vm1, %v9901_v36, %v9575_v46  ;;  %v9166_v45 = vadd.f32 %v16457_v18, %v9165_v48  ;;  %v9313_v32 = vmax.f32 %v9163_v42, 0.0 }
 0xbd9   : > { %10375 = vst.msk [vmem:[%s16592_s18 + $0x8] sm:$0xff] %vm10373_vm2, %v10294_v61  ;;  %v9316_v51 = vmax.f32 %v9174_v44, 0.0 }
 0xbda   : > { %v9314_v3 = vmax.f32 %v9166_v45, 0.0  ;;  %v9951_v24 = vpop.permute.xlu1 %9950 }
 0xbdb   : > { %v9366_v9 = vpack.c.bf16 %v9316_v51, %v9315_v15 }
 0xbdc   : > { %v9365_v2 = vpack.c.bf16 %v9314_v3, %v9313_v32 }
 0xbde   : > { %12295 = vmatprep.mubr.msk.bf16.mxu1 %vm8783_vm0, %v9365_v2  ;;  %v9956_v2 = vpop.permute.xlu0 %9955 }
 0xbdf   : > { %12296 = vmatmul.mubr.msk.bf16.gmra.mrb[104].mxu1 %vm8783_vm0, %v9366_v9 }
 0xbe6   : > { %v12245_v22 = vpop.f32.mrb[52].mxu1 }
 0xbe7   : > { %v9596_v41 = vadd.f32 %v12245_v22, %v16584_v33  ;;  %v9587_v19 = vpop.f32.mrb[53].mxu1 }
 0xbe8   : > { %v9588_v23 = vadd.f32 %v16584_v33, %v9587_v19  ;;  %v12246_v8 = vpop.f32.mrb[54].mxu1  ;;  %v12213_v39 = vpop.f32.mrb[108].mxu0 }
 0xbe9   : > { %v10299_v35 = vsel %vm9892_vm1, %v9926_v11, %v9596_v41  ;;  %v9599_v53 = vadd.f32 %v12246_v8, %v16584_v33  ;;  %v9590_v60 = vpop.f32.mrb[55].mxu1  ;;  %v9187_v40 = vadd.f32 %v12213_v39, %v16457_v18  ;;  %v9178_v16 = vpop.f32.mrb[109].mxu0 }
 0xbea   : > { %10380 = vst.msk [vmem:[%s16592_s18 + $0x30] sm:$0xff] %vm10373_vm2, %v10299_v35  ;;  %v10297_v29 = vsel %vm9892_vm1, %v9916_v63, %v9588_v23  ;;  %v9591_v54 = vadd.f32 %v16584_v33, %v9590_v60  ;;  %v9179_v0 = vadd.f32 %v16457_v18, %v9178_v16  ;;  %v12214_v17 = vpop.f32.mrb[110].mxu0  ;;  %v9961_v63 = vpop.permute.xlu1 %9960 }
 0xbeb   : > { %10378 = vst.msk [vmem:[%s16592_s18 + $0x20] sm:$0xff] %vm10373_vm2, %v10297_v29  ;;  %v10300_v50 = vsel %vm9892_vm1, %v9931_v52, %v9599_v53  ;;  %v9190_v55 = vadd.f32 %v12214_v17, %v16457_v18  ;;  %v9181_v5 = vpop.f32.mrb[111].mxu0  ;;  %v9319_v20 = vmax.f32 %v9187_v40, 0.0  ;;  %v9966_v19 = vpop.permute.xlu0 %9965 }
 0xbec   : > { %10381 = vst.msk [vmem:[%s16592_s18 + $0x38] sm:$0xff] %vm10373_vm2, %v10300_v50  ;;  %v10298_v6 = vsel %vm9892_vm1, %v9921_v31, %v9591_v54  ;;  %v9182_v26 = vadd.f32 %v16457_v18, %v9181_v5  ;;  %v9317_v57 = vmax.f32 %v9179_v0, 0.0 }
 0xbed   : > { %10379 = vst.msk [vmem:[%s16592_s18 + $0x28] sm:$0xff] %vm10373_vm2, %v10298_v6  ;;  %v9320_v13 = vmax.f32 %v9190_v55, 0.0 }
 0xbee   : > { %v9318_v14 = vmax.f32 %v9182_v26, 0.0  ;;  %v9971_v60 = vpop.permute.xlu1 %9970 }
 0xbef   : > { %v9368_v37 = vpack.c.bf16 %v9320_v13, %v9319_v20 }
 0xbf0   : > { %v9367_v21 = vpack.c.bf16 %v9318_v14, %v9317_v57 }
 0xbf2   : > { %12299 = vmatprep.mubr.msk.bf16.mxu1 %vm8783_vm0, %v9367_v21  ;;  %v9976_v21 = vpop.permute.xlu0 %9975 }
 0xbf3   : > { %12300 = vmatmul.mubr.msk.bf16.gmra.mrb[108].mxu1 %vm8783_vm0, %v9368_v37 }
 0xbf9   : > { %v12249_v49 = vpop.f32.mrb[56].mxu1 }
 0xbfa   : > { %v9612_v1 = vadd.f32 %v12249_v49, %v16584_v33  ;;  %v9603_v38 = vpop.f32.mrb[57].mxu1 }
 0xbfb   : > { %v9604_v30 = vadd.f32 %v16584_v33, %v9603_v38  ;;  %v12250_v56 = vpop.f32.mrb[58].mxu1  ;;  %v9986_v38 = vpop.permute.xlu0 %9985 }
 0xbfc   : > { %v10303_v58 = vsel %vm9892_vm1, %v9946_v10, %v9612_v1  ;;  %v9615_v25 = vadd.f32 %v12250_v56, %v16584_v33  ;;  %v9606_v59 = vpop.f32.mrb[59].mxu1 }
 0xbfd   : > { %10384 = vst.msk [vmem:[%s16592_s18 + $0x50] sm:$0xff] %vm10373_vm2, %v10303_v58  ;;  %v10301_v4 = vsel %vm9892_vm1, %v9936_v12, %v9604_v30  ;;  %v9607_v46 = vadd.f32 %v16584_v33, %v9606_v59  ;;  %v9981_v12 = vpop.permute.xlu1 %9980 }
 0xbfe   : > { %v12217_v43 = vpop.f32.mrb[112].mxu0  ;;  %10382 = vst.msk [vmem:[%s16592_s18 + $0x40] sm:$0xff] %vm10373_vm2, %v10301_v4  ;;  %v10304_v36 = vsel %vm9892_vm1, %v9951_v24, %v9615_v25 }
 0xbff   : > { %v9203_v47 = vadd.f32 %v12217_v43, %v16457_v18  ;;  %v9194_v28 = vpop.f32.mrb[113].mxu0  ;;  %10385 = vst.msk [vmem:[%s16592_s18 + $0x58] sm:$0xff] %vm10373_vm2, %v10304_v36  ;;  %v10302_v34 = vsel %vm9892_vm1, %v9941_v62, %v9607_v46 }
 0xc00   : > { %v9195_v7 = vadd.f32 %v16457_v18, %v9194_v28  ;;  %v12218_v42 = vpop.f32.mrb[114].mxu0  ;;  %10383 = vst.msk [vmem:[%s16592_s18 + $0x48] sm:$0xff] %vm10373_vm2, %v10302_v34 }
 0xc01   : > { %v9206_v61 = vadd.f32 %v12218_v42, %v16457_v18  ;;  %v9197_v44 = vpop.f32.mrb[115].mxu0  ;;  %v9323_v45 = vmax.f32 %v9203_v47, 0.0  ;;  %v9991_v59 = vpop.permute.xlu1 %9990 }
 0xc02   : > { %v9198_v48 = vadd.f32 %v16457_v18, %v9197_v44  ;;  %v9321_v51 = vmax.f32 %v9195_v7, 0.0 }
 0xc03   : > { %v9324_v15 = vmax.f32 %v9206_v61, 0.0 }
 0xc04   : > { %v9322_v32 = vmax.f32 %v9198_v48, 0.0 }
 0xc05   : > { %v9370_v3 = vpack.c.bf16 %v9324_v15, %v9323_v45 }
 0xc06   : > { %v9369_v9 = vpack.c.bf16 %v9322_v32, %v9321_v51 }
 0xc08   : > { %12303 = vmatprep.mubr.msk.bf16.mxu1 %vm8783_vm0, %v9369_v9  ;;  %v9996_v9 = vpop.permute.xlu0 %9995 }
 0xc09   : > { %12304 = vmatmul.mubr.msk.bf16.gmra.mrb[112].mxu1 %vm8783_vm0, %v9370_v3 }
 0xc0c   : > { %v12253_v31 = vpop.f32.mrb[60].mxu1 }
 0xc0d   : > { %v9628_v22 = vadd.f32 %v12253_v31, %v16584_v33  ;;  %v9619_v41 = vpop.f32.mrb[61].mxu1 }
 0xc0e   : > { %v9620_v11 = vadd.f32 %v16584_v33, %v9619_v41  ;;  %v12254_v23 = vpop.f32.mrb[62].mxu1  ;;  %v10006_v41 = vpop.permute.xlu0 %10005 }
 0xc0f   : > { %v10307_v8 = vsel %vm9892_vm1, %v9966_v19, %v9628_v22  ;;  %v12221_v35 = vpop.f32.mrb[116].mxu0  ;;  %v9631_v39 = vadd.f32 %v12254_v23, %v16584_v33  ;;  %v9622_v53 = vpop.f32.mrb[63].mxu1 }
 0xc10   : > { %10388 = vst.msk [vmem:[%s16592_s18 + $0x70] sm:$0xff] %vm10373_vm2, %v10307_v8  ;;  %v10305_v52 = vsel %vm9892_vm1, %v9956_v2, %v9620_v11  ;;  %v9219_v29 = vadd.f32 %v12221_v35, %v16457_v18  ;;  %v9210_v40 = vpop.f32.mrb[117].mxu0  ;;  %v9623_v16 = vadd.f32 %v16584_v33, %v9622_v53  ;;  %v10001_v2 = vpop.permute.xlu1 %10000 }
 0xc11   : > { %10386 = vst.msk [vmem:[%s16592_s18 + $0x60] sm:$0xff] %vm10373_vm2, %v10305_v52  ;;  %v10308_v54 = vsel %vm9892_vm1, %v9971_v60, %v9631_v39  ;;  %v9211_v50 = vadd.f32 %v16457_v18, %v9210_v40  ;;  %v12222_v0 = vpop.f32.mrb[118].mxu0  ;;  %v12902_v60 = vld [vmem:[%s17043_s11 + $0x1] ss:$0 sm:$0xff] }
 0xc12   : > { %10389 = vst.msk [vmem:[%s16592_s18 + $0x78] sm:$0xff] %vm10373_vm2, %v10308_v54  ;;  %v10306_v17 = vsel %vm9892_vm1, %v9961_v63, %v9623_v16  ;;  %v9222_v6 = vadd.f32 %v12222_v0, %v16457_v18  ;;  %v9213_v55 = vpop.f32.mrb[119].mxu0  ;;  %v9327_v26 = vmax.f32 %v9219_v29, 0.0 }
 0xc13   : > { %10387 = vst.msk [vmem:[%s16592_s18 + $0x68] sm:$0xff] %vm10373_vm2, %v10306_v17  ;;  %v9214_v5 = vadd.f32 %v16457_v18, %v9213_v55  ;;  %v9325_v13 = vmax.f32 %v9211_v50, 0.0 }
 0xc14   : > { %v9328_v20 = vmax.f32 %v9222_v6, 0.0  ;;  %v10011_v39 = vpop.permute.xlu1 %10010 }
 0xc15   : > { %v9326_v57 = vmax.f32 %v9214_v5, 0.0 }
 0xc16   : > { %v9372_v14 = vpack.c.bf16 %v9328_v20, %v9327_v26 }
 0xc17   : > { %v9371_v37 = vpack.c.bf16 %v9326_v57, %v9325_v13 }
 0xc19   : > { %12307 = vmatprep.mubr.msk.bf16.mxu1 %vm8783_vm0, %v9371_v37  ;;  %v10016_v37 = vpop.permute.xlu0 %10015 }
 0xc1a   : > { %12308 = vmatmul.mubr.msk.bf16.gmra.mrb[116].mxu1 %vm8783_vm0, %v9372_v14 }
 0xc21   : > { %v12257_v62 = vpop.f32.mrb[64].mxu1 }
 0xc22   : > { %v9644_v49 = vadd.f32 %v12257_v62, %v16584_v33  ;;  %v9635_v1 = vpop.f32.mrb[65].mxu1 }
 0xc23   : > { %v9636_v10 = vadd.f32 %v16584_v33, %v9635_v1  ;;  %v12258_v30 = vpop.f32.mrb[66].mxu1  ;;  %v12225_v58 = vpop.f32.mrb[120].mxu0 }
 0xc24   : > { %v10311_v56 = vsel %vm9892_vm1, %v9986_v38, %v9644_v49  ;;  %v9647_v43 = vadd.f32 %v12258_v30, %v16584_v33  ;;  %v9638_v25 = vpop.f32.mrb[67].mxu1  ;;  %v9235_v4 = vadd.f32 %v12225_v58, %v16457_v18  ;;  %v9226_v47 = vpop.f32.mrb[121].mxu0 }
 0xc25   : > { %10392 = vst.msk [vmem:[%s16592_s18 + $0x90] sm:$0xff] %vm10373_vm2, %v10311_v56  ;;  %v10309_v24 = vsel %vm9892_vm1, %v9976_v21, %v9636_v10  ;;  %v9639_v28 = vadd.f32 %v16584_v33, %v9638_v25  ;;  %v9227_v36 = vadd.f32 %v16457_v18, %v9226_v47  ;;  %v12226_v7 = vpop.f32.mrb[122].mxu0  ;;  %v10021_v21 = vpop.permute.xlu1 %10020 }
 0xc26   : > { %10390 = vst.msk [vmem:[%s16592_s18 + $0x80] sm:$0xff] %vm10373_vm2, %v10309_v24  ;;  %v10312_v46 = vsel %vm9892_vm1, %v9991_v59, %v9647_v43  ;;  %v9238_v34 = vadd.f32 %v12226_v7, %v16457_v18  ;;  %v9229_v61 = vpop.f32.mrb[123].mxu0  ;;  %v9331_v48 = vmax.f32 %v9235_v4, 0.0  ;;  %v10026_v1 = vpop.permute.xlu0 %10025 }
 0xc27   : > { %10393 = vst.msk [vmem:[%s16592_s18 + $0x98] sm:$0xff] %vm10373_vm2, %v10312_v46  ;;  %v10310_v42 = vsel %vm9892_vm1, %v9981_v12, %v9639_v28  ;;  %v9230_v44 = vadd.f32 %v16457_v18, %v9229_v61  ;;  %v9329_v15 = vmax.f32 %v9227_v36, 0.0 }
 0xc28   : > { %10391 = vst.msk [vmem:[%s16592_s18 + $0x88] sm:$0xff] %vm10373_vm2, %v10310_v42  ;;  %v9332_v45 = vmax.f32 %v9238_v34, 0.0 }
 0xc29   : > { %v9330_v51 = vmax.f32 %v9230_v44, 0.0  ;;  %v10031_v43 = vpop.permute.xlu1 %10030 }
 0xc2a   : > { %v9374_v32 = vpack.c.bf16 %v9332_v45, %v9331_v48  ;;  %v10036_v47 = vpop.permute.xlu0 %10035 }
 0xc2b   : > { %v9373_v3 = vpack.c.bf16 %v9330_v51, %v9329_v15 }
 0xc2d   : > { %12311 = vmatprep.mubr.msk.bf16.mxu1 %vm8783_vm0, %v9373_v3  ;;  %v10041_v28 = vpop.permute.xlu1 %10040 }
 0xc2e   : > { %12312 = vmatmul.mubr.msk.bf16.gmra.mrb[120].mxu1 %vm8783_vm0, %v9374_v32  ;;  %v10046_v42 = vpop.permute.xlu0 %10045 }
 0xc31   : > { %v10051_v15 = vpop.permute.xlu1 %10050 }
 0xc36   : > { %v12261_v63 = vpop.f32.mrb[68].mxu1 }
 0xc37   : > { %v9660_v31 = vadd.f32 %v12261_v63, %v16584_v33  ;;  %v9651_v22 = vpop.f32.mrb[69].mxu1  ;;  %v10061_v63 = vpop.permute.xlu1 %10060 }
 0xc38   : > { %v9652_v18 = vadd.f32 %v16584_v33, %v9651_v22  ;;  %v12262_v19 = vpop.f32.mrb[70].mxu1 }
 0xc39   : > { %v10315_v11 = vsel %vm9892_vm1, %v10006_v41, %v9660_v31  ;;  %v12229_v23 = vpop.f32.mrb[124].mxu0  ;;  %v9663_v8 = vadd.f32 %v12262_v19, %v16584_v33  ;;  %v9654_v35 = vpop.f32.mrb[71].mxu1 }
 0xc3a   : > { %10396 = vst.msk [vmem:[%s16592_s18 + $0xb0] sm:$0xff] %vm10373_vm2, %v10315_v11  ;;  %v10313_v53 = vsel %vm9892_vm1, %v9996_v9, %v9652_v18  ;;  %v9251_v52 = vadd.f32 %v12902_v60, %v12229_v23  ;;  %v9242_v29 = vpop.f32.mrb[125].mxu0  ;;  %v9655_v40 = vadd.f32 %v16584_v33, %v9654_v35 }
 0xc3b   : > { %10394 = vst.msk [vmem:[%s16592_s18 + $0xa0] sm:$0xff] %vm10373_vm2, %v10313_v53  ;;  %v10316_v16 = vsel %vm9892_vm1, %v10011_v39, %v9663_v8  ;;  %v9243_v54 = vadd.f32 %v12902_v60, %v9242_v29  ;;  %v12230_v50 = vpop.f32.mrb[126].mxu0  ;;  %v10071_v39 = vpop.permute.xlu1 %10070 }
 0xc3c   : > { %10397 = vst.msk [vmem:[%s16592_s18 + $0xb8] sm:$0xff] %vm10373_vm2, %v10316_v16  ;;  %v10314_v0 = vsel %vm9892_vm1, %v10001_v2, %v9655_v40  ;;  %v9254_v17 = vadd.f32 %v12902_v60, %v12230_v50  ;;  %v9245_v6 = vpop.f32.mrb[127].mxu0  ;;  %v9335_v5 = vmax.f32 %v9251_v52, 0.0  ;;  %v10056_v2 = vpop.permute.xlu0 %10055 }
 0xc3d   : > { %10395 = vst.msk [vmem:[%s16592_s18 + $0xa8] sm:$0xff] %vm10373_vm2, %v10314_v0  ;;  %v9246_v55 = vadd.f32 %v12902_v60, %v9245_v6  ;;  %v9333_v20 = vmax.f32 %v9243_v54, 0.0 }
 0xc3e   : > { %v9336_v26 = vmax.f32 %v9254_v17, 0.0 }
 0xc3f   : > { %v9334_v13 = vmax.f32 %v9246_v55, 0.0  ;;  %v10081_v16 = vpop.permute.xlu1 %10080 }
 0xc40   : > { %v9376_v57 = vpack.c.bf16 %v9336_v26, %v9335_v5  ;;  %v10066_v18 = vpop.permute.xlu0 %10065 }
 0xc41   : > { %v9375_v14 = vpack.c.bf16 %v9334_v13, %v9333_v20 }
 0xc43   : > { %12315 = vmatprep.mubr.msk.bf16.mxu1 %vm8783_vm0, %v9375_v14  ;;  %v10091_v13 = vpop.permute.xlu1 %10090 }
 0xc44   : > { %12316 = vmatmul.mubr.msk.bf16.gmra.mrb[124].mxu1 %vm8783_vm0, %v9376_v57  ;;  %v10076_v29 = vpop.permute.xlu0 %10075 }
 0xc47   : > { %v12265_v12 = vpop.f32.mrb[72].mxu1 }
 0xc48   : > { %v9676_v62 = vadd.f32 %v12265_v12, %v16584_v33  ;;  %v9667_v49 = vpop.f32.mrb[73].mxu1  ;;  %v10086_v17 = vpop.permute.xlu0 %10085 }
 0xc49   : > { %v9668_v38 = vadd.f32 %v16584_v33, %v9667_v49  ;;  %v12266_v10 = vpop.f32.mrb[74].mxu1 }
 0xc4a   : > { %v10319_v30 = vsel %vm9892_vm1, %v10026_v1, %v9676_v62  ;;  %v9679_v56 = vadd.f32 %v12266_v10, %v16584_v33  ;;  %v9670_v58 = vpop.f32.mrb[75].mxu1  ;;  %v10101_v62 = vpop.permute.xlu1 %10100 }
 0xc4b   : > { %10400 = vst.msk [vmem:[%s16592_s18 + $0xd0] sm:$0xff] %vm10373_vm2, %v10319_v30  ;;  %v10317_v25 = vsel %vm9892_vm1, %v10016_v37, %v9668_v38  ;;  %v9671_v59 = vadd.f32 %v16584_v33, %v9670_v58 }
 0xc4c   : > { %10398 = vst.msk [vmem:[%s16592_s18 + $0xc0] sm:$0xff] %vm10373_vm2, %v10317_v25  ;;  %v10320_v24 = vsel %vm9892_vm1, %v10031_v43, %v9679_v56 }
 0xc4d   : > { %10401 = vst.msk [vmem:[%s16592_s18 + $0xd8] sm:$0xff] %vm10373_vm2, %v10320_v24  ;;  %v10318_v4 = vsel %vm9892_vm1, %v10021_v21, %v9671_v59  ;;  %v10096_v21 = vpop.permute.xlu0 %10095 }
 0xc4e   : > { %10399 = vst.msk [vmem:[%s16592_s18 + $0xc8] sm:$0xff] %vm10373_vm2, %v10318_v4  ;;  %v10111_v59 = vpop.permute.xlu1 %10110 }
 0xc51   : > { %v10106_v10 = vpop.permute.xlu0 %10105 }
 0xc54   : > { %v12269_v46 = vpop.f32.mrb[76].mxu1 }
 0xc55   : > { %v9692_v36 = vadd.f32 %v12269_v46, %v16584_v33  ;;  %v9683_v7 = vpop.f32.mrb[77].mxu1  ;;  %v10116_v46 = vpop.permute.xlu0 %10115 }
 0xc56   : > { %v9684_v34 = vadd.f32 %v16584_v33, %v9683_v7  ;;  %v12270_v61 = vpop.f32.mrb[78].mxu1 }
 0xc57   : > { %v10323_v44 = vsel %vm9892_vm1, %v10046_v42, %v9692_v36  ;;  %v9695_v48 = vadd.f32 %v12270_v61, %v16584_v33  ;;  %v9686_v45 = vpop.f32.mrb[79].mxu1  ;;  %v10121_v36 = vpop.permute.xlu1 %10120 }
 0xc58   : > { %10404 = vst.msk [vmem:[%s16592_s18 + $0xf0] sm:$0xff] %vm10373_vm2, %v10323_v44  ;;  %v10321_v51 = vsel %vm9892_vm1, %v10036_v47, %v9684_v34  ;;  %v9687_v32 = vadd.f32 %v16584_v33, %v9686_v45 }
 0xc59   : > { %10402 = vst.msk [vmem:[%s16592_s18 + $0xe0] sm:$0xff] %vm10373_vm2, %v10321_v51  ;;  %v10324_v3 = vsel %vm9892_vm1, %v10051_v15, %v9695_v48  ;;  %v10126_v61 = vpop.permute.xlu0 %10125 }
 0xc5a   : > { %10405 = vst.msk [vmem:[%s16592_s18 + $0xf8] sm:$0xff] %vm10373_vm2, %v10324_v3  ;;  %v10322_v9 = vsel %vm9892_vm1, %v10041_v28, %v9687_v32 }
 0xc5b   : > { %10403 = vst.msk [vmem:[%s16592_s18 + $0xe8] sm:$0xff] %vm10373_vm2, %v10322_v9  ;;  %v10131_v32 = vpop.permute.xlu1 %10130 }
 0xc60   : > { %v12273_v31 = vpop.f32.mrb[80].mxu1 }
 0xc61   : > { %v9708_v22 = vadd.f32 %v12273_v31, %v16584_v33  ;;  %v9699_v41 = vpop.f32.mrb[81].mxu1  ;;  %v10136_v31 = vpop.permute.xlu0 %10135 }
 0xc62   : > { %v9700_v19 = vadd.f32 %v16584_v33, %v9699_v41  ;;  %v12274_v11 = vpop.f32.mrb[82].mxu1 }
 0xc63   : > { %v10327_v23 = vsel %vm9892_vm1, %v10066_v18, %v9708_v22  ;;  %v9711_v8 = vadd.f32 %v12274_v11, %v16584_v33  ;;  %v9702_v35 = vpop.f32.mrb[83].mxu1  ;;  %v10141_v22 = vpop.permute.xlu1 %10140 }
 0xc64   : > { %10408 = vst.msk [vmem:[%s16592_s18 + $0x110] sm:$0xff] %vm10373_vm2, %v10327_v23  ;;  %v10325_v53 = vsel %vm9892_vm1, %v10056_v2, %v9700_v19  ;;  %v9703_v60 = vadd.f32 %v16584_v33, %v9702_v35 }
 0xc65   : > { %10406 = vst.msk [vmem:[%s16592_s18 + $0x100] sm:$0xff] %vm10373_vm2, %v10325_v53  ;;  %v10328_v52 = vsel %vm9892_vm1, %v10071_v39, %v9711_v8  ;;  %v10146_v11 = vpop.permute.xlu0 %10145 }
 0xc66   : > { %10409 = vst.msk [vmem:[%s16592_s18 + $0x118] sm:$0xff] %vm10373_vm2, %v10328_v52  ;;  %v10326_v40 = vsel %vm9892_vm1, %v10061_v63, %v9703_v60 }
 0xc67   : > { %10407 = vst.msk [vmem:[%s16592_s18 + $0x108] sm:$0xff] %vm10373_vm2, %v10326_v40  ;;  %v10151_v60 = vpop.permute.xlu1 %10150 }
 0xc68   : > { %v12277_v54 = vpop.f32.mrb[84].mxu1 }
 0xc69   : > { %v9724_v50 = vadd.f32 %v12277_v54, %v16584_v33  ;;  %v9715_v0 = vpop.f32.mrb[85].mxu1  ;;  %v10156_v54 = vpop.permute.xlu0 %10155 }
 0xc6a   : > { %v9716_v6 = vadd.f32 %v16584_v33, %v9715_v0  ;;  %v12278_v55 = vpop.f32.mrb[86].mxu1 }
 0xc6b   : > { %v10331_v5 = vsel %vm9892_vm1, %v10086_v17, %v9724_v50  ;;  %v9727_v26 = vadd.f32 %v12278_v55, %v16584_v33  ;;  %v9718_v20 = vpop.f32.mrb[87].mxu1  ;;  %v10161_v50 = vpop.permute.xlu1 %10160 }
 0xc6c   : > { %10412 = vst.msk [vmem:[%s16592_s18 + $0x130] sm:$0xff] %vm10373_vm2, %v10331_v5  ;;  %v10329_v57 = vsel %vm9892_vm1, %v10076_v29, %v9716_v6  ;;  %v9719_v14 = vadd.f32 %v16584_v33, %v9718_v20 }
 0xc6d   : > { %10410 = vst.msk [vmem:[%s16592_s18 + $0x120] sm:$0xff] %vm10373_vm2, %v10329_v57  ;;  %v10332_v37 = vsel %vm9892_vm1, %v10091_v13, %v9727_v26  ;;  %v10166_v55 = vpop.permute.xlu0 %10165 }
 0xc6e   : > { %10413 = vst.msk [vmem:[%s16592_s18 + $0x138] sm:$0xff] %vm10373_vm2, %v10332_v37  ;;  %v10330_v12 = vsel %vm9892_vm1, %v10081_v16, %v9719_v14 }
 0xc6f   : > { %10411 = vst.msk [vmem:[%s16592_s18 + $0x128] sm:$0xff] %vm10373_vm2, %v10330_v12  ;;  %v10171_v14 = vpop.permute.xlu1 %10170 }
 0xc70   : > { %v12281_v49 = vpop.f32.mrb[88].mxu1 }
 0xc71   : > { %v9740_v1 = vadd.f32 %v12281_v49, %v16584_v33  ;;  %v9731_v38 = vpop.f32.mrb[89].mxu1  ;;  %v10176_v49 = vpop.permute.xlu0 %10175 }
 0xc72   : > { %v9732_v30 = vadd.f32 %v16584_v33, %v9731_v38  ;;  %v12282_v56 = vpop.f32.mrb[90].mxu1 }
 0xc73   : > { %v10335_v58 = vsel %vm9892_vm1, %v10106_v10, %v9740_v1  ;;  %v9743_v43 = vadd.f32 %v12282_v56, %v16584_v33  ;;  %v9734_v25 = vpop.f32.mrb[91].mxu1  ;;  %v10181_v1 = vpop.permute.xlu1 %10180 }
 0xc74   : > { %10416 = vst.msk [vmem:[%s16592_s18 + $0x150] sm:$0xff] %vm10373_vm2, %v10335_v58  ;;  %v10333_v24 = vsel %vm9892_vm1, %v10096_v21, %v9732_v30  ;;  %v9735_v4 = vadd.f32 %v16584_v33, %v9734_v25 }
 0xc75   : > { %10414 = vst.msk [vmem:[%s16592_s18 + $0x140] sm:$0xff] %vm10373_vm2, %v10333_v24  ;;  %v10336_v47 = vsel %vm9892_vm1, %v10111_v59, %v9743_v43  ;;  %v10186_v56 = vpop.permute.xlu0 %10185 }
 0xc76   : > { %10417 = vst.msk [vmem:[%s16592_s18 + $0x158] sm:$0xff] %vm10373_vm2, %v10336_v47  ;;  %v10334_v28 = vsel %vm9892_vm1, %v10101_v62, %v9735_v4 }
 0xc77   : > { %10415 = vst.msk [vmem:[%s16592_s18 + $0x148] sm:$0xff] %vm10373_vm2, %v10334_v28  ;;  %v10191_v4 = vpop.permute.xlu1 %10190 }
 0xc7d   : > { %v12285_v7 = vpop.f32.mrb[92].mxu1 }
 0xc7e   : > { %v9756_v42 = vadd.f32 %v12285_v7, %v16584_v33  ;;  %v9747_v34 = vpop.f32.mrb[93].mxu1  ;;  %v10196_v7 = vpop.permute.xlu0 %10195 }
 0xc7f   : > { %v9748_v44 = vadd.f32 %v16584_v33, %v9747_v34  ;;  %v12286_v48 = vpop.f32.mrb[94].mxu1 }
 0xc80   : > { %v10339_v45 = vsel %vm9892_vm1, %v10126_v61, %v9756_v42  ;;  %v9759_v15 = vadd.f32 %v12286_v48, %v16584_v33  ;;  %v9750_v51 = vpop.f32.mrb[95].mxu1  ;;  %v10201_v42 = vpop.permute.xlu1 %10200 }
 0xc81   : > { %10420 = vst.msk [vmem:[%s16592_s18 + $0x170] sm:$0xff] %vm10373_vm2, %v10339_v45  ;;  %v10337_v3 = vsel %vm9892_vm1, %v10116_v46, %v9748_v44  ;;  %v9751_v9 = vadd.f32 %v16584_v33, %v9750_v51 }
 0xc82   : > { %10418 = vst.msk [vmem:[%s16592_s18 + $0x160] sm:$0xff] %vm10373_vm2, %v10337_v3  ;;  %v10340_v2 = vsel %vm9892_vm1, %v10131_v32, %v9759_v15  ;;  %v10206_v48 = vpop.permute.xlu0 %10205 }
 0xc83   : > { %10421 = vst.msk [vmem:[%s16592_s18 + $0x178] sm:$0xff] %vm10373_vm2, %v10340_v2  ;;  %v10338_v63 = vsel %vm9892_vm1, %v10121_v36, %v9751_v9 }
 0xc84   : > { %10419 = vst.msk [vmem:[%s16592_s18 + $0x168] sm:$0xff] %vm10373_vm2, %v10338_v63  ;;  %v10211_v9 = vpop.permute.xlu1 %10210 }
 0xc8f   : > { %v12289_v41 = vpop.f32.mrb[96].mxu1 }
 0xc90   : > { %v9772_v18 = vadd.f32 %v12289_v41, %v16584_v33  ;;  %v9763_v19 = vpop.f32.mrb[97].mxu1  ;;  %v10216_v41 = vpop.permute.xlu0 %10215 }
 0xc91   : > { %v9764_v23 = vadd.f32 %v16584_v33, %v9763_v19  ;;  %v12290_v8 = vpop.f32.mrb[98].mxu1 }
 0xc92   : > { %v10343_v35 = vsel %vm9892_vm1, %v10146_v11, %v9772_v18  ;;  %v9775_v39 = vadd.f32 %v12290_v8, %v16584_v33  ;;  %v9766_v53 = vpop.f32.mrb[99].mxu1  ;;  %v10221_v18 = vpop.permute.xlu1 %10220 }
 0xc93   : > { %10424 = vst.msk [vmem:[%s16592_s18 + $0x190] sm:$0xff] %vm10373_vm2, %v10343_v35  ;;  %v10341_v52 = vsel %vm9892_vm1, %v10136_v31, %v9764_v23  ;;  %v9767_v29 = vadd.f32 %v16584_v33, %v9766_v53 }
 0xc94   : > { %10422 = vst.msk [vmem:[%s16592_s18 + $0x180] sm:$0xff] %vm10373_vm2, %v10341_v52  ;;  %v10344_v40 = vsel %vm9892_vm1, %v10151_v60, %v9775_v39  ;;  %v10226_v8 = vpop.permute.xlu0 %10225 }
 0xc95   : > { %10425 = vst.msk [vmem:[%s16592_s18 + $0x198] sm:$0xff] %vm10373_vm2, %v10344_v40  ;;  %v10342_v16 = vsel %vm9892_vm1, %v10141_v22, %v9767_v29 }
 0xc96   : > { %10423 = vst.msk [vmem:[%s16592_s18 + $0x188] sm:$0xff] %vm10373_vm2, %v10342_v16  ;;  %v10231_v29 = vpop.permute.xlu1 %10230 }
 0xca0   : > { %v12293_v0 = vpop.f32.mrb[100].mxu1 }
 0xca1   : > { %v9788_v17 = vadd.f32 %v12293_v0, %v16584_v33  ;;  %v9779_v6 = vpop.f32.mrb[101].mxu1  ;;  %v10236_v0 = vpop.permute.xlu0 %10235 }
 0xca2   : > { %v9780_v5 = vadd.f32 %v16584_v33, %v9779_v6  ;;  %v12294_v26 = vpop.f32.mrb[102].mxu1 }
 0xca3   : > { %v10347_v20 = vsel %vm9892_vm1, %v10166_v55, %v9788_v17  ;;  %v9791_v13 = vadd.f32 %v12294_v26, %v16584_v33  ;;  %v9782_v57 = vpop.f32.mrb[103].mxu1  ;;  %v10241_v17 = vpop.permute.xlu1 %10240 }
 0xca4   : > { %10428 = vst.msk [vmem:[%s16592_s18 + $0x1b0] sm:$0xff] %vm10373_vm2, %v10347_v20  ;;  %v10345_v37 = vsel %vm9892_vm1, %v10156_v54, %v9780_v5  ;;  %v9783_v21 = vadd.f32 %v16584_v33, %v9782_v57 }
 0xca5   : > { %10426 = vst.msk [vmem:[%s16592_s18 + $0x1a0] sm:$0xff] %vm10373_vm2, %v10345_v37  ;;  %v10348_v12 = vsel %vm9892_vm1, %v10171_v14, %v9791_v13  ;;  %v10246_v26 = vpop.permute.xlu0 %10245 }
 0xca6   : > { %10429 = vst.msk [vmem:[%s16592_s18 + $0x1b8] sm:$0xff] %vm10373_vm2, %v10348_v12  ;;  %v10346_v62 = vsel %vm9892_vm1, %v10161_v50, %v9783_v21 }
 0xca7   : > { %10427 = vst.msk [vmem:[%s16592_s18 + $0x1a8] sm:$0xff] %vm10373_vm2, %v10346_v62  ;;  %v10251_v21 = vpop.permute.xlu1 %10250 }
 0xcb2   : > { %v12297_v38 = vpop.f32.mrb[104].mxu1 }
 0xcb3   : > { %v9804_v10 = vadd.f32 %v12297_v38, %v16584_v33  ;;  %v9795_v30 = vpop.f32.mrb[105].mxu1  ;;  %v10256_v38 = vpop.permute.xlu0 %10255 }
 0xcb4   : > { %v9796_v58 = vadd.f32 %v16584_v33, %v9795_v30  ;;  %v12298_v43 = vpop.f32.mrb[106].mxu1 }
 0xcb5   : > { %v10351_v25 = vsel %vm9892_vm1, %v10186_v56, %v9804_v10  ;;  %v9807_v59 = vadd.f32 %v12298_v43, %v16584_v33  ;;  %v9798_v24 = vpop.f32.mrb[107].mxu1  ;;  %v10261_v10 = vpop.permute.xlu1 %10260 }
 0xcb6   : > { %10432 = vst.msk [vmem:[%s16592_s18 + $0x1d0] sm:$0xff] %vm10373_vm2, %v10351_v25  ;;  %v10349_v47 = vsel %vm9892_vm1, %v10176_v49, %v9796_v58  ;;  %v9799_v28 = vadd.f32 %v16584_v33, %v9798_v24 }
 0xcb7   : > { %10430 = vst.msk [vmem:[%s16592_s18 + $0x1c0] sm:$0xff] %vm10373_vm2, %v10349_v47  ;;  %v10352_v46 = vsel %vm9892_vm1, %v10191_v4, %v9807_v59  ;;  %v10266_v43 = vpop.permute.xlu0 %10265 }
 0xcb8   : > { %10433 = vst.msk [vmem:[%s16592_s18 + $0x1d8] sm:$0xff] %vm10373_vm2, %v10352_v46  ;;  %v10350_v36 = vsel %vm9892_vm1, %v10181_v1, %v9799_v28 }
 0xcb9   : > { %10431 = vst.msk [vmem:[%s16592_s18 + $0x1c8] sm:$0xff] %vm10373_vm2, %v10350_v36  ;;  %v10271_v28 = vpop.permute.xlu1 %10270 }
 0xcc6   : > { %v12301_v34 = vpop.f32.mrb[108].mxu1 }
 0xcc7   : > { %v9820_v61 = vadd.f32 %v12301_v34, %v16584_v33  ;;  %v9811_v44 = vpop.f32.mrb[109].mxu1  ;;  %v10276_v34 = vpop.permute.xlu0 %10275 }
 0xcc8   : > { %v9812_v45 = vadd.f32 %v16584_v33, %v9811_v44  ;;  %v12302_v15 = vpop.f32.mrb[110].mxu1 }
 0xcc9   : > { %v10355_v51 = vsel %vm9892_vm1, %v10206_v48, %v9820_v61  ;;  %v9823_v32 = vadd.f32 %v12302_v15, %v16584_v33  ;;  %v9814_v3 = vpop.f32.mrb[111].mxu1  ;;  %v10281_v61 = vpop.permute.xlu1 %10280 }
 0xcca   : > { %10436 = vst.msk [vmem:[%s16592_s18 + $0x1f0] sm:$0xff] %vm10373_vm2, %v10355_v51  ;;  %v10353_v2 = vsel %vm9892_vm1, %v10196_v7, %v9812_v45  ;;  %v9815_v63 = vadd.f32 %v16584_v33, %v9814_v3 }
 0xccb   : > { %10434 = vst.msk [vmem:[%s16592_s18 + $0x1e0] sm:$0xff] %vm10373_vm2, %v10353_v2  ;;  %v10356_v31 = vsel %vm9892_vm1, %v10211_v9, %v9823_v32  ;;  %v10286_v15 = vpop.permute.xlu0 %10285 }
 0xccc   : > { %10437 = vst.msk [vmem:[%s16592_s18 + $0x1f8] sm:$0xff] %vm10373_vm2, %v10356_v31  ;;  %v10354_v22 = vsel %vm9892_vm1, %v10201_v42, %v9815_v63 }
 0xccd   : > { %10435 = vst.msk [vmem:[%s16592_s18 + $0x1e8] sm:$0xff] %vm10373_vm2, %v10354_v22  ;;  %v10291_v63 = vpop.permute.xlu1 %10290 }
 0xcdc   : > { %v12305_v19 = vpop.f32.mrb[112].mxu1 }
 0xcdd   : > { %v9836_v11 = vadd.f32 %v12305_v19, %v16584_v33  ;;  %v9827_v23 = vpop.f32.mrb[113].mxu1 }
 0xcde   : > { %v9828_v35 = vadd.f32 %v16584_v33, %v9827_v23  ;;  %v12306_v39 = vpop.f32.mrb[114].mxu1 }
 0xcdf   : > { %v10359_v53 = vsel %vm9892_vm1, %v10226_v8, %v9836_v11  ;;  %v9839_v60 = vadd.f32 %v12306_v39, %v16584_v33  ;;  %v9830_v52 = vpop.f32.mrb[115].mxu1 }
 0xce0   : > { %10440 = vst.msk [vmem:[%s16592_s18 + $0x210] sm:$0xff] %vm10373_vm2, %v10359_v53  ;;  %v10357_v40 = vsel %vm9892_vm1, %v10216_v41, %v9828_v35  ;;  %v9831_v16 = vadd.f32 %v16584_v33, %v9830_v52 }
 0xce1   : > { %10438 = vst.msk [vmem:[%s16592_s18 + $0x200] sm:$0xff] %vm10373_vm2, %v10357_v40  ;;  %v10360_v54 = vsel %vm9892_vm1, %v10231_v29, %v9839_v60 }
 0xce2   : > { %10441 = vst.msk [vmem:[%s16592_s18 + $0x218] sm:$0xff] %vm10373_vm2, %v10360_v54  ;;  %v10358_v50 = vsel %vm9892_vm1, %v10221_v18, %v9831_v16 }
 0xce3   : > { %10439 = vst.msk [vmem:[%s16592_s18 + $0x208] sm:$0xff] %vm10373_vm2, %v10358_v50 }
 0xced   : > { %v12309_v6 = vpop.f32.mrb[116].mxu1 }
 0xcee   : > { %v9852_v55 = vadd.f32 %v12309_v6, %v16584_v33  ;;  %v9843_v5 = vpop.f32.mrb[117].mxu1 }
 0xcef   : > { %v9844_v20 = vadd.f32 %v16584_v33, %v9843_v5  ;;  %v12310_v13 = vpop.f32.mrb[118].mxu1 }
 0xcf0   : > { %v10363_v57 = vsel %vm9892_vm1, %v10246_v26, %v9852_v55  ;;  %v9855_v14 = vadd.f32 %v12310_v13, %v16584_v33  ;;  %v9846_v37 = vpop.f32.mrb[119].mxu1 }
 0xcf1   : > { %10444 = vst.msk [vmem:[%s16592_s18 + $0x230] sm:$0xff] %vm10373_vm2, %v10363_v57  ;;  %v10361_v12 = vsel %vm9892_vm1, %v10236_v0, %v9844_v20  ;;  %v9847_v62 = vadd.f32 %v16584_v33, %v9846_v37 }
 0xcf2   : > { %10442 = vst.msk [vmem:[%s16592_s18 + $0x220] sm:$0xff] %vm10373_vm2, %v10361_v12  ;;  %v10364_v49 = vsel %vm9892_vm1, %v10251_v21, %v9855_v14 }
 0xcf3   : > { %10445 = vst.msk [vmem:[%s16592_s18 + $0x238] sm:$0xff] %vm10373_vm2, %v10364_v49  ;;  %v10362_v1 = vsel %vm9892_vm1, %v10241_v17, %v9847_v62 }
 0xcf4   : > { %10443 = vst.msk [vmem:[%s16592_s18 + $0x228] sm:$0xff] %vm10373_vm2, %v10362_v1 }
 0xd01   : > { %v12313_v30 = vpop.f32.mrb[120].mxu1 }
 0xd02   : > { %v9868_v56 = vadd.f32 %v12313_v30, %v16584_v33  ;;  %v9859_v58 = vpop.f32.mrb[121].mxu1 }
 0xd03   : > { %v9860_v25 = vadd.f32 %v16584_v33, %v9859_v58  ;;  %v12314_v59 = vpop.f32.mrb[122].mxu1 }
 0xd04   : > { %v10367_v24 = vsel %vm9892_vm1, %v10266_v43, %v9868_v56  ;;  %v9871_v4 = vadd.f32 %v12314_v59, %v16584_v33  ;;  %v9862_v47 = vpop.f32.mrb[123].mxu1 }
 0xd05   : > { %10448 = vst.msk [vmem:[%s16592_s18 + $0x250] sm:$0xff] %vm10373_vm2, %v10367_v24  ;;  %v10365_v46 = vsel %vm9892_vm1, %v10256_v38, %v9860_v25  ;;  %v9863_v36 = vadd.f32 %v16584_v33, %v9862_v47 }
 0xd06   : > { %10446 = vst.msk [vmem:[%s16592_s18 + $0x240] sm:$0xff] %vm10373_vm2, %v10365_v46  ;;  %v10368_v7 = vsel %vm9892_vm1, %v10271_v28, %v9871_v4 }
 0xd07   : > { %10449 = vst.msk [vmem:[%s16592_s18 + $0x258] sm:$0xff] %vm10373_vm2, %v10368_v7  ;;  %v10366_v42 = vsel %vm9892_vm1, %v10261_v10, %v9863_v36 }
 0xd08   : > { %10447 = vst.msk [vmem:[%s16592_s18 + $0x248] sm:$0xff] %vm10373_vm2, %v10366_v42 }
 0xd17   : > { %v12317_v44 = vpop.f32.mrb[124].mxu1 }
 0xd18   : > { %v9884_v48 = vadd.f32 %v12317_v44, %v16584_v33  ;;  %v9875_v45 = vpop.f32.mrb[125].mxu1 }
 0xd19   : > { %v9876_v51 = vadd.f32 %v16584_v33, %v9875_v45  ;;  %v12318_v32 = vpop.f32.mrb[126].mxu1 }
 0xd1a   : > { %v10371_v3 = vsel %vm9892_vm1, %v10286_v15, %v9884_v48  ;;  %v9887_v9 = vadd.f32 %v12318_v32, %v16584_v33  ;;  %v9878_v2 = vpop.f32.mrb[127].mxu1 }
 0xd1b   : > { %10452 = vst.msk [vmem:[%s16592_s18 + $0x270] sm:$0xff] %vm10373_vm2, %v10371_v3  ;;  %v10369_v31 = vsel %vm9892_vm1, %v10276_v34, %v9876_v51  ;;  %v9879_v22 = vadd.f32 %v16584_v33, %v9878_v2 }
 0xd1c   : > { %10450 = vst.msk [vmem:[%s16592_s18 + $0x260] sm:$0xff] %vm10373_vm2, %v10369_v31  ;;  %v10372_v41 = vsel %vm9892_vm1, %v10291_v63, %v9887_v9 }
 0xd1d   : > { %10453 = vst.msk [vmem:[%s16592_s18 + $0x278] sm:$0xff] %vm10373_vm2, %v10372_v41  ;;  %v10370_v18 = vsel %vm9892_vm1, %v10281_v61, %v9879_v22 }
 0xd1e   : > { %10451 = vst.msk [vmem:[%s16592_s18 + $0x268] sm:$0xff] %vm10373_vm2, %v10370_v18 }
 0xd1f PF: > { %s22_s21 = sadd.s32 1, %s12909_s21  }
 0xd20   : > { %p19_p4 = scmp.ge.s32.totalorder %s22_s21, 10  }
 0xd22   :  { %21 = sbr.rel (!%p19_p4) target bundleno = 1 (0x1), region = 113 }

</bundles_post_ra>
